<compile_context>
chip_gen: v7x
topology: tpu7x:2x2x1
jax: 0.10.0
libtpu: 0.0.40
codegen_flags: <defaults>
</compile_context>

<pallas_src>
import jax
import jax.numpy as jnp
from jax.experimental import pallas as pl
from jax.experimental.pallas import tpu as pltpu


# ----------------------------------------------------------------------------
# Fused kernel: im2col-matmul conv + folded-BN bias + ReLU + avg-pool (matmul)
#               + Linear, for Bblk samples per grid step.
# ----------------------------------------------------------------------------
def _lite_judging_kernel(patches_ref, w_ref, bias_ref, pool_ref, wfc_ref,
                         bfc_ref, o_ref):
    # patches_ref: (Bblk, H*W, Kp)      bf16  pre-computed im2col patches
    # w_ref:       (Kp, Cout)           bf16  conv weight, BN scale folded, K-padded
    # bias_ref:    (1, Cout)            f32   folded BN bias
    # pool_ref:    (Bblk, Bblk*H*W)     bf16  block-diagonal 1/(H*W) pooling matrix
    # wfc_ref:     (Cout, 128)          bf16  fc weight^T, zero-padded to 128 lanes
    # bfc_ref:     (1, 128)             f32   fc bias, zero-padded
    # o_ref:       (Bblk, 128)          f32   output rows (first 2 lanes = logits)
    bblk, hw, kp = patches_ref.shape

    # conv3x3 as ONE im2col matmul (bf16 x bf16 -> f32 on the MXU).
    p2 = patches_ref[...].reshape(bblk * hw, kp)            # leading-dim merge
    y = jnp.dot(p2, w_ref[...], preferred_element_type=jnp.float32)
    y = jnp.maximum(y + bias_ref[...], 0.0)                  # folded BN + ReLU

    # Global average pool as a block-diagonal matmul (stays on the MXU).
    pooled = jnp.dot(pool_ref[...], y.astype(jnp.bfloat16),
                     preferred_element_type=jnp.float32)     # (Bblk, Cout)
    # LiteBlock4's post-pool ReLU is a no-op here (mean of non-negative values).

    # fc(128 -> 2), lane-dense against the zero-padded (Cout, 128) bf16 weight.
    logits = jnp.dot(pooled.astype(jnp.bfloat16), wfc_ref[...],
                     preferred_element_type=jnp.float32)     # (Bblk, 128)
    o_ref[...] = logits + bfc_ref[...]


def lite_judging_forward(x_nchw, params):
    """NCHW input -> (B, 2) logits, matching the PyTorch module (eval-mode BN)."""
    B, Cin, H, W = x_nchw.shape
    HW = H * W
    K = 9 * Cin
    Kp, Cout = params["conv_w_folded"].shape                 # K padded to 128-multiple

    # Samples per grid step; multiple of 8 so the output store is a full
    # (8,128) tile.  Tune upward (e.g. 32-128) for large B on v6e.
    BBLK = 8
    n_steps = pl.cdiv(B, BBLK)
    B_pad = n_steps * BBLK

    # ---- im2col in the (jit-fused) wrapper: lane-dense bf16 patch matrix ----
    # transpose + cast + pad + shifted slices + concat fuse under jit; the
    # kernel never touches half-lane / sublane-misaligned data.
    x = jnp.transpose(x_nchw, (0, 2, 3, 1)).astype(jnp.bfloat16)   # NHWC bf16
    x_p = jnp.pad(x, ((0, 0), (1, 1), (1, 1), (0, 0)))
    cols = [x_p[:, dy:dy + H, dx:dx + W, :]                         # (B,H,W,Cin)
            for dy in range(3) for dx in range(3)]                  # (dy,dx,Cin) order
    patches = jnp.concatenate(cols, axis=-1).reshape(B, HW, K)      # (B,HW,576)
    patches = jnp.pad(patches, ((0, B_pad - B), (0, 0), (0, Kp - K)))

    # Block-diagonal pooling matrix: row b averages rows [b*HW, (b+1)*HW).
    pool_mat = jnp.kron(jnp.eye(BBLK, dtype=jnp.float32),
                        jnp.full((1, HW), 1.0 / HW, jnp.float32)).astype(jnp.bfloat16)

    out = pl.pallas_call(
        _lite_judging_kernel,
        out_shape=jax.ShapeDtypeStruct((B_pad, 128), jnp.float32),
        grid=(n_steps,),
        in_specs=[
            pl.BlockSpec((BBLK, HW, Kp), lambda b: (b, 0, 0)),
            pl.BlockSpec((Kp, Cout), lambda b: (0, 0)),
            pl.BlockSpec((1, Cout), lambda b: (0, 0)),
            pl.BlockSpec((BBLK, BBLK * HW), lambda b: (0, 0)),
            pl.BlockSpec((Cout, 128), lambda b: (0, 0)),
            pl.BlockSpec((1, 128), lambda b: (0, 0)),
        ],
        out_specs=pl.BlockSpec((BBLK, 128), lambda b: (b, 0)),
        compiler_params=pltpu.CompilerParams(
            dimension_semantics=("parallel",),
            vmem_limit_bytes=32 * 1024 * 1024),
    )(patches, params["conv_w_folded"], params["conv_bias"],
      pool_mat, params["fc_w_pad"], params["fc_b_pad"])

    return out[:B, :2]                                       # (B, 2) logits


# ----------------------------------------------------------------------------
# Deterministic, synthetic parameters (BatchNorm evaluated in inference mode,
# folded into conv weight scale + bias; K zero-padded to a 128 multiple).
# ----------------------------------------------------------------------------
def _fold_bn(gamma, beta, mean, var, eps=1e-5):
    scale = gamma / jnp.sqrt(var + eps)
    return scale, beta - mean * scale


def make_params(key, cin=64, cout=128, n_cls=2):
    ks = jax.random.split(key, 7)
    w_hwio = 0.05 * jax.random.normal(ks[0], (3, 3, cin, cout), jnp.float32)
    gamma = 1.0 + 0.1 * jax.random.normal(ks[1], (cout,), jnp.float32)
    beta = 0.1 * jax.random.normal(ks[2], (cout,), jnp.float32)
    mean = 0.1 * jax.random.normal(ks[3], (cout,), jnp.float32)
    var = 1.0 + 0.1 * jax.random.uniform(ks[4], (cout,), jnp.float32)
    scale, bias = _fold_bn(gamma, beta, mean, var)

    # Fold BN scale into the conv weight; reshape HWIO -> (9*Cin, Cout)
    # (row order (ky, kx, ci) matches the wrapper's (dy, dx, ci) patch order),
    # zero-pad K to a multiple of 128 lanes, cast to bf16.
    k = 9 * cin
    kp = ((k + 127) // 128) * 128
    w_folded = (w_hwio * scale[None, None, None, :]).reshape(k, cout)
    w_folded = jnp.pad(w_folded, ((0, kp - k), (0, 0))).astype(jnp.bfloat16)

    # fc: PyTorch Linear weight (out, in) and bias (out,). Store transposed and
    # zero-padded to 128 output lanes (bf16) so the kernel's store is lane-dense.
    w_fc = 0.1 * jax.random.normal(ks[5], (n_cls, cout), jnp.float32)
    b_fc = 0.1 * jax.random.normal(ks[6], (n_cls,), jnp.float32)
    fc_w_pad = (jnp.zeros((cout, 128), jnp.float32)
                .at[:, :n_cls].set(w_fc.T).astype(jnp.bfloat16))
    fc_b_pad = jnp.zeros((1, 128), jnp.float32).at[0, :n_cls].set(b_fc)

    return {
        "conv_w_folded": w_folded,                               # (Kp, Cout) bf16
        "conv_bias": bias.reshape(1, cout).astype(jnp.float32),  # (1, Cout)  f32
        "fc_w_pad": fc_w_pad,                                    # (Cout,128) bf16
        "fc_b_pad": fc_b_pad,                                    # (1, 128)   f32
    }


if __name__ == "__main__":
    key = jax.random.PRNGKey(0)
    k_x, k_p = jax.random.split(key)

    # LiteJudgingModule expects 64 input channels; small NCHW input.
    x = jax.random.normal(k_x, (2, 64, 16, 16), jnp.float32)
    params = make_params(k_p)

    fwd = jax.jit(lite_judging_forward)
    y = fwd(x, params)
    jax.block_until_ready(y)

    assert y.shape == (2, 2), y.shape
    assert bool(jnp.all(jnp.isfinite(y)))
    print("KERNEL_OK")
</pallas_src>

<mosaic_0001>
module attributes {stable_mosaic.version = 11 : i64} {
  func.func @_lite_judging_kernel(%arg0: i32, %arg1: memref<8x256x640xbf16, #tpu.memory_space<vmem>>, %arg2: memref<640x128xbf16, #tpu.memory_space<vmem>>, %arg3: memref<1x128xf32, #tpu.memory_space<vmem>>, %arg4: memref<8x2048xbf16, #tpu.memory_space<vmem>>, %arg5: memref<128x128xbf16, #tpu.memory_space<vmem>>, %arg6: memref<1x128xf32, #tpu.memory_space<vmem>>, %arg7: memref<8x128xf32, #tpu.memory_space<vmem>>) attributes {dimension_semantics = [#tpu.dimension_semantics<parallel>], iteration_bounds = array<i64: 1>, scalar_prefetch = 0 : i64, scratch_operands = 0 : i64, tpu.core_type = #tpu.core_type<tc>, window_params = [{transform_indices = @transform_0, window_bounds = array<i64: 8, 256, 640>}, {pipeline_mode = #tpu.pipeline_mode<synchronous>, transform_indices = @transform_1, window_bounds = array<i64: 640, 128>}, {pipeline_mode = #tpu.pipeline_mode<synchronous>, transform_indices = @transform_2, window_bounds = array<i64: 1, 128>}, {pipeline_mode = #tpu.pipeline_mode<synchronous>, transform_indices = @transform_3, window_bounds = array<i64: 8, 2048>}, {pipeline_mode = #tpu.pipeline_mode<synchronous>, transform_indices = @transform_4, window_bounds = array<i64: 128, 128>}, {pipeline_mode = #tpu.pipeline_mode<synchronous>, transform_indices = @transform_5, window_bounds = array<i64: 1, 128>}, {transform_indices = @transform_6, window_bounds = array<i64: 8, 128>}]} {
    %c0 = arith.constant 0 : index
    %c0_0 = arith.constant 0 : index
    %c0_1 = arith.constant 0 : index
    %0 = vector.load %arg1[%c0, %c0_0, %c0_1] : memref<8x256x640xbf16, #tpu.memory_space<vmem>>, vector<8x256x640xbf16>
    %1 = vector.shape_cast %0 : vector<8x256x640xbf16> to vector<2048x640xbf16>
    %c0_2 = arith.constant 0 : index
    %c0_3 = arith.constant 0 : index
    %2 = vector.load %arg2[%c0_2, %c0_3] : memref<640x128xbf16, #tpu.memory_space<vmem>>, vector<640x128xbf16>
    %cst = arith.constant dense<0.000000e+00> : vector<2048x128xf32>
    %3 = tpu.matmul %1, %2, %cst {dimension_numbers = #tpu.dot_dimension_numbers<[1], [0], [0], [1], [0, 0, 1, 1], [], []>} : vector<2048x640xbf16>, vector<640x128xbf16>, vector<2048x128xf32> -> vector<2048x128xf32>
    %c0_4 = arith.constant 0 : index
    %c0_5 = arith.constant 0 : index
    %4 = vector.load %arg3[%c0_4, %c0_5] : memref<1x128xf32, #tpu.memory_space<vmem>>, vector<1x128xf32>
    %5 = vector.broadcast %4 : vector<1x128xf32> to vector<2048x128xf32>
    %6 = arith.addf %3, %5 : vector<2048x128xf32>
    %cst_6 = arith.constant 0.000000e+00 : f32
    %7 = vector.broadcast %cst_6 : f32 to vector<2048x128xf32>
    %8 = arith.maximumf %6, %7 : vector<2048x128xf32>
    %c0_7 = arith.constant 0 : index
    %c0_8 = arith.constant 0 : index
    %9 = vector.load %arg4[%c0_7, %c0_8] : memref<8x2048xbf16, #tpu.memory_space<vmem>>, vector<8x2048xbf16>
    %10 = arith.truncf %8 : vector<2048x128xf32> to vector<2048x128xbf16>
    %cst_9 = arith.constant dense<0.000000e+00> : vector<8x128xf32>
    %11 = tpu.matmul %9, %10, %cst_9 {dimension_numbers = #tpu.dot_dimension_numbers<[1], [0], [0], [1], [0, 0, 1, 1], [], []>} : vector<8x2048xbf16>, vector<2048x128xbf16>, vector<8x128xf32> -> vector<8x128xf32>
    %12 = arith.truncf %11 : vector<8x128xf32> to vector<8x128xbf16>
    %c0_10 = arith.constant 0 : index
    %c0_11 = arith.constant 0 : index
    %13 = vector.load %arg5[%c0_10, %c0_11] : memref<128x128xbf16, #tpu.memory_space<vmem>>, vector<128x128xbf16>
    %cst_12 = arith.constant dense<0.000000e+00> : vector<8x128xf32>
    %14 = tpu.matmul %12, %13, %cst_12 {dimension_numbers = #tpu.dot_dimension_numbers<[1], [0], [0], [1], [0, 0, 1, 1], [], []>} : vector<8x128xbf16>, vector<128x128xbf16>, vector<8x128xf32> -> vector<8x128xf32>
    %c0_13 = arith.constant 0 : index
    %c0_14 = arith.constant 0 : index
    %15 = vector.load %arg6[%c0_13, %c0_14] : memref<1x128xf32, #tpu.memory_space<vmem>>, vector<1x128xf32>
    %16 = vector.broadcast %15 : vector<1x128xf32> to vector<8x128xf32>
    %17 = arith.addf %14, %16 : vector<8x128xf32>
    %c0_15 = arith.constant 0 : index
    %c0_16 = arith.constant 0 : index
    %18 = vector.load %arg7[%c0_15, %c0_16] : memref<8x128xf32, #tpu.memory_space<vmem>>, vector<8x128xf32>
    tpu.vector_store %arg7[%c0_15, %c0_16], %17 {strides = array<i32>} : memref<8x128xf32, #tpu.memory_space<vmem>>, vector<8x128xf32>,
    return
  }
  func.func @transform_0(%arg0: i32) -> (i32, i32, i32) {
    %c0_i32 = arith.constant 0 : i32
    %c0_i32_0 = arith.constant 0 : i32
    %c0_i32_1 = arith.constant 0 : i32
    return %arg0, %c0_i32, %c0_i32_0 : i32, i32, i32
  }
  func.func @transform_1(%arg0: i32) -> (i32, i32) {
    %c0_i32 = arith.constant 0 : i32
    %c0_i32_0 = arith.constant 0 : i32
    %c0_i32_1 = arith.constant 0 : i32
    return %c0_i32, %c0_i32_0 : i32, i32
  }
  func.func @transform_2(%arg0: i32) -> (i32, i32) {
    %c0_i32 = arith.constant 0 : i32
    %c0_i32_0 = arith.constant 0 : i32
    %c0_i32_1 = arith.constant 0 : i32
    return %c0_i32, %c0_i32_0 : i32, i32
  }
  func.func @transform_3(%arg0: i32) -> (i32, i32) {
    %c0_i32 = arith.constant 0 : i32
    %c0_i32_0 = arith.constant 0 : i32
    %c0_i32_1 = arith.constant 0 : i32
    return %c0_i32, %c0_i32_0 : i32, i32
  }
  func.func @transform_4(%arg0: i32) -> (i32, i32) {
    %c0_i32 = arith.constant 0 : i32
    %c0_i32_0 = arith.constant 0 : i32
    %c0_i32_1 = arith.constant 0 : i32
    return %c0_i32, %c0_i32_0 : i32, i32
  }
  func.func @transform_5(%arg0: i32) -> (i32, i32) {
    %c0_i32 = arith.constant 0 : i32
    %c0_i32_0 = arith.constant 0 : i32
    %c0_i32_1 = arith.constant 0 : i32
    return %c0_i32, %c0_i32_0 : i32, i32
  }
  func.func @transform_6(%arg0: i32) -> (i32, i32) {
    %c0_i32 = arith.constant 0 : i32
    %c0_i32_0 = arith.constant 0 : i32
    return %arg0, %c0_i32 : i32, i32
  }
}

</mosaic_0001>

<bundles_post_ra>
// kernel: lite_judging_forward.1
= control target key start
LH: loop header
LB: loop body
LE: loop exit
PB: predicated region body
PF: predicated region fallthrough
CT: control target
= control target key end

     0   :  { %v11431_v0 = vmov 0   ;;  %vm11433_vm0 = vmmov 0   ;;  %s15407_s1 = inlined_call_operand.vmem [shape: bf16[640,128], index: 1, kind: input, shape index: {}]   ;;  %s15408_s0 = inlined_call_operand.vmem [shape: bf16[8,256,640], index: 0, kind: input, shape index: {}]   ;;  %s15409_s2 = inlined_call_operand.vmem [shape: f32[1,128], index: 2, kind: input, shape index: {}]   ;;  %s15410_s3 = inlined_call_operand.vmem [shape: bf16[8,2048], index: 3, kind: input, shape index: {}]   ;;  %s15411_s4 = inlined_call_operand.vmem [shape: bf16[128,128], index: 4, kind: input, shape index: {}]   ;;  %s15412_s5 = inlined_call_operand.vmem [shape: f32[1,128], index: 5, kind: input, shape index: {}]   ;;  %s15413_s6 = inlined_call_operand.vmem [shape: f32[8,128], index: 6, kind: output, shape index: {}]  }
   0x1   :  { %4447 = vmatprep.subr.bf16.mxu0 %v11431_v0  ;;  %9822 = vmatprep.subr.bf16.mxu1 %v11431_v0  ;;  %v10467_v1 = vld [vmem:[%s15407_s1] sm:$0xff]   ;;  %v10468_v2 = vld [vmem:[%s15407_s1 + $0x8] sm:$0xff]   ;;  %v10469_v3 = vld [vmem:[%s15407_s1 + $0x10] sm:$0xff]  }
   0x2   :  { %4448 = vmatpush1.bf16.msra.mxu0 %v10467_v1  ;;  %9838 = vmatpush1.bf16.msra.mxu1 %v10467_v1  ;;  %v10470_v4 = vld [vmem:[%s15407_s1 + $0x18] sm:$0xff]   ;;  %v10471_v5 = vld [vmem:[%s15407_s1 + $0x20] sm:$0xff]   ;;  %v10472_v7 = vld [vmem:[%s15407_s1 + $0x28] sm:$0xff]  }
   0x3   :  { %4449 = vmatprep.subr.bf16.mxu0 %v11431_v0  ;;  %9823 = vmatprep.subr.bf16.mxu1 %v11431_v0  ;;  %v10485_v6 = vld [vmem:[%s15408_s0 + $0x4] ss:$20 sps:$4 sm:$0xff]   ;;  %v10488_v8 = vld [vmem:[%s15408_s0 + $0x7ac] ss:$20 sps:$4 sm:$0xff]   ;;  %v10473_v9 = vld [vmem:[%s15407_s1 + $0x30] sm:$0xff]  }
   0x4   :  { %4479 = vmatprep.mubr.bf16.mxu0 %v10485_v6  ;;  %4871 = vmatprep.mubr.bf16.mxu1 %v10488_v8  ;;  %v10474_v10 = vld [vmem:[%s15407_s1 + $0x38] sm:$0xff]   ;;  %v10475_v11 = vld [vmem:[%s15407_s1 + $0x40] sm:$0xff]   ;;  %v10476_v12 = vld [vmem:[%s15407_s1 + $0x48] sm:$0xff]  }
   0x5   :  { %v10477_v13 = vld [vmem:[%s15407_s1 + $0x50] sm:$0xff]   ;;  %v10478_v14 = vld [vmem:[%s15407_s1 + $0x58] sm:$0xff]   ;;  %v10479_v15 = vld [vmem:[%s15407_s1 + $0x60] sm:$0xff]  }
   0x6   :  { %4450 = vmatpush1.bf16.msra.mxu0 %v10468_v2  ;;  %9839 = vmatpush1.bf16.msra.mxu1 %v10468_v2  ;;  %v10480_v16 = vld [vmem:[%s15407_s1 + $0x68] sm:$0xff]   ;;  %v10481_v17 = vld [vmem:[%s15407_s1 + $0x70] sm:$0xff]   ;;  %v10482_v18 = vld [vmem:[%s15407_s1 + $0x78] sm:$0xff]  }
   0x7   :  { %4451 = vmatprep.subr.bf16.mxu0 %v11431_v0  ;;  %9824 = vmatprep.subr.bf16.mxu1 %v11431_v0  ;;  %v10483_v19 = vld [vmem:[%s15408_s0] ss:$20 sps:$4 sm:$0xff]   ;;  %v10486_v20 = vld [vmem:[%s15408_s0 + $0x7a8] ss:$20 sps:$4 sm:$0xff]   ;;  %v10495_v26 = vld [vmem:[%s15408_s0 + $0x7d0] ss:$20 sps:$4 sm:$0xff]  }
   0x8   :  { %v10489_v21 = vld [vmem:[%s15407_s1 + $0x80] sm:$0xff]   ;;  %v10492_v23 = vld [vmem:[%s15408_s0 + $0x7d4] ss:$20 sps:$4 sm:$0xff]   ;;  %v10498_v28 = vld [vmem:[%s15408_s0 + $0x7fc] ss:$20 sps:$4 sm:$0xff]  }
   0x9   :  { %v10490_v22 = vld [vmem:[%s15408_s0 + $0x2c] ss:$20 sps:$4 sm:$0xff]   ;;  %v10494_v25 = vld [vmem:[%s15408_s0 + $0x28] ss:$20 sps:$4 sm:$0xff]   ;;  %v10527_v29 = vld [vmem:[%s15407_s1 + $0x90] sm:$0xff]  }
   0xa   :  { %4452 = vmatpush1.bf16.msra.mxu0 %v10469_v3  ;;  %9840 = vmatpush1.bf16.msra.mxu1 %v10469_v3  ;;  %v10508_v24 = vld [vmem:[%s15407_s1 + $0x88] sm:$0xff]   ;;  %v10546_v30 = vld [vmem:[%s15407_s1 + $0x98] sm:$0xff]   ;;  %v10500_v31 = vld [vmem:[%s15408_s0 + $0x50] ss:$20 sps:$4 sm:$0xff]  }
   0xb   :  { %4453 = vmatprep.subr.bf16.mxu0 %v11431_v0  ;;  %9825 = vmatprep.subr.bf16.mxu1 %v11431_v0  ;;  %v10496_v27 = vld [vmem:[%s15408_s0 + $0x54] ss:$20 sps:$4 sm:$0xff]   ;;  %v10501_v32 = vld [vmem:[%s15408_s0 + $0x7f8] ss:$20 sps:$4 sm:$0xff]   ;;  %v10502_v33 = vld [vmem:[%s15408_s0 + $0x7c] ss:$20 sps:$4 sm:$0xff]  }
   0xc   :  { %v10504_v34 = vld [vmem:[%s15408_s0 + $0x824] ss:$20 sps:$4 sm:$0xff]   ;;  %v10584_v36 = vld [vmem:[%s15407_s1 + $0xa8] sm:$0xff]   ;;  %v10507_v38 = vld [vmem:[%s15408_s0 + $0x820] ss:$20 sps:$4 sm:$0xff]  }
   0xd   :  { %v10565_v35 = vld [vmem:[%s15407_s1 + $0xa0] sm:$0xff]   ;;  %v10506_v37 = vld [vmem:[%s15408_s0 + $0x78] ss:$20 sps:$4 sm:$0xff]   ;;  %v10603_v41 = vld [vmem:[%s15407_s1 + $0xb0] sm:$0xff]  }
   0xe   :  { %4454 = vmatpush1.bf16.msra.mxu0 %v10470_v4  ;;  %9841 = vmatpush1.bf16.msra.mxu1 %v10470_v4  ;;  %v10509_v39 = vld [vmem:[%s15408_s0 + $0xa4] ss:$20 sps:$4 sm:$0xff]   ;;  %v10511_v40 = vld [vmem:[%s15408_s0 + $0x84c] ss:$20 sps:$4 sm:$0xff]   ;;  %v10514_v43 = vld [vmem:[%s15408_s0 + $0x848] ss:$20 sps:$4 sm:$0xff]  }
   0xf   :  { %4455 = vmatprep.subr.bf16.mxu0 %v11431_v0  ;;  %9826 = vmatprep.subr.bf16.mxu1 %v11431_v0  ;;  %v10513_v42 = vld [vmem:[%s15408_s0 + $0xa0] ss:$20 sps:$4 sm:$0xff]   ;;  %v10519_v46 = vld [vmem:[%s15408_s0 + $0xc8] ss:$20 sps:$4 sm:$0xff]   ;;  %v10520_v47 = vld [vmem:[%s15408_s0 + $0x870] ss:$20 sps:$4 sm:$0xff]  }
  0x10   :  { %v10515_v44 = vld [vmem:[%s15408_s0 + $0xcc] ss:$20 sps:$4 sm:$0xff]   ;;  %v10517_v45 = vld [vmem:[%s15408_s0 + $0x874] ss:$20 sps:$4 sm:$0xff]   ;;  %v10523_v49 = vld [vmem:[%s15408_s0 + $0x89c] ss:$20 sps:$4 sm:$0xff]  }
  0x11   :  { %v10521_v48 = vld [vmem:[%s15408_s0 + $0xf4] ss:$20 sps:$4 sm:$0xff]   ;;  %v10622_v50 = vld [vmem:[%s15407_s1 + $0xb8] sm:$0xff]   ;;  %v10525_v51 = vld [vmem:[%s15408_s0 + $0xf0] ss:$20 sps:$4 sm:$0xff]  }
  0x12   :  { %4456 = vmatpush1.bf16.msra.mxu0 %v10471_v5  ;;  %9842 = vmatpush1.bf16.msra.mxu1 %v10471_v5  ;;  %v10526_v52 = vld [vmem:[%s15408_s0 + $0x898] ss:$20 sps:$4 sm:$0xff]   ;;  %v10528_v53 = vld [vmem:[%s15408_s0 + $0x11c] ss:$20 sps:$4 sm:$0xff]   ;;  %v10533_v56 = vld [vmem:[%s15408_s0 + $0x8c0] ss:$20 sps:$4 sm:$0xff]  }
  0x13   :  { %4457 = vmatprep.subr.bf16.mxu0 %v11431_v0  ;;  %9827 = vmatprep.subr.bf16.mxu1 %v11431_v0  ;;  %v10530_v54 = vld [vmem:[%s15408_s0 + $0x8c4] ss:$20 sps:$4 sm:$0xff]   ;;  %v10536_v58 = vld [vmem:[%s15408_s0 + $0x8ec] ss:$20 sps:$4 sm:$0xff]   ;;  %v10539_v60 = vld [vmem:[%s15408_s0 + $0x8e8] ss:$20 sps:$4 sm:$0xff]  }
  0x14   :  { %v10532_v55 = vld [vmem:[%s15408_s0 + $0x118] ss:$20 sps:$4 sm:$0xff]   ;;  %v10538_v59 = vld [vmem:[%s15408_s0 + $0x140] ss:$20 sps:$4 sm:$0xff]   ;;  %v10544_v1 = vld [vmem:[%s15408_s0 + $0x168] ss:$20 sps:$4 sm:$0xff]  }
  0x15   :  { %v10534_v57 = vld [vmem:[%s15408_s0 + $0x144] ss:$20 sps:$4 sm:$0xff]   ;;  %v10540_v61 = vld [vmem:[%s15408_s0 + $0x16c] ss:$20 sps:$4 sm:$0xff]   ;;  %v10542_v62 = vld [vmem:[%s15408_s0 + $0x914] ss:$20 sps:$4 sm:$0xff]  }
  0x16   :  { %4458 = vmatpush1.bf16.msra.mxu0 %v10472_v7  ;;  %9843 = vmatpush1.bf16.msra.mxu1 %v10472_v7  ;;  %v10641_v63 = vld [vmem:[%s15407_s1 + $0xc0] sm:$0xff]   ;;  %v10547_v3 = vld [vmem:[%s15408_s0 + $0x194] ss:$20 sps:$4 sm:$0xff]   ;;  %v10549_v4 = vld [vmem:[%s15408_s0 + $0x93c] ss:$20 sps:$4 sm:$0xff]  }
  0x17   :  { %4459 = vmatprep.subr.bf16.mxu0 %v11431_v0  ;;  %9828 = vmatprep.subr.bf16.mxu1 %v11431_v0  ;;  %v10545_v2 = vld [vmem:[%s15408_s0 + $0x910] ss:$20 sps:$4 sm:$0xff]   ;;  %v10552_v6 = vld [vmem:[%s15408_s0 + $0x938] ss:$20 sps:$4 sm:$0xff]  }
  0x18   :  { %v10551_v5 = vld [vmem:[%s15408_s0 + $0x190] ss:$20 sps:$4 sm:$0xff]  }
  0x19   :  { %v10553_v7 = vld [vmem:[%s15408_s0 + $0x1bc] ss:$20 sps:$4 sm:$0xff]   ;;  %v10555_v8 = vld [vmem:[%s15408_s0 + $0x964] ss:$20 sps:$4 sm:$0xff]  }
  0x1a   :  { %4460 = vmatpush1.bf16.msra.mxu0 %v10473_v9  ;;  %9844 = vmatpush1.bf16.msra.mxu1 %v10473_v9  ;;  %v10557_v9 = vld [vmem:[%s15408_s0 + $0x1b8] ss:$20 sps:$4 sm:$0xff]  }
  0x1b   :  { %4461 = vmatprep.subr.bf16.mxu0 %v11431_v0  ;;  %9829 = vmatprep.subr.bf16.mxu1 %v11431_v0 }
  0x1e   :  { %4462 = vmatpush1.bf16.msra.mxu0 %v10474_v10  ;;  %9845 = vmatpush1.bf16.msra.mxu1 %v10474_v10  ;;  %v10558_v10 = vld [vmem:[%s15408_s0 + $0x960] ss:$20 sps:$4 sm:$0xff]  }
  0x1f   :  { %4463 = vmatprep.subr.bf16.mxu0 %v11431_v0  ;;  %9830 = vmatprep.subr.bf16.mxu1 %v11431_v0 }
  0x22   :  { %4464 = vmatpush1.bf16.msra.mxu0 %v10475_v11  ;;  %9846 = vmatpush1.bf16.msra.mxu1 %v10475_v11  ;;  %v10559_v11 = vld [vmem:[%s15408_s0 + $0x1e4] ss:$20 sps:$4 sm:$0xff]  }
  0x23   :  { %4465 = vmatprep.subr.bf16.mxu0 %v11431_v0  ;;  %9831 = vmatprep.subr.bf16.mxu1 %v11431_v0 }
  0x26   :  { %4466 = vmatpush1.bf16.msra.mxu0 %v10476_v12  ;;  %9847 = vmatpush1.bf16.msra.mxu1 %v10476_v12  ;;  %v10561_v12 = vld [vmem:[%s15408_s0 + $0x98c] ss:$20 sps:$4 sm:$0xff]  }
  0x27   :  { %4467 = vmatprep.subr.bf16.mxu0 %v11431_v0  ;;  %9832 = vmatprep.subr.bf16.mxu1 %v11431_v0 }
  0x2a   :  { %4468 = vmatpush1.bf16.msra.mxu0 %v10477_v13  ;;  %9848 = vmatpush1.bf16.msra.mxu1 %v10477_v13  ;;  %v10660_v13 = vld [vmem:[%s15407_s1 + $0xc8] sm:$0xff]  }
  0x2b   :  { %4469 = vmatprep.subr.bf16.mxu0 %v11431_v0  ;;  %9833 = vmatprep.subr.bf16.mxu1 %v11431_v0 }
  0x2e   :  { %4470 = vmatpush1.bf16.msra.mxu0 %v10478_v14  ;;  %9849 = vmatpush1.bf16.msra.mxu1 %v10478_v14  ;;  %v10563_v14 = vld [vmem:[%s15408_s0 + $0x1e0] ss:$20 sps:$4 sm:$0xff]  }
  0x2f   :  { %4471 = vmatprep.subr.bf16.mxu0 %v11431_v0  ;;  %9834 = vmatprep.subr.bf16.mxu1 %v11431_v0 }
  0x32   :  { %4472 = vmatpush1.bf16.msra.mxu0 %v10479_v15  ;;  %9850 = vmatpush1.bf16.msra.mxu1 %v10479_v15  ;;  %v10564_v15 = vld [vmem:[%s15408_s0 + $0x988] ss:$20 sps:$4 sm:$0xff]  }
  0x33   :  { %4473 = vmatprep.subr.bf16.mxu0 %v11431_v0  ;;  %9835 = vmatprep.subr.bf16.mxu1 %v11431_v0 }
  0x36   :  { %4474 = vmatpush1.bf16.msra.mxu0 %v10480_v16  ;;  %9851 = vmatpush1.bf16.msra.mxu1 %v10480_v16  ;;  %v10566_v16 = vld [vmem:[%s15408_s0 + $0x20c] ss:$20 sps:$4 sm:$0xff]  }
  0x37   :  { %4475 = vmatprep.subr.bf16.mxu0 %v11431_v0  ;;  %9836 = vmatprep.subr.bf16.mxu1 %v11431_v0 }
  0x3a   :  { %4476 = vmatpush1.bf16.msra.mxu0 %v10481_v17  ;;  %9852 = vmatpush1.bf16.msra.mxu1 %v10481_v17  ;;  %v10568_v17 = vld [vmem:[%s15408_s0 + $0x9b4] ss:$20 sps:$4 sm:$0xff]  }
  0x3b   :  { %4477 = vmatprep.subr.bf16.mxu0 %v11431_v0  ;;  %9837 = vmatprep.subr.bf16.mxu1 %v11431_v0 }
  0x3e   :  { %4478 = vmatpush1.bf16.msra.mxu0 %v10482_v18  ;;  %9853 = vmatpush1.bf16.msra.mxu1 %v10482_v18  ;;  %v10570_v18 = vld [vmem:[%s15408_s0 + $0x208] ss:$20 sps:$4 sm:$0xff]  }
  0x3f   :  { %5504 = vmatprep.subr.bf16.mxu0 %v11431_v0 }
  0x41   :  { %4480 = vmatmul.mubr.bf16.vlgmr.msra.gmra.mrb[0].mxu0 %v10483_v19  ;;  %4872 = vmatmul.mubr.bf16.vlgmr.msra.gmra.mrb[0].mxu1 %v10486_v20  ;;  %v10571_v19 = vld [vmem:[%s15408_s0 + $0x9b0] ss:$20 sps:$4 sm:$0xff]   ;;  %v10572_v20 = vld [vmem:[%s15408_s0 + $0x234] ss:$20 sps:$4 sm:$0xff]  }
  0x42   :  { %5505 = vmatpush1.bf16.msra.mxu0 %v10489_v21  ;;  %4487 = vmatprep.mubr.bf16.mxu0 %v10490_v22  ;;  %v10574_v21 = vld [vmem:[%s15408_s0 + $0x9dc] ss:$20 sps:$4 sm:$0xff]  }
  0x43   :  { %4879 = vmatprep.mubr.bf16.mxu1 %v10492_v23  ;;  %5506 = vmatprep.subr.bf16.mxu0 %v11431_v0  ;;  %v10576_v22 = vld [vmem:[%s15408_s0 + $0x230] ss:$20 sps:$4 sm:$0xff]   ;;  %v10577_v23 = vld [vmem:[%s15408_s0 + $0x9d8] ss:$20 sps:$4 sm:$0xff]  }
  0x46   :  { %5507 = vmatpush1.bf16.msra.mxu0 %v10508_v24  ;;  %v10578_v24 = vld [vmem:[%s15408_s0 + $0x25c] ss:$20 sps:$4 sm:$0xff]  }
  0x47   :  { %5508 = vmatprep.subr.bf16.mxu0 %v11431_v0 }
  0x49   :  { %4488 = vmatmul.mubr.bf16.gmra.mrb[4].mxu0 %v10494_v25  ;;  %4880 = vmatmul.mubr.bf16.gmra.mrb[4].mxu1 %v10495_v26  ;;  %v10580_v25 = vld [vmem:[%s15408_s0 + $0xa04] ss:$20 sps:$4 sm:$0xff]   ;;  %v10679_v26 = vld [vmem:[%s15407_s1 + $0xd0] sm:$0xff]  }
  0x4a   :  { %4495 = vmatprep.mubr.bf16.mxu0 %v10496_v27  ;;  %4887 = vmatprep.mubr.bf16.mxu1 %v10498_v28  ;;  %v10582_v27 = vld [vmem:[%s15408_s0 + $0x258] ss:$20 sps:$4 sm:$0xff]   ;;  %v10583_v28 = vld [vmem:[%s15408_s0 + $0xa00] ss:$20 sps:$4 sm:$0xff]  }
  0x4b   :  { %5509 = vmatpush1.bf16.msra.mxu0 %v10527_v29  ;;  %v10585_v29 = vld [vmem:[%s15408_s0 + $0x284] ss:$20 sps:$4 sm:$0xff]  }
  0x4c   :  { %5510 = vmatprep.subr.bf16.mxu0 %v11431_v0 }
  0x4f   :  { %5511 = vmatpush1.bf16.msra.mxu0 %v10546_v30  ;;  %v10587_v30 = vld [vmem:[%s15408_s0 + $0xa2c] ss:$20 sps:$4 sm:$0xff]  }
  0x50   :  { %5512 = vmatprep.subr.bf16.mxu0 %v11431_v0 }
  0x51   :  { %4496 = vmatmul.mubr.bf16.gmra.mrb[8].mxu0 %v10500_v31  ;;  %4888 = vmatmul.mubr.bf16.gmra.mrb[8].mxu1 %v10501_v32  ;;  %v10589_v31 = vld [vmem:[%s15408_s0 + $0x280] ss:$20 sps:$4 sm:$0xff]   ;;  %v10590_v32 = vld [vmem:[%s15408_s0 + $0xa28] ss:$20 sps:$4 sm:$0xff]  }
  0x52   :  { %4503 = vmatprep.mubr.bf16.mxu0 %v10502_v33  ;;  %4895 = vmatprep.mubr.bf16.mxu1 %v10504_v34  ;;  %v10591_v33 = vld [vmem:[%s15408_s0 + $0x2ac] ss:$20 sps:$4 sm:$0xff]   ;;  %v10593_v34 = vld [vmem:[%s15408_s0 + $0xa54] ss:$20 sps:$4 sm:$0xff]  }
  0x53   :  { %5513 = vmatpush1.bf16.msra.mxu0 %v10565_v35  ;;  %v10595_v35 = vld [vmem:[%s15408_s0 + $0x2a8] ss:$20 sps:$4 sm:$0xff]  }
  0x54   :  { %5514 = vmatprep.subr.bf16.mxu0 %v11431_v0 }
  0x57   :  { %5515 = vmatpush1.bf16.msra.mxu0 %v10584_v36  ;;  %v10596_v36 = vld [vmem:[%s15408_s0 + $0xa50] ss:$20 sps:$4 sm:$0xff]  }
  0x58   :  { %5516 = vmatprep.subr.bf16.mxu0 %v11431_v0 }
  0x59   :  { %4504 = vmatmul.mubr.bf16.gmra.mrb[12].mxu0 %v10506_v37  ;;  %4896 = vmatmul.mubr.bf16.gmra.mrb[12].mxu1 %v10507_v38  ;;  %v10597_v37 = vld [vmem:[%s15408_s0 + $0x2d4] ss:$20 sps:$4 sm:$0xff]   ;;  %v10599_v38 = vld [vmem:[%s15408_s0 + $0xa7c] ss:$20 sps:$4 sm:$0xff]  }
  0x5a   :  { %4511 = vmatprep.mubr.bf16.mxu0 %v10509_v39  ;;  %4903 = vmatprep.mubr.bf16.mxu1 %v10511_v40  ;;  %v10698_v39 = vld [vmem:[%s15407_s1 + $0x100] sm:$0xff]   ;;  %v10703_v40 = vld [vmem:[%s15407_s1 + $0xd8] sm:$0xff]  }
  0x5b   :  { %5517 = vmatpush1.bf16.msra.mxu0 %v10603_v41  ;;  %v10601_v41 = vld [vmem:[%s15408_s0 + $0x2d0] ss:$20 sps:$4 sm:$0xff]   ;;  %9530 = vmatprep.subr.bf16.mxu1 %v10698_v39 }
  0x5c   :  { %5518 = vmatprep.subr.bf16.mxu0 %v11431_v0  ;;  %9531 = vmatpush3.bf16.msra.mxu1 %v10698_v39 }
  0x5f   :  { %5519 = vmatpush1.bf16.msra.mxu0 %v10622_v50  ;;  %v10615_v50 = vld [vmem:[%s15408_s0 + $0xac8] ss:$20 sps:$4 sm:$0xff]  }
  0x60   :  { %5520 = vmatprep.subr.bf16.mxu0 %v11431_v0 }
  0x61   :  { %4512 = vmatmul.mubr.bf16.gmra.mrb[16].mxu0 %v10513_v42  ;;  %4904 = vmatmul.mubr.bf16.gmra.mrb[16].mxu1 %v10514_v43  ;;  %v10602_v42 = vld [vmem:[%s15408_s0 + $0xa78] ss:$20 sps:$4 sm:$0xff]   ;;  %v10604_v43 = vld [vmem:[%s15408_s0 + $0x2fc] ss:$20 sps:$4 sm:$0xff]  }
  0x62   :  { %4519 = vmatprep.mubr.bf16.mxu0 %v10515_v44  ;;  %4911 = vmatprep.mubr.bf16.mxu1 %v10517_v45  ;;  %v10606_v44 = vld [vmem:[%s15408_s0 + $0xaa4] ss:$20 sps:$4 sm:$0xff]  }
  0x63   :  { %5521 = vmatpush1.bf16.msra.mxu0 %v10641_v63  ;;  %v10608_v45 = vld [vmem:[%s15408_s0 + $0x2f8] ss:$20 sps:$4 sm:$0xff]   ;;  %v10634_v63 = vld [vmem:[%s15408_s0 + $0xb40] ss:$20 sps:$4 sm:$0xff]  }
  0x64   :  { %5522 = vmatprep.subr.bf16.mxu0 %v11431_v0 }
  0x67   :  { %5523 = vmatpush1.bf16.msra.mxu0 %v10660_v13  ;;  %v10653_v13 = vld [vmem:[%s15408_s0 + $0xbb8] ss:$20 sps:$4 sm:$0xff]  }
  0x68   :  { %5524 = vmatprep.subr.bf16.mxu0 %v11431_v0 }
  0x69   :  { %4520 = vmatmul.mubr.bf16.gmra.mrb[20].mxu0 %v10519_v46  ;;  %4912 = vmatmul.mubr.bf16.gmra.mrb[20].mxu1 %v10520_v47  ;;  %v10609_v46 = vld [vmem:[%s15408_s0 + $0xaa0] ss:$20 sps:$4 sm:$0xff]   ;;  %v10610_v47 = vld [vmem:[%s15408_s0 + $0x324] ss:$20 sps:$4 sm:$0xff]  }
  0x6a   :  { %4527 = vmatprep.mubr.bf16.mxu0 %v10521_v48  ;;  %4919 = vmatprep.mubr.bf16.mxu1 %v10523_v49  ;;  %v10612_v48 = vld [vmem:[%s15408_s0 + $0xacc] ss:$20 sps:$4 sm:$0xff]  }
  0x6b   :  { %5525 = vmatpush1.bf16.msra.mxu0 %v10679_v26  ;;  %v10614_v49 = vld [vmem:[%s15408_s0 + $0x320] ss:$20 sps:$4 sm:$0xff]  }
  0x6c   :  { %5526 = vmatprep.subr.bf16.mxu0 %v11431_v0  ;;  %v10665_v26 = vld [vmem:[%s15408_s0 + $0x460] ss:$20 sps:$4 sm:$0xff]  }
  0x6f   :  { %5527 = vmatpush1.bf16.msra.mxu0 %v10703_v40 }
  0x70   :  { %5528 = vmatprep.subr.bf16.mxu0 %v11431_v0 }
  0x71   :  { %4528 = vmatmul.mubr.bf16.gmra.mrb[24].mxu0 %v10525_v51  ;;  %4920 = vmatmul.mubr.bf16.gmra.mrb[24].mxu1 %v10526_v52  ;;  %v10616_v51 = vld [vmem:[%s15408_s0 + $0x34c] ss:$20 sps:$4 sm:$0xff]   ;;  %v10618_v52 = vld [vmem:[%s15408_s0 + $0xaf4] ss:$20 sps:$4 sm:$0xff]  }
  0x72   :  { %4535 = vmatprep.mubr.bf16.mxu0 %v10528_v53  ;;  %4927 = vmatprep.mubr.bf16.mxu1 %v10530_v54  ;;  %v10722_v53 = vld [vmem:[%s15407_s1 + $0xe0] sm:$0xff]   ;;  %v10620_v54 = vld [vmem:[%s15408_s0 + $0x348] ss:$20 sps:$4 sm:$0xff]  }
  0x73   :  { %5529 = vmatpush1.bf16.msra.mxu0 %v10722_v53  ;;  %v10686_v53 = vld [vmem:[%s15408_s0 + $0x504] ss:$20 sps:$4 sm:$0xff]  }
  0x74   :  { %5530 = vmatprep.subr.bf16.mxu0 %v11431_v0 }
  0x79   :  { %4536 = vmatmul.mubr.bf16.gmra.mrb[28].mxu0 %v10532_v55  ;;  %4928 = vmatmul.mubr.bf16.gmra.mrb[28].mxu1 %v10533_v56  ;;  %v10621_v55 = vld [vmem:[%s15408_s0 + $0xaf0] ss:$20 sps:$4 sm:$0xff]   ;;  %v10623_v56 = vld [vmem:[%s15408_s0 + $0x374] ss:$20 sps:$4 sm:$0xff]  }
  0x7a   :  { %4543 = vmatprep.mubr.bf16.mxu0 %v10534_v57  ;;  %4935 = vmatprep.mubr.bf16.mxu1 %v10536_v58  ;;  %v10625_v57 = vld [vmem:[%s15408_s0 + $0xb1c] ss:$20 sps:$4 sm:$0xff]  }
  0x7b   :  { %v10627_v58 = vld [vmem:[%s15408_s0 + $0x370] ss:$20 sps:$4 sm:$0xff]  }
  0x81   :  { %4544 = vmatmul.mubr.bf16.gmra.mrb[32].mxu0 %v10538_v59  ;;  %4936 = vmatmul.mubr.bf16.gmra.mrb[32].mxu1 %v10539_v60  ;;  %v10628_v59 = vld [vmem:[%s15408_s0 + $0xb18] ss:$20 sps:$4 sm:$0xff]   ;;  %v10629_v60 = vld [vmem:[%s15408_s0 + $0x39c] ss:$20 sps:$4 sm:$0xff]  }
  0x82   :  { %4551 = vmatprep.mubr.bf16.mxu0 %v10540_v61  ;;  %4943 = vmatprep.mubr.bf16.mxu1 %v10542_v62  ;;  %v10631_v61 = vld [vmem:[%s15408_s0 + $0xb44] ss:$20 sps:$4 sm:$0xff]  }
  0x83   :  { %v10633_v62 = vld [vmem:[%s15408_s0 + $0x398] ss:$20 sps:$4 sm:$0xff]  }
  0x89   :  { %4552 = vmatmul.mubr.bf16.gmra.mrb[36].mxu0 %v10544_v1  ;;  %4944 = vmatmul.mubr.bf16.gmra.mrb[36].mxu1 %v10545_v2  ;;  %v10635_v1 = vld [vmem:[%s15408_s0 + $0x3c4] ss:$20 sps:$4 sm:$0xff]   ;;  %v10637_v2 = vld [vmem:[%s15408_s0 + $0xb6c] ss:$20 sps:$4 sm:$0xff]  }
  0x8a   :  { %4559 = vmatprep.mubr.bf16.mxu0 %v10547_v3  ;;  %4951 = vmatprep.mubr.bf16.mxu1 %v10549_v4  ;;  %v10639_v3 = vld [vmem:[%s15408_s0 + $0x3c0] ss:$20 sps:$4 sm:$0xff]   ;;  %v10640_v4 = vld [vmem:[%s15408_s0 + $0xb68] ss:$20 sps:$4 sm:$0xff]  }
  0x91   :  { %4560 = vmatmul.mubr.bf16.gmra.mrb[40].mxu0 %v10551_v5  ;;  %4952 = vmatmul.mubr.bf16.gmra.mrb[40].mxu1 %v10552_v6  ;;  %v10642_v5 = vld [vmem:[%s15408_s0 + $0x3ec] ss:$20 sps:$4 sm:$0xff]   ;;  %v10644_v6 = vld [vmem:[%s15408_s0 + $0xb94] ss:$20 sps:$4 sm:$0xff]  }
  0x92   :  { %4567 = vmatprep.mubr.bf16.mxu0 %v10553_v7  ;;  %4959 = vmatprep.mubr.bf16.mxu1 %v10555_v8  ;;  %v10743_v7 = vld [vmem:[%s15407_s1 + $0xe8] sm:$0xff]  }
  0x93   :  { %v10646_v8 = vld [vmem:[%s15408_s0 + $0x3e8] ss:$20 sps:$4 sm:$0xff]   ;;  %5531 = vmatpush1.bf16.msra.mxu0 %v10743_v7 }
  0x94   :  { %5532 = vmatprep.subr.bf16.mxu0 %v11431_v0  ;;  %v10701_v7 = vld [vmem:[%s15408_s0 + $0xcfc] ss:$20 sps:$4 sm:$0xff]  }
  0x99   :  { %4568 = vmatmul.mubr.bf16.gmra.mrb[44].mxu0 %v10557_v9  ;;  %4960 = vmatmul.mubr.bf16.gmra.mrb[44].mxu1 %v10558_v10  ;;  %v10647_v9 = vld [vmem:[%s15408_s0 + $0xb90] ss:$20 sps:$4 sm:$0xff]   ;;  %v10648_v10 = vld [vmem:[%s15408_s0 + $0x414] ss:$20 sps:$4 sm:$0xff]  }
  0x9a   :  { %4575 = vmatprep.mubr.bf16.mxu0 %v10559_v11  ;;  %4967 = vmatprep.mubr.bf16.mxu1 %v10561_v12  ;;  %v10650_v11 = vld [vmem:[%s15408_s0 + $0xbbc] ss:$20 sps:$4 sm:$0xff]  }
  0x9b   :  { %v10652_v12 = vld [vmem:[%s15408_s0 + $0x410] ss:$20 sps:$4 sm:$0xff]  }
  0xa1   :  { %4576 = vmatmul.mubr.bf16.gmra.mrb[48].mxu0 %v10563_v14  ;;  %4968 = vmatmul.mubr.bf16.gmra.mrb[48].mxu1 %v10564_v15  ;;  %v10654_v14 = vld [vmem:[%s15408_s0 + $0x43c] ss:$20 sps:$4 sm:$0xff]   ;;  %v10656_v15 = vld [vmem:[%s15408_s0 + $0xbe4] ss:$20 sps:$4 sm:$0xff]  }
  0xa2   :  { %4583 = vmatprep.mubr.bf16.mxu0 %v10566_v16  ;;  %4975 = vmatprep.mubr.bf16.mxu1 %v10568_v17  ;;  %v10658_v16 = vld [vmem:[%s15408_s0 + $0x438] ss:$20 sps:$4 sm:$0xff]   ;;  %v10659_v17 = vld [vmem:[%s15408_s0 + $0xbe0] ss:$20 sps:$4 sm:$0xff]  }
  0xa9   :  { %4584 = vmatmul.mubr.bf16.gmra.mrb[52].mxu0 %v10570_v18  ;;  %4976 = vmatmul.mubr.bf16.gmra.mrb[52].mxu1 %v10571_v19  ;;  %v10661_v19 = vld [vmem:[%s15408_s0 + $0x464] ss:$20 sps:$4 sm:$0xff]  }
  0xaa   :  { %4591 = vmatprep.mubr.bf16.mxu0 %v10572_v20  ;;  %4983 = vmatprep.mubr.bf16.mxu1 %v10574_v21  ;;  %v10663_v20 = vld [vmem:[%s15408_s0 + $0xc0c] ss:$20 sps:$4 sm:$0xff]  }
  0xb1   :  { %4592 = vmatmul.mubr.bf16.gmra.mrb[56].mxu0 %v10576_v22  ;;  %4984 = vmatmul.mubr.bf16.gmra.mrb[56].mxu1 %v10577_v23 }
  0xb2   :  { %4599 = vmatprep.mubr.bf16.mxu0 %v10578_v24  ;;  %4991 = vmatprep.mubr.bf16.mxu1 %v10580_v25  ;;  %v10762_v24 = vld [vmem:[%s15407_s1 + $0xf0] sm:$0xff]   ;;  %v10763_v25 = vld [vmem:[%s15407_s1 + $0x108] sm:$0xff]  }
  0xb3   :  { %5533 = vmatpush1.bf16.msra.mxu0 %v10762_v24  ;;  %9532 = vmatprep.subr.bf16.mxu1 %v10763_v25  ;;  %v10712_v24 = vld [vmem:[%s15408_s0 + $0x5a4] ss:$20 sps:$4 sm:$0xff]  }
  0xb4   :  { %9533 = vmatpush3.bf16.msra.mxu1 %v10763_v25  ;;  %5534 = vmatprep.subr.bf16.mxu0 %v11431_v0  ;;  %v10673_v0 = vld [vmem:[%s15408_s0 + $0x4b4] ss:$20 sps:$4 sm:$0xff]   ;;  %v10714_v25 = vld [vmem:[%s15408_s0 + $0xd4c] ss:$20 sps:$4 sm:$0xff]  }
  0xb9   :  { %4600 = vmatmul.mubr.bf16.gmra.mrb[60].mxu0 %v10582_v27  ;;  %4992 = vmatmul.mubr.bf16.gmra.mrb[60].mxu1 %v10583_v28  ;;  %v10666_v27 = vld [vmem:[%s15408_s0 + $0xc08] ss:$20 sps:$4 sm:$0xff]  }
  0xba   :  { %4607 = vmatprep.mubr.bf16.mxu0 %v10585_v29  ;;  %4999 = vmatprep.mubr.bf16.mxu1 %v10587_v30  ;;  %v10667_v29 = vld [vmem:[%s15408_s0 + $0x48c] ss:$20 sps:$4 sm:$0xff]   ;;  %v10669_v30 = vld [vmem:[%s15408_s0 + $0xc34] ss:$20 sps:$4 sm:$0xff]  }
  0xc1   :  { %4608 = vmatmul.mubr.bf16.gmra.mrb[64].mxu0 %v10589_v31  ;;  %5000 = vmatmul.mubr.bf16.gmra.mrb[64].mxu1 %v10590_v32 }
  0xc2   :  { %4615 = vmatprep.mubr.bf16.mxu0 %v10591_v33  ;;  %5007 = vmatprep.mubr.bf16.mxu1 %v10593_v34  ;;  %v10671_v34 = vld [vmem:[%s15408_s0 + $0x488] ss:$20 sps:$4 sm:$0xff]  }
  0xc9   :  { %4616 = vmatmul.mubr.bf16.gmra.mrb[68].mxu0 %v10595_v35  ;;  %5008 = vmatmul.mubr.bf16.gmra.mrb[68].mxu1 %v10596_v36  ;;  %v10672_v35 = vld [vmem:[%s15408_s0 + $0xc30] ss:$20 sps:$4 sm:$0xff]  }
  0xca   :  { %4623 = vmatprep.mubr.bf16.mxu0 %v10597_v37  ;;  %5015 = vmatprep.mubr.bf16.mxu1 %v10599_v38  ;;  %v10675_v37 = vld [vmem:[%s15408_s0 + $0xc5c] ss:$20 sps:$4 sm:$0xff]  }
  0xd1   :  { %4624 = vmatmul.mubr.bf16.gmra.mrb[72].mxu0 %v10601_v41  ;;  %5016 = vmatmul.mubr.bf16.gmra.mrb[72].mxu1 %v10602_v42  ;;  %v10677_v41 = vld [vmem:[%s15408_s0 + $0x4b0] ss:$20 sps:$4 sm:$0xff]   ;;  %v10678_v42 = vld [vmem:[%s15408_s0 + $0xc58] ss:$20 sps:$4 sm:$0xff]  }
  0xd2   :  { %4631 = vmatprep.mubr.bf16.mxu0 %v10604_v43  ;;  %5023 = vmatprep.mubr.bf16.mxu1 %v10606_v44  ;;  %v10680_v44 = vld [vmem:[%s15408_s0 + $0x4dc] ss:$20 sps:$4 sm:$0xff]  }
  0xd9   :  { %4632 = vmatmul.mubr.bf16.gmra.mrb[76].mxu0 %v10608_v45  ;;  %5024 = vmatmul.mubr.bf16.gmra.mrb[76].mxu1 %v10609_v46  ;;  %v10682_v45 = vld [vmem:[%s15408_s0 + $0xc84] ss:$20 sps:$4 sm:$0xff]  }
  0xda   :  { %4639 = vmatprep.mubr.bf16.mxu0 %v10610_v47  ;;  %5031 = vmatprep.mubr.bf16.mxu1 %v10612_v48 }
  0xe1   :  { %4640 = vmatmul.mubr.bf16.gmra.mrb[80].mxu0 %v10614_v49  ;;  %5032 = vmatmul.mubr.bf16.gmra.mrb[80].mxu1 %v10615_v50  ;;  %v10782_v49 = vld [vmem:[%s15407_s1 + $0xf8] sm:$0xff]  }
  0xe2   :  { %4647 = vmatprep.mubr.bf16.mxu0 %v10616_v51  ;;  %5039 = vmatprep.mubr.bf16.mxu1 %v10618_v52  ;;  %v10684_v50 = vld [vmem:[%s15408_s0 + $0x4d8] ss:$20 sps:$4 sm:$0xff]   ;;  %v10685_v51 = vld [vmem:[%s15408_s0 + $0xc80] ss:$20 sps:$4 sm:$0xff]  }
  0xe3   :  { %5535 = vmatpush1.bf16.msra.mxu0 %v10782_v49 }
  0xe9   :  { %4648 = vmatmul.mubr.bf16.gmra.mrb[84].mxu0 %v10620_v54  ;;  %5040 = vmatmul.mubr.bf16.gmra.mrb[84].mxu1 %v10621_v55  ;;  %v10688_v54 = vld [vmem:[%s15408_s0 + $0xcac] ss:$20 sps:$4 sm:$0xff]  }
  0xea   :  { %4655 = vmatprep.mubr.bf16.mxu0 %v10623_v56  ;;  %5047 = vmatprep.mubr.bf16.mxu1 %v10625_v57 }
  0xf1   :  { %4656 = vmatmul.mubr.bf16.gmra.mrb[88].mxu0 %v10627_v58  ;;  %5048 = vmatmul.mubr.bf16.gmra.mrb[88].mxu1 %v10628_v59  ;;  %v10690_v58 = vld [vmem:[%s15408_s0 + $0x500] ss:$20 sps:$4 sm:$0xff]   ;;  %v10691_v59 = vld [vmem:[%s15408_s0 + $0xca8] ss:$20 sps:$4 sm:$0xff]  }
  0xf2   :  { %4663 = vmatprep.mubr.bf16.mxu0 %v10629_v60  ;;  %5055 = vmatprep.mubr.bf16.mxu1 %v10631_v61  ;;  %v10692_v61 = vld [vmem:[%s15408_s0 + $0x52c] ss:$20 sps:$4 sm:$0xff]  }
  0xf9   :  { %4664 = vmatmul.mubr.bf16.gmra.mrb[92].mxu0 %v10633_v62  ;;  %5056 = vmatmul.mubr.bf16.gmra.mrb[92].mxu1 %v10634_v63  ;;  %v10694_v62 = vld [vmem:[%s15408_s0 + $0xcd4] ss:$20 sps:$4 sm:$0xff]  }
  0xfa   :  { %4671 = vmatprep.mubr.bf16.mxu0 %v10635_v1  ;;  %5063 = vmatprep.mubr.bf16.mxu1 %v10637_v2 }
 0x101   :  { %4672 = vmatmul.mubr.bf16.gmra.mrb[96].mxu0 %v10639_v3  ;;  %5064 = vmatmul.mubr.bf16.gmra.mrb[96].mxu1 %v10640_v4  ;;  %v10696_v3 = vld [vmem:[%s15408_s0 + $0x528] ss:$20 sps:$4 sm:$0xff]   ;;  %v10697_v4 = vld [vmem:[%s15408_s0 + $0xcd0] ss:$20 sps:$4 sm:$0xff]  }
 0x102   :  { %4679 = vmatprep.mubr.bf16.mxu0 %v10642_v5  ;;  %5071 = vmatprep.mubr.bf16.mxu1 %v10644_v6  ;;  %v10699_v6 = vld [vmem:[%s15408_s0 + $0x554] ss:$20 sps:$4 sm:$0xff]  }
 0x109   :  { %4680 = vmatmul.mubr.bf16.gmra.mrb[100].mxu0 %v10646_v8  ;;  %5072 = vmatmul.mubr.bf16.gmra.mrb[100].mxu1 %v10647_v9 }
 0x10a   :  { %4687 = vmatprep.mubr.bf16.mxu0 %v10648_v10  ;;  %5079 = vmatprep.mubr.bf16.mxu1 %v10650_v11  ;;  %v10704_v11 = vld [vmem:[%s15408_s0 + $0x550] ss:$20 sps:$4 sm:$0xff]  }
 0x111   :  { %4688 = vmatmul.mubr.bf16.gmra.mrb[104].mxu0 %v10652_v12  ;;  %5080 = vmatmul.mubr.bf16.gmra.mrb[104].mxu1 %v10653_v13  ;;  %v10705_v12 = vld [vmem:[%s15408_s0 + $0xcf8] ss:$20 sps:$4 sm:$0xff]  }
 0x112   :  { %4695 = vmatprep.mubr.bf16.mxu0 %v10654_v14  ;;  %5087 = vmatprep.mubr.bf16.mxu1 %v10656_v15  ;;  %v10706_v14 = vld [vmem:[%s15408_s0 + $0x57c] ss:$20 sps:$4 sm:$0xff]   ;;  %v10708_v15 = vld [vmem:[%s15408_s0 + $0xd24] ss:$20 sps:$4 sm:$0xff]  }
 0x114   :  { %v11945_v18 = vpop.f32.mrb[0].mxu1 }
 0x115   :  { %15414 = vst [vmem:[#allocation2_spill] sm:$0xff] %v11945_v18  ;;  %v4875_v21 = vpop.f32.mrb[1].mxu1  ;;  %v11100_v18 = vld [vmem:[%s15408_s0 + $0x768] ss:$20 sps:$4 sm:$0xff]  }
 0x116   :  { %v11953_v22 = vpop.f32.mrb[2].mxu1  ;;  %v10711_v21 = vld [vmem:[%s15408_s0 + $0xd20] ss:$20 sps:$4 sm:$0xff]  }
 0x117   :  { %15415 = vst [vmem:[#allocation3_spill] sm:$0xff] %v11953_v22  ;;  %v4878_v23 = vpop.f32.mrb[3].mxu1  ;;  %v11099_v22 = vld [vmem:[%s15408_s0 + $0x850] ss:$20 sps:$4 sm:$0xff]  }
 0x119   :  { %4696 = vmatmul.mubr.bf16.gmra.mrb[108].mxu0 %v10658_v16  ;;  %5088 = vmatmul.mubr.bf16.gmra.mrb[108].mxu1 %v10659_v17 }
 0x11a   :  { %4703 = vmatprep.mubr.bf16.mxu0 %v10661_v19  ;;  %5095 = vmatprep.mubr.bf16.mxu1 %v10663_v20  ;;  %v10710_v20 = vld [vmem:[%s15408_s0 + $0x578] ss:$20 sps:$4 sm:$0xff]  }
 0x11c   :  { %v11967_v28 = vpop.f32.mrb[4].mxu1 }
 0x11d   :  { %15416 = vst [vmem:[#allocation4_spill] sm:$0xff] %v11967_v28  ;;  %v4883_v31 = vpop.f32.mrb[5].mxu1  ;;  %v11095_v28 = vld [vmem:[%s15408_s0 + $0x718] ss:$20 sps:$4 sm:$0xff]  }
 0x11e   :  { %v11976_v32 = vpop.f32.mrb[6].mxu1  ;;  %v10717_v31 = vld [vmem:[%s15408_s0 + $0xd48] ss:$20 sps:$4 sm:$0xff]  }
 0x11f   :  { %15417 = vst [vmem:[#allocation5_spill] sm:$0xff] %v11976_v32  ;;  %v4886_v33 = vpop.f32.mrb[7].mxu1  ;;  %v11094_v32 = vld [vmem:[%s15408_s0 + $0x828] ss:$20 sps:$4 sm:$0xff]  }
 0x121   :  { %4704 = vmatmul.mubr.bf16.gmra.mrb[112].mxu0 %v10665_v26  ;;  %5096 = vmatmul.mubr.bf16.gmra.mrb[112].mxu1 %v10666_v27 }
 0x122   :  { %4711 = vmatprep.mubr.bf16.mxu0 %v10667_v29  ;;  %5103 = vmatprep.mubr.bf16.mxu1 %v10669_v30  ;;  %v10716_v30 = vld [vmem:[%s15408_s0 + $0x5a0] ss:$20 sps:$4 sm:$0xff]  }
 0x124   :  { %v11984_v36 = vpop.f32.mrb[8].mxu1 }
 0x125   :  { %15418 = vst [vmem:[#allocation6_spill] sm:$0xff] %v11984_v36  ;;  %v4891_v38 = vpop.f32.mrb[9].mxu1  ;;  %v11090_v36 = vld [vmem:[%s15408_s0 + $0x6c8] ss:$20 sps:$4 sm:$0xff]  }
 0x126   :  { %v11992_v39 = vpop.f32.mrb[10].mxu1 }
 0x127   :  { %15419 = vst [vmem:[#allocation7_spill] sm:$0xff] %v11992_v39  ;;  %v4894_v40 = vpop.f32.mrb[11].mxu1  ;;  %v11089_v39 = vld [vmem:[%s15408_s0 + $0x800] ss:$20 sps:$4 sm:$0xff]  }
 0x128   :  { %v10723_v40 = vld [vmem:[%s15408_s0 + $0x5c8] ss:$20 sps:$4 sm:$0xff]  }
 0x129   :  { %4712 = vmatmul.mubr.bf16.gmra.mrb[116].mxu0 %v10671_v34  ;;  %5104 = vmatmul.mubr.bf16.gmra.mrb[116].mxu1 %v10672_v35  ;;  %v10718_v34 = vld [vmem:[%s15408_s0 + $0x5cc] ss:$20 sps:$4 sm:$0xff]   ;;  %v10720_v35 = vld [vmem:[%s15408_s0 + $0xd74] ss:$20 sps:$4 sm:$0xff]  }
 0x12a   :  { %4719 = vmatprep.mubr.bf16.mxu0 %v10673_v0  ;;  %5111 = vmatprep.mubr.bf16.mxu1 %v10675_v37 }
 0x12c   :  { %v12000_v43 = vpop.f32.mrb[12].mxu1 }
 0x12d   :  { %15420 = vst [vmem:[#allocation8_spill] sm:$0xff] %v12000_v43  ;;  %v4899_v46 = vpop.f32.mrb[13].mxu1  ;;  %v11085_v43 = vld [vmem:[%s15408_s0 + $0x678] ss:$20 sps:$4 sm:$0xff]  }
 0x12e   :  { %v12008_v47 = vpop.f32.mrb[14].mxu1 }
 0x12f   :  { %15421 = vst [vmem:[#allocation9_spill] sm:$0xff] %v12008_v47  ;;  %v4902_v48 = vpop.f32.mrb[15].mxu1  ;;  %v11084_v47 = vld [vmem:[%s15408_s0 + $0x7d8] ss:$20 sps:$4 sm:$0xff]  }
 0x131   :  { %4720 = vmatmul.mubr.bf16.gmra.mrb[120].mxu0 %v10677_v41  ;;  %5112 = vmatmul.mubr.bf16.gmra.mrb[120].mxu1 %v10678_v42  ;;  %v10724_v41 = vld [vmem:[%s15408_s0 + $0xd70] ss:$20 sps:$4 sm:$0xff]  }
 0x132   :  { %4727 = vmatprep.mubr.bf16.mxu0 %v10680_v44  ;;  %5119 = vmatprep.mubr.bf16.mxu1 %v10682_v45  ;;  %v10725_v44 = vld [vmem:[%s15408_s0 + $0x5f4] ss:$20 sps:$4 sm:$0xff]   ;;  %v10727_v45 = vld [vmem:[%s15408_s0 + $0xd9c] ss:$20 sps:$4 sm:$0xff]  }
 0x134   :  { %v12019_v52 = vpop.f32.mrb[16].mxu1 }
 0x135   :  { %15422 = vst [vmem:[#allocation10_spill] sm:$0xff] %v12019_v52  ;;  %v4907_v55 = vpop.f32.mrb[17].mxu1  ;;  %v11080_v52 = vld [vmem:[%s15408_s0 + $0x628] ss:$20 sps:$4 sm:$0xff]  }
 0x136   :  { %v12027_v56 = vpop.f32.mrb[18].mxu1  ;;  %v10731_v55 = vld [vmem:[%s15408_s0 + $0x61c] ss:$20 sps:$4 sm:$0xff]  }
 0x137   :  { %15423 = vst [vmem:[#allocation11_spill] sm:$0xff] %v12027_v56  ;;  %v4910_v57 = vpop.f32.mrb[19].mxu1  ;;  %v11079_v56 = vld [vmem:[%s15408_s0 + $0x7b0] ss:$20 sps:$4 sm:$0xff]  }
 0x138   :  { %v10733_v57 = vld [vmem:[%s15408_s0 + $0xdc4] ss:$20 sps:$4 sm:$0xff]  }
 0x139   :  { %4728 = vmatmul.mubr.bf16.gmra.mrb[124].mxu0 %v10684_v50  ;;  %5120 = vmatmul.mubr.bf16.gmra.mrb[124].mxu1 %v10685_v51  ;;  %v10825_v50 = vld [vmem:[%s15407_s1 + $0x110] sm:$0xff]  }
 0x13a   :  { %4735 = vmatprep.mubr.bf16.mxu0 %v10686_v53  ;;  %5127 = vmatprep.mubr.bf16.mxu1 %v10688_v54  ;;  %v10729_v51 = vld [vmem:[%s15408_s0 + $0x5f0] ss:$20 sps:$4 sm:$0xff]   ;;  %v10730_v53 = vld [vmem:[%s15408_s0 + $0xd98] ss:$20 sps:$4 sm:$0xff]  }
 0x13b   :  { %9534 = vmatprep.subr.bf16.mxu1 %v10825_v50 }
 0x13c   :  { %v12035_v60 = vpop.f32.mrb[20].mxu1  ;;  %9535 = vmatpush3.bf16.msra.mxu1 %v10825_v50  ;;  %v10760_v50 = vld [vmem:[%s15408_s0 + $0x6b8] ss:$20 sps:$4 sm:$0xff]  }
 0x13d   :  { %15424 = vst [vmem:[#allocation12_spill] sm:$0xff] %v12035_v60  ;;  %v4915_v63 = vpop.f32.mrb[21].mxu1  ;;  %v11075_v60 = vld [vmem:[%s15408_s0 + $0x5d8] ss:$20 sps:$4 sm:$0xff]  }
 0x13e   :  { %v12043_v1 = vpop.f32.mrb[22].mxu1  ;;  %v10735_v63 = vld [vmem:[%s15408_s0 + $0x618] ss:$20 sps:$4 sm:$0xff]  }
 0x13f   :  { %15425 = vst [vmem:[#allocation13_spill] sm:$0xff] %v12043_v1  ;;  %v4918_v2 = vpop.f32.mrb[23].mxu1  ;;  %v11074_v1 = vld [vmem:[%s15408_s0 + $0x788] ss:$20 sps:$4 sm:$0xff]  }
 0x140   :  { %v10736_v2 = vld [vmem:[%s15408_s0 + $0xdc0] ss:$20 sps:$4 sm:$0xff]  }
 0x141   :  { %4736 = vmatmul.mubr.bf16.gmra.mrb[128].mxu0 %v10690_v58  ;;  %5128 = vmatmul.mubr.bf16.gmra.mrb[128].mxu1 %v10691_v59 }
 0x142   :  { %4743 = vmatprep.mubr.bf16.mxu0 %v10692_v61  ;;  %5135 = vmatprep.mubr.bf16.mxu1 %v10694_v62 }
 0x144   :  { %v12051_v5 = vpop.f32.mrb[24].mxu1 }
 0x145   :  { %15426 = vst [vmem:[#allocation14_spill] sm:$0xff] %v12051_v5  ;;  %v4923_v8 = vpop.f32.mrb[25].mxu1  ;;  %v11070_v5 = vld [vmem:[%s15408_s0 + $0x588] ss:$20 sps:$4 sm:$0xff]  }
 0x146   :  { %v12059_v9 = vpop.f32.mrb[26].mxu1 }
 0x147   :  { %15427 = vst [vmem:[#allocation15_spill] sm:$0xff] %v12059_v9  ;;  %v4926_v10 = vpop.f32.mrb[27].mxu1  ;;  %v11069_v9 = vld [vmem:[%s15408_s0 + $0x760] ss:$20 sps:$4 sm:$0xff]  }
 0x149   :  { %4744 = vmatmul.mubr.bf16.gmra.mrb[132].mxu0 %v10696_v3  ;;  %5136 = vmatmul.mubr.bf16.gmra.mrb[132].mxu1 %v10697_v4  ;;  %v10737_v4 = vld [vmem:[%s15408_s0 + $0x644] ss:$20 sps:$4 sm:$0xff]  }
 0x14a   :  { %4751 = vmatprep.mubr.bf16.mxu0 %v10699_v6  ;;  %5143 = vmatprep.mubr.bf16.mxu1 %v10701_v7  ;;  %v10739_v6 = vld [vmem:[%s15408_s0 + $0xdec] ss:$20 sps:$4 sm:$0xff]  }
 0x14c   :  { %v12067_v13 = vpop.f32.mrb[28].mxu1 }
 0x14d   :  { %15428 = vst [vmem:[#allocation16_spill] sm:$0xff] %v12067_v13  ;;  %v4931_v16 = vpop.f32.mrb[29].mxu1  ;;  %v11065_v13 = vld [vmem:[%s15408_s0 + $0x538] ss:$20 sps:$4 sm:$0xff]  }
 0x14e   :  { %v12075_v17 = vpop.f32.mrb[30].mxu1  ;;  %v10746_v16 = vld [vmem:[%s15408_s0 + $0xe14] ss:$20 sps:$4 sm:$0xff]  }
 0x14f   :  { %15429 = vst [vmem:[#allocation17_spill] sm:$0xff] %v12075_v17  ;;  %v4934_v19 = vpop.f32.mrb[31].mxu1  ;;  %v11064_v17 = vld [vmem:[%s15408_s0 + $0x738] ss:$20 sps:$4 sm:$0xff]  }
 0x151   :  { %4752 = vmatmul.mubr.bf16.gmra.mrb[136].mxu0 %v10704_v11  ;;  %5144 = vmatmul.mubr.bf16.gmra.mrb[136].mxu1 %v10705_v12  ;;  %v10741_v11 = vld [vmem:[%s15408_s0 + $0x640] ss:$20 sps:$4 sm:$0xff]   ;;  %v10742_v12 = vld [vmem:[%s15408_s0 + $0xde8] ss:$20 sps:$4 sm:$0xff]  }
 0x152   :  { %4759 = vmatprep.mubr.bf16.mxu0 %v10706_v14  ;;  %5151 = vmatprep.mubr.bf16.mxu1 %v10708_v15  ;;  %v10744_v15 = vld [vmem:[%s15408_s0 + $0x66c] ss:$20 sps:$4 sm:$0xff]  }
 0x154   :  { %v12083_v23 = vpop.f32.mrb[32].mxu1 }
 0x155   :  { %15430 = vst [vmem:[#allocation18_spill] sm:$0xff] %v12083_v23  ;;  %v4939_v26 = vpop.f32.mrb[33].mxu1  ;;  %v11060_v23 = vld [vmem:[%s15408_s0 + $0x4e8] ss:$20 sps:$4 sm:$0xff]  }
 0x156   :  { %v12091_v27 = vpop.f32.mrb[34].mxu1 }
 0x157   :  { %15431 = vst [vmem:[#allocation19_spill] sm:$0xff] %v12091_v27  ;;  %v4942_v29 = vpop.f32.mrb[35].mxu1  ;;  %v11059_v27 = vld [vmem:[%s15408_s0 + $0x710] ss:$20 sps:$4 sm:$0xff]  }
 0x158   :  { %v10750_v29 = vld [vmem:[%s15408_s0 + $0x694] ss:$20 sps:$4 sm:$0xff]  }
 0x159   :  { %4760 = vmatmul.mubr.bf16.gmra.mrb[140].mxu0 %v10710_v20  ;;  %5152 = vmatmul.mubr.bf16.gmra.mrb[140].mxu1 %v10711_v21 }
 0x15a   :  { %4767 = vmatprep.mubr.bf16.mxu0 %v10712_v24  ;;  %5159 = vmatprep.mubr.bf16.mxu1 %v10714_v25  ;;  %v10748_v24 = vld [vmem:[%s15408_s0 + $0x668] ss:$20 sps:$4 sm:$0xff]   ;;  %v10749_v25 = vld [vmem:[%s15408_s0 + $0xe10] ss:$20 sps:$4 sm:$0xff]  }
 0x15c   :  { %v12099_v33 = vpop.f32.mrb[36].mxu1 }
 0x15d   :  { %15432 = vst [vmem:[#allocation20_spill] sm:$0xff] %v12099_v33  ;;  %v4947_v0 = vpop.f32.mrb[37].mxu1  ;;  %v11055_v33 = vld [vmem:[%s15408_s0 + $0x498] ss:$20 sps:$4 sm:$0xff]  }
 0x15e   :  { %v12107_v37 = vpop.f32.mrb[38].mxu1  ;;  %v10754_v0 = vld [vmem:[%s15408_s0 + $0x690] ss:$20 sps:$4 sm:$0xff]  }
 0x15f   :  { %15433 = vst [vmem:[#allocation21_spill] sm:$0xff] %v12107_v37  ;;  %v4950_v38 = vpop.f32.mrb[39].mxu1  ;;  %v11054_v37 = vld [vmem:[%s15408_s0 + $0x6e8] ss:$20 sps:$4 sm:$0xff]  }
 0x160   :  { %v10755_v38 = vld [vmem:[%s15408_s0 + $0xe38] ss:$20 sps:$4 sm:$0xff]  }
 0x161   :  { %4768 = vmatmul.mubr.bf16.gmra.mrb[144].mxu0 %v10716_v30  ;;  %5160 = vmatmul.mubr.bf16.gmra.mrb[144].mxu1 %v10717_v31  ;;  %v10752_v30 = vld [vmem:[%s15408_s0 + $0xe3c] ss:$20 sps:$4 sm:$0xff]  }
 0x162   :  { %4775 = vmatprep.mubr.bf16.mxu0 %v10718_v34  ;;  %5167 = vmatprep.mubr.bf16.mxu1 %v10720_v35 }
 0x164   :  { %v12115_v42 = vpop.f32.mrb[40].mxu1 }
 0x165   :  { %15434 = vst [vmem:[#allocation22_spill] sm:$0xff] %v12115_v42  ;;  %v4955_v46 = vpop.f32.mrb[41].mxu1  ;;  %v11050_v42 = vld [vmem:[%s15408_s0 + $0x448] ss:$20 sps:$4 sm:$0xff]  }
 0x166   :  { %v12123_v48 = vpop.f32.mrb[42].mxu1 }
 0x167   :  { %15435 = vst [vmem:[#allocation23_spill] sm:$0xff] %v12123_v48  ;;  %v4958_v49 = vpop.f32.mrb[43].mxu1  ;;  %v11049_v48 = vld [vmem:[%s15408_s0 + $0x6c0] ss:$20 sps:$4 sm:$0xff]  }
 0x169   :  { %4776 = vmatmul.mubr.bf16.gmra.mrb[148].mxu0 %v10723_v40  ;;  %5168 = vmatmul.mubr.bf16.gmra.mrb[148].mxu1 %v10724_v41  ;;  %v10756_v41 = vld [vmem:[%s15408_s0 + $0x6bc] ss:$20 sps:$4 sm:$0xff]  }
 0x16a   :  { %4783 = vmatprep.mubr.bf16.mxu0 %v10725_v44  ;;  %5175 = vmatprep.mubr.bf16.mxu1 %v10727_v45  ;;  %v10758_v44 = vld [vmem:[%s15408_s0 + $0xe64] ss:$20 sps:$4 sm:$0xff]  }
 0x16c   :  { %v12134_v54 = vpop.f32.mrb[44].mxu1 }
 0x16d   :  { %15436 = vst [vmem:[#allocation24_spill] sm:$0xff] %v12134_v54  ;;  %v4963_v58 = vpop.f32.mrb[45].mxu1  ;;  %v11045_v54 = vld [vmem:[%s15408_s0 + $0x3f8] ss:$20 sps:$4 sm:$0xff]  }
 0x16e   :  { %v12142_v59 = vpop.f32.mrb[46].mxu1 }
 0x16f   :  { %15437 = vst [vmem:[#allocation25_spill] sm:$0xff] %v12142_v59  ;;  %v4966_v61 = vpop.f32.mrb[47].mxu1  ;;  %v11044_v59 = vld [vmem:[%s15408_s0 + $0x698] ss:$20 sps:$4 sm:$0xff]  }
 0x171   :  { %4784 = vmatmul.mubr.bf16.gmra.mrb[152].mxu0 %v10729_v51  ;;  %5176 = vmatmul.mubr.bf16.gmra.mrb[152].mxu1 %v10730_v53  ;;  %v10761_v51 = vld [vmem:[%s15408_s0 + $0xe60] ss:$20 sps:$4 sm:$0xff]  }
 0x172   :  { %4791 = vmatprep.mubr.bf16.mxu0 %v10731_v55  ;;  %5183 = vmatprep.mubr.bf16.mxu1 %v10733_v57  ;;  %v10764_v55 = vld [vmem:[%s15408_s0 + $0x6e4] ss:$20 sps:$4 sm:$0xff]   ;;  %v10766_v57 = vld [vmem:[%s15408_s0 + $0xe8c] ss:$20 sps:$4 sm:$0xff]  }
 0x174   :  { %v12144_v62 = vpop.f32.mrb[48].mxu1 }
 0x175   :  { %15438 = vst [vmem:[#allocation26_spill] sm:$0xff] %v12144_v62  ;;  %v4971_v3 = vpop.f32.mrb[49].mxu1  ;;  %v11040_v62 = vld [vmem:[%s15408_s0 + $0x3a8] ss:$20 sps:$4 sm:$0xff]  }
 0x176   :  { %v12158_v7 = vpop.f32.mrb[50].mxu1  ;;  %v10769_v3 = vld [vmem:[%s15408_s0 + $0xe88] ss:$20 sps:$4 sm:$0xff]  }
 0x177   :  { %15439 = vst [vmem:[#allocation27_spill] sm:$0xff] %v12158_v7  ;;  %v4974_v8 = vpop.f32.mrb[51].mxu1  ;;  %v11039_v7 = vld [vmem:[%s15408_s0 + $0x670] ss:$20 sps:$4 sm:$0xff]  }
 0x178   :  { %v10772_v8 = vld [vmem:[%s15408_s0 + $0xeb4] ss:$20 sps:$4 sm:$0xff]  }
 0x179   :  { %4792 = vmatmul.mubr.bf16.gmra.mrb[156].mxu0 %v10735_v63  ;;  %5184 = vmatmul.mubr.bf16.gmra.mrb[156].mxu1 %v10736_v2  ;;  %v10768_v2 = vld [vmem:[%s15408_s0 + $0x6e0] ss:$20 sps:$4 sm:$0xff]  }
 0x17a   :  { %4799 = vmatprep.mubr.bf16.mxu0 %v10737_v4  ;;  %5191 = vmatprep.mubr.bf16.mxu1 %v10739_v6  ;;  %v10770_v6 = vld [vmem:[%s15408_s0 + $0x70c] ss:$20 sps:$4 sm:$0xff]  }
 0x17c   :  { %v12160_v10 = vpop.f32.mrb[52].mxu1 }
 0x17d   :  { %15440 = vst [vmem:[#allocation28_spill] sm:$0xff] %v12160_v10  ;;  %v4979_v14 = vpop.f32.mrb[53].mxu1  ;;  %v11035_v10 = vld [vmem:[%s15408_s0 + $0x358] ss:$20 sps:$4 sm:$0xff]  }
 0x17e   :  { %v12174_v19 = vpop.f32.mrb[54].mxu1 }
 0x17f   :  { %15441 = vst [vmem:[#allocation29_spill] sm:$0xff] %v12174_v19  ;;  %v4982_v20 = vpop.f32.mrb[55].mxu1  ;;  %v11034_v19 = vld [vmem:[%s15408_s0 + $0x648] ss:$20 sps:$4 sm:$0xff]  }
 0x181   :  { %4800 = vmatmul.mubr.bf16.gmra.mrb[160].mxu0 %v10741_v11  ;;  %5192 = vmatmul.mubr.bf16.gmra.mrb[160].mxu1 %v10742_v12 }
 0x182   :  { %4807 = vmatprep.mubr.bf16.mxu0 %v10744_v15  ;;  %5199 = vmatprep.mubr.bf16.mxu1 %v10746_v16  ;;  %v10774_v15 = vld [vmem:[%s15408_s0 + $0x708] ss:$20 sps:$4 sm:$0xff]   ;;  %v10775_v16 = vld [vmem:[%s15408_s0 + $0xeb0] ss:$20 sps:$4 sm:$0xff]  }
 0x184   :  { %v12176_v21 = vpop.f32.mrb[56].mxu1 }
 0x185   :  { %15442 = vst [vmem:[#allocation30_spill] sm:$0xff] %v12176_v21  ;;  %v4987_v26 = vpop.f32.mrb[57].mxu1  ;;  %v11030_v21 = vld [vmem:[%s15408_s0 + $0x308] ss:$20 sps:$4 sm:$0xff]  }
 0x186   :  { %v12190_v31 = vpop.f32.mrb[58].mxu1 }
 0x187   :  { %15443 = vst [vmem:[#allocation31_spill] sm:$0xff] %v12190_v31  ;;  %v4990_v34 = vpop.f32.mrb[59].mxu1  ;;  %v11029_v31 = vld [vmem:[%s15408_s0 + $0x620] ss:$20 sps:$4 sm:$0xff]  }
 0x188   :  { %v10780_v34 = vld [vmem:[%s15408_s0 + $0x730] ss:$20 sps:$4 sm:$0xff]  }
 0x189   :  { %4808 = vmatmul.mubr.bf16.gmra.mrb[164].mxu0 %v10748_v24  ;;  %5200 = vmatmul.mubr.bf16.gmra.mrb[164].mxu1 %v10749_v25  ;;  %v10776_v24 = vld [vmem:[%s15408_s0 + $0x734] ss:$20 sps:$4 sm:$0xff]   ;;  %v10778_v25 = vld [vmem:[%s15408_s0 + $0xedc] ss:$20 sps:$4 sm:$0xff]  }
 0x18a   :  { %4815 = vmatprep.mubr.bf16.mxu0 %v10750_v29  ;;  %5207 = vmatprep.mubr.bf16.mxu1 %v10752_v30 }
 0x18c   :  { %v12192_v35 = vpop.f32.mrb[60].mxu1 }
 0x18d   :  { %15444 = vst [vmem:[#allocation32_spill] sm:$0xff] %v12192_v35  ;;  %v4995_v40 = vpop.f32.mrb[61].mxu1  ;;  %v11025_v35 = vld [vmem:[%s15408_s0 + $0x2b8] ss:$20 sps:$4 sm:$0xff]  }
 0x18e   :  { %v12206_v45 = vpop.f32.mrb[62].mxu1  ;;  %v10783_v40 = vld [vmem:[%s15408_s0 + $0x75c] ss:$20 sps:$4 sm:$0xff]  }
 0x18f   :  { %15445 = vst [vmem:[#allocation33_spill] sm:$0xff] %v12206_v45  ;;  %v4998_v46 = vpop.f32.mrb[63].mxu1  ;;  %v11024_v45 = vld [vmem:[%s15408_s0 + $0x5f8] ss:$20 sps:$4 sm:$0xff]  }
 0x191   :  { %4816 = vmatmul.mubr.bf16.gmra.mrb[168].mxu0 %v10754_v0  ;;  %5208 = vmatmul.mubr.bf16.gmra.mrb[168].mxu1 %v10755_v38  ;;  %v10781_v0 = vld [vmem:[%s15408_s0 + $0xed8] ss:$20 sps:$4 sm:$0xff]  }
 0x192   :  { %4823 = vmatprep.mubr.bf16.mxu0 %v10756_v41  ;;  %5215 = vmatprep.mubr.bf16.mxu1 %v10758_v44  ;;  %v10785_v41 = vld [vmem:[%s15408_s0 + $0xf04] ss:$20 sps:$4 sm:$0xff]  }
 0x194   :  { %v12208_v49 = vpop.f32.mrb[64].mxu1 }
 0x195   :  { %15446 = vst [vmem:[#allocation34_spill] sm:$0xff] %v12208_v49  ;;  %v5003_v53 = vpop.f32.mrb[65].mxu1  ;;  %v11020_v49 = vld [vmem:[%s15408_s0 + $0x268] ss:$20 sps:$4 sm:$0xff]  }
 0x196   :  { %v12222_v58 = vpop.f32.mrb[66].mxu1  ;;  %v10788_v53 = vld [vmem:[%s15408_s0 + $0xf00] ss:$20 sps:$4 sm:$0xff]  }
 0x197   :  { %15447 = vst [vmem:[#allocation35_spill] sm:$0xff] %v12222_v58  ;;  %v5006_v61 = vpop.f32.mrb[67].mxu1  ;;  %v11019_v58 = vld [vmem:[%s15408_s0 + $0x5d0] ss:$20 sps:$4 sm:$0xff]  }
 0x198   :  { %v10791_v61 = vld [vmem:[%s15408_s0 + $0xf2c] ss:$20 sps:$4 sm:$0xff]  }
 0x199   :  { %4824 = vmatmul.mubr.bf16.gmra.mrb[172].mxu0 %v10760_v50  ;;  %5216 = vmatmul.mubr.bf16.gmra.mrb[172].mxu1 %v10761_v51  ;;  %v10787_v51 = vld [vmem:[%s15408_s0 + $0x758] ss:$20 sps:$4 sm:$0xff]  }
 0x19a   :  { %4831 = vmatprep.mubr.bf16.mxu0 %v10764_v55  ;;  %5223 = vmatprep.mubr.bf16.mxu1 %v10766_v57  ;;  %v10789_v57 = vld [vmem:[%s15408_s0 + $0x784] ss:$20 sps:$4 sm:$0xff]  }
 0x19c   :  { %v12224_v63 = vpop.f32.mrb[68].mxu1 }
 0x19d   :  { %15448 = vst [vmem:[#allocation36_spill] sm:$0xff] %v12224_v63  ;;  %v5011_v4 = vpop.f32.mrb[69].mxu1  ;;  %v11015_v63 = vld [vmem:[%s15408_s0 + $0x218] ss:$20 sps:$4 sm:$0xff]  }
 0x19e   :  { %v12238_v11 = vpop.f32.mrb[70].mxu1  ;;  %v10886_v4 = vld [vmem:[%s15407_s1 + $0x118] sm:$0xff]  }
 0x19f   :  { %15449 = vst [vmem:[#allocation37_spill] sm:$0xff] %v12238_v11  ;;  %v5014_v12 = vpop.f32.mrb[71].mxu1  ;;  %9536 = vmatprep.subr.bf16.mxu1 %v10886_v4  ;;  %v11014_v11 = vld [vmem:[%s15408_s0 + $0x5a8] ss:$20 sps:$4 sm:$0xff]  }
 0x1a0   :  { %9537 = vmatpush3.bf16.msra.mxu1 %v10886_v4  ;;  %v10794_v12 = vld [vmem:[%s15408_s0 + $0xf28] ss:$20 sps:$4 sm:$0xff]  }
 0x1a1   :  { %4832 = vmatmul.mubr.bf16.gmra.mrb[176].mxu0 %v10768_v2  ;;  %5224 = vmatmul.mubr.bf16.gmra.mrb[176].mxu1 %v10769_v3  ;;  %v10809_v4 = vld [vmem:[%s15408_s0 + $0x5c] ss:$20 sps:$4 sm:$0xff]  }
 0x1a2   :  { %4839 = vmatprep.mubr.bf16.mxu0 %v10770_v6  ;;  %5231 = vmatprep.mubr.bf16.mxu1 %v10772_v8  ;;  %v10793_v8 = vld [vmem:[%s15408_s0 + $0x780] ss:$20 sps:$4 sm:$0xff]  }
 0x1a4   :  { %v12240_v14 = vpop.f32.mrb[72].mxu1 }
 0x1a5   :  { %15450 = vst [vmem:[#allocation38_spill] sm:$0xff] %v12240_v14  ;;  %v5019_v20 = vpop.f32.mrb[73].mxu1  ;;  %v11010_v14 = vld [vmem:[%s15408_s0 + $0x1c8] ss:$20 sps:$4 sm:$0xff]  }
 0x1a6   :  { %v12254_v26 = vpop.f32.mrb[74].mxu1  ;;  %v10799_v20 = vld [vmem:[%s15408_s0 + $0xc] ss:$20 sps:$4 sm:$0xff]  }
 0x1a7   :  { %15451 = vst [vmem:[#allocation39_spill] sm:$0xff] %v12254_v26  ;;  %v5022_v29 = vpop.f32.mrb[75].mxu1  ;;  %v11009_v26 = vld [vmem:[%s15408_s0 + $0x580] ss:$20 sps:$4 sm:$0xff]  }
 0x1a9   :  { %4840 = vmatmul.mubr.bf16.gmra.mrb[180].mxu0 %v10774_v15  ;;  %5232 = vmatmul.mubr.bf16.gmra.mrb[180].mxu1 %v10775_v16  ;;  %v10795_v16 = vld [vmem:[%s15408_s0 + $0xf54] ss:$20 sps:$4 sm:$0xff]  }
 0x1aa   :  { %4847 = vmatprep.mubr.bf16.mxu0 %v10776_v24  ;;  %5239 = vmatprep.mubr.bf16.mxu1 %v10778_v25 }
 0x1ac   :  { %v12256_v30 = vpop.f32.mrb[76].mxu1 }
 0x1ad   :  { %15452 = vst [vmem:[#allocation40_spill] sm:$0xff] %v12256_v30  ;;  %v5027_v38 = vpop.f32.mrb[77].mxu1  ;;  %v11005_v30 = vld [vmem:[%s15408_s0 + $0x178] ss:$20 sps:$4 sm:$0xff]  }
 0x1ae   :  { %v12270_v44 = vpop.f32.mrb[78].mxu1 }
 0x1af   :  { %15453 = vst [vmem:[#allocation41_spill] sm:$0xff] %v12270_v44  ;;  %v5030_v46 = vpop.f32.mrb[79].mxu1  ;;  %v11004_v44 = vld [vmem:[%s15408_s0 + $0x558] ss:$20 sps:$4 sm:$0xff]  }
 0x1b1   :  { %4848 = vmatmul.mubr.bf16.gmra.mrb[184].mxu0 %v10780_v34  ;;  %5240 = vmatmul.mubr.bf16.gmra.mrb[184].mxu1 %v10781_v0  ;;  %v10797_v34 = vld [vmem:[%s15408_s0 + $0x8] ss:$20 sps:$4 sm:$0xff]   ;;  %v10800_v0 = vld [vmem:[%s15408_s0 + $0xf50] ss:$20 sps:$4 sm:$0xff]  }
 0x1b2   :  { %4855 = vmatprep.mubr.bf16.mxu0 %v10783_v40  ;;  %5247 = vmatprep.mubr.bf16.mxu1 %v10785_v41  ;;  %v10801_v40 = vld [vmem:[%s15408_s0 + $0xf7c] ss:$20 sps:$4 sm:$0xff]   ;;  %v10803_v41 = vld [vmem:[%s15408_s0 + $0x34] ss:$20 sps:$4 sm:$0xff]  }
 0x1b4   :  { %v12272_v50 = vpop.f32.mrb[80].mxu1 }
 0x1b5   :  { %15454 = vst [vmem:[#allocation42_spill] sm:$0xff] %v12272_v50  ;;  %v5035_v55 = vpop.f32.mrb[81].mxu1  ;;  %v11000_v50 = vld [vmem:[%s15408_s0 + $0x128] ss:$20 sps:$4 sm:$0xff]  }
 0x1b6   :  { %v12286_v2 = vpop.f32.mrb[82].mxu1  ;;  %v10805_v55 = vld [vmem:[%s15408_s0 + $0xf78] ss:$20 sps:$4 sm:$0xff]  }
 0x1b7   :  { %15455 = vst [vmem:[#allocation43_spill] sm:$0xff] %v12286_v2  ;;  %v5038_v3 = vpop.f32.mrb[83].mxu1  ;;  %v10999_v2 = vld [vmem:[%s15408_s0 + $0x530] ss:$20 sps:$4 sm:$0xff]  }
 0x1b8   :  { %v10807_v3 = vld [vmem:[%s15408_s0 + $0xfa4] ss:$20 sps:$4 sm:$0xff]  }
 0x1b9   :  { %4856 = vmatmul.mubr.bf16.gmra.mrb[188].mxu0 %v10787_v51  ;;  %5248 = vmatmul.mubr.bf16.gmra.mrb[188].mxu1 %v10788_v53 }
 0x1ba   :  { %4863 = vmatprep.mubr.bf16.mxu0 %v10789_v57  ;;  %5255 = vmatprep.mubr.bf16.mxu1 %v10791_v61  ;;  %v10806_v57 = vld [vmem:[%s15408_s0 + $0x30] ss:$20 sps:$4 sm:$0xff]  }
 0x1bc   :  { %v12291_v6 = vpop.f32.mrb[84].mxu1 }
 0x1bd   :  { %15456 = vst [vmem:[#allocation44_spill] sm:$0xff] %v12291_v6  ;;  %v5043_v15 = vpop.f32.mrb[85].mxu1  ;;  %v10995_v6 = vld [vmem:[%s15408_s0 + $0xd8] ss:$20 sps:$4 sm:$0xff]  }
 0x1be   :  { %v12305_v24 = vpop.f32.mrb[86].mxu1 }
 0x1bf   :  { %15457 = vst [vmem:[#allocation45_spill] sm:$0xff] %v12305_v24  ;;  %v5046_v25 = vpop.f32.mrb[87].mxu1  ;;  %v10994_v24 = vld [vmem:[%s15408_s0 + $0x508] ss:$20 sps:$4 sm:$0xff]  }
 0x1c1   :  { %4864 = vmatmul.mubr.bf16.gmra.mrb[192].mxu0 %v10793_v8  ;;  %5256 = vmatmul.mubr.bf16.gmra.mrb[192].mxu1 %v10794_v12 }
 0x1c2   :  { %5263 = vmatprep.mubr.bf16.mxu1 %v10795_v16  ;;  %5536 = vmatprep.mubr.bf16.mxu0 %v10799_v20  ;;  %v10811_v16 = vld [vmem:[%s15408_s0 + $0xfa0] ss:$20 sps:$4 sm:$0xff]   ;;  %v10812_v20 = vld [vmem:[%s15408_s0 + $0x58] ss:$20 sps:$4 sm:$0xff]  }
 0x1c4   :  { %v12307_v29 = vpop.f32.mrb[88].mxu1 }
 0x1c5   :  { %15458 = vst [vmem:[#allocation46_spill] sm:$0xff] %v12307_v29  ;;  %v5051_v38 = vpop.f32.mrb[89].mxu1  ;;  %v10990_v29 = vld [vmem:[%s15408_s0 + $0x88] ss:$20 sps:$4 sm:$0xff]  }
 0x1c6   :  { %v12321_v46 = vpop.f32.mrb[90].mxu1 }
 0x1c7   :  { %15459 = vst [vmem:[#allocation47_spill] sm:$0xff] %v12321_v46  ;;  %v5054_v51 = vpop.f32.mrb[91].mxu1  ;;  %v10989_v46 = vld [vmem:[%s15408_s0 + $0x4e0] ss:$20 sps:$4 sm:$0xff]  }
 0x1c8   :  { %v10817_v51 = vld [vmem:[%s15408_s0 + $0xfc8] ss:$20 sps:$4 sm:$0xff]  }
 0x1c9   :  { %5264 = vmatmul.mubr.bf16.gmra.mrb[196].mxu1 %v10800_v0  ;;  %5537 = vmatmul.mubr.bf16.vlgmr.msra.gmra.mrb[0].mxu0 %v10797_v34  ;;  %v10813_v34 = vld [vmem:[%s15408_s0 + $0xfcc] ss:$20 sps:$4 sm:$0xff]   ;;  %v10815_v0 = vld [vmem:[%s15408_s0 + $0x84] ss:$20 sps:$4 sm:$0xff]  }
 0x1ca   :  { %5271 = vmatprep.mubr.bf16.mxu1 %v10801_v40  ;;  %5544 = vmatprep.mubr.bf16.mxu0 %v10803_v41 }
 0x1cc   :  { %v12323_v53 = vpop.f32.mrb[92].mxu1 }
 0x1cd   :  { %15460 = vst [vmem:[#allocation48_spill] sm:$0xff] %v12323_v53  ;;  %v5059_v61 = vpop.f32.mrb[93].mxu1 }
 0x1ce   :  { %v12337_v8 = vpop.f32.mrb[94].mxu1  ;;  %v10819_v61 = vld [vmem:[%s15408_s0 + $0xff4] ss:$20 sps:$4 sm:$0xff]  }
 0x1cf   :  { %15461 = vst [vmem:[#allocation49_spill] sm:$0xff] %v12337_v8  ;;  %v5062_v12 = vpop.f32.mrb[95].mxu1  ;;  %v10985_v8 = vld [vmem:[%s15408_s0 + $0x38] ss:$20 sps:$4 sm:$0xff]  }
 0x1d1   :  { %5272 = vmatmul.mubr.bf16.gmra.mrb[200].mxu1 %v10805_v55  ;;  %5545 = vmatmul.mubr.bf16.gmra.mrb[4].mxu0 %v10806_v57  ;;  %v10818_v55 = vld [vmem:[%s15408_s0 + $0x80] ss:$20 sps:$4 sm:$0xff]  }
 0x1d2   :  { %5279 = vmatprep.mubr.bf16.mxu1 %v10807_v3  ;;  %5552 = vmatprep.mubr.bf16.mxu0 %v10809_v4  ;;  %v10821_v3 = vld [vmem:[%s15408_s0 + $0xac] ss:$20 sps:$4 sm:$0xff]  }
 0x1d4   :  { %v12339_v15 = vpop.f32.mrb[96].mxu1 }
 0x1d5   :  { %15462 = vst [vmem:[#allocation50_spill] sm:$0xff] %v12339_v15  ;;  %v5067_v25 = vpop.f32.mrb[97].mxu1  ;;  %v10978_v15 = vld [vmem:[%s15408_s0 + $0x490] ss:$20 sps:$4 sm:$0xff]  }
 0x1d6   :  { %v12353_v38 = vpop.f32.mrb[98].mxu1  ;;  %v10824_v25 = vld [vmem:[%s15408_s0 + $0xa8] ss:$20 sps:$4 sm:$0xff]  }
 0x1d7   :  { %15463 = vst [vmem:[#allocation51_spill] sm:$0xff] %v12353_v38  ;;  %v5070_v40 = vpop.f32.mrb[99].mxu1  ;;  %v10973_v38 = vld [vmem:[%s15408_s0 + $0x13d8] ss:$20 sps:$4 sm:$0xff]  }
 0x1d8   :  { %v10828_v40 = vld [vmem:[%s15408_s0 + $0xd4] ss:$20 sps:$4 sm:$0xff]  }
 0x1d9   :  { %5280 = vmatmul.mubr.bf16.gmra.mrb[204].mxu1 %v10811_v16  ;;  %5553 = vmatmul.mubr.bf16.gmra.mrb[8].mxu0 %v10812_v20  ;;  %v10823_v20 = vld [vmem:[%s15408_s0 + $0xff0] ss:$20 sps:$4 sm:$0xff]  }
 0x1da   :  { %5287 = vmatprep.mubr.bf16.mxu1 %v10813_v34  ;;  %5560 = vmatprep.mubr.bf16.mxu0 %v10815_v0  ;;  %v10826_v0 = vld [vmem:[%s15408_s0 + $0x101c] ss:$20 sps:$4 sm:$0xff]  }
 0x1dc   :  { %v12355_v41 = vpop.f32.mrb[100].mxu1 }
 0x1dd   :  { %15464 = vst [vmem:[#allocation52_spill] sm:$0xff] %v12355_v41  ;;  %v5075_v57 = vpop.f32.mrb[101].mxu1  ;;  %v10971_v41 = vld [vmem:[%s15408_s0 + $0x468] ss:$20 sps:$4 sm:$0xff]  }
 0x1de   :  { %v12369_v4 = vpop.f32.mrb[102].mxu1 }
 0x1df   :  { %15465 = vst [vmem:[#allocation53_spill] sm:$0xff] %v12369_v4  ;;  %v5078_v12 = vpop.f32.mrb[103].mxu1  ;;  %v10966_v4 = vld [vmem:[%s15408_s0 + $0x13b0] ss:$20 sps:$4 sm:$0xff]  }
 0x1e1   :  { %5288 = vmatmul.mubr.bf16.gmra.mrb[208].mxu1 %v10817_v51  ;;  %5561 = vmatmul.mubr.bf16.gmra.mrb[12].mxu0 %v10818_v55 }
 0x1e2   :  { %5295 = vmatprep.mubr.bf16.mxu1 %v10819_v61  ;;  %5568 = vmatprep.mubr.bf16.mxu0 %v10821_v3  ;;  %v10830_v61 = vld [vmem:[%s15408_s0 + $0x1018] ss:$20 sps:$4 sm:$0xff]   ;;  %v10831_v3 = vld [vmem:[%s15408_s0 + $0xd0] ss:$20 sps:$4 sm:$0xff]  }
 0x1e4   :  { %v12371_v16 = vpop.f32.mrb[104].mxu1 }
 0x1e5   :  { %15466 = vst [vmem:[#allocation54_spill] sm:$0xff] %v12371_v16  ;;  %v5083_v34 = vpop.f32.mrb[105].mxu1 }
 0x1e6   :  { %v12385_v51 = vpop.f32.mrb[106].mxu1  ;;  %v10832_v34 = vld [vmem:[%s15408_s0 + $0x1044] ss:$20 sps:$4 sm:$0xff]  }
 0x1e7   :  { %15467 = vst [vmem:[#allocation55_spill] sm:$0xff] %v12385_v51  ;;  %v5086_v55 = vpop.f32.mrb[107].mxu1 }
 0x1e8   :  { %v10836_v55 = vld [vmem:[%s15408_s0 + $0x1040] ss:$20 sps:$4 sm:$0xff]  }
 0x1e9   :  { %5296 = vmatmul.mubr.bf16.gmra.mrb[212].mxu1 %v10823_v20  ;;  %5569 = vmatmul.mubr.bf16.gmra.mrb[16].mxu0 %v10824_v25  ;;  %v10834_v20 = vld [vmem:[%s15408_s0 + $0xfc] ss:$20 sps:$4 sm:$0xff]  }
 0x1ea   :  { %5303 = vmatprep.mubr.bf16.mxu1 %v10826_v0  ;;  %5576 = vmatprep.mubr.bf16.mxu0 %v10828_v40 }
 0x1ec   :  { %v12387_v57 = vpop.f32.mrb[108].mxu1 }
 0x1ed   :  { %15468 = vst [vmem:[#allocation56_spill] sm:$0xff] %v12387_v57  ;;  %v5091_v12 = vpop.f32.mrb[109].mxu1 }
 0x1ee   :  { %v12401_v25 = vpop.f32.mrb[110].mxu1  ;;  %v10837_v12 = vld [vmem:[%s15408_s0 + $0xf8] ss:$20 sps:$4 sm:$0xff]  }
 0x1ef   :  { %15469 = vst [vmem:[#allocation57_spill] sm:$0xff] %v12401_v25  ;;  %v5094_v0 = vpop.f32.mrb[111].mxu1  ;;  %v10838_v25 = vld [vmem:[%s15408_s0 + $0x106c] ss:$20 sps:$4 sm:$0xff]  }
 0x1f0   :  { %v10843_v0 = vld [vmem:[%s15408_s0 + $0x120] ss:$20 sps:$4 sm:$0xff]  }
 0x1f1   :  { %5304 = vmatmul.mubr.bf16.gmra.mrb[216].mxu1 %v10830_v61  ;;  %5577 = vmatmul.mubr.bf16.gmra.mrb[20].mxu0 %v10831_v3  ;;  %v10840_v61 = vld [vmem:[%s15408_s0 + $0x124] ss:$20 sps:$4 sm:$0xff]  }
 0x1f2   :  { %5311 = vmatprep.mubr.bf16.mxu1 %v10832_v34  ;;  %5584 = vmatprep.mubr.bf16.mxu0 %v10834_v20 }
 0x1f4   :  { %v12403_v40 = vpop.f32.mrb[112].mxu1 }
 0x1f5   :  { %15470 = vst [vmem:[#allocation58_spill] sm:$0xff] %v12403_v40  ;;  %v5099_v57 = vpop.f32.mrb[113].mxu1 }
 0x1f6   :  { %v12417_v3 = vpop.f32.mrb[114].mxu1  ;;  %v10842_v57 = vld [vmem:[%s15408_s0 + $0x1068] ss:$20 sps:$4 sm:$0xff]  }
 0x1f7   :  { %15471 = vst [vmem:[#allocation59_spill] sm:$0xff] %v12417_v3  ;;  %v5102_v34 = vpop.f32.mrb[115].mxu1  ;;  %v10844_v3 = vld [vmem:[%s15408_s0 + $0x1094] ss:$20 sps:$4 sm:$0xff]  }
 0x1f8   :  { %v10849_v34 = vld [vmem:[%s15408_s0 + $0x148] ss:$20 sps:$4 sm:$0xff]  }
 0x1f9   :  { %5312 = vmatmul.mubr.bf16.gmra.mrb[220].mxu1 %v10836_v55  ;;  %5585 = vmatmul.mubr.bf16.gmra.mrb[24].mxu0 %v10837_v12 }
 0x1fa   :  { %5319 = vmatprep.mubr.bf16.mxu1 %v10838_v25  ;;  %5592 = vmatprep.mubr.bf16.mxu0 %v10840_v61  ;;  %v10846_v25 = vld [vmem:[%s15408_s0 + $0x14c] ss:$20 sps:$4 sm:$0xff]  }
 0x1fc   :  { %v12419_v20 = vpop.f32.mrb[116].mxu1 }
 0x1fd   :  { %15472 = vst [vmem:[#allocation60_spill] sm:$0xff] %v12419_v20  ;;  %v5107_v40 = vpop.f32.mrb[117].mxu1 }
 0x1fe   :  { %v12433_v55 = vpop.f32.mrb[118].mxu1  ;;  %v10848_v40 = vld [vmem:[%s15408_s0 + $0x1090] ss:$20 sps:$4 sm:$0xff]  }
 0x1ff   :  { %15473 = vst [vmem:[#allocation61_spill] sm:$0xff] %v12433_v55  ;;  %v5110_v12 = vpop.f32.mrb[119].mxu1  ;;  %v10850_v55 = vld [vmem:[%s15408_s0 + $0x10bc] ss:$20 sps:$4 sm:$0xff]  }
 0x200   :  { %v10854_v12 = vld [vmem:[%s15408_s0 + $0x10b8] ss:$20 sps:$4 sm:$0xff]  }
 0x201   :  { %5320 = vmatmul.mubr.bf16.gmra.mrb[224].mxu1 %v10842_v57  ;;  %5593 = vmatmul.mubr.bf16.gmra.mrb[28].mxu0 %v10843_v0  ;;  %v10946_v0 = vld [vmem:[%s15407_s1 + $0x120] sm:$0xff]  }
 0x202   :  { %5327 = vmatprep.mubr.bf16.mxu1 %v10844_v3  ;;  %5600 = vmatprep.mubr.bf16.mxu0 %v10846_v25  ;;  %v10852_v3 = vld [vmem:[%s15408_s0 + $0x174] ss:$20 sps:$4 sm:$0xff]  }
 0x203   :  { %9538 = vmatprep.subr.bf16.mxu1 %v10946_v0 }
 0x204   :  { %v12435_v61 = vpop.f32.mrb[120].mxu1  ;;  %9539 = vmatpush3.bf16.msra.mxu1 %v10946_v0  ;;  %v10861_v0 = vld [vmem:[%s15408_s0 + $0x198] ss:$20 sps:$4 sm:$0xff]  }
 0x205   :  { %15474 = vst [vmem:[#allocation62_spill] sm:$0xff] %v12435_v61  ;;  %v5115_v20 = vpop.f32.mrb[121].mxu1 }
 0x206   :  { %v12449_v57 = vpop.f32.mrb[122].mxu1 }
 0x207   :  { %15475 = vst [vmem:[#allocation63_spill] sm:$0xff] %v12449_v57  ;;  %v5118_v25 = vpop.f32.mrb[123].mxu1  ;;  %v10855_v57 = vld [vmem:[%s15408_s0 + $0x170] ss:$20 sps:$4 sm:$0xff]  }
 0x208   :  { %v10856_v25 = vld [vmem:[%s15408_s0 + $0x10e4] ss:$20 sps:$4 sm:$0xff]  }
 0x209   :  { %5328 = vmatmul.mubr.bf16.gmra.mrb[228].mxu1 %v10848_v40  ;;  %5601 = vmatmul.mubr.bf16.gmra.mrb[32].mxu0 %v10849_v34 }
 0x20a   :  { %5335 = vmatprep.mubr.bf16.mxu1 %v10850_v55  ;;  %5608 = vmatprep.mubr.bf16.mxu0 %v10852_v3  ;;  %v10858_v55 = vld [vmem:[%s15408_s0 + $0x19c] ss:$20 sps:$4 sm:$0xff]  }
 0x20c   :  { %v12454_v20 = vpop.f32.mrb[124].mxu1 }
 0x20d   :  { %15476 = vst [vmem:[#allocation64_spill] sm:$0xff] %v12454_v20  ;;  %v5123_v61 = vpop.f32.mrb[125].mxu1 }
 0x20e   :  { %v12468_v40 = vpop.f32.mrb[126].mxu1  ;;  %v10860_v61 = vld [vmem:[%s15408_s0 + $0x10e0] ss:$20 sps:$4 sm:$0xff]  }
 0x20f   :  { %15477 = vst [vmem:[#allocation65_spill] sm:$0xff] %v12468_v40  ;;  %v5126_v34 = vpop.f32.mrb[127].mxu1  ;;  %v10862_v40 = vld [vmem:[%s15408_s0 + $0x110c] ss:$20 sps:$4 sm:$0xff]  }
 0x210   :  { %v10867_v34 = vld [vmem:[%s15408_s0 + $0x1c0] ss:$20 sps:$4 sm:$0xff]  }
 0x211   :  { %5336 = vmatmul.mubr.bf16.gmra.mrb[232].mxu1 %v10854_v12  ;;  %5609 = vmatmul.mubr.bf16.gmra.mrb[36].mxu0 %v10855_v57  ;;  %v10864_v57 = vld [vmem:[%s15408_s0 + $0x1c4] ss:$20 sps:$4 sm:$0xff]  }
 0x212   :  { %5343 = vmatprep.mubr.bf16.mxu1 %v10856_v25  ;;  %5616 = vmatprep.mubr.bf16.mxu0 %v10858_v55 }
 0x214   :  { %v12470_v3 = vpop.f32.mrb[128].mxu1 }
 0x215   :  { %15478 = vst [vmem:[#allocation66_spill] sm:$0xff] %v12470_v3  ;;  %v5131_v20 = vpop.f32.mrb[129].mxu1 }
 0x216   :  { %v12484_v12 = vpop.f32.mrb[130].mxu1  ;;  %v10866_v20 = vld [vmem:[%s15408_s0 + $0x1108] ss:$20 sps:$4 sm:$0xff]  }
 0x217   :  { %15479 = vst [vmem:[#allocation67_spill] sm:$0xff] %v12484_v12  ;;  %v5134_v25 = vpop.f32.mrb[131].mxu1  ;;  %v10868_v12 = vld [vmem:[%s15408_s0 + $0x1134] ss:$20 sps:$4 sm:$0xff]  }
 0x218   :  { %v10873_v25 = vld [vmem:[%s15408_s0 + $0x1e8] ss:$20 sps:$4 sm:$0xff]  }
 0x219   :  { %5344 = vmatmul.mubr.bf16.gmra.mrb[236].mxu1 %v10860_v61  ;;  %5617 = vmatmul.mubr.bf16.gmra.mrb[40].mxu0 %v10861_v0 }
 0x21a   :  { %5351 = vmatprep.mubr.bf16.mxu1 %v10862_v40  ;;  %5624 = vmatprep.mubr.bf16.mxu0 %v10864_v57  ;;  %v10870_v40 = vld [vmem:[%s15408_s0 + $0x1ec] ss:$20 sps:$4 sm:$0xff]  }
 0x21c   :  { %v12486_v55 = vpop.f32.mrb[132].mxu1 }
 0x21d   :  { %15480 = vst [vmem:[#allocation68_spill] sm:$0xff] %v12486_v55  ;;  %v5139_v3 = vpop.f32.mrb[133].mxu1 }
 0x21e   :  { %v12500_v61 = vpop.f32.mrb[134].mxu1  ;;  %v10872_v3 = vld [vmem:[%s15408_s0 + $0x1130] ss:$20 sps:$4 sm:$0xff]  }
 0x21f   :  { %15481 = vst [vmem:[#allocation69_spill] sm:$0xff] %v12500_v61  ;;  %v5142_v0 = vpop.f32.mrb[135].mxu1  ;;  %v10874_v61 = vld [vmem:[%s15408_s0 + $0x115c] ss:$20 sps:$4 sm:$0xff]  }
 0x220   :  { %v10878_v0 = vld [vmem:[%s15408_s0 + $0x1158] ss:$20 sps:$4 sm:$0xff]  }
 0x221   :  { %5352 = vmatmul.mubr.bf16.gmra.mrb[240].mxu1 %v10866_v20  ;;  %5625 = vmatmul.mubr.bf16.gmra.mrb[44].mxu0 %v10867_v34 }
 0x222   :  { %5359 = vmatprep.mubr.bf16.mxu1 %v10868_v12  ;;  %5632 = vmatprep.mubr.bf16.mxu0 %v10870_v40  ;;  %v10876_v12 = vld [vmem:[%s15408_s0 + $0x214] ss:$20 sps:$4 sm:$0xff]  }
 0x223   :  { %v10972_v40 = vld [vmem:[%s15407_s1 + $0x128] sm:$0xff]  }
 0x224   :  { %v12502_v57 = vpop.f32.mrb[136].mxu1  ;;  %9540 = vmatprep.subr.bf16.mxu1 %v10972_v40 }
 0x225   :  { %15482 = vst [vmem:[#allocation70_spill] sm:$0xff] %v12502_v57  ;;  %v5147_v55 = vpop.f32.mrb[137].mxu1  ;;  %v10879_v57 = vld [vmem:[%s15408_s0 + $0x210] ss:$20 sps:$4 sm:$0xff]   ;;  %9541 = vmatpush3.bf16.msra.mxu1 %v10972_v40  ;;  %v10884_v40 = vld [vmem:[%s15408_s0 + $0x1180] ss:$20 sps:$4 sm:$0xff]  }
 0x226   :  { %v12516_v20 = vpop.f32.mrb[138].mxu1 }
 0x227   :  { %15483 = vst [vmem:[#allocation71_spill] sm:$0xff] %v12516_v20  ;;  %v5150_v34 = vpop.f32.mrb[139].mxu1 }
 0x228   :  { %v10979_v34 = vld [vmem:[%s15407_s1 + $0x130] sm:$0xff]  }
 0x229   :  { %5360 = vmatmul.mubr.bf16.gmra.mrb[244].mxu1 %v10872_v3  ;;  %5633 = vmatmul.mubr.bf16.gmra.mrb[48].mxu0 %v10873_v25  ;;  %v10882_v25 = vld [vmem:[%s15408_s0 + $0x23c] ss:$20 sps:$4 sm:$0xff]  }
 0x22a   :  { %5367 = vmatprep.mubr.bf16.mxu1 %v10874_v61  ;;  %5640 = vmatprep.mubr.bf16.mxu0 %v10876_v12  ;;  %v10880_v61 = vld [vmem:[%s15408_s0 + $0x1184] ss:$20 sps:$4 sm:$0xff]  }
 0x22b   :  { %9542 = vmatprep.subr.bf16.mxu1 %v10979_v34 }
 0x22c   :  { %v12521_v55 = vpop.f32.mrb[140].mxu1  ;;  %9543 = vmatpush3.bf16.msra.mxu1 %v10979_v34 }
 0x22d   :  { %15484 = vst [vmem:[#allocation72_spill] sm:$0xff] %v12521_v55  ;;  %v5155_v20 = vpop.f32.mrb[141].mxu1  ;;  %v10892_v55 = vld [vmem:[%s15408_s0 + $0x260] ss:$20 sps:$4 sm:$0xff]  }
 0x22e   :  { %v12529_v3 = vpop.f32.mrb[142].mxu1  ;;  %v10980_v20 = vld [vmem:[%s15407_s1 + $0x138] sm:$0xff]  }
 0x22f   :  { %15485 = vst [vmem:[#allocation73_spill] sm:$0xff] %v12529_v3  ;;  %v5158_v12 = vpop.f32.mrb[143].mxu1  ;;  %9544 = vmatprep.subr.bf16.mxu1 %v10980_v20 }
 0x230   :  { %v10885_v12 = vld [vmem:[%s15408_s0 + $0x238] ss:$20 sps:$4 sm:$0xff]   ;;  %9545 = vmatpush3.bf16.msra.mxu1 %v10980_v20  ;;  %v10895_v20 = vld [vmem:[%s15408_s0 + $0x11d4] ss:$20 sps:$4 sm:$0xff]  }
 0x231   :  { %5368 = vmatmul.mubr.bf16.gmra.mrb[248].mxu1 %v10878_v0  ;;  %5641 = vmatmul.mubr.bf16.gmra.mrb[52].mxu0 %v10879_v57 }
 0x232   :  { %5375 = vmatprep.mubr.bf16.mxu1 %v10880_v61  ;;  %5648 = vmatprep.mubr.bf16.mxu0 %v10882_v25  ;;  %v10889_v61 = vld [vmem:[%s15408_s0 + $0x11ac] ss:$20 sps:$4 sm:$0xff]   ;;  %v10890_v25 = vld [vmem:[%s15408_s0 + $0x264] ss:$20 sps:$4 sm:$0xff]  }
 0x234   :  { %v12543_v3 = vpop.f32.mrb[144].mxu1 }
 0x235   :  { %15486 = vst [vmem:[#allocation74_spill] sm:$0xff] %v12543_v3  ;;  %v5163_v0 = vpop.f32.mrb[145].mxu1 }
 0x236   :  { %v12551_v57 = vpop.f32.mrb[146].mxu1 }
 0x237   :  { %15487 = vst [vmem:[#allocation75_spill] sm:$0xff] %v12551_v57  ;;  %v5166_v34 = vpop.f32.mrb[147].mxu1  ;;  %v10887_v57 = vld [vmem:[%s15408_s0 + $0x11a8] ss:$20 sps:$4 sm:$0xff]  }
 0x238   :  { %v10893_v34 = vld [vmem:[%s15408_s0 + $0x11d0] ss:$20 sps:$4 sm:$0xff]  }
 0x239   :  { %5376 = vmatmul.mubr.bf16.gmra.mrb[252].mxu1 %v10884_v40  ;;  %5649 = vmatmul.mubr.bf16.gmra.mrb[56].mxu0 %v10885_v12  ;;  %v10896_v40 = vld [vmem:[%s15408_s0 + $0x28c] ss:$20 sps:$4 sm:$0xff]  }
 0x23a   :  { %5383 = vmatprep.mubr.bf16.mxu1 %v10889_v61  ;;  %5656 = vmatprep.mubr.bf16.mxu0 %v10890_v25 }
 0x23c   :  { %v12559_v3 = vpop.f32.mrb[148].mxu1 }
 0x23d   :  { %15488 = vst [vmem:[#allocation76_spill] sm:$0xff] %v12559_v3  ;;  %v5171_v0 = vpop.f32.mrb[149].mxu1  ;;  %v10965_v3 = vld [vmem:[%s15408_s0 + $0x440] ss:$20 sps:$4 sm:$0xff]  }
 0x23e   :  { %v12567_v51 = vpop.f32.mrb[150].mxu1  ;;  %v10898_v0 = vld [vmem:[%s15408_s0 + $0x288] ss:$20 sps:$4 sm:$0xff]  }
 0x23f   :  { %15489 = vst [vmem:[#allocation77_spill] sm:$0xff] %v12567_v51  ;;  %v5174_v12 = vpop.f32.mrb[151].mxu1 }
 0x241   :  { %5384 = vmatmul.mubr.bf16.gmra.mrb[148].mxu1 %v10887_v57  ;;  %5657 = vmatmul.mubr.bf16.gmra.mrb[60].mxu0 %v10892_v55  ;;  %v10901_v57 = vld [vmem:[%s15408_s0 + $0x11fc] ss:$20 sps:$4 sm:$0xff]   ;;  %v10902_v55 = vld [vmem:[%s15408_s0 + $0x2b4] ss:$20 sps:$4 sm:$0xff]  }
 0x242   :  { %5391 = vmatprep.mubr.bf16.mxu1 %v10895_v20  ;;  %5664 = vmatprep.mubr.bf16.mxu0 %v10896_v40 }
 0x244   :  { %v12575_v61 = vpop.f32.mrb[152].mxu1 }
 0x245   :  { %15490 = vst [vmem:[#allocation78_spill] sm:$0xff] %v12575_v61  ;;  %v5179_v25 = vpop.f32.mrb[153].mxu1 }
 0x246   :  { %v12583_v51 = vpop.f32.mrb[154].mxu1  ;;  %v10899_v25 = vld [vmem:[%s15408_s0 + $0x11f8] ss:$20 sps:$4 sm:$0xff]  }
 0x247   :  { %15491 = vst [vmem:[#allocation79_spill] sm:$0xff] %v12583_v51  ;;  %v5182_v20 = vpop.f32.mrb[155].mxu1  ;;  %v10904_v51 = vld [vmem:[%s15408_s0 + $0x2b0] ss:$20 sps:$4 sm:$0xff]  }
 0x249   :  { %5392 = vmatmul.mubr.bf16.gmra.mrb[152].mxu1 %v10893_v34  ;;  %5665 = vmatmul.mubr.bf16.gmra.mrb[64].mxu0 %v10898_v0  ;;  %v10907_v34 = vld [vmem:[%s15408_s0 + $0x1224] ss:$20 sps:$4 sm:$0xff]   ;;  %v10908_v0 = vld [vmem:[%s15408_s0 + $0x2dc] ss:$20 sps:$4 sm:$0xff]  }
 0x24a   :  { %5399 = vmatprep.mubr.bf16.mxu1 %v10901_v57  ;;  %5672 = vmatprep.mubr.bf16.mxu0 %v10902_v55 }
 0x24c   :  { %v12591_v40 = vpop.f32.mrb[156].mxu1 }
 0x24d   :  { %15492 = vst [vmem:[#allocation80_spill] sm:$0xff] %v12591_v40  ;;  %v5187_v12 = vpop.f32.mrb[157].mxu1 }
 0x24e   :  { %v12599_v61 = vpop.f32.mrb[158].mxu1  ;;  %v10905_v12 = vld [vmem:[%s15408_s0 + $0x1220] ss:$20 sps:$4 sm:$0xff]  }
 0x24f   :  { %15493 = vst [vmem:[#allocation81_spill] sm:$0xff] %v12599_v61  ;;  %v5190_v57 = vpop.f32.mrb[159].mxu1  ;;  %v10910_v61 = vld [vmem:[%s15408_s0 + $0x2d8] ss:$20 sps:$4 sm:$0xff]  }
 0x251   :  { %5400 = vmatmul.mubr.bf16.gmra.mrb[156].mxu1 %v10899_v25  ;;  %5673 = vmatmul.mubr.bf16.gmra.mrb[68].mxu0 %v10904_v51  ;;  %v10913_v25 = vld [vmem:[%s15408_s0 + $0x124c] ss:$20 sps:$4 sm:$0xff]   ;;  %v10914_v51 = vld [vmem:[%s15408_s0 + $0x304] ss:$20 sps:$4 sm:$0xff]  }
 0x252   :  { %5407 = vmatprep.mubr.bf16.mxu1 %v10907_v34  ;;  %5680 = vmatprep.mubr.bf16.mxu0 %v10908_v0 }
 0x254   :  { %v12607_v55 = vpop.f32.mrb[160].mxu1 }
 0x255   :  { %15494 = vst [vmem:[#allocation82_spill] sm:$0xff] %v12607_v55  ;;  %v5195_v20 = vpop.f32.mrb[161].mxu1 }
 0x256   :  { %v12615_v40 = vpop.f32.mrb[162].mxu1  ;;  %v10911_v20 = vld [vmem:[%s15408_s0 + $0x1248] ss:$20 sps:$4 sm:$0xff]  }
 0x257   :  { %15495 = vst [vmem:[#allocation83_spill] sm:$0xff] %v12615_v40  ;;  %v5198_v34 = vpop.f32.mrb[163].mxu1  ;;  %v10916_v40 = vld [vmem:[%s15408_s0 + $0x300] ss:$20 sps:$4 sm:$0xff]  }
 0x259   :  { %5408 = vmatmul.mubr.bf16.gmra.mrb[160].mxu1 %v10905_v12  ;;  %5681 = vmatmul.mubr.bf16.gmra.mrb[72].mxu0 %v10910_v61  ;;  %v10919_v12 = vld [vmem:[%s15408_s0 + $0x1274] ss:$20 sps:$4 sm:$0xff]   ;;  %v10920_v61 = vld [vmem:[%s15408_s0 + $0x32c] ss:$20 sps:$4 sm:$0xff]  }
 0x25a   :  { %5415 = vmatprep.mubr.bf16.mxu1 %v10913_v25  ;;  %5688 = vmatprep.mubr.bf16.mxu0 %v10914_v51 }
 0x25c   :  { %v12623_v0 = vpop.f32.mrb[164].mxu1 }
 0x25d   :  { %15496 = vst [vmem:[#allocation84_spill] sm:$0xff] %v12623_v0  ;;  %v5203_v57 = vpop.f32.mrb[165].mxu1 }
 0x25e   :  { %v12631_v55 = vpop.f32.mrb[166].mxu1  ;;  %v10917_v57 = vld [vmem:[%s15408_s0 + $0x1270] ss:$20 sps:$4 sm:$0xff]  }
 0x25f   :  { %15497 = vst [vmem:[#allocation85_spill] sm:$0xff] %v12631_v55  ;;  %v5206_v25 = vpop.f32.mrb[167].mxu1  ;;  %v10922_v55 = vld [vmem:[%s15408_s0 + $0x328] ss:$20 sps:$4 sm:$0xff]  }
 0x261   :  { %5416 = vmatmul.mubr.bf16.gmra.mrb[164].mxu1 %v10911_v20  ;;  %5689 = vmatmul.mubr.bf16.gmra.mrb[76].mxu0 %v10916_v40  ;;  %v10925_v20 = vld [vmem:[%s15408_s0 + $0x129c] ss:$20 sps:$4 sm:$0xff]   ;;  %v10926_v40 = vld [vmem:[%s15408_s0 + $0x354] ss:$20 sps:$4 sm:$0xff]  }
 0x262   :  { %5423 = vmatprep.mubr.bf16.mxu1 %v10919_v12  ;;  %5696 = vmatprep.mubr.bf16.mxu0 %v10920_v61 }
 0x264   :  { %v12639_v51 = vpop.f32.mrb[168].mxu1 }
 0x265   :  { %15498 = vst [vmem:[#allocation86_spill] sm:$0xff] %v12639_v51  ;;  %v5211_v34 = vpop.f32.mrb[169].mxu1 }
 0x266   :  { %v12647_v0 = vpop.f32.mrb[170].mxu1  ;;  %v10923_v34 = vld [vmem:[%s15408_s0 + $0x1298] ss:$20 sps:$4 sm:$0xff]  }
 0x267   :  { %15499 = vst [vmem:[#allocation87_spill] sm:$0xff] %v12647_v0  ;;  %v5214_v12 = vpop.f32.mrb[171].mxu1  ;;  %v10928_v0 = vld [vmem:[%s15408_s0 + $0x350] ss:$20 sps:$4 sm:$0xff]  }
 0x269   :  { %5424 = vmatmul.mubr.bf16.gmra.mrb[168].mxu1 %v10917_v57  ;;  %5697 = vmatmul.mubr.bf16.gmra.mrb[80].mxu0 %v10922_v55  ;;  %v10931_v57 = vld [vmem:[%s15408_s0 + $0x12c4] ss:$20 sps:$4 sm:$0xff]   ;;  %v10932_v55 = vld [vmem:[%s15408_s0 + $0x37c] ss:$20 sps:$4 sm:$0xff]  }
 0x26a   :  { %5431 = vmatprep.mubr.bf16.mxu1 %v10925_v20  ;;  %5704 = vmatprep.mubr.bf16.mxu0 %v10926_v40 }
 0x26c   :  { %v12655_v61 = vpop.f32.mrb[172].mxu1 }
 0x26d   :  { %15500 = vst [vmem:[#allocation88_spill] sm:$0xff] %v12655_v61  ;;  %v5219_v25 = vpop.f32.mrb[173].mxu1 }
 0x26e   :  { %v12663_v51 = vpop.f32.mrb[174].mxu1  ;;  %v10929_v25 = vld [vmem:[%s15408_s0 + $0x12c0] ss:$20 sps:$4 sm:$0xff]  }
 0x26f   :  { %15501 = vst [vmem:[#allocation89_spill] sm:$0xff] %v12663_v51  ;;  %v5222_v20 = vpop.f32.mrb[175].mxu1  ;;  %v10934_v51 = vld [vmem:[%s15408_s0 + $0x378] ss:$20 sps:$4 sm:$0xff]  }
 0x271   :  { %5432 = vmatmul.mubr.bf16.gmra.mrb[172].mxu1 %v10923_v34  ;;  %5705 = vmatmul.mubr.bf16.gmra.mrb[84].mxu0 %v10928_v0  ;;  %v10937_v34 = vld [vmem:[%s15408_s0 + $0x12ec] ss:$20 sps:$4 sm:$0xff]   ;;  %v10938_v0 = vld [vmem:[%s15408_s0 + $0x3a4] ss:$20 sps:$4 sm:$0xff]  }
 0x272   :  { %5439 = vmatprep.mubr.bf16.mxu1 %v10931_v57  ;;  %5712 = vmatprep.mubr.bf16.mxu0 %v10932_v55 }
 0x274   :  { %v12671_v40 = vpop.f32.mrb[176].mxu1 }
 0x275   :  { %15502 = vst [vmem:[#allocation90_spill] sm:$0xff] %v12671_v40  ;;  %v5227_v12 = vpop.f32.mrb[177].mxu1 }
 0x276   :  { %v12679_v61 = vpop.f32.mrb[178].mxu1  ;;  %v10935_v12 = vld [vmem:[%s15408_s0 + $0x12e8] ss:$20 sps:$4 sm:$0xff]  }
 0x277   :  { %15503 = vst [vmem:[#allocation91_spill] sm:$0xff] %v12679_v61  ;;  %v5230_v57 = vpop.f32.mrb[179].mxu1  ;;  %v10940_v61 = vld [vmem:[%s15408_s0 + $0x3a0] ss:$20 sps:$4 sm:$0xff]  }
 0x279   :  { %5440 = vmatmul.mubr.bf16.gmra.mrb[176].mxu1 %v10929_v25  ;;  %5713 = vmatmul.mubr.bf16.gmra.mrb[88].mxu0 %v10934_v51  ;;  %v10943_v25 = vld [vmem:[%s15408_s0 + $0x1314] ss:$20 sps:$4 sm:$0xff]   ;;  %v10944_v51 = vld [vmem:[%s15408_s0 + $0x3cc] ss:$20 sps:$4 sm:$0xff]  }
 0x27a   :  { %5447 = vmatprep.mubr.bf16.mxu1 %v10937_v34  ;;  %5720 = vmatprep.mubr.bf16.mxu0 %v10938_v0 }
 0x27c   :  { %v12687_v55 = vpop.f32.mrb[180].mxu1 }
 0x27d   :  { %15504 = vst [vmem:[#allocation92_spill] sm:$0xff] %v12687_v55  ;;  %v5235_v20 = vpop.f32.mrb[181].mxu1 }
 0x27e   :  { %v12695_v40 = vpop.f32.mrb[182].mxu1  ;;  %v10941_v20 = vld [vmem:[%s15408_s0 + $0x1310] ss:$20 sps:$4 sm:$0xff]  }
 0x27f   :  { %15505 = vst [vmem:[#allocation93_spill] sm:$0xff] %v12695_v40  ;;  %v5238_v34 = vpop.f32.mrb[183].mxu1  ;;  %v10947_v40 = vld [vmem:[%s15408_s0 + $0x3c8] ss:$20 sps:$4 sm:$0xff]  }
 0x281   :  { %5448 = vmatmul.mubr.bf16.gmra.mrb[180].mxu1 %v10935_v12  ;;  %5721 = vmatmul.mubr.bf16.gmra.mrb[92].mxu0 %v10940_v61  ;;  %v10950_v12 = vld [vmem:[%s15408_s0 + $0x133c] ss:$20 sps:$4 sm:$0xff]   ;;  %v10951_v61 = vld [vmem:[%s15408_s0 + $0x3f4] ss:$20 sps:$4 sm:$0xff]  }
 0x282   :  { %5455 = vmatprep.mubr.bf16.mxu1 %v10943_v25  ;;  %5728 = vmatprep.mubr.bf16.mxu0 %v10944_v51 }
 0x284   :  { %v12703_v0 = vpop.f32.mrb[184].mxu1 }
 0x285   :  { %15506 = vst [vmem:[#allocation94_spill] sm:$0xff] %v12703_v0  ;;  %v5243_v57 = vpop.f32.mrb[185].mxu1 }
 0x286   :  { %v12711_v55 = vpop.f32.mrb[186].mxu1  ;;  %v10948_v57 = vld [vmem:[%s15408_s0 + $0x1338] ss:$20 sps:$4 sm:$0xff]  }
 0x287   :  { %15507 = vst [vmem:[#allocation95_spill] sm:$0xff] %v12711_v55  ;;  %v5246_v25 = vpop.f32.mrb[187].mxu1  ;;  %v10953_v55 = vld [vmem:[%s15408_s0 + $0x3f0] ss:$20 sps:$4 sm:$0xff]  }
 0x289   :  { %5456 = vmatmul.mubr.bf16.gmra.mrb[184].mxu1 %v10941_v20  ;;  %5729 = vmatmul.mubr.bf16.gmra.mrb[96].mxu0 %v10947_v40  ;;  %v10956_v20 = vld [vmem:[%s15408_s0 + $0x1364] ss:$20 sps:$4 sm:$0xff]   ;;  %v10957_v40 = vld [vmem:[%s15408_s0 + $0x41c] ss:$20 sps:$4 sm:$0xff]  }
 0x28a   :  { %5463 = vmatprep.mubr.bf16.mxu1 %v10950_v12  ;;  %5736 = vmatprep.mubr.bf16.mxu0 %v10951_v61 }
 0x28c   :  { %v12719_v51 = vpop.f32.mrb[188].mxu1 }
 0x28d   :  { %15508 = vst [vmem:[#allocation96_spill] sm:$0xff] %v12719_v51  ;;  %v5251_v34 = vpop.f32.mrb[189].mxu1 }
 0x28e   :  { %v12727_v0 = vpop.f32.mrb[190].mxu1  ;;  %v10954_v34 = vld [vmem:[%s15408_s0 + $0x1360] ss:$20 sps:$4 sm:$0xff]  }
 0x28f   :  { %15509 = vst [vmem:[#allocation97_spill] sm:$0xff] %v12727_v0  ;;  %v5254_v12 = vpop.f32.mrb[191].mxu1  ;;  %v10959_v0 = vld [vmem:[%s15408_s0 + $0x418] ss:$20 sps:$4 sm:$0xff]  }
 0x291   :  { %5464 = vmatmul.mubr.bf16.gmra.mrb[188].mxu1 %v10948_v57  ;;  %5737 = vmatmul.mubr.bf16.gmra.mrb[100].mxu0 %v10953_v55  ;;  %v10962_v57 = vld [vmem:[%s15408_s0 + $0x138c] ss:$20 sps:$4 sm:$0xff]   ;;  %v10963_v55 = vld [vmem:[%s15408_s0 + $0x444] ss:$20 sps:$4 sm:$0xff]  }
 0x292   :  { %5471 = vmatprep.mubr.bf16.mxu1 %v10956_v20  ;;  %5744 = vmatprep.mubr.bf16.mxu0 %v10957_v40 }
 0x294   :  { %v12735_v61 = vpop.f32.mrb[192].mxu1 }
 0x295   :  { %15510 = vst [vmem:[#allocation98_spill] sm:$0xff] %v12735_v61  ;;  %v5259_v25 = vpop.f32.mrb[193].mxu1 }
 0x296   :  { %v12743_v51 = vpop.f32.mrb[194].mxu1 }
 0x297   :  { %15511 = vst [vmem:[#allocation99_spill] sm:$0xff] %v12743_v51  ;;  %v5262_v20 = vpop.f32.mrb[195].mxu1  ;;  %v10960_v51 = vld [vmem:[%s15408_s0 + $0x1388] ss:$20 sps:$4 sm:$0xff]  }
 0x299   :  { %5472 = vmatmul.mubr.bf16.gmra.mrb[192].mxu1 %v10954_v34  ;;  %5745 = vmatmul.mubr.bf16.gmra.mrb[104].mxu0 %v10959_v0  ;;  %v10968_v0 = vld [vmem:[%s15408_s0 + $0x13b4] ss:$20 sps:$4 sm:$0xff]  }
 0x29a   :  { %5479 = vmatprep.mubr.bf16.mxu1 %v10962_v57  ;;  %5752 = vmatprep.mubr.bf16.mxu0 %v10963_v55 }
 0x29c   :  { %v12751_v40 = vpop.f32.mrb[0].mxu0  ;;  %v12753_v12 = vpop.f32.mrb[196].mxu1 }
 0x29d   :  { %15512 = vst [vmem:[#allocation100_spill] sm:$0xff] %v12753_v12  ;;  %v5540_v25 = vpop.f32.mrb[1].mxu0  ;;  %v5267_v61 = vpop.f32.mrb[197].mxu1 }
 0x29e   :  { %v12761_v16 = vpop.f32.mrb[2].mxu0  ;;  %v12763_v34 = vpop.f32.mrb[198].mxu1  ;;  %v10969_v61 = vld [vmem:[%s15408_s0 + $0x46c] ss:$20 sps:$4 sm:$0xff]  }
 0x29f   :  { %15513 = vst [vmem:[#allocation101_spill] sm:$0xff] %v12763_v34  ;;  %v5543_v57 = vpop.f32.mrb[3].mxu0  ;;  %v5270_v55 = vpop.f32.mrb[199].mxu1 }
 0x2a1   :  { %5480 = vmatmul.mubr.bf16.gmra.mrb[196].mxu1 %v10960_v51  ;;  %5753 = vmatmul.mubr.bf16.gmra.mrb[108].mxu0 %v10965_v3  ;;  %v10975_v3 = vld [vmem:[%s15408_s0 + $0x13dc] ss:$20 sps:$4 sm:$0xff]  }
 0x2a2   :  { %5487 = vmatprep.mubr.bf16.mxu1 %v10968_v0  ;;  %5760 = vmatprep.mubr.bf16.mxu0 %v10969_v61 }
 0x2a4   :  { %v12771_v20 = vpop.f32.mrb[4].mxu0  ;;  %v12773_v25 = vpop.f32.mrb[200].mxu1 }
 0x2a5   :  { %15514 = vst [vmem:[#allocation102_spill] sm:$0xff] %v12773_v25  ;;  %v5548_v12 = vpop.f32.mrb[5].mxu0  ;;  %v5275_v34 = vpop.f32.mrb[201].mxu1 }
 0x2a6   :  { %v12781_v57 = vpop.f32.mrb[6].mxu0  ;;  %v12783_v51 = vpop.f32.mrb[202].mxu1  ;;  %v10976_v12 = vld [vmem:[%s15408_s0 + $0x494] ss:$20 sps:$4 sm:$0xff]  }
 0x2a7   :  { %15515 = vst [vmem:[#allocation103_spill] sm:$0xff] %v12783_v51  ;;  %v5551_v34 = vpop.f32.mrb[7].mxu0  ;;  %v5278_v0 = vpop.f32.mrb[203].mxu1 }
 0x2a9   :  { %5488 = vmatmul.mubr.bf16.gmra.mrb[200].mxu1 %v10966_v4  ;;  %5761 = vmatmul.mubr.bf16.gmra.mrb[112].mxu0 %v10971_v41  ;;  %v10981_v41 = vld [vmem:[%s15408_s0 + $0x4bc] ss:$20 sps:$4 sm:$0xff]  }
 0x2aa   :  { %5495 = vmatprep.mubr.bf16.mxu1 %v10975_v3  ;;  %5768 = vmatprep.mubr.bf16.mxu0 %v10976_v12 }
 0x2ac   :  { %v12791_v61 = vpop.f32.mrb[8].mxu0  ;;  %v12793_v55 = vpop.f32.mrb[204].mxu1 }
 0x2ad   :  { %15516 = vst [vmem:[#allocation104_spill] sm:$0xff] %v12793_v55  ;;  %v5556_v25 = vpop.f32.mrb[9].mxu0  ;;  %v5283_v51 = vpop.f32.mrb[205].mxu1 }
 0x2ae   :  { %v12801_v34 = vpop.f32.mrb[10].mxu0  ;;  %v12803_v4 = vpop.f32.mrb[206].mxu1  ;;  %v10983_v25 = vld [vmem:[%s15408_s0 + $0x10] ss:$20 sps:$4 sm:$0xff]  }
 0x2af   :  { %15517 = vst [vmem:[#allocation105_spill] sm:$0xff] %v12803_v4  ;;  %v5559_v51 = vpop.f32.mrb[11].mxu0  ;;  %v5286_v3 = vpop.f32.mrb[207].mxu1  ;;  %v10984_v4 = vld [vmem:[%s15408_s0 + $0x4b8] ss:$20 sps:$4 sm:$0xff]  }
 0x2b1   :  { %5496 = vmatmul.mubr.bf16.gmra.mrb[204].mxu1 %v10973_v38  ;;  %5769 = vmatmul.mubr.bf16.gmra.mrb[116].mxu0 %v10978_v15  ;;  %v10986_v15 = vld [vmem:[%s15408_s0 + $0x4e4] ss:$20 sps:$4 sm:$0xff]   ;;  %v10988_v38 = vld [vmem:[%s15408_s0 + $0x60] ss:$20 sps:$4 sm:$0xff]  }
 0x2b2   :  { %5776 = vmatprep.mubr.bf16.mxu0 %v10981_v41  ;;  %9546 = vmatprep.mubr.bf16.mxu1 %v10983_v25 }
 0x2b4   :  { %v12811_v12 = vpop.f32.mrb[12].mxu0  ;;  %v12813_v0 = vpop.f32.mrb[208].mxu1 }
 0x2b5   :  { %15518 = vst [vmem:[#allocation106_spill] sm:$0xff] %v12813_v0  ;;  %v5564_v55 = vpop.f32.mrb[13].mxu0  ;;  %v5291_v53 = vpop.f32.mrb[209].mxu1 }
 0x2b6   :  { %v12821_v51 = vpop.f32.mrb[14].mxu0  ;;  %v12829_v55 = vpop.f32.mrb[210].mxu1 }
 0x2b7   :  { %15519 = vst [vmem:[#allocation107_spill] sm:$0xff] %v12829_v55  ;;  %v5567_v41 = vpop.f32.mrb[15].mxu0  ;;  %v5294_v25 = vpop.f32.mrb[211].mxu1 }
 0x2b9   :  { %5777 = vmatmul.mubr.bf16.gmra.mrb[120].mxu0 %v10984_v4  ;;  %9547 = vmatmul.mubr.bf16.vlgmr.msra.gmra.mrb[0].mxu1 %v10985_v8  ;;  %v10991_v8 = vld [vmem:[%s15408_s0 + $0x50c] ss:$20 sps:$4 sm:$0xff]   ;;  %v10993_v4 = vld [vmem:[%s15408_s0 + $0xb0] ss:$20 sps:$4 sm:$0xff]  }
 0x2ba   :  { %5784 = vmatprep.mubr.bf16.mxu0 %v10986_v15  ;;  %9550 = vmatprep.mubr.bf16.mxu1 %v10988_v38 }
 0x2bc   :  { %v12831_v3 = vpop.f32.mrb[16].mxu0  ;;  %v12833_v53 = vpop.f32.mrb[212].mxu1 }
 0x2bd   :  { %15520 = vst [vmem:[#allocation108_spill] sm:$0xff] %v12833_v53  ;;  %v5572_v0 = vpop.f32.mrb[17].mxu0  ;;  %v5299_v55 = vpop.f32.mrb[213].mxu1 }
 0x2be   :  { %v12841_v41 = vpop.f32.mrb[18].mxu0  ;;  %v12849_v0 = vpop.f32.mrb[214].mxu1 }
 0x2bf   :  { %15521 = vst [vmem:[#allocation109_spill] sm:$0xff] %v12849_v0  ;;  %v5575_v15 = vpop.f32.mrb[19].mxu0  ;;  %v5302_v38 = vpop.f32.mrb[215].mxu1 }
 0x2c1   :  { %5785 = vmatmul.mubr.bf16.gmra.mrb[124].mxu0 %v10989_v46  ;;  %9551 = vmatmul.mubr.bf16.gmra.mrb[4].mxu1 %v10990_v29  ;;  %v10996_v29 = vld [vmem:[%s15408_s0 + $0x534] ss:$20 sps:$4 sm:$0xff]  }
 0x2c2   :  { %5792 = vmatprep.mubr.bf16.mxu0 %v10991_v8  ;;  %9554 = vmatprep.mubr.bf16.mxu1 %v10993_v4  ;;  %v10998_v46 = vld [vmem:[%s15408_s0 + $0x100] ss:$20 sps:$4 sm:$0xff]  }
 0x2c4   :  { %v12851_v25 = vpop.f32.mrb[20].mxu0  ;;  %v12853_v55 = vpop.f32.mrb[216].mxu1 }
 0x2c5   :  { %15522 = vst [vmem:[#allocation110_spill] sm:$0xff] %v12853_v55  ;;  %v5580_v53 = vpop.f32.mrb[21].mxu0  ;;  %v5307_v0 = vpop.f32.mrb[217].mxu1 }
 0x2c6   :  { %v12861_v15 = vpop.f32.mrb[22].mxu0  ;;  %v12869_v53 = vpop.f32.mrb[218].mxu1 }
 0x2c7   :  { %15523 = vst [vmem:[#allocation111_spill] sm:$0xff] %v12869_v53  ;;  %v5583_v8 = vpop.f32.mrb[23].mxu0  ;;  %v5310_v4 = vpop.f32.mrb[219].mxu1 }
 0x2c9   :  { %5793 = vmatmul.mubr.bf16.gmra.mrb[128].mxu0 %v10994_v24  ;;  %9555 = vmatmul.mubr.bf16.gmra.mrb[8].mxu1 %v10995_v6  ;;  %v11001_v6 = vld [vmem:[%s15408_s0 + $0x55c] ss:$20 sps:$4 sm:$0xff]  }
 0x2ca   :  { %5800 = vmatprep.mubr.bf16.mxu0 %v10996_v29  ;;  %9558 = vmatprep.mubr.bf16.mxu1 %v10998_v46  ;;  %v11003_v24 = vld [vmem:[%s15408_s0 + $0x150] ss:$20 sps:$4 sm:$0xff]  }
 0x2cc   :  { %v12871_v38 = vpop.f32.mrb[24].mxu0  ;;  %v12873_v0 = vpop.f32.mrb[220].mxu1 }
 0x2cd   :  { %15524 = vst [vmem:[#allocation112_spill] sm:$0xff] %v12873_v0  ;;  %v5588_v55 = vpop.f32.mrb[25].mxu0  ;;  %v5315_v53 = vpop.f32.mrb[221].mxu1 }
 0x2ce   :  { %v12881_v8 = vpop.f32.mrb[26].mxu0  ;;  %v12889_v55 = vpop.f32.mrb[222].mxu1 }
 0x2cf   :  { %15525 = vst [vmem:[#allocation113_spill] sm:$0xff] %v12889_v55  ;;  %v5591_v29 = vpop.f32.mrb[27].mxu0  ;;  %v5318_v46 = vpop.f32.mrb[223].mxu1 }
 0x2d1   :  { %5801 = vmatmul.mubr.bf16.gmra.mrb[132].mxu0 %v10999_v2  ;;  %9559 = vmatmul.mubr.bf16.gmra.mrb[12].mxu1 %v11000_v50  ;;  %v11006_v50 = vld [vmem:[%s15408_s0 + $0x584] ss:$20 sps:$4 sm:$0xff]   ;;  %v11008_v2 = vld [vmem:[%s15408_s0 + $0x1a0] ss:$20 sps:$4 sm:$0xff]  }
 0x2d2   :  { %5808 = vmatprep.mubr.bf16.mxu0 %v11001_v6  ;;  %9562 = vmatprep.mubr.bf16.mxu1 %v11003_v24 }
 0x2d4   :  { %v12891_v4 = vpop.f32.mrb[28].mxu0  ;;  %v12893_v53 = vpop.f32.mrb[224].mxu1 }
 0x2d5   :  { %15526 = vst [vmem:[#allocation114_spill] sm:$0xff] %v12893_v53  ;;  %v5596_v0 = vpop.f32.mrb[29].mxu0  ;;  %v5323_v55 = vpop.f32.mrb[225].mxu1 }
 0x2d6   :  { %v12901_v29 = vpop.f32.mrb[30].mxu0  ;;  %v12909_v0 = vpop.f32.mrb[226].mxu1 }
 0x2d7   :  { %15527 = vst [vmem:[#allocation115_spill] sm:$0xff] %v12909_v0  ;;  %v5599_v6 = vpop.f32.mrb[31].mxu0  ;;  %v5326_v24 = vpop.f32.mrb[227].mxu1 }
 0x2d9   :  { %5809 = vmatmul.mubr.bf16.gmra.mrb[136].mxu0 %v11004_v44  ;;  %9563 = vmatmul.mubr.bf16.gmra.mrb[16].mxu1 %v11005_v30  ;;  %v11011_v30 = vld [vmem:[%s15408_s0 + $0x5ac] ss:$20 sps:$4 sm:$0xff]   ;;  %v11013_v44 = vld [vmem:[%s15408_s0 + $0x1f0] ss:$20 sps:$4 sm:$0xff]  }
 0x2da   :  { %5816 = vmatprep.mubr.bf16.mxu0 %v11006_v50  ;;  %9566 = vmatprep.mubr.bf16.mxu1 %v11008_v2 }
 0x2dc   :  { %v12911_v46 = vpop.f32.mrb[32].mxu0  ;;  %v12913_v55 = vpop.f32.mrb[228].mxu1 }
 0x2dd   :  { %15528 = vst [vmem:[#allocation116_spill] sm:$0xff] %v12913_v55  ;;  %v5604_v53 = vpop.f32.mrb[33].mxu0  ;;  %v5331_v0 = vpop.f32.mrb[229].mxu1 }
 0x2de   :  { %v12921_v6 = vpop.f32.mrb[34].mxu0  ;;  %v12929_v53 = vpop.f32.mrb[230].mxu1 }
 0x2df   :  { %15529 = vst [vmem:[#allocation117_spill] sm:$0xff] %v12929_v53  ;;  %v5607_v50 = vpop.f32.mrb[35].mxu0  ;;  %v5334_v2 = vpop.f32.mrb[231].mxu1 }
 0x2e1   :  { %5817 = vmatmul.mubr.bf16.gmra.mrb[140].mxu0 %v11009_v26  ;;  %9567 = vmatmul.mubr.bf16.gmra.mrb[20].mxu1 %v11010_v14  ;;  %v11016_v14 = vld [vmem:[%s15408_s0 + $0x5d4] ss:$20 sps:$4 sm:$0xff]  }
 0x2e2   :  { %5824 = vmatprep.mubr.bf16.mxu0 %v11011_v30  ;;  %9570 = vmatprep.mubr.bf16.mxu1 %v11013_v44  ;;  %v11018_v26 = vld [vmem:[%s15408_s0 + $0x240] ss:$20 sps:$4 sm:$0xff]  }
 0x2e4   :  { %v12931_v24 = vpop.f32.mrb[36].mxu0  ;;  %v12933_v0 = vpop.f32.mrb[232].mxu1 }
 0x2e5   :  { %15530 = vst [vmem:[#allocation118_spill] sm:$0xff] %v12933_v0  ;;  %v5612_v55 = vpop.f32.mrb[37].mxu0  ;;  %v5339_v53 = vpop.f32.mrb[233].mxu1 }
 0x2e6   :  { %v12941_v50 = vpop.f32.mrb[38].mxu0  ;;  %v12949_v55 = vpop.f32.mrb[234].mxu1 }
 0x2e7   :  { %15531 = vst [vmem:[#allocation119_spill] sm:$0xff] %v12949_v55  ;;  %v5615_v30 = vpop.f32.mrb[39].mxu0  ;;  %v5342_v44 = vpop.f32.mrb[235].mxu1 }
 0x2e9   :  { %5825 = vmatmul.mubr.bf16.gmra.mrb[144].mxu0 %v11014_v11  ;;  %9571 = vmatmul.mubr.bf16.gmra.mrb[24].mxu1 %v11015_v63  ;;  %v11021_v63 = vld [vmem:[%s15408_s0 + $0x5fc] ss:$20 sps:$4 sm:$0xff]  }
 0x2ea   :  { %5832 = vmatprep.mubr.bf16.mxu0 %v11016_v14  ;;  %9574 = vmatprep.mubr.bf16.mxu1 %v11018_v26  ;;  %v11023_v11 = vld [vmem:[%s15408_s0 + $0x290] ss:$20 sps:$4 sm:$0xff]  }
 0x2ec   :  { %v12951_v2 = vpop.f32.mrb[40].mxu0  ;;  %v12953_v53 = vpop.f32.mrb[236].mxu1 }
 0x2ed   :  { %15532 = vst [vmem:[#allocation120_spill] sm:$0xff] %v12953_v53  ;;  %v5620_v0 = vpop.f32.mrb[41].mxu0  ;;  %v5347_v55 = vpop.f32.mrb[237].mxu1 }
 0x2ee   :  { %v12961_v30 = vpop.f32.mrb[42].mxu0  ;;  %v12969_v0 = vpop.f32.mrb[238].mxu1 }
 0x2ef   :  { %15533 = vst [vmem:[#allocation121_spill] sm:$0xff] %v12969_v0  ;;  %v5623_v14 = vpop.f32.mrb[43].mxu0  ;;  %v5350_v26 = vpop.f32.mrb[239].mxu1 }
 0x2f1   :  { %5833 = vmatmul.mubr.bf16.gmra.mrb[148].mxu0 %v11019_v58  ;;  %9575 = vmatmul.mubr.bf16.gmra.mrb[28].mxu1 %v11020_v49  ;;  %v11026_v49 = vld [vmem:[%s15408_s0 + $0x624] ss:$20 sps:$4 sm:$0xff]   ;;  %v11028_v58 = vld [vmem:[%s15408_s0 + $0x2e0] ss:$20 sps:$4 sm:$0xff]  }
 0x2f2   :  { %5840 = vmatprep.mubr.bf16.mxu0 %v11021_v63  ;;  %9578 = vmatprep.mubr.bf16.mxu1 %v11023_v11 }
 0x2f4   :  { %v12971_v44 = vpop.f32.mrb[44].mxu0  ;;  %v12973_v55 = vpop.f32.mrb[240].mxu1 }
 0x2f5   :  { %15534 = vst [vmem:[#allocation122_spill] sm:$0xff] %v12973_v55  ;;  %v5628_v53 = vpop.f32.mrb[45].mxu0  ;;  %v5355_v0 = vpop.f32.mrb[241].mxu1 }
 0x2f6   :  { %v12981_v14 = vpop.f32.mrb[46].mxu0  ;;  %v12989_v53 = vpop.f32.mrb[242].mxu1 }
 0x2f7   :  { %15535 = vst [vmem:[#allocation123_spill] sm:$0xff] %v12989_v53  ;;  %v5631_v63 = vpop.f32.mrb[47].mxu0  ;;  %v5358_v11 = vpop.f32.mrb[243].mxu1 }
 0x2f9   :  { %5841 = vmatmul.mubr.bf16.gmra.mrb[152].mxu0 %v11024_v45  ;;  %9579 = vmatmul.mubr.bf16.gmra.mrb[32].mxu1 %v11025_v35  ;;  %v11031_v35 = vld [vmem:[%s15408_s0 + $0x64c] ss:$20 sps:$4 sm:$0xff]   ;;  %v11033_v45 = vld [vmem:[%s15408_s0 + $0x330] ss:$20 sps:$4 sm:$0xff]  }
 0x2fa   :  { %5848 = vmatprep.mubr.bf16.mxu0 %v11026_v49  ;;  %9582 = vmatprep.mubr.bf16.mxu1 %v11028_v58 }
 0x2fc   :  { %v12991_v26 = vpop.f32.mrb[48].mxu0  ;;  %v12993_v0 = vpop.f32.mrb[244].mxu1 }
 0x2fd   :  { %15536 = vst [vmem:[#allocation124_spill] sm:$0xff] %v12993_v0  ;;  %v5636_v55 = vpop.f32.mrb[49].mxu0  ;;  %v5363_v53 = vpop.f32.mrb[245].mxu1 }
 0x2fe   :  { %v13001_v63 = vpop.f32.mrb[50].mxu0  ;;  %v13009_v55 = vpop.f32.mrb[246].mxu1 }
 0x2ff   :  { %15537 = vst [vmem:[#allocation125_spill] sm:$0xff] %v13009_v55  ;;  %v5639_v49 = vpop.f32.mrb[51].mxu0  ;;  %v5366_v58 = vpop.f32.mrb[247].mxu1 }
 0x301   :  { %5849 = vmatmul.mubr.bf16.gmra.mrb[156].mxu0 %v11029_v31  ;;  %9583 = vmatmul.mubr.bf16.gmra.mrb[36].mxu1 %v11030_v21  ;;  %v11036_v21 = vld [vmem:[%s15408_s0 + $0x674] ss:$20 sps:$4 sm:$0xff]  }
 0x302   :  { %5856 = vmatprep.mubr.bf16.mxu0 %v11031_v35  ;;  %9586 = vmatprep.mubr.bf16.mxu1 %v11033_v45  ;;  %v11038_v31 = vld [vmem:[%s15408_s0 + $0x380] ss:$20 sps:$4 sm:$0xff]  }
 0x304   :  { %v13011_v11 = vpop.f32.mrb[52].mxu0  ;;  %v13013_v53 = vpop.f32.mrb[248].mxu1 }
 0x305   :  { %15538 = vst [vmem:[#allocation126_spill] sm:$0xff] %v13013_v53  ;;  %v5644_v0 = vpop.f32.mrb[53].mxu0  ;;  %v5371_v55 = vpop.f32.mrb[249].mxu1 }
 0x306   :  { %v13021_v49 = vpop.f32.mrb[54].mxu0  ;;  %v13029_v0 = vpop.f32.mrb[250].mxu1 }
 0x307   :  { %15539 = vst [vmem:[#allocation127_spill] sm:$0xff] %v13029_v0  ;;  %v5647_v35 = vpop.f32.mrb[55].mxu0  ;;  %v5374_v45 = vpop.f32.mrb[251].mxu1 }
 0x309   :  { %5857 = vmatmul.mubr.bf16.gmra.mrb[160].mxu0 %v11034_v19  ;;  %9587 = vmatmul.mubr.bf16.gmra.mrb[40].mxu1 %v11035_v10  ;;  %v11041_v10 = vld [vmem:[%s15408_s0 + $0x69c] ss:$20 sps:$4 sm:$0xff]  }
 0x30a   :  { %5864 = vmatprep.mubr.bf16.mxu0 %v11036_v21  ;;  %9590 = vmatprep.mubr.bf16.mxu1 %v11038_v31  ;;  %v11043_v19 = vld [vmem:[%s15408_s0 + $0x3d0] ss:$20 sps:$4 sm:$0xff]  }
 0x30c   :  { %v13031_v58 = vpop.f32.mrb[56].mxu0  ;;  %v13033_v55 = vpop.f32.mrb[252].mxu1 }
 0x30d   :  { %15540 = vst [vmem:[#allocation128_spill] sm:$0xff] %v13033_v55  ;;  %v5652_v53 = vpop.f32.mrb[57].mxu0  ;;  %v5379_v0 = vpop.f32.mrb[253].mxu1 }
 0x30e   :  { %v13041_v35 = vpop.f32.mrb[58].mxu0  ;;  %v13049_v53 = vpop.f32.mrb[254].mxu1 }
 0x30f   :  { %15541 = vst [vmem:[#allocation129_spill] sm:$0xff] %v13049_v53  ;;  %v5655_v21 = vpop.f32.mrb[59].mxu0  ;;  %v5382_v31 = vpop.f32.mrb[255].mxu1 }
 0x311   :  { %5865 = vmatmul.mubr.bf16.gmra.mrb[164].mxu0 %v11039_v7  ;;  %9591 = vmatmul.mubr.bf16.gmra.mrb[44].mxu1 %v11040_v62  ;;  %v11046_v62 = vld [vmem:[%s15408_s0 + $0x6c4] ss:$20 sps:$4 sm:$0xff]   ;;  %v11048_v7 = vld [vmem:[%s15408_s0 + $0x420] ss:$20 sps:$4 sm:$0xff]  }
 0x312   :  { %5872 = vmatprep.mubr.bf16.mxu0 %v11041_v10  ;;  %9594 = vmatprep.mubr.bf16.mxu1 %v11043_v19 }
 0x314   :  { %v13051_v45 = vpop.f32.mrb[60].mxu0  ;;  %v13053_v0 = vpop.f32.mrb[148].mxu1 }
 0x315   :  { %15542 = vst [vmem:[#allocation130_spill] sm:$0xff] %v13053_v0  ;;  %v5660_v55 = vpop.f32.mrb[61].mxu0  ;;  %v5387_v53 = vpop.f32.mrb[149].mxu1 }
 0x316   :  { %v13061_v21 = vpop.f32.mrb[62].mxu0  ;;  %v13069_v55 = vpop.f32.mrb[150].mxu1 }
 0x317   :  { %15543 = vst [vmem:[#allocation131_spill] sm:$0xff] %v13069_v55  ;;  %v5663_v10 = vpop.f32.mrb[63].mxu0  ;;  %v5390_v19 = vpop.f32.mrb[151].mxu1 }
 0x319   :  { %5873 = vmatmul.mubr.bf16.gmra.mrb[168].mxu0 %v11044_v59  ;;  %9595 = vmatmul.mubr.bf16.gmra.mrb[48].mxu1 %v11045_v54  ;;  %v11051_v54 = vld [vmem:[%s15408_s0 + $0x6ec] ss:$20 sps:$4 sm:$0xff]   ;;  %v11053_v59 = vld [vmem:[%s15408_s0 + $0x470] ss:$20 sps:$4 sm:$0xff]  }
 0x31a   :  { %5880 = vmatprep.mubr.bf16.mxu0 %v11046_v62  ;;  %9598 = vmatprep.mubr.bf16.mxu1 %v11048_v7 }
 0x31c   :  { %v13071_v31 = vpop.f32.mrb[64].mxu0  ;;  %v13073_v53 = vpop.f32.mrb[152].mxu1 }
 0x31d   :  { %15544 = vst [vmem:[#allocation132_spill] sm:$0xff] %v13073_v53  ;;  %v5668_v0 = vpop.f32.mrb[65].mxu0  ;;  %v5395_v55 = vpop.f32.mrb[153].mxu1 }
 0x31e   :  { %v13081_v10 = vpop.f32.mrb[66].mxu0  ;;  %v13089_v0 = vpop.f32.mrb[154].mxu1 }
 0x31f   :  { %15545 = vst [vmem:[#allocation133_spill] sm:$0xff] %v13089_v0  ;;  %v5671_v62 = vpop.f32.mrb[67].mxu0  ;;  %v5398_v7 = vpop.f32.mrb[155].mxu1 }
 0x321   :  { %5881 = vmatmul.mubr.bf16.gmra.mrb[172].mxu0 %v11049_v48  ;;  %9599 = vmatmul.mubr.bf16.gmra.mrb[52].mxu1 %v11050_v42  ;;  %v11056_v42 = vld [vmem:[%s15408_s0 + $0x714] ss:$20 sps:$4 sm:$0xff]  }
 0x322   :  { %5888 = vmatprep.mubr.bf16.mxu0 %v11051_v54  ;;  %9602 = vmatprep.mubr.bf16.mxu1 %v11053_v59  ;;  %v11058_v48 = vld [vmem:[%s15408_s0 + $0x4c0] ss:$20 sps:$4 sm:$0xff]  }
 0x324   :  { %v13091_v19 = vpop.f32.mrb[68].mxu0  ;;  %v13093_v55 = vpop.f32.mrb[156].mxu1 }
 0x325   :  { %15546 = vst [vmem:[#allocation134_spill] sm:$0xff] %v13093_v55  ;;  %v5676_v53 = vpop.f32.mrb[69].mxu0  ;;  %v5403_v0 = vpop.f32.mrb[157].mxu1 }
 0x326   :  { %v13101_v62 = vpop.f32.mrb[70].mxu0  ;;  %v13109_v53 = vpop.f32.mrb[158].mxu1 }
 0x327   :  { %15547 = vst [vmem:[#allocation135_spill] sm:$0xff] %v13109_v53  ;;  %v5679_v54 = vpop.f32.mrb[71].mxu0  ;;  %v5406_v59 = vpop.f32.mrb[159].mxu1 }
 0x329   :  { %5889 = vmatmul.mubr.bf16.gmra.mrb[176].mxu0 %v11054_v37  ;;  %9603 = vmatmul.mubr.bf16.gmra.mrb[56].mxu1 %v11055_v33  ;;  %v11061_v33 = vld [vmem:[%s15408_s0 + $0x73c] ss:$20 sps:$4 sm:$0xff]  }
 0x32a   :  { %5896 = vmatprep.mubr.bf16.mxu0 %v11056_v42  ;;  %9606 = vmatprep.mubr.bf16.mxu1 %v11058_v48  ;;  %v11063_v37 = vld [vmem:[%s15408_s0 + $0x510] ss:$20 sps:$4 sm:$0xff]  }
 0x32c   :  { %v13111_v7 = vpop.f32.mrb[72].mxu0  ;;  %v13113_v0 = vpop.f32.mrb[160].mxu1 }
 0x32d   :  { %15548 = vst [vmem:[#allocation136_spill] sm:$0xff] %v13113_v0  ;;  %v5684_v55 = vpop.f32.mrb[73].mxu0  ;;  %v5411_v53 = vpop.f32.mrb[161].mxu1 }
 0x32e   :  { %v13121_v54 = vpop.f32.mrb[74].mxu0  ;;  %v13129_v55 = vpop.f32.mrb[162].mxu1 }
 0x32f   :  { %15549 = vst [vmem:[#allocation137_spill] sm:$0xff] %v13129_v55  ;;  %v5687_v42 = vpop.f32.mrb[75].mxu0  ;;  %v5414_v48 = vpop.f32.mrb[163].mxu1 }
 0x331   :  { %5897 = vmatmul.mubr.bf16.gmra.mrb[180].mxu0 %v11059_v27  ;;  %9607 = vmatmul.mubr.bf16.gmra.mrb[60].mxu1 %v11060_v23  ;;  %v11066_v23 = vld [vmem:[%s15408_s0 + $0x764] ss:$20 sps:$4 sm:$0xff]   ;;  %v11068_v27 = vld [vmem:[%s15408_s0 + $0x560] ss:$20 sps:$4 sm:$0xff]  }
 0x332   :  { %5904 = vmatprep.mubr.bf16.mxu0 %v11061_v33  ;;  %9610 = vmatprep.mubr.bf16.mxu1 %v11063_v37 }
 0x334   :  { %v13131_v59 = vpop.f32.mrb[76].mxu0  ;;  %v13133_v53 = vpop.f32.mrb[164].mxu1 }
 0x335   :  { %15550 = vst [vmem:[#allocation138_spill] sm:$0xff] %v13133_v53  ;;  %v5692_v0 = vpop.f32.mrb[77].mxu0  ;;  %v5419_v55 = vpop.f32.mrb[165].mxu1 }
 0x336   :  { %v13141_v42 = vpop.f32.mrb[78].mxu0  ;;  %v13149_v0 = vpop.f32.mrb[166].mxu1 }
 0x337   :  { %15551 = vst [vmem:[#allocation139_spill] sm:$0xff] %v13149_v0  ;;  %v5695_v33 = vpop.f32.mrb[79].mxu0  ;;  %v5422_v37 = vpop.f32.mrb[167].mxu1 }
 0x339   :  { %5905 = vmatmul.mubr.bf16.gmra.mrb[184].mxu0 %v11064_v17  ;;  %9611 = vmatmul.mubr.bf16.gmra.mrb[64].mxu1 %v11065_v13  ;;  %v11071_v13 = vld [vmem:[%s15408_s0 + $0x78c] ss:$20 sps:$4 sm:$0xff]   ;;  %v11073_v17 = vld [vmem:[%s15408_s0 + $0x5b0] ss:$20 sps:$4 sm:$0xff]  }
 0x33a   :  { %5912 = vmatprep.mubr.bf16.mxu0 %v11066_v23  ;;  %9614 = vmatprep.mubr.bf16.mxu1 %v11068_v27 }
 0x33c   :  { %v13151_v48 = vpop.f32.mrb[80].mxu0  ;;  %v13153_v55 = vpop.f32.mrb[168].mxu1 }
 0x33d   :  { %15552 = vst [vmem:[#allocation140_spill] sm:$0xff] %v13153_v55  ;;  %v5700_v53 = vpop.f32.mrb[81].mxu0  ;;  %v5427_v0 = vpop.f32.mrb[169].mxu1 }
 0x33e   :  { %v13161_v33 = vpop.f32.mrb[82].mxu0  ;;  %v13169_v53 = vpop.f32.mrb[170].mxu1 }
 0x33f   :  { %15553 = vst [vmem:[#allocation141_spill] sm:$0xff] %v13169_v53  ;;  %v5703_v23 = vpop.f32.mrb[83].mxu0  ;;  %v5430_v27 = vpop.f32.mrb[171].mxu1 }
 0x341   :  { %5913 = vmatmul.mubr.bf16.gmra.mrb[188].mxu0 %v11069_v9  ;;  %9615 = vmatmul.mubr.bf16.gmra.mrb[68].mxu1 %v11070_v5  ;;  %v11076_v5 = vld [vmem:[%s15408_s0 + $0x7b4] ss:$20 sps:$4 sm:$0xff]  }
 0x342   :  { %5920 = vmatprep.mubr.bf16.mxu0 %v11071_v13  ;;  %9618 = vmatprep.mubr.bf16.mxu1 %v11073_v17  ;;  %v11078_v9 = vld [vmem:[%s15408_s0 + $0x600] ss:$20 sps:$4 sm:$0xff]  }
 0x344   :  { %v13171_v37 = vpop.f32.mrb[84].mxu0  ;;  %v13173_v0 = vpop.f32.mrb[172].mxu1 }
 0x345   :  { %15554 = vst [vmem:[#allocation142_spill] sm:$0xff] %v13173_v0  ;;  %v5708_v55 = vpop.f32.mrb[85].mxu0  ;;  %v5435_v53 = vpop.f32.mrb[173].mxu1 }
 0x346   :  { %v13181_v23 = vpop.f32.mrb[86].mxu0  ;;  %v13189_v55 = vpop.f32.mrb[174].mxu1 }
 0x347   :  { %15555 = vst [vmem:[#allocation143_spill] sm:$0xff] %v13189_v55  ;;  %v5711_v13 = vpop.f32.mrb[87].mxu0  ;;  %v5438_v17 = vpop.f32.mrb[175].mxu1 }
 0x349   :  { %5921 = vmatmul.mubr.bf16.gmra.mrb[192].mxu0 %v11074_v1  ;;  %9619 = vmatmul.mubr.bf16.gmra.mrb[72].mxu1 %v11075_v60  ;;  %v11081_v60 = vld [vmem:[%s15408_s0 + $0x7dc] ss:$20 sps:$4 sm:$0xff]  }
 0x34a   :  { %5928 = vmatprep.mubr.bf16.mxu0 %v11076_v5  ;;  %9622 = vmatprep.mubr.bf16.mxu1 %v11078_v9  ;;  %v11083_v1 = vld [vmem:[%s15408_s0 + $0x650] ss:$20 sps:$4 sm:$0xff]  }
 0x34c   :  { %v13191_v27 = vpop.f32.mrb[88].mxu0  ;;  %v13193_v53 = vpop.f32.mrb[176].mxu1 }
 0x34d   :  { %15556 = vst [vmem:[#allocation144_spill] sm:$0xff] %v13193_v53  ;;  %v5716_v0 = vpop.f32.mrb[89].mxu0  ;;  %v5443_v55 = vpop.f32.mrb[177].mxu1 }
 0x34e   :  { %v13201_v13 = vpop.f32.mrb[90].mxu0  ;;  %v13209_v0 = vpop.f32.mrb[178].mxu1 }
 0x34f   :  { %15557 = vst [vmem:[#allocation145_spill] sm:$0xff] %v13201_v13  ;;  %15558 = vst [vmem:[#allocation146_spill] sm:$0xff] %v13209_v0  ;;  %v5719_v5 = vpop.f32.mrb[91].mxu0  ;;  %v5446_v9 = vpop.f32.mrb[179].mxu1 }
 0x351   :  { %5929 = vmatmul.mubr.bf16.gmra.mrb[196].mxu0 %v11079_v56  ;;  %9623 = vmatmul.mubr.bf16.gmra.mrb[76].mxu1 %v11080_v52  ;;  %v11086_v52 = vld [vmem:[%s15408_s0 + $0x804] ss:$20 sps:$4 sm:$0xff]   ;;  %v11088_v56 = vld [vmem:[%s15408_s0 + $0x6a0] ss:$20 sps:$4 sm:$0xff]  }
 0x352   :  { %5936 = vmatprep.mubr.bf16.mxu0 %v11081_v60  ;;  %9626 = vmatprep.mubr.bf16.mxu1 %v11083_v1 }
 0x354   :  { %v13211_v17 = vpop.f32.mrb[92].mxu0  ;;  %v13213_v55 = vpop.f32.mrb[180].mxu1 }
 0x355   :  { %15559 = vst [vmem:[#allocation147_spill] sm:$0xff] %v13213_v55  ;;  %v5724_v53 = vpop.f32.mrb[93].mxu0  ;;  %v5451_v0 = vpop.f32.mrb[181].mxu1 }
 0x356   :  { %v13221_v5 = vpop.f32.mrb[94].mxu0  ;;  %v13229_v53 = vpop.f32.mrb[182].mxu1 }
 0x357   :  { %15560 = vst [vmem:[#allocation148_spill] sm:$0xff] %v13229_v53  ;;  %v5727_v60 = vpop.f32.mrb[95].mxu0  ;;  %v5454_v1 = vpop.f32.mrb[183].mxu1 }
 0x359   :  { %5937 = vmatmul.mubr.bf16.gmra.mrb[200].mxu0 %v11084_v47  ;;  %9627 = vmatmul.mubr.bf16.gmra.mrb[80].mxu1 %v11085_v43  ;;  %v11091_v43 = vld [vmem:[%s15408_s0 + $0x82c] ss:$20 sps:$4 sm:$0xff]   ;;  %v11093_v47 = vld [vmem:[%s15408_s0 + $0x6f0] ss:$20 sps:$4 sm:$0xff]  }
 0x35a   :  { %5944 = vmatprep.mubr.bf16.mxu0 %v11086_v52  ;;  %9630 = vmatprep.mubr.bf16.mxu1 %v11088_v56 }
 0x35c   :  { %v13231_v9 = vpop.f32.mrb[96].mxu0  ;;  %v13233_v0 = vpop.f32.mrb[184].mxu1 }
 0x35d   :  { %15561 = vst [vmem:[#allocation149_spill] sm:$0xff] %v13231_v9  ;;  %15562 = vst [vmem:[#allocation150_spill] sm:$0xff] %v13233_v0  ;;  %v5732_v55 = vpop.f32.mrb[97].mxu0  ;;  %v5459_v53 = vpop.f32.mrb[185].mxu1 }
 0x35e   :  { %v13241_v60 = vpop.f32.mrb[98].mxu0  ;;  %v13249_v55 = vpop.f32.mrb[186].mxu1 }
 0x35f   :  { %15563 = vst [vmem:[#allocation151_spill] sm:$0xff] %v13241_v60  ;;  %15564 = vst [vmem:[#allocation152_spill] sm:$0xff] %v13249_v55  ;;  %v5735_v52 = vpop.f32.mrb[99].mxu0  ;;  %v5462_v56 = vpop.f32.mrb[187].mxu1 }
 0x361   :  { %5945 = vmatmul.mubr.bf16.gmra.mrb[204].mxu0 %v11089_v39  ;;  %9631 = vmatmul.mubr.bf16.gmra.mrb[84].mxu1 %v11090_v36  ;;  %v11096_v36 = vld [vmem:[%s15408_s0 + $0x854] ss:$20 sps:$4 sm:$0xff]  }
 0x362   :  { %5952 = vmatprep.mubr.bf16.mxu0 %v11091_v43  ;;  %9634 = vmatprep.mubr.bf16.mxu1 %v11093_v47  ;;  %v11098_v39 = vld [vmem:[%s15408_s0 + $0x740] ss:$20 sps:$4 sm:$0xff]  }
 0x364   :  { %v13251_v1 = vpop.f32.mrb[100].mxu0  ;;  %v13253_v53 = vpop.f32.mrb[188].mxu1 }
 0x365   :  { %15565 = vst [vmem:[#allocation153_spill] sm:$0xff] %v13251_v1  ;;  %15566 = vst [vmem:[#allocation154_spill] sm:$0xff] %v13253_v53  ;;  %v5740_v0 = vpop.f32.mrb[101].mxu0  ;;  %v5467_v55 = vpop.f32.mrb[189].mxu1 }
 0x366   :  { %v13261_v52 = vpop.f32.mrb[102].mxu0  ;;  %v13269_v0 = vpop.f32.mrb[190].mxu1 }
 0x367   :  { %15567 = vst [vmem:[#allocation155_spill] sm:$0xff] %v13261_v52  ;;  %15568 = vst [vmem:[#allocation156_spill] sm:$0xff] %v13269_v0  ;;  %v5743_v43 = vpop.f32.mrb[103].mxu0  ;;  %v5470_v47 = vpop.f32.mrb[191].mxu1 }
 0x369   :  { %5953 = vmatmul.mubr.bf16.gmra.mrb[208].mxu0 %v11094_v32  ;;  %9635 = vmatmul.mubr.bf16.gmra.mrb[88].mxu1 %v11095_v28  ;;  %v11101_v28 = vld [vmem:[%s15408_s0 + $0x87c] ss:$20 sps:$4 sm:$0xff]  }
 0x36a   :  { %5960 = vmatprep.mubr.bf16.mxu0 %v11096_v36  ;;  %9638 = vmatprep.mubr.bf16.mxu1 %v11098_v39  ;;  %v11103_v32 = vld [vmem:[%s15408_s0 + $0x790] ss:$20 sps:$4 sm:$0xff]  }
 0x36c   :  { %v13271_v56 = vpop.f32.mrb[104].mxu0  ;;  %v13273_v55 = vpop.f32.mrb[192].mxu1 }
 0x36d   :  { %15569 = vst [vmem:[#allocation157_spill] sm:$0xff] %v13271_v56  ;;  %15570 = vst [vmem:[#allocation158_spill] sm:$0xff] %v13273_v55  ;;  %v5748_v53 = vpop.f32.mrb[105].mxu0  ;;  %v5475_v0 = vpop.f32.mrb[193].mxu1  ;;  %v11105_v56 = vld [vmem:[%s15408_s0 + $0x7b8] ss:$20 sps:$4 sm:$0xff]  }
 0x36e   :  { %v13281_v43 = vpop.f32.mrb[106].mxu0  ;;  %v13289_v53 = vpop.f32.mrb[194].mxu1 }
 0x36f   :  { %15571 = vst [vmem:[#allocation159_spill] sm:$0xff] %v13281_v43  ;;  %15572 = vst [vmem:[#allocation160_spill] sm:$0xff] %v13289_v53  ;;  %v5751_v36 = vpop.f32.mrb[107].mxu0  ;;  %v5478_v39 = vpop.f32.mrb[195].mxu1  ;;  %v11104_v43 = vld [vmem:[%s15408_s0 + $0x878] ss:$20 sps:$4 sm:$0xff]  }
 0x371   :  { %5961 = vmatmul.mubr.bf16.gmra.mrb[212].mxu0 %v11099_v22  ;;  %9639 = vmatmul.mubr.bf16.gmra.mrb[92].mxu1 %v11100_v18  ;;  %v11106_v18 = vld [vmem:[%s15408_s0 + $0x8a4] ss:$20 sps:$4 sm:$0xff]   ;;  %v11108_v22 = vld [vmem:[%s15408_s0 + $0x7e0] ss:$20 sps:$4 sm:$0xff]  }
 0x372   :  { %5968 = vmatprep.mubr.bf16.mxu0 %v11101_v28  ;;  %9642 = vmatprep.mubr.bf16.mxu1 %v11103_v32 }
 0x374   :  { %v13291_v47 = vpop.f32.mrb[108].mxu0  ;;  %v13293_v0 = vpop.f32.mrb[196].mxu1 }
 0x375   :  { %15573 = vst [vmem:[#allocation161_spill] sm:$0xff] %v13291_v47  ;;  %15574 = vst [vmem:[#allocation162_spill] sm:$0xff] %v13293_v0  ;;  %v5756_v55 = vpop.f32.mrb[109].mxu0  ;;  %v5483_v53 = vpop.f32.mrb[197].mxu1  ;;  %v11110_v47 = vld [vmem:[%s15408_s0 + $0x808] ss:$20 sps:$4 sm:$0xff]  }
 0x376   :  { %v13301_v36 = vpop.f32.mrb[110].mxu0  ;;  %v13309_v55 = vpop.f32.mrb[198].mxu1 }
 0x377   :  { %15575 = vst [vmem:[#allocation163_spill] sm:$0xff] %v13301_v36  ;;  %15576 = vst [vmem:[#allocation164_spill] sm:$0xff] %v13309_v55  ;;  %v5759_v28 = vpop.f32.mrb[111].mxu0  ;;  %v5486_v32 = vpop.f32.mrb[199].mxu1  ;;  %v11109_v36 = vld [vmem:[%s15408_s0 + $0x8a0] ss:$20 sps:$4 sm:$0xff]  }
 0x379   :  { %5969 = vmatmul.mubr.bf16.gmra.mrb[216].mxu0 %v11104_v43  ;;  %9643 = vmatmul.mubr.bf16.gmra.mrb[96].mxu1 %v11105_v56  ;;  %v11111_v56 = vld [vmem:[%s15408_s0 + $0x8cc] ss:$20 sps:$4 sm:$0xff]  }
 0x37a   :  { %5976 = vmatprep.mubr.bf16.mxu0 %v11106_v18  ;;  %9646 = vmatprep.mubr.bf16.mxu1 %v11108_v22 }
 0x37c   :  { %v13311_v39 = vpop.f32.mrb[112].mxu0  ;;  %v13313_v53 = vpop.f32.mrb[200].mxu1 }
 0x37d   :  { %15577 = vst [vmem:[#allocation165_spill] sm:$0xff] %v13311_v39  ;;  %15578 = vst [vmem:[#allocation166_spill] sm:$0xff] %v13313_v53  ;;  %v5764_v0 = vpop.f32.mrb[113].mxu0  ;;  %v5491_v55 = vpop.f32.mrb[201].mxu1  ;;  %v11115_v39 = vld [vmem:[%s15408_s0 + $0x858] ss:$20 sps:$4 sm:$0xff]  }
 0x37e   :  { %v13321_v28 = vpop.f32.mrb[114].mxu0  ;;  %v13323_v43 = vpop.f32.mrb[202].mxu1  ;;  %v11113_v0 = vld [vmem:[%s15408_s0 + $0x830] ss:$20 sps:$4 sm:$0xff]  }
 0x37f   :  { %15579 = vst [vmem:[#allocation167_spill] sm:$0xff] %v13321_v28  ;;  %15580 = vst [vmem:[#allocation168_spill] sm:$0xff] %v13323_v43  ;;  %v5767_v18 = vpop.f32.mrb[115].mxu0  ;;  %v5494_v22 = vpop.f32.mrb[203].mxu1  ;;  %v11114_v28 = vld [vmem:[%s15408_s0 + $0x8c8] ss:$20 sps:$4 sm:$0xff]  }
 0x381   :  { %5977 = vmatmul.mubr.bf16.gmra.mrb[220].mxu0 %v11109_v36  ;;  %9647 = vmatmul.mubr.bf16.gmra.mrb[100].mxu1 %v11110_v47  ;;  %v11116_v47 = vld [vmem:[%s15408_s0 + $0x8f4] ss:$20 sps:$4 sm:$0xff]  }
 0x382   :  { %5984 = vmatprep.mubr.bf16.mxu0 %v11111_v56  ;;  %9650 = vmatprep.mubr.bf16.mxu1 %v11113_v0  ;;  %v13354_v0 = vld [vmem:[%s15409_s2] ss:$0 sm:$0xff] }
 0x383   :  { %v9856_v22 = vadd.f32 %v13354_v0, %v12771_v20  ;;  %v11120_v20 = vld [vmem:[%s15408_s0 + $0x8a8] ss:$20 sps:$4 sm:$0xff]   ;;  %v9858_v13 = vadd.f32 %v13354_v0, %v12791_v61  ;;  %v9859_v61 = vadd.f32 %v13354_v0, %v12801_v34 }
 0x384   :  { %v13331_v32 = vpop.f32.mrb[116].mxu0  ;;  %v13333_v55 = vpop.f32.mrb[204].mxu1 }
 0x385   :  { %15581 = vst [vmem:[#allocation169_spill] sm:$0xff] %v13331_v32  ;;  %15582 = vst [vmem:[#allocation170_spill] sm:$0xff] %v13333_v55  ;;  %v5772_v53 = vpop.f32.mrb[117].mxu0  ;;  %v5499_v43 = vpop.f32.mrb[205].mxu1 }
 0x386   :  { %v13341_v18 = vpop.f32.mrb[118].mxu0  ;;  %v13343_v36 = vpop.f32.mrb[206].mxu1  ;;  %v11118_v53 = vld [vmem:[%s15408_s0 + $0x880] ss:$20 sps:$4 sm:$0xff]  }
 0x387   :  { %15583 = vst [vmem:[#allocation171_spill] sm:$0xff] %v13341_v18  ;;  %15584 = vst [vmem:[#allocation172_spill] sm:$0xff] %v13343_v36  ;;  %v5775_v43 = vpop.f32.mrb[119].mxu0  ;;  %v5502_v56 = vpop.f32.mrb[207].mxu1  ;;  %v9854_v36 = vadd.f32 %v13354_v0, %v12751_v40  ;;  %v9855_v40 = vadd.f32 %v13354_v0, %v12761_v16 }
 0x389   :  { %5985 = vmatmul.mubr.bf16.gmra.mrb[224].mxu0 %v11114_v28  ;;  %9651 = vmatmul.mubr.bf16.gmra.mrb[104].mxu1 %v11115_v39  ;;  %v9857_v28 = vadd.f32 %v13354_v0, %v12781_v57  ;;  %v11121_v57 = vld [vmem:[%s15408_s0 + $0x91c] ss:$20 sps:$4 sm:$0xff]  }
 0x38a   :  { %5992 = vmatprep.mubr.bf16.mxu0 %v11116_v47  ;;  %9654 = vmatprep.mubr.bf16.mxu1 %v11118_v53  ;;  %v11119_v47 = vld [vmem:[%s15408_s0 + $0x8f0] ss:$20 sps:$4 sm:$0xff]  }
 0x38c   :  { %v13360_v55 = vpop.f32.mrb[120].mxu0  ;;  %v9548_v18 = vpop.f32.mrb[0].mxu1 }
 0x38d   :  { %15585 = vst [vmem:[#allocation173_spill] sm:$0xff] %v13360_v55  ;;  %v6604_v39 = vadd.f32 %v9856_v22, %v9548_v18  ;;  %v5780_v43 = vpop.f32.mrb[121].mxu0  ;;  %v6595_v56 = vpop.f32.mrb[1].mxu1  ;;  %v11123_v18 = vld [vmem:[%s15408_s0 + $0x8d0] ss:$20 sps:$4 sm:$0xff]  }
 0x38e   :  { %v6596_v53 = vadd.f32 %v9854_v36, %v6595_v56  ;;  %v13372_v55 = vpop.f32.mrb[122].mxu0  ;;  %v9549_v32 = vpop.f32.mrb[2].mxu1  ;;  %v9860_v56 = vadd.f32 %v13354_v0, %v12811_v12  ;;  %v11124_v12 = vld [vmem:[%s15408_s0 + $0x918] ss:$20 sps:$4 sm:$0xff]  }
 0x38f   :  { %15586 = vst [vmem:[#allocation174_spill] sm:$0xff] %v13372_v55  ;;  %v6607_v22 = vadd.f32 %v9857_v28, %v9549_v32  ;;  %v5783_v43 = vpop.f32.mrb[123].mxu0  ;;  %v6598_v60 = vpop.f32.mrb[3].mxu1  ;;  %v7620_v9 = vmax.f32 %v6604_v39, 0.0  ;;  %v9861_v39 = vadd.f32 %v13354_v0, %v12821_v51  ;;  %v11126_v51 = vld [vmem:[%s15408_s0 + $0x944] ss:$20 sps:$4 sm:$0xff]  }
 0x390   :  { %v6599_v52 = vadd.f32 %v9855_v40, %v6598_v60  ;;  %v7618_v16 = vmax.f32 %v6596_v53, 0.0 }
 0x391   :  { %v7621_v1 = vmax.f32 %v6607_v22, 0.0  ;;  %5993 = vmatmul.mubr.bf16.gmra.mrb[228].mxu0 %v11119_v47  ;;  %9655 = vmatmul.mubr.bf16.gmra.mrb[108].mxu1 %v11120_v20 }
 0x392   :  { %v7619_v36 = vmax.f32 %v6599_v52, 0.0  ;;  %6000 = vmatprep.mubr.bf16.mxu0 %v11121_v57  ;;  %9658 = vmatprep.mubr.bf16.mxu1 %v11123_v18  ;;  %v11128_v57 = vld [vmem:[%s15408_s0 + $0x920] ss:$20 sps:$4 sm:$0xff]  }
 0x393   :  { %v13382_v55 = vpack.c.bf16 %v7621_v1, %v7620_v9  ;;  %v11125_v9 = vld [vmem:[%s15408_s0 + $0x8f8] ss:$20 sps:$4 sm:$0xff]  }
 0x394   :  { %v13386_v32 = vpack.c.bf16 %v7619_v36, %v7618_v16  ;;  %v13388_v28 = vpop.f32.mrb[124].mxu0  ;;  %v9552_v60 = vpop.f32.mrb[4].mxu1 }
 0x395   :  { %v6620_v47 = vadd.f32 %v9860_v56, %v9552_v60  ;;  %v5788_v52 = vpop.f32.mrb[125].mxu0  ;;  %v6611_v20 = vpop.f32.mrb[5].mxu1  ;;  %v9864_v60 = vadd.f32 %v13354_v0, %v12851_v25  ;;  %v11129_v25 = vld [vmem:[%s15408_s0 + $0x940] ss:$20 sps:$4 sm:$0xff]  }
 0x396   :  { %v6612_v1 = vadd.f32 %v9858_v13, %v6611_v20  ;;  %v13400_v40 = vpop.f32.mrb[126].mxu0  ;;  %v9553_v53 = vpop.f32.mrb[6].mxu1  ;;  %v9862_v20 = vadd.f32 %v13354_v0, %v12831_v3  ;;  %v9863_v3 = vadd.f32 %v13354_v0, %v12841_v41 }
 0x397   :  { %v6623_v18 = vadd.f32 %v9861_v39, %v9553_v53  ;;  %v5791_v22 = vpop.f32.mrb[127].mxu0  ;;  %v6614_v43 = vpop.f32.mrb[7].mxu1  ;;  %v7624_v36 = vmax.f32 %v6620_v47, 0.0 }
 0x398   :  { %v6615_v16 = vadd.f32 %v9859_v61, %v6614_v43  ;;  %v7622_v34 = vmax.f32 %v6612_v1, 0.0  ;;  %v11133_v43 = vld [vmem:[%s15408_s0 + $0x970] ss:$20 sps:$4 sm:$0xff]  }
 0x399   :  { %v7625_v56 = vmax.f32 %v6623_v18, 0.0  ;;  %6001 = vmatmul.mubr.bf16.gmra.mrb[232].mxu0 %v11124_v12  ;;  %9659 = vmatmul.mubr.bf16.gmra.mrb[112].mxu1 %v11125_v9  ;;  %v9865_v12 = vadd.f32 %v13354_v0, %v12861_v15  ;;  %v11131_v15 = vld [vmem:[%s15408_s0 + $0x96c] ss:$20 sps:$4 sm:$0xff]  }
 0x39a   :  { %v7623_v13 = vmax.f32 %v6615_v16, 0.0  ;;  %6008 = vmatprep.mubr.bf16.mxu0 %v11126_v51  ;;  %9662 = vmatprep.mubr.bf16.mxu1 %v11128_v57  ;;  %v11130_v51 = vld [vmem:[%s15408_s0 + $0x948] ss:$20 sps:$4 sm:$0xff]  }
 0x39b   :  { %v13410_v52 = vpack.c.bf16 %v7625_v56, %v7624_v36 }
 0x39c   :  { %v13414_v39 = vpack.c.bf16 %v7623_v13, %v7622_v34  ;;  %v13416_v53 = vpop.f32.mrb[128].mxu0  ;;  %v9556_v47 = vpop.f32.mrb[8].mxu1 }
 0x39d   :  { %v6636_v9 = vadd.f32 %v9864_v60, %v9556_v47  ;;  %v5796_v61 = vpop.f32.mrb[129].mxu0  ;;  %v6627_v1 = vpop.f32.mrb[9].mxu1  ;;  %v9868_v47 = vadd.f32 %v13354_v0, %v12891_v4  ;;  %v11134_v4 = vld [vmem:[%s15408_s0 + $0x968] ss:$20 sps:$4 sm:$0xff]  }
 0x39e   :  { %v6628_v57 = vadd.f32 %v9862_v20, %v6627_v1  ;;  %v13428_v18 = vpop.f32.mrb[130].mxu0  ;;  %v9557_v22 = vpop.f32.mrb[10].mxu1  ;;  %v9866_v1 = vadd.f32 %v13354_v0, %v12871_v38  ;;  %v9867_v38 = vadd.f32 %v13354_v0, %v12881_v8 }
 0x39f   :  { %v6639_v16 = vadd.f32 %v9865_v12, %v9557_v22  ;;  %v5799_v36 = vpop.f32.mrb[131].mxu0  ;;  %v6630_v56 = vpop.f32.mrb[11].mxu1  ;;  %v7628_v13 = vmax.f32 %v6636_v9, 0.0 }
 0x3a0   :  { %v6631_v34 = vadd.f32 %v9863_v3, %v6630_v56  ;;  %v7626_v41 = vmax.f32 %v6628_v57, 0.0  ;;  %v11138_v56 = vld [vmem:[%s15408_s0 + $0x9c0] ss:$20 sps:$4 sm:$0xff]  }
 0x3a1   :  { %v7629_v60 = vmax.f32 %v6639_v16, 0.0  ;;  %6009 = vmatmul.mubr.bf16.gmra.mrb[236].mxu0 %v11129_v25  ;;  %9663 = vmatmul.mubr.bf16.gmra.mrb[116].mxu1 %v11130_v51  ;;  %v9869_v25 = vadd.f32 %v13354_v0, %v12901_v29  ;;  %v11136_v29 = vld [vmem:[%s15408_s0 + $0x994] ss:$20 sps:$4 sm:$0xff]  }
 0x3a2   :  { %v7627_v20 = vmax.f32 %v6631_v34, 0.0  ;;  %6016 = vmatprep.mubr.bf16.mxu0 %v11131_v15  ;;  %9666 = vmatprep.mubr.bf16.mxu1 %v11133_v43  ;;  %v11135_v15 = vld [vmem:[%s15408_s0 + $0x998] ss:$20 sps:$4 sm:$0xff]  }
 0x3a3   :  { %v13438_v61 = vpack.c.bf16 %v7629_v60, %v7628_v13 }
 0x3a4   :  { %v13442_v12 = vpack.c.bf16 %v7627_v20, %v7626_v41  ;;  %v13444_v22 = vpop.f32.mrb[132].mxu0  ;;  %v9560_v9 = vpop.f32.mrb[12].mxu1 }
 0x3a5   :  { %v6652_v51 = vadd.f32 %v9868_v47, %v9560_v9  ;;  %v5804_v3 = vpop.f32.mrb[133].mxu0  ;;  %v6643_v57 = vpop.f32.mrb[13].mxu1  ;;  %v9872_v9 = vadd.f32 %v13354_v0, %v12931_v24  ;;  %v11139_v24 = vld [vmem:[%s15408_s0 + $0x990] ss:$20 sps:$4 sm:$0xff]  }
 0x3a6   :  { %v6644_v43 = vadd.f32 %v9866_v1, %v6643_v57  ;;  %v13456_v16 = vpop.f32.mrb[134].mxu0  ;;  %v9561_v36 = vpop.f32.mrb[14].mxu1  ;;  %v9870_v57 = vadd.f32 %v13354_v0, %v12911_v46  ;;  %v9871_v46 = vadd.f32 %v13354_v0, %v12921_v6 }
 0x3a7   :  { %v6655_v34 = vadd.f32 %v9869_v25, %v9561_v36  ;;  %v5807_v13 = vpop.f32.mrb[135].mxu0  ;;  %v6646_v60 = vpop.f32.mrb[15].mxu1  ;;  %v7632_v20 = vmax.f32 %v6652_v51, 0.0 }
 0x3a8   :  { %v6647_v41 = vadd.f32 %v9867_v38, %v6646_v60  ;;  %v7630_v8 = vmax.f32 %v6644_v43, 0.0  ;;  %v11143_v60 = vld [vmem:[%s15408_s0 + $0xa10] ss:$20 sps:$4 sm:$0xff]  }
 0x3a9   :  { %v7633_v47 = vmax.f32 %v6655_v34, 0.0  ;;  %6017 = vmatmul.mubr.bf16.gmra.mrb[240].mxu0 %v11134_v4  ;;  %9667 = vmatmul.mubr.bf16.gmra.mrb[120].mxu1 %v11135_v15  ;;  %v9873_v4 = vadd.f32 %v13354_v0, %v12941_v50  ;;  %v11141_v50 = vld [vmem:[%s15408_s0 + $0x9bc] ss:$20 sps:$4 sm:$0xff]  }
 0x3aa   :  { %v7631_v1 = vmax.f32 %v6647_v41, 0.0  ;;  %6024 = vmatprep.mubr.bf16.mxu0 %v11136_v29  ;;  %9670 = vmatprep.mubr.bf16.mxu1 %v11138_v56  ;;  %v11140_v29 = vld [vmem:[%s15408_s0 + $0x9e8] ss:$20 sps:$4 sm:$0xff]  }
 0x3ab   :  { %v13466_v3 = vpack.c.bf16 %v7633_v47, %v7632_v20 }
 0x3ac   :  { %v13470_v25 = vpack.c.bf16 %v7631_v1, %v7630_v8  ;;  %v13472_v36 = vpop.f32.mrb[136].mxu0  ;;  %v9564_v51 = vpop.f32.mrb[16].mxu1 }
 0x3ad   :  { %v6668_v15 = vadd.f32 %v9872_v9, %v9564_v51  ;;  %v5812_v38 = vpop.f32.mrb[137].mxu0  ;;  %v6659_v43 = vpop.f32.mrb[17].mxu1  ;;  %v9876_v51 = vadd.f32 %v13354_v0, %v12971_v44  ;;  %v11145_v44 = vld [vmem:[%s15408_s0 + $0xa38] ss:$20 sps:$4 sm:$0xff]  }
 0x3ae   :  { %v6660_v56 = vadd.f32 %v9870_v57, %v6659_v43  ;;  %v13484_v34 = vpop.f32.mrb[138].mxu0  ;;  %v9565_v13 = vpop.f32.mrb[18].mxu1  ;;  %v9874_v43 = vadd.f32 %v13354_v0, %v12951_v2  ;;  %v9875_v2 = vadd.f32 %v13354_v0, %v12961_v30 }
 0x3af   :  { %15587 = vst [vmem:[#allocation175_spill] sm:$0xff] %v13484_v34  ;;  %v6671_v41 = vadd.f32 %v9873_v4, %v9565_v13  ;;  %v5815_v20 = vpop.f32.mrb[139].mxu0  ;;  %v6662_v47 = vpop.f32.mrb[19].mxu1  ;;  %v7636_v1 = vmax.f32 %v6668_v15, 0.0  ;;  %v9877_v15 = vadd.f32 %v13354_v0, %v12981_v14  ;;  %v11146_v14 = vld [vmem:[%s15408_s0 + $0x9e4] ss:$20 sps:$4 sm:$0xff]  }
 0x3b0   :  { %v6663_v8 = vadd.f32 %v9871_v46, %v6662_v47  ;;  %v7634_v6 = vmax.f32 %v6660_v56, 0.0  ;;  %v11144_v56 = vld [vmem:[%s15408_s0 + $0x9b8] ss:$20 sps:$4 sm:$0xff]   ;;  %v11148_v20 = vld [vmem:[%s15408_s0 + $0xa60] ss:$20 sps:$4 sm:$0xff]  }
 0x3b1   :  { %v7637_v9 = vmax.f32 %v6671_v41, 0.0  ;;  %6025 = vmatmul.mubr.bf16.gmra.mrb[244].mxu0 %v11139_v24  ;;  %9671 = vmatmul.mubr.bf16.gmra.mrb[124].mxu1 %v11140_v29 }
 0x3b2   :  { %v7635_v57 = vmax.f32 %v6663_v8, 0.0  ;;  %6032 = vmatprep.mubr.bf16.mxu0 %v11141_v50  ;;  %9674 = vmatprep.mubr.bf16.mxu1 %v11143_v60 }
 0x3b3   :  { %v7891_v38 = vpack.c.bf16 %v7637_v9, %v7636_v1 }
 0x3b4   :  { %v13496_v34 = vpop.f32.mrb[140].mxu0  ;;  %v9568_v4 = vpop.f32.mrb[20].mxu1  ;;  %v7890_v13 = vpack.c.bf16 %v7635_v57, %v7634_v6 }
 0x3b5   :  { %v6684_v24 = vadd.f32 %v9876_v51, %v9568_v4  ;;  %v5820_v29 = vpop.f32.mrb[141].mxu0  ;;  %v6675_v46 = vpop.f32.mrb[21].mxu1 }
 0x3b6   :  { %v6676_v50 = vadd.f32 %v9874_v43, %v6675_v46  ;;  %v13508_v60 = vpop.f32.mrb[142].mxu0  ;;  %v9569_v41 = vpop.f32.mrb[22].mxu1  ;;  %9345 = vmatprep.subr.bf16.mxu1 %v7890_v13  ;;  %v9880_v43 = vadd.f32 %v13354_v0, %v13011_v11  ;;  %v9878_v13 = vadd.f32 %v13354_v0, %v12991_v26  ;;  %v11149_v11 = vld [vmem:[%s15408_s0 + $0x9e0] ss:$20 sps:$4 sm:$0xff]   ;;  %v9879_v26 = vadd.f32 %v13354_v0, %v13001_v63 }
 0x3b7   :  { %v6687_v47 = vadd.f32 %v9877_v15, %v9569_v41  ;;  %v5823_v8 = vpop.f32.mrb[143].mxu0  ;;  %v6678_v1 = vpop.f32.mrb[23].mxu1  ;;  %9346 = vmatpush3.bf16.msra.mxu1 %v13386_v32  ;;  %v7640_v30 = vmax.f32 %v6684_v24, 0.0  ;;  %v9881_v24 = vadd.f32 %v13354_v0, %v13021_v49  ;;  %v11153_v49 = vld [vmem:[%s15408_s0 + $0xa0c] ss:$20 sps:$4 sm:$0xff]  }
 0x3b8   :  { %v6679_v9 = vadd.f32 %v9875_v2, %v6678_v1  ;;  %9347 = vmatprep.subr.bf16.mxu1 %v7891_v38  ;;  %v7638_v57 = vmax.f32 %v6676_v50, 0.0  ;;  %v11154_v41 = vld [vmem:[%s15408_s0 + $0xab0] ss:$20 sps:$4 sm:$0xff]  }
 0x3b9   :  { %v7641_v6 = vmax.f32 %v6687_v47, 0.0  ;;  %6033 = vmatmul.mubr.bf16.gmra.mrb[248].mxu0 %v11144_v56  ;;  %9675 = vmatmul.mubr.bf16.gmra.mrb[128].mxu1 %v11145_v44 }
 0x3ba   :  { %v7639_v51 = vmax.f32 %v6679_v9, 0.0  ;;  %6040 = vmatprep.mubr.bf16.mxu0 %v11146_v14  ;;  %9678 = vmatprep.mubr.bf16.mxu1 %v11148_v20 }
 0x3bb   :  { %9348 = vmatpush3.bf16.msra.mxu1 %v13382_v55  ;;  %v7893_v4 = vpack.c.bf16 %v7641_v6, %v7640_v30  ;;  %v11150_v55 = vld [vmem:[%s15408_s0 + $0xa88] ss:$20 sps:$4 sm:$0xff]   ;;  %v9884_v6 = vadd.f32 %v13354_v0, %v13051_v45 }
 0x3bc   :  { %v13522_v32 = vpop.f32.mrb[144].mxu0  ;;  %v9572_v38 = vpop.f32.mrb[24].mxu1  ;;  %v7892_v15 = vpack.c.bf16 %v7639_v51, %v7638_v57  ;;  %v9882_v51 = vadd.f32 %v13354_v0, %v13031_v58  ;;  %v11151_v45 = vld [vmem:[%s15408_s0 + $0xa08] ss:$20 sps:$4 sm:$0xff]   ;;  %v9883_v58 = vadd.f32 %v13354_v0, %v13041_v35 }
 0x3bd   :  { %v6700_v29 = vadd.f32 %v9880_v43, %v9572_v38  ;;  %v5828_v46 = vpop.f32.mrb[145].mxu0  ;;  %v6691_v56 = vpop.f32.mrb[25].mxu1 }
 0x3be   :  { %v6692_v44 = vadd.f32 %v9878_v13, %v6691_v56  ;;  %v13534_v2 = vpop.f32.mrb[146].mxu0  ;;  %v9573_v50 = vpop.f32.mrb[26].mxu1  ;;  %9349 = vmatprep.subr.bf16.mxu1 %v7892_v15  ;;  %v9885_v13 = vadd.f32 %v13354_v0, %v13061_v21  ;;  %v11158_v21 = vld [vmem:[%s15408_s0 + $0xa34] ss:$20 sps:$4 sm:$0xff]  }
 0x3bf   :  { %v6703_v14 = vadd.f32 %v9881_v24, %v9573_v50  ;;  %v5831_v20 = vpop.f32.mrb[147].mxu0  ;;  %v6694_v47 = vpop.f32.mrb[27].mxu1  ;;  %9350 = vmatpush3.bf16.msra.mxu1 %v13414_v39  ;;  %v7644_v63 = vmax.f32 %v6700_v29, 0.0 }
 0x3c0   :  { %v6695_v8 = vadd.f32 %v9879_v26, %v6694_v47  ;;  %9351 = vmatprep.subr.bf16.mxu1 %v7893_v4  ;;  %v7642_v9 = vmax.f32 %v6692_v44, 0.0  ;;  %v9888_v20 = vadd.f32 %v13354_v0, %v13091_v19  ;;  %v11156_v19 = vld [vmem:[%s15408_s0 + $0xa30] ss:$20 sps:$4 sm:$0xff]  }
 0x3c1   :  { %v7645_v1 = vmax.f32 %v6703_v14, 0.0  ;;  %6041 = vmatmul.mubr.bf16.gmra.mrb[252].mxu0 %v11149_v11  ;;  %9679 = vmatmul.mubr.bf16.gmra.mrb[132].mxu1 %v11150_v55  ;;  %v11159_v11 = vld [vmem:[%s15408_s0 + $0xb00] ss:$20 sps:$4 sm:$0xff]  }
 0x3c2   :  { %v7643_v30 = vmax.f32 %v6695_v8, 0.0  ;;  %6048 = vmatprep.mubr.bf16.mxu0 %v11153_v49  ;;  %9682 = vmatprep.mubr.bf16.mxu1 %v11154_v41  ;;  %v9886_v8 = vadd.f32 %v13354_v0, %v13071_v31  ;;  %v9887_v31 = vadd.f32 %v13354_v0, %v13081_v10 }
 0x3c3   :  { %9352 = vmatpush3.bf16.msra.mxu1 %v13410_v52  ;;  %v7895_v57 = vpack.c.bf16 %v7645_v1, %v7644_v63  ;;  %v11155_v52 = vld [vmem:[%s15408_s0 + $0xad8] ss:$20 sps:$4 sm:$0xff]  }
 0x3c4   :  { %v13548_v39 = vpop.f32.mrb[148].mxu0  ;;  %v9576_v43 = vpop.f32.mrb[28].mxu1  ;;  %v7894_v4 = vpack.c.bf16 %v7643_v30, %v7642_v9  ;;  %v9889_v9 = vadd.f32 %v13354_v0, %v13101_v62  ;;  %v11163_v62 = vld [vmem:[%s15408_s0 + $0xa5c] ss:$20 sps:$4 sm:$0xff]  }
 0x3c5   :  { %v6716_v38 = vadd.f32 %v9884_v6, %v9576_v43  ;;  %v5836_v15 = vpop.f32.mrb[149].mxu0  ;;  %v6707_v24 = vpop.f32.mrb[29].mxu1 }
 0x3c6   :  { %v6708_v29 = vadd.f32 %v9882_v51, %v6707_v24  ;;  %v13560_v46 = vpop.f32.mrb[150].mxu0  ;;  %v9577_v56 = vpop.f32.mrb[30].mxu1  ;;  %9353 = vmatprep.subr.bf16.mxu1 %v7894_v4 }
 0x3c7   :  { %v6719_v55 = vadd.f32 %v9885_v13, %v9577_v56  ;;  %v5839_v26 = vpop.f32.mrb[151].mxu0  ;;  %v6710_v44 = vpop.f32.mrb[31].mxu1  ;;  %9354 = vmatpush3.bf16.msra.mxu1 %v13442_v12  ;;  %v7648_v35 = vmax.f32 %v6716_v38, 0.0  ;;  %v11164_v13 = vld [vmem:[%s15408_s0 + $0xb50] ss:$20 sps:$4 sm:$0xff]  }
 0x3c8   :  { %v6711_v50 = vadd.f32 %v9883_v58, %v6710_v44  ;;  %9355 = vmatprep.subr.bf16.mxu1 %v7895_v57  ;;  %v7646_v41 = vmax.f32 %v6708_v29, 0.0  ;;  %v9890_v26 = vadd.f32 %v13354_v0, %v13111_v7  ;;  %v9891_v7 = vadd.f32 %v13354_v0, %v13121_v54 }
 0x3c9   :  { %v7649_v49 = vmax.f32 %v6719_v55, 0.0  ;;  %6049 = vmatmul.mubr.bf16.gmra.mrb[0].mxu0 %v11151_v45  ;;  %9683 = vmatmul.mubr.bf16.gmra.mrb[136].mxu1 %v11155_v52 }
 0x3ca   :  { %v7647_v14 = vmax.f32 %v6711_v50, 0.0  ;;  %6056 = vmatprep.mubr.bf16.mxu0 %v11158_v21  ;;  %9686 = vmatprep.mubr.bf16.mxu1 %v11159_v11  ;;  %v9892_v21 = vadd.f32 %v13354_v0, %v13131_v59  ;;  %v11165_v59 = vld [vmem:[%s15408_s0 + $0xb78] ss:$20 sps:$4 sm:$0xff]  }
 0x3cb   :  { %9356 = vmatpush3.bf16.msra.mxu1 %v13438_v61  ;;  %v7897_v47 = vpack.c.bf16 %v7649_v49, %v7648_v35  ;;  %v11160_v61 = vld [vmem:[%s15408_s0 + $0xb28] ss:$20 sps:$4 sm:$0xff]   ;;  %v9893_v49 = vadd.f32 %v13354_v0, %v13141_v42  ;;  %v11169_v42 = vld [vmem:[%s15408_s0 + $0xba0] ss:$20 sps:$4 sm:$0xff]  }
 0x3cc   :  { %v13574_v12 = vpop.f32.mrb[152].mxu0  ;;  %v9580_v63 = vpop.f32.mrb[32].mxu1  ;;  %v7896_v1 = vpack.c.bf16 %v7647_v14, %v7646_v41 }
 0x3cd   :  { %v6732_v30 = vadd.f32 %v9888_v20, %v9580_v63  ;;  %v5844_v6 = vpop.f32.mrb[153].mxu0  ;;  %v6723_v57 = vpop.f32.mrb[33].mxu1 }
 0x3ce   :  { %v6724_v51 = vadd.f32 %v9886_v8, %v6723_v57  ;;  %v13586_v43 = vpop.f32.mrb[154].mxu0  ;;  %v9581_v4 = vpop.f32.mrb[34].mxu1  ;;  %9357 = vmatprep.subr.bf16.mxu1 %v7896_v1 }
 0x3cf   :  { %v6735_v38 = vadd.f32 %v9889_v9, %v9581_v4  ;;  %v5847_v15 = vpop.f32.mrb[155].mxu0  ;;  %v6726_v24 = vpop.f32.mrb[35].mxu1  ;;  %9358 = vmatpush3.bf16.msra.mxu1 %v13470_v25  ;;  %v7652_v10 = vmax.f32 %v6732_v30, 0.0 }
 0x3d0   :  { %v6727_v45 = vadd.f32 %v9887_v31, %v6726_v24  ;;  %9359 = vmatprep.subr.bf16.mxu1 %v7897_v47  ;;  %v7650_v58 = vmax.f32 %v6724_v51, 0.0  ;;  %v11168_v47 = vld [vmem:[%s15408_s0 + $0xa84] ss:$20 sps:$4 sm:$0xff]   ;;  %v9897_v24 = vadd.f32 %v13354_v0, %v13181_v23 }
 0x3d1   :  { %v7653_v52 = vmax.f32 %v6735_v38, 0.0  ;;  %6057 = vmatmul.mubr.bf16.gmra.mrb[4].mxu0 %v11156_v19  ;;  %9687 = vmatmul.mubr.bf16.gmra.mrb[140].mxu1 %v11160_v61  ;;  %v9896_v61 = vadd.f32 %v13354_v0, %v13171_v37  ;;  %v11170_v37 = vld [vmem:[%s15408_s0 + $0xbc8] ss:$20 sps:$4 sm:$0xff]   ;;  %v11174_v23 = vld [vmem:[%s15408_s0 + $0xbf0] ss:$20 sps:$4 sm:$0xff]  }
 0x3d2   :  { %v7651_v29 = vmax.f32 %v6727_v45, 0.0  ;;  %6064 = vmatprep.mubr.bf16.mxu0 %v11163_v62  ;;  %9690 = vmatprep.mubr.bf16.mxu1 %v11164_v13  ;;  %v9894_v62 = vadd.f32 %v13354_v0, %v13151_v48  ;;  %v11166_v45 = vld [vmem:[%s15408_s0 + $0xa80] ss:$20 sps:$4 sm:$0xff]   ;;  %v9895_v48 = vadd.f32 %v13354_v0, %v13161_v33 }
 0x3d3   :  { %v13595_v56 = vpack.c.bf16 %v7653_v52, %v7652_v10  ;;  %9360 = vmatpush3.bf16.msra.mxu1 %v13466_v3  ;;  %v11161_v3 = vld [vmem:[%s15408_s0 + $0xa58] ss:$20 sps:$4 sm:$0xff]  }
 0x3d4   :  { %v13600_v11 = vpack.c.bf16 %v7651_v29, %v7650_v58  ;;  %v13602_v25 = vpop.f32.mrb[156].mxu0  ;;  %v9584_v55 = vpop.f32.mrb[36].mxu1  ;;  %v11173_v29 = vld [vmem:[%s15408_s0 + $0xaac] ss:$20 sps:$4 sm:$0xff]  }
 0x3d5   :  { %v6748_v44 = vadd.f32 %v9892_v21, %v9584_v55  ;;  %v5852_v50 = vpop.f32.mrb[157].mxu0  ;;  %v6739_v35 = vpop.f32.mrb[37].mxu1 }
 0x3d6   :  { %v6740_v41 = vadd.f32 %v9890_v26, %v6739_v35  ;;  %v13614_v14 = vpop.f32.mrb[158].mxu0  ;;  %v9585_v20 = vpop.f32.mrb[38].mxu1 }
 0x3d7   :  { %v6751_v8 = vadd.f32 %v9893_v49, %v9585_v20  ;;  %v5855_v63 = vpop.f32.mrb[159].mxu0  ;;  %v6742_v1 = vpop.f32.mrb[39].mxu1  ;;  %v7656_v30 = vmax.f32 %v6748_v44, 0.0 }
 0x3d8   :  { %v6743_v9 = vadd.f32 %v9891_v7, %v6742_v1  ;;  %v7654_v57 = vmax.f32 %v6740_v41, 0.0  ;;  %v9901_v1 = vadd.f32 %v13354_v0, %v13221_v5  ;;  %v11179_v5 = vld [vmem:[%s15408_s0 + $0xc40] ss:$20 sps:$4 sm:$0xff]  }
 0x3d9   :  { %v7657_v6 = vmax.f32 %v6751_v8, 0.0  ;;  %6065 = vmatmul.mubr.bf16.gmra.mrb[8].mxu0 %v11161_v3  ;;  %9691 = vmatmul.mubr.bf16.gmra.mrb[144].mxu1 %v11165_v59  ;;  %v9900_v59 = vadd.f32 %v13354_v0, %v13211_v17  ;;  %v11175_v17 = vld [vmem:[%s15408_s0 + $0xc18] ss:$20 sps:$4 sm:$0xff]  }
 0x3da   :  { %v7655_v19 = vmax.f32 %v6743_v9, 0.0  ;;  %6072 = vmatprep.mubr.bf16.mxu0 %v11168_v47  ;;  %9694 = vmatprep.mubr.bf16.mxu1 %v11169_v42  ;;  %v9898_v47 = vadd.f32 %v13354_v0, %v13191_v27  ;;  %v11171_v9 = vld [vmem:[%s15408_s0 + $0xaa8] ss:$20 sps:$4 sm:$0xff]  }
 0x3db   :  { %v13624_v54 = vpack.c.bf16 %v7657_v6, %v7656_v30 }
 0x3dc   :  { %v13628_v31 = vpack.c.bf16 %v7655_v19, %v7654_v57  ;;  %v13630_v51 = vpop.f32.mrb[160].mxu0  ;;  %v9588_v4 = vpop.f32.mrb[40].mxu1  ;;  %v15588_v19 = vld [vmem:[#allocation145_spill] sm:$0xff] }
 0x3dd   :  { %v6764_v13 = vadd.f32 %v9896_v61, %v9588_v4  ;;  %v5860_v38 = vpop.f32.mrb[161].mxu0  ;;  %v6755_v15 = vpop.f32.mrb[41].mxu1  ;;  %v9899_v27 = vadd.f32 %v13354_v0, %v15588_v19  ;;  %v11178_v61 = vld [vmem:[%s15408_s0 + $0xad4] ss:$20 sps:$4 sm:$0xff]  }
 0x3de   :  { %v6756_v10 = vadd.f32 %v9894_v62, %v6755_v15  ;;  %v13642_v52 = vpop.f32.mrb[162].mxu0  ;;  %v9589_v58 = vpop.f32.mrb[42].mxu1 }
 0x3df   :  { %v6767_v21 = vadd.f32 %v9897_v24, %v9589_v58  ;;  %v5863_v55 = vpop.f32.mrb[163].mxu0  ;;  %v6758_v26 = vpop.f32.mrb[43].mxu1  ;;  %v7660_v50 = vmax.f32 %v6764_v13, 0.0  ;;  %v15589_v58 = vld [vmem:[#allocation153_spill] sm:$0xff] }
 0x3e0   :  { %v6759_v44 = vadd.f32 %v9895_v48, %v6758_v26  ;;  %v7658_v49 = vmax.f32 %v6756_v10, 0.0  ;;  %v9904_v48 = vadd.f32 %v13354_v0, %v15589_v58  ;;  %v15590_v55 = vld [vmem:[#allocation149_spill] sm:$0xff] }
 0x3e1   :  { %v7661_v35 = vmax.f32 %v6767_v21, 0.0  ;;  %6073 = vmatmul.mubr.bf16.gmra.mrb[12].mxu0 %v11166_v45  ;;  %9695 = vmatmul.mubr.bf16.gmra.mrb[208].mxu1 %v11170_v37  ;;  %v9902_v26 = vadd.f32 %v13354_v0, %v15590_v55  ;;  %v15594_v58 = vld [vmem:[#allocation157_spill] sm:$0xff] }
 0x3e2   :  { %v7659_v3 = vmax.f32 %v6759_v44, 0.0  ;;  %6080 = vmatprep.mubr.bf16.mxu0 %v11173_v29  ;;  %9698 = vmatprep.mubr.bf16.mxu1 %v11174_v23 }
 0x3e3   :  { %v13652_v33 = vpack.c.bf16 %v7661_v35, %v7660_v50 }
 0x3e4   :  { %v13656_v41 = vpack.c.bf16 %v7659_v3, %v7658_v49  ;;  %v13658_v20 = vpop.f32.mrb[164].mxu0  ;;  %v9592_v7 = vpop.f32.mrb[44].mxu1  ;;  %v15591_v49 = vld [vmem:[#allocation155_spill] sm:$0xff] }
 0x3e5   :  { %v6780_v42 = vadd.f32 %v9900_v59, %v9592_v7  ;;  %v5868_v8 = vpop.f32.mrb[165].mxu0  ;;  %v6771_v63 = vpop.f32.mrb[45].mxu1  ;;  %v9905_v3 = vadd.f32 %v13354_v0, %v15591_v49  ;;  %v11176_v59 = vld [vmem:[%s15408_s0 + $0xad0] ss:$20 sps:$4 sm:$0xff]   ;;  %v11180_v7 = vld [vmem:[%s15408_s0 + $0xc68] ss:$20 sps:$4 sm:$0xff]  }
 0x3e6   :  { %v6772_v30 = vadd.f32 %v9898_v47, %v6771_v63  ;;  %v13670_v6 = vpop.f32.mrb[166].mxu0  ;;  %v9593_v57 = vpop.f32.mrb[46].mxu1  ;;  %v15592_v63 = vld [vmem:[#allocation151_spill] sm:$0xff] }
 0x3e7   :  { %v6783_v4 = vadd.f32 %v9901_v1, %v9593_v57  ;;  %v5871_v62 = vpop.f32.mrb[167].mxu0  ;;  %v6774_v13 = vpop.f32.mrb[47].mxu1  ;;  %v7664_v15 = vmax.f32 %v6780_v42, 0.0  ;;  %v9903_v1 = vadd.f32 %v13354_v0, %v15592_v63  ;;  %v11185_v49 = vld [vmem:[%s15408_s0 + $0xcb8] ss:$20 sps:$4 sm:$0xff]  }
 0x3e8   :  { %v6775_v38 = vadd.f32 %v9899_v27, %v6774_v13  ;;  %v7662_v45 = vmax.f32 %v6772_v30, 0.0  ;;  %v11188_v63 = vld [vmem:[%s15408_s0 + $0xb24] ss:$20 sps:$4 sm:$0xff]  }
 0x3e9   :  { %v7665_v24 = vmax.f32 %v6783_v4, 0.0  ;;  %6081 = vmatmul.mubr.bf16.gmra.mrb[16].mxu0 %v11171_v9  ;;  %9699 = vmatmul.mubr.bf16.gmra.mrb[212].mxu1 %v11175_v17  ;;  %v11183_v9 = vld [vmem:[%s15408_s0 + $0xafc] ss:$20 sps:$4 sm:$0xff]  }
 0x3ea   :  { %v7663_v37 = vmax.f32 %v6775_v38, 0.0  ;;  %6088 = vmatprep.mubr.bf16.mxu0 %v11178_v61  ;;  %9702 = vmatprep.mubr.bf16.mxu1 %v11179_v5  ;;  %v11184_v17 = vld [vmem:[%s15408_s0 + $0xc90] ss:$20 sps:$4 sm:$0xff]   ;;  %v15593_v38 = vld [vmem:[#allocation161_spill] sm:$0xff] }
 0x3eb   :  { %v13680_v10 = vpack.c.bf16 %v7665_v24, %v7664_v15  ;;  %v9908_v15 = vadd.f32 %v13354_v0, %v15593_v38 }
 0x3ec   :  { %v13684_v29 = vpack.c.bf16 %v7663_v37, %v7662_v45  ;;  %v13686_v23 = vpop.f32.mrb[168].mxu0  ;;  %v9596_v21 = vpop.f32.mrb[48].mxu1 }
 0x3ed   :  { %v6796_v44 = vadd.f32 %v9904_v48, %v9596_v21  ;;  %v5876_v50 = vpop.f32.mrb[169].mxu0  ;;  %v6787_v35 = vpop.f32.mrb[49].mxu1  ;;  %v9906_v48 = vadd.f32 %v13354_v0, %v15594_v58  ;;  %v15598_v58 = vld [vmem:[#allocation165_spill] sm:$0xff] }
 0x3ee   :  { %v6788_v47 = vadd.f32 %v9902_v26, %v6787_v35  ;;  %v13698_v42 = vpop.f32.mrb[170].mxu0  ;;  %v9597_v8 = vpop.f32.mrb[50].mxu1  ;;  %v11181_v35 = vld [vmem:[%s15408_s0 + $0xaf8] ss:$20 sps:$4 sm:$0xff]  }
 0x3ef   :  { %v6799_v30 = vadd.f32 %v9905_v3, %v9597_v8  ;;  %v5879_v57 = vpop.f32.mrb[171].mxu0  ;;  %v6790_v19 = vpop.f32.mrb[51].mxu1  ;;  %v7668_v61 = vmax.f32 %v6796_v44, 0.0  ;;  %v15595_v44 = vld [vmem:[#allocation163_spill] sm:$0xff] }
 0x3f0   :  { %v6791_v27 = vadd.f32 %v9903_v1, %v6790_v19  ;;  %v7666_v4 = vmax.f32 %v6788_v47, 0.0  ;;  %v9909_v50 = vadd.f32 %v13354_v0, %v15595_v44  ;;  %v15596_v47 = vld [vmem:[#allocation159_spill] sm:$0xff]  ;;  %v11189_v1 = vld [vmem:[%s15408_s0 + $0xce0] ss:$20 sps:$4 sm:$0xff]  }
 0x3f1   :  { %v7669_v5 = vmax.f32 %v6799_v30, 0.0  ;;  %6089 = vmatmul.mubr.bf16.gmra.mrb[20].mxu0 %v11176_v59  ;;  %9703 = vmatmul.mubr.bf16.gmra.mrb[216].mxu1 %v11180_v7  ;;  %v9907_v8 = vadd.f32 %v13354_v0, %v15596_v47  ;;  %v15599_v44 = vld [vmem:[#allocation171_spill] sm:$0xff] }
 0x3f2   :  { %v7667_v62 = vmax.f32 %v6791_v27, 0.0  ;;  %6096 = vmatprep.mubr.bf16.mxu0 %v11183_v9  ;;  %9706 = vmatprep.mubr.bf16.mxu1 %v11184_v17 }
 0x3f3   :  { %v13708_v13 = vpack.c.bf16 %v7669_v5, %v7668_v61 }
 0x3f4   :  { %v7906_v24 = vpack.c.bf16 %v7667_v62, %v7666_v4  ;;  %v13712_v45 = vpop.f32.mrb[172].mxu0  ;;  %v9600_v37 = vpop.f32.mrb[52].mxu1  ;;  %v15597_v62 = vld [vmem:[#allocation169_spill] sm:$0xff] }
 0x3f5   :  { %v6812_v21 = vadd.f32 %v9908_v15, %v9600_v37  ;;  %v5884_v55 = vpop.f32.mrb[173].mxu0  ;;  %v6803_v26 = vpop.f32.mrb[53].mxu1  ;;  %v9912_v38 = vadd.f32 %v13354_v0, %v15597_v62 }
 0x3f6   :  { %v6804_v3 = vadd.f32 %v9906_v48, %v6803_v26  ;;  %v13724_v59 = vpop.f32.mrb[174].mxu0  ;;  %v9601_v7 = vpop.f32.mrb[54].mxu1  ;;  %9367 = vmatprep.subr.bf16.mxu1 %v7906_v24  ;;  %v9910_v48 = vadd.f32 %v13354_v0, %v15598_v58 }
 0x3f7   :  { %v6815_v9 = vadd.f32 %v9909_v50, %v9601_v7  ;;  %v5887_v17 = vpop.f32.mrb[175].mxu0  ;;  %v6806_v30 = vpop.f32.mrb[55].mxu1  ;;  %v7672_v19 = vmax.f32 %v6812_v21, 0.0  ;;  %v9913_v50 = vadd.f32 %v13354_v0, %v15599_v44 }
 0x3f8   :  { %v6807_v57 = vadd.f32 %v9907_v8, %v6806_v30  ;;  %v7670_v61 = vmax.f32 %v6804_v3, 0.0  ;;  %v15600_v8 = vld [vmem:[#allocation167_spill] sm:$0xff] }
 0x3f9   :  { %v7673_v27 = vmax.f32 %v6815_v9, 0.0  ;;  %6097 = vmatmul.mubr.bf16.gmra.mrb[24].mxu0 %v11181_v35  ;;  %9707 = vmatmul.mubr.bf16.gmra.mrb[220].mxu1 %v11185_v49  ;;  %v11186_v35 = vld [vmem:[%s15408_s0 + $0xb20] ss:$20 sps:$4 sm:$0xff]   ;;  %v11190_v49 = vld [vmem:[%s15408_s0 + $0xd08] ss:$20 sps:$4 sm:$0xff]  }
 0x3fa   :  { %v7671_v5 = vmax.f32 %v6807_v57, 0.0  ;;  %6104 = vmatprep.mubr.bf16.mxu0 %v11188_v63  ;;  %9710 = vmatprep.mubr.bf16.mxu1 %v11189_v1  ;;  %v9911_v63 = vadd.f32 %v13354_v0, %v15600_v8  ;;  %v11193_v1 = vld [vmem:[%s15408_s0 + $0xb4c] ss:$20 sps:$4 sm:$0xff]   ;;  %v11194_v9 = vld [vmem:[%s15408_s0 + $0xd30] ss:$20 sps:$4 sm:$0xff]  }
 0x3fb   :  { %v13734_v4 = vpack.c.bf16 %v7673_v27, %v7672_v19 }
 0x3fc   :  { %v13738_v15 = vpack.c.bf16 %v7671_v5, %v7670_v61  ;;  %v13740_v24 = vpop.f32.mrb[176].mxu0  ;;  %v9604_v37 = vpop.f32.mrb[56].mxu1 }
 0x3fd   :  { %v6828_v21 = vadd.f32 %v9912_v38, %v9604_v37  ;;  %v5892_v55 = vpop.f32.mrb[177].mxu0  ;;  %v6819_v26 = vpop.f32.mrb[57].mxu1  ;;  %v9916_v37 = vadd.f32 %v13354_v0, %v13388_v28  ;;  %v11195_v28 = vld [vmem:[%s15408_s0 + $0xd58] ss:$20 sps:$4 sm:$0xff]  }
 0x3fe   :  { %v6820_v3 = vadd.f32 %v9910_v48, %v6819_v26  ;;  %v13752_v7 = vpop.f32.mrb[178].mxu0  ;;  %v9605_v47 = vpop.f32.mrb[58].mxu1  ;;  %v15601_v26 = vld [vmem:[#allocation173_spill] sm:$0xff] }
 0x3ff   :  { %v6831_v17 = vadd.f32 %v9913_v50, %v9605_v47  ;;  %v5895_v30 = vpop.f32.mrb[179].mxu0  ;;  %v6822_v57 = vpop.f32.mrb[59].mxu1  ;;  %v7676_v27 = vmax.f32 %v6828_v21, 0.0  ;;  %v9914_v21 = vadd.f32 %v13354_v0, %v15601_v26  ;;  %v9920_v26 = vadd.f32 %v13354_v0, %v13444_v22  ;;  %v11200_v22 = vld [vmem:[%s15408_s0 + $0xda8] ss:$20 sps:$4 sm:$0xff]  }
 0x400   :  { %v6823_v19 = vadd.f32 %v9911_v63, %v6822_v57  ;;  %v7674_v5 = vmax.f32 %v6820_v3, 0.0  ;;  %v11191_v3 = vld [vmem:[%s15408_s0 + $0xb48] ss:$20 sps:$4 sm:$0xff]  }
 0x401   :  { %v7677_v61 = vmax.f32 %v6831_v17, 0.0  ;;  %6105 = vmatmul.mubr.bf16.gmra.mrb[28].mxu0 %v11186_v35  ;;  %9711 = vmatmul.mubr.bf16.gmra.mrb[224].mxu1 %v11190_v49  ;;  %v9917_v49 = vadd.f32 %v13354_v0, %v13400_v40  ;;  %v11198_v17 = vld [vmem:[%s15408_s0 + $0xb74] ss:$20 sps:$4 sm:$0xff]  }
 0x402   :  { %v7675_v62 = vmax.f32 %v6823_v19, 0.0  ;;  %6112 = vmatprep.mubr.bf16.mxu0 %v11193_v1  ;;  %9714 = vmatprep.mubr.bf16.mxu1 %v11194_v9  ;;  %v15602_v1 = vld [vmem:[#allocation174_spill] sm:$0xff] }
 0x403   :  { %v13762_v38 = vpack.c.bf16 %v7677_v61, %v7676_v27  ;;  %v9915_v9 = vadd.f32 %v13354_v0, %v15602_v1  ;;  %v11199_v40 = vld [vmem:[%s15408_s0 + $0xd80] ss:$20 sps:$4 sm:$0xff]  }
 0x404   :  { %v13766_v58 = vpack.c.bf16 %v7675_v62, %v7674_v5  ;;  %v13768_v48 = vpop.f32.mrb[180].mxu0  ;;  %v9608_v55 = vpop.f32.mrb[60].mxu1 }
 0x405   :  { %v6844_v44 = vadd.f32 %v9916_v37, %v9608_v55  ;;  %v5900_v50 = vpop.f32.mrb[181].mxu0  ;;  %v6835_v35 = vpop.f32.mrb[61].mxu1 }
 0x406   :  { %v6836_v47 = vadd.f32 %v9914_v21, %v6835_v35  ;;  %v13780_v8 = vpop.f32.mrb[182].mxu0  ;;  %v9609_v63 = vpop.f32.mrb[62].mxu1 }
 0x407   :  { %v6847_v30 = vadd.f32 %v9917_v49, %v9609_v63  ;;  %v5903_v57 = vpop.f32.mrb[183].mxu0  ;;  %v6838_v19 = vpop.f32.mrb[63].mxu1  ;;  %v7680_v61 = vmax.f32 %v6844_v44, 0.0  ;;  %v9918_v44 = vadd.f32 %v13354_v0, %v13416_v53  ;;  %v11196_v63 = vld [vmem:[%s15408_s0 + $0xb70] ss:$20 sps:$4 sm:$0xff]  }
 0x408   :  { %v6839_v27 = vadd.f32 %v9915_v9, %v6838_v19  ;;  %v7678_v62 = vmax.f32 %v6836_v47, 0.0  ;;  %v9921_v47 = vadd.f32 %v13354_v0, %v13456_v16  ;;  %v13813_v53 = vld [vmem:[%s15409_s2] ss:$0 sm:$0xff]  ;;  %v11203_v16 = vld [vmem:[%s15408_s0 + $0xb9c] ss:$20 sps:$4 sm:$0xff]  }
 0x409   :  { %v7681_v5 = vmax.f32 %v6847_v30, 0.0  ;;  %6113 = vmatmul.mubr.bf16.gmra.mrb[32].mxu0 %v11191_v3  ;;  %9715 = vmatmul.mubr.bf16.gmra.mrb[228].mxu1 %v11195_v28  ;;  %v9919_v0 = vadd.f32 %v13813_v53, %v13428_v18 }
 0x40a   :  { %v7679_v37 = vmax.f32 %v6839_v27, 0.0  ;;  %6120 = vmatprep.mubr.bf16.mxu0 %v11198_v17  ;;  %9718 = vmatprep.mubr.bf16.mxu1 %v11199_v40  ;;  %v11204_v40 = vld [vmem:[%s15408_s0 + $0xdd0] ss:$20 sps:$4 sm:$0xff]  }
 0x40b   :  { %v13790_v55 = vpack.c.bf16 %v7681_v5, %v7680_v61 }
 0x40c   :  { %v13794_v21 = vpack.c.bf16 %v7679_v37, %v7678_v62  ;;  %v13796_v50 = vpop.f32.mrb[184].mxu0  ;;  %v9612_v35 = vpop.f32.mrb[64].mxu1 }
 0x40d   :  { %v6860_v49 = vadd.f32 %v9920_v26, %v9612_v35  ;;  %v5908_v3 = vpop.f32.mrb[185].mxu0  ;;  %v6851_v28 = vpop.f32.mrb[65].mxu1  ;;  %v9924_v26 = vadd.f32 %v13813_v53, %v13496_v34  ;;  %v11205_v34 = vld [vmem:[%s15408_s0 + $0xdf8] ss:$20 sps:$4 sm:$0xff]  }
 0x40e   :  { %v6852_v1 = vadd.f32 %v9918_v44, %v6851_v28  ;;  %v13808_v9 = vpop.f32.mrb[186].mxu0  ;;  %v9613_v17 = vpop.f32.mrb[66].mxu1 }
 0x40f   :  { %v6863_v30 = vadd.f32 %v9921_v47, %v9613_v17  ;;  %v5911_v57 = vpop.f32.mrb[187].mxu0  ;;  %v6854_v19 = vpop.f32.mrb[67].mxu1  ;;  %v7684_v61 = vmax.f32 %v6860_v49, 0.0  ;;  %v9922_v49 = vadd.f32 %v13813_v53, %v13472_v36 }
 0x410   :  { %v6855_v27 = vadd.f32 %v9919_v0, %v6854_v19  ;;  %v7682_v62 = vmax.f32 %v6852_v1, 0.0  ;;  %v11201_v1 = vld [vmem:[%s15408_s0 + $0xb98] ss:$20 sps:$4 sm:$0xff]  }
 0x411   :  { %v7685_v5 = vmax.f32 %v6863_v30, 0.0  ;;  %6121 = vmatmul.mubr.bf16.gmra.mrb[36].mxu0 %v11196_v63  ;;  %9719 = vmatmul.mubr.bf16.gmra.mrb[232].mxu1 %v11200_v22  ;;  %v9925_v22 = vadd.f32 %v13813_v53, %v13508_v60  ;;  %v11208_v30 = vld [vmem:[%s15408_s0 + $0xbc4] ss:$20 sps:$4 sm:$0xff]   ;;  %v11209_v60 = vld [vmem:[%s15408_s0 + $0xe20] ss:$20 sps:$4 sm:$0xff]  }
 0x412   :  { %v7683_v37 = vmax.f32 %v6855_v27, 0.0  ;;  %6128 = vmatprep.mubr.bf16.mxu0 %v11203_v16  ;;  %9722 = vmatprep.mubr.bf16.mxu1 %v11204_v40  ;;  %v15603_v40 = vld [vmem:[#allocation175_spill] sm:$0xff] }
 0x413   :  { %v13823_v18 = vpack.c.bf16 %v7685_v5, %v7684_v61  ;;  %v9923_v36 = vadd.f32 %v13813_v53, %v15603_v40  ;;  %v11206_v40 = vld [vmem:[%s15408_s0 + $0xbc0] ss:$20 sps:$4 sm:$0xff]  }
 0x414   :  { %v13827_v35 = vpack.c.bf16 %v7683_v37, %v7682_v62  ;;  %v13829_v44 = vpop.f32.mrb[188].mxu0  ;;  %v9616_v3 = vpop.f32.mrb[68].mxu1 }
 0x415   :  { %v6876_v28 = vadd.f32 %v9924_v26, %v9616_v3  ;;  %v5916_v47 = vpop.f32.mrb[189].mxu0  ;;  %v6867_v63 = vpop.f32.mrb[69].mxu1 }
 0x416   :  { %v6868_v17 = vadd.f32 %v9922_v49, %v6867_v63  ;;  %v13841_v0 = vpop.f32.mrb[190].mxu0  ;;  %v9617_v16 = vpop.f32.mrb[70].mxu1  ;;  %v9928_v49 = vadd.f32 %v13813_v53, %v13548_v39  ;;  %v11210_v39 = vld [vmem:[%s15408_s0 + $0xe48] ss:$20 sps:$4 sm:$0xff]  }
 0x417   :  { %v6879_v57 = vadd.f32 %v9925_v22, %v9617_v16  ;;  %v5919_v19 = vpop.f32.mrb[191].mxu0  ;;  %v6870_v27 = vpop.f32.mrb[71].mxu1  ;;  %v7688_v5 = vmax.f32 %v6876_v28, 0.0  ;;  %v9926_v28 = vadd.f32 %v13813_v53, %v13522_v32  ;;  %v9927_v32 = vadd.f32 %v13813_v53, %v13534_v2  ;;  %v15604_v2 = vld [vmem:[#allocation2_spill] sm:$0xff] }
 0x418   :  { %v6871_v61 = vadd.f32 %v9923_v36, %v6870_v27  ;;  %v7686_v37 = vmax.f32 %v6868_v17, 0.0  ;;  %v9929_v17 = vadd.f32 %v13813_v53, %v13560_v46  ;;  %v11214_v46 = vld [vmem:[%s15408_s0 + $0xe70] ss:$20 sps:$4 sm:$0xff]  }
 0x419   :  { %v7689_v62 = vmax.f32 %v6879_v57, 0.0  ;;  %6129 = vmatmul.mubr.bf16.gmra.mrb[40].mxu0 %v11201_v1  ;;  %9723 = vmatmul.mubr.bf16.gmra.mrb[236].mxu1 %v11205_v34  ;;  %v11213_v57 = vld [vmem:[%s15408_s0 + $0xbec] ss:$20 sps:$4 sm:$0xff]  }
 0x41a   :  { %v7687_v26 = vmax.f32 %v6871_v61, 0.0  ;;  %6136 = vmatprep.mubr.bf16.mxu0 %v11208_v30  ;;  %9726 = vmatprep.mubr.bf16.mxu1 %v11209_v60 }
 0x41b   :  { %v13851_v3 = vpack.c.bf16 %v7689_v62, %v7688_v5 }
 0x41c   :  { %v13855_v47 = vpack.c.bf16 %v7687_v26, %v7686_v37  ;;  %v13857_v63 = vpop.f32.mrb[192].mxu0  ;;  %v9620_v22 = vpop.f32.mrb[72].mxu1 }
 0x41d   :  { %v6892_v16 = vadd.f32 %v9928_v49, %v9620_v22  ;;  %v5924_v1 = vpop.f32.mrb[193].mxu0  ;;  %v6883_v34 = vpop.f32.mrb[73].mxu1  ;;  %v4874_v22 = vadd.f32 %v13813_v53, %v15604_v2 }
 0x41e   :  { %v6884_v36 = vadd.f32 %v9926_v28, %v6883_v34  ;;  %v13869_v30 = vpop.f32.mrb[194].mxu0  ;;  %v9621_v60 = vpop.f32.mrb[74].mxu1  ;;  %v9932_v1 = vadd.f32 %v13813_v53, %v13602_v25  ;;  %v11211_v25 = vld [vmem:[%s15408_s0 + $0xbe8] ss:$20 sps:$4 sm:$0xff]  }
 0x41f   :  { %v6895_v19 = vadd.f32 %v9929_v17, %v9621_v60  ;;  %v5927_v27 = vpop.f32.mrb[195].mxu0  ;;  %v6886_v61 = vpop.f32.mrb[75].mxu1  ;;  %v7692_v62 = vmax.f32 %v6892_v16, 0.0  ;;  %v9930_v16 = vadd.f32 %v13813_v53, %v13574_v12 }
 0x420   :  { %v6887_v5 = vadd.f32 %v9927_v32, %v6886_v61  ;;  %v7690_v26 = vmax.f32 %v6884_v36, 0.0 }
 0x421   :  { %v7693_v37 = vmax.f32 %v6895_v19, 0.0  ;;  %6137 = vmatmul.mubr.bf16.gmra.mrb[44].mxu0 %v11206_v40  ;;  %9727 = vmatmul.mubr.bf16.gmra.mrb[240].mxu1 %v11210_v39  ;;  %v15605_v40 = vld [vmem:[#allocation3_spill] sm:$0xff] }
 0x422   :  { %v7691_v49 = vmax.f32 %v6887_v5, 0.0  ;;  %6144 = vmatprep.mubr.bf16.mxu0 %v11213_v57  ;;  %9730 = vmatprep.mubr.bf16.mxu1 %v11214_v46  ;;  %v4877_v39 = vadd.f32 %v13813_v53, %v15605_v40  ;;  %v9933_v46 = vadd.f32 %v13813_v53, %v13614_v14  ;;  %v11215_v19 = vld [vmem:[%s15408_s0 + $0xe98] ss:$20 sps:$4 sm:$0xff]   ;;  %v11218_v14 = vld [vmem:[%s15408_s0 + $0xc14] ss:$20 sps:$4 sm:$0xff]  }
 0x423   :  { %v13881_v28 = vpack.c.bf16 %v7693_v37, %v7692_v62  ;;  %v9931_v62 = vadd.f32 %v13813_v53, %v13586_v43  ;;  %v11219_v37 = vld [vmem:[%s15408_s0 + $0xec0] ss:$20 sps:$4 sm:$0xff]  }
 0x424   :  { %v13885_v34 = vpack.c.bf16 %v7691_v49, %v7690_v26  ;;  %v5930_v17 = vpop.f32.mrb[196].mxu0  ;;  %v9624_v60 = vpop.f32.mrb[76].mxu1  ;;  %v15606_v40 = vld [vmem:[#allocation4_spill] sm:$0xff] }
 0x425   :  { %v6908_v36 = vadd.f32 %v9932_v1, %v9624_v60  ;;  %v5932_v32 = vpop.f32.mrb[197].mxu0  ;;  %v6899_v57 = vpop.f32.mrb[77].mxu1  ;;  %v13899_v27 = vadd.f32 %v5930_v17, %v4874_v22 }
 0x426   :  { %v6900_v12 = vadd.f32 %v9930_v16, %v6899_v57  ;;  %v5933_v61 = vpop.f32.mrb[198].mxu0  ;;  %v9625_v5 = vpop.f32.mrb[78].mxu1  ;;  %v4882_v32 = vadd.f32 %v13813_v53, %v15606_v40 }
 0x427   :  { %v6911_v26 = vadd.f32 %v9933_v46, %v9625_v5  ;;  %v5935_v49 = vpop.f32.mrb[199].mxu0  ;;  %v6902_v2 = vpop.f32.mrb[79].mxu1  ;;  %v13909_v1 = vadd.f32 %v5933_v61, %v4877_v39  ;;  %v7696_v17 = vmax.f32 %v6908_v36, 0.0  ;;  %v9936_v46 = vadd.f32 %v13813_v53, %v13658_v20  ;;  %v11216_v20 = vld [vmem:[%s15408_s0 + $0xc10] ss:$20 sps:$4 sm:$0xff]  }
 0x428   :  { %v6903_v22 = vadd.f32 %v9931_v62, %v6902_v2  ;;  %v7694_v16 = vmax.f32 %v6900_v12, 0.0  ;;  %v9934_v36 = vadd.f32 %v13813_v53, %v13630_v51 }
 0x429   :  { %v7697_v60 = vmax.f32 %v6911_v26, 0.0  ;;  %6145 = vmatmul.mubr.bf16.gmra.mrb[48].mxu0 %v11211_v25  ;;  %9731 = vmatmul.mubr.bf16.gmra.mrb[244].mxu1 %v11215_v19  ;;  %v15608_v25 = vld [vmem:[#allocation5_spill] sm:$0xff] }
 0x42a   :  { %v7695_v43 = vmax.f32 %v6903_v22, 0.0  ;;  %6152 = vmatprep.mubr.bf16.mxu0 %v11218_v14  ;;  %9734 = vmatprep.mubr.bf16.mxu1 %v11219_v37  ;;  %v4885_v19 = vadd.f32 %v13813_v53, %v15608_v25  ;;  %v9937_v37 = vadd.f32 %v13813_v53, %v13670_v6  ;;  %v11220_v26 = vld [vmem:[%s15408_s0 + $0xee8] ss:$20 sps:$4 sm:$0xff]   ;;  %v15609_v25 = vld [vmem:[#allocation6_spill] sm:$0xff] }
 0x42b   :  { %v13913_v57 = vpack.c.bf16 %v7697_v60, %v7696_v17  ;;  %v9935_v17 = vadd.f32 %v13813_v53, %v13642_v52  ;;  %v11223_v6 = vld [vmem:[%s15408_s0 + $0xc3c] ss:$20 sps:$4 sm:$0xff]  }
 0x42c   :  { %v13917_v5 = vpack.c.bf16 %v7695_v43, %v7694_v16  ;;  %v5938_v39 = vpop.f32.mrb[200].mxu0  ;;  %v9628_v61 = vpop.f32.mrb[80].mxu1  ;;  %v11224_v60 = vld [vmem:[%s15408_s0 + $0xf10] ss:$20 sps:$4 sm:$0xff]  }
 0x42d   :  { %15607 = vst [vmem:[#allocation145_spill] sm:$0xff] %v13913_v57  ;;  %v6924_v12 = vadd.f32 %v9936_v46, %v9628_v61  ;;  %v5940_v62 = vpop.f32.mrb[201].mxu0  ;;  %v6915_v14 = vpop.f32.mrb[81].mxu1  ;;  %v13931_v49 = vadd.f32 %v5938_v39, %v4882_v32 }
 0x42e   :  { %v6916_v51 = vadd.f32 %v9934_v36, %v6915_v14  ;;  %v5941_v2 = vpop.f32.mrb[202].mxu0  ;;  %v9629_v22 = vpop.f32.mrb[82].mxu1  ;;  %v4890_v62 = vadd.f32 %v13813_v53, %v15609_v25 }
 0x42f   :  { %v6927_v16 = vadd.f32 %v9937_v37, %v9629_v22  ;;  %v5943_v43 = vpop.f32.mrb[203].mxu0  ;;  %v6918_v40 = vpop.f32.mrb[83].mxu1  ;;  %v13941_v46 = vadd.f32 %v5941_v2, %v4885_v19  ;;  %v7700_v39 = vmax.f32 %v6924_v12, 0.0  ;;  %v9940_v37 = vadd.f32 %v13813_v53, %v13712_v45  ;;  %v11221_v45 = vld [vmem:[%s15408_s0 + $0xc38] ss:$20 sps:$4 sm:$0xff]  }
 0x430   :  { %v6919_v32 = vadd.f32 %v9935_v17, %v6918_v40  ;;  %v7698_v36 = vmax.f32 %v6916_v51, 0.0  ;;  %v9938_v12 = vadd.f32 %v13813_v53, %v13686_v23 }
 0x431   :  { %v7701_v61 = vmax.f32 %v6927_v16, 0.0  ;;  %6153 = vmatmul.mubr.bf16.gmra.mrb[52].mxu0 %v11216_v20  ;;  %9735 = vmatmul.mubr.bf16.gmra.mrb[248].mxu1 %v11220_v26  ;;  %v15610_v20 = vld [vmem:[#allocation7_spill] sm:$0xff] }
 0x432   :  { %v7699_v52 = vmax.f32 %v6919_v32, 0.0  ;;  %6160 = vmatprep.mubr.bf16.mxu0 %v11223_v6  ;;  %9738 = vmatprep.mubr.bf16.mxu1 %v11224_v60  ;;  %v4893_v26 = vadd.f32 %v13813_v53, %v15610_v20  ;;  %v9941_v60 = vadd.f32 %v13813_v53, %v13724_v59  ;;  %v11225_v16 = vld [vmem:[%s15408_s0 + $0xf38] ss:$20 sps:$4 sm:$0xff]   ;;  %v15611_v20 = vld [vmem:[#allocation8_spill] sm:$0xff] }
 0x433   :  { %v13945_v14 = vpack.c.bf16 %v7701_v61, %v7700_v39  ;;  %v9939_v39 = vadd.f32 %v13813_v53, %v13698_v42  ;;  %v11228_v59 = vld [vmem:[%s15408_s0 + $0xc64] ss:$20 sps:$4 sm:$0xff]   ;;  %v11229_v61 = vld [vmem:[%s15408_s0 + $0xf60] ss:$20 sps:$4 sm:$0xff]  }
 0x434   :  { %v13949_v22 = vpack.c.bf16 %v7699_v52, %v7698_v36  ;;  %v5946_v19 = vpop.f32.mrb[204].mxu0  ;;  %v9632_v2 = vpop.f32.mrb[84].mxu1 }
 0x435   :  { %v6940_v51 = vadd.f32 %v9940_v37, %v9632_v2  ;;  %v5948_v17 = vpop.f32.mrb[205].mxu0  ;;  %v6931_v6 = vpop.f32.mrb[85].mxu1  ;;  %v13963_v43 = vadd.f32 %v5946_v19, %v4890_v62 }
 0x436   :  { %v6932_v23 = vadd.f32 %v9938_v12, %v6931_v6  ;;  %v5949_v40 = vpop.f32.mrb[206].mxu0  ;;  %v9633_v32 = vpop.f32.mrb[86].mxu1  ;;  %v4898_v17 = vadd.f32 %v13813_v53, %v15611_v20 }
 0x437   :  { %v6943_v36 = vadd.f32 %v9941_v60, %v9633_v32  ;;  %v5951_v52 = vpop.f32.mrb[207].mxu0  ;;  %v6934_v25 = vpop.f32.mrb[87].mxu1  ;;  %v13973_v37 = vadd.f32 %v5949_v40, %v4893_v26  ;;  %v7704_v19 = vmax.f32 %v6940_v51, 0.0  ;;  %v9944_v60 = vadd.f32 %v13813_v53, %v13768_v48  ;;  %v11226_v48 = vld [vmem:[%s15408_s0 + $0xc60] ss:$20 sps:$4 sm:$0xff]  }
 0x438   :  { %v6935_v62 = vadd.f32 %v9939_v39, %v6934_v25  ;;  %v7702_v12 = vmax.f32 %v6932_v23, 0.0  ;;  %v9942_v51 = vadd.f32 %v13813_v53, %v13740_v24 }
 0x439   :  { %v7705_v2 = vmax.f32 %v6943_v36, 0.0  ;;  %6161 = vmatmul.mubr.bf16.gmra.mrb[56].mxu0 %v11221_v45  ;;  %9739 = vmatmul.mubr.bf16.gmra.mrb[252].mxu1 %v11225_v16  ;;  %v15612_v45 = vld [vmem:[#allocation9_spill] sm:$0xff] }
 0x43a   :  { %v7703_v42 = vmax.f32 %v6935_v62, 0.0  ;;  %6168 = vmatprep.mubr.bf16.mxu0 %v11228_v59  ;;  %9742 = vmatprep.mubr.bf16.mxu1 %v11229_v61  ;;  %v4901_v16 = vadd.f32 %v13813_v53, %v15612_v45  ;;  %v9945_v61 = vadd.f32 %v13813_v53, %v13780_v8  ;;  %v11230_v36 = vld [vmem:[%s15408_s0 + $0xf88] ss:$20 sps:$4 sm:$0xff]   ;;  %v11233_v8 = vld [vmem:[%s15408_s0 + $0xc8c] ss:$20 sps:$4 sm:$0xff]  }
 0x43b   :  { %v13977_v6 = vpack.c.bf16 %v7705_v2, %v7704_v19  ;;  %v9943_v19 = vadd.f32 %v13813_v53, %v13752_v7  ;;  %v11234_v2 = vld [vmem:[%s15408_s0 + $0xfb0] ss:$20 sps:$4 sm:$0xff]  }
 0x43c   :  { %v13981_v32 = vpack.c.bf16 %v7703_v42, %v7702_v12  ;;  %v5954_v26 = vpop.f32.mrb[208].mxu0  ;;  %v9636_v40 = vpop.f32.mrb[88].mxu1  ;;  %v15613_v45 = vld [vmem:[#allocation10_spill] sm:$0xff] }
 0x43d   :  { %v6956_v23 = vadd.f32 %v9944_v60, %v9636_v40  ;;  %v5956_v39 = vpop.f32.mrb[209].mxu0  ;;  %v6947_v59 = vpop.f32.mrb[89].mxu1  ;;  %v13995_v52 = vadd.f32 %v5954_v26, %v4898_v17 }
 0x43e   :  { %v6948_v24 = vadd.f32 %v9942_v51, %v6947_v59  ;;  %v5957_v25 = vpop.f32.mrb[210].mxu0  ;;  %v9637_v62 = vpop.f32.mrb[90].mxu1  ;;  %v4906_v39 = vadd.f32 %v13813_v53, %v15613_v45 }
 0x43f   :  { %v6959_v12 = vadd.f32 %v9945_v61, %v9637_v62  ;;  %v5959_v42 = vpop.f32.mrb[211].mxu0  ;;  %v6950_v20 = vpop.f32.mrb[91].mxu1  ;;  %v14005_v60 = vadd.f32 %v5957_v25, %v4901_v16  ;;  %v7708_v26 = vmax.f32 %v6956_v23, 0.0  ;;  %v9948_v61 = vadd.f32 %v13813_v53, %v13829_v44  ;;  %v11231_v44 = vld [vmem:[%s15408_s0 + $0xc88] ss:$20 sps:$4 sm:$0xff]  }
 0x440   :  { %v6951_v17 = vadd.f32 %v9943_v19, %v6950_v20  ;;  %v7706_v51 = vmax.f32 %v6948_v24, 0.0  ;;  %v9946_v23 = vadd.f32 %v13813_v53, %v13796_v50 }
 0x441   :  { %v7709_v40 = vmax.f32 %v6959_v12, 0.0  ;;  %6169 = vmatmul.mubr.bf16.gmra.mrb[60].mxu0 %v11226_v48  ;;  %9743 = vmatmul.mubr.bf16.gmra.mrb[148].mxu1 %v11230_v36  ;;  %v15614_v48 = vld [vmem:[#allocation11_spill] sm:$0xff] }
 0x442   :  { %v7707_v7 = vmax.f32 %v6951_v17, 0.0  ;;  %6176 = vmatprep.mubr.bf16.mxu0 %v11233_v8  ;;  %9746 = vmatprep.mubr.bf16.mxu1 %v11234_v2  ;;  %v4909_v36 = vadd.f32 %v13813_v53, %v15614_v48  ;;  %v9949_v2 = vadd.f32 %v13813_v53, %v13841_v0  ;;  %v11235_v12 = vld [vmem:[%s15408_s0 + $0xfd8] ss:$20 sps:$4 sm:$0xff]   ;;  %v11238_v0 = vld [vmem:[%s15408_s0 + $0xcb4] ss:$20 sps:$4 sm:$0xff]  }
 0x443   :  { %v14009_v59 = vpack.c.bf16 %v7709_v40, %v7708_v26  ;;  %v9947_v26 = vadd.f32 %v13813_v53, %v13808_v9  ;;  %v11239_v40 = vld [vmem:[%s15408_s0 + $0x1000] ss:$20 sps:$4 sm:$0xff]  }
 0x444   :  { %v14013_v62 = vpack.c.bf16 %v7707_v7, %v7706_v51  ;;  %v5962_v16 = vpop.f32.mrb[212].mxu0  ;;  %v9640_v25 = vpop.f32.mrb[92].mxu1  ;;  %v15615_v48 = vld [vmem:[#allocation12_spill] sm:$0xff] }
 0x445   :  { %v6972_v24 = vadd.f32 %v9948_v61, %v9640_v25  ;;  %v5964_v19 = vpop.f32.mrb[213].mxu0  ;;  %v6963_v8 = vpop.f32.mrb[93].mxu1  ;;  %v14027_v42 = vadd.f32 %v5962_v16, %v4906_v39 }
 0x446   :  { %v6964_v50 = vadd.f32 %v9946_v23, %v6963_v8  ;;  %v5965_v20 = vpop.f32.mrb[214].mxu0  ;;  %v9641_v17 = vpop.f32.mrb[94].mxu1  ;;  %v4914_v19 = vadd.f32 %v13813_v53, %v15615_v48 }
 0x447   :  { %v6975_v51 = vadd.f32 %v9949_v2, %v9641_v17  ;;  %v5967_v7 = vpop.f32.mrb[215].mxu0  ;;  %v6966_v45 = vpop.f32.mrb[95].mxu1  ;;  %v14037_v61 = vadd.f32 %v5965_v20, %v4909_v36  ;;  %v7712_v16 = vmax.f32 %v6972_v24, 0.0  ;;  %v9950_v36 = vadd.f32 %v13813_v53, %v13857_v63  ;;  %v15616_v24 = vld [vmem:[#allocation13_spill] sm:$0xff] }
 0x448   :  { %v6967_v39 = vadd.f32 %v9947_v26, %v6966_v45  ;;  %v7710_v23 = vmax.f32 %v6964_v50, 0.0  ;;  %v11236_v26 = vld [vmem:[%s15408_s0 + $0xcb0] ss:$20 sps:$4 sm:$0xff]   ;;  %v9951_v45 = vadd.f32 %v13813_v53, %v13869_v30 }
 0x449   :  { %v7713_v25 = vmax.f32 %v6975_v51, 0.0  ;;  %6177 = vmatmul.mubr.bf16.gmra.mrb[64].mxu0 %v11231_v44  ;;  %9747 = vmatmul.mubr.bf16.gmra.mrb[152].mxu1 %v11235_v12  ;;  %v4917_v44 = vadd.f32 %v13813_v53, %v15616_v24 }
 0x44a   :  { %v7711_v9 = vmax.f32 %v6967_v39, 0.0  ;;  %6184 = vmatprep.mubr.bf16.mxu0 %v11238_v0  ;;  %9750 = vmatprep.mubr.bf16.mxu1 %v11239_v40  ;;  %v11240_v0 = vld [vmem:[%s15408_s0 + $0x1028] ss:$20 sps:$4 sm:$0xff]   ;;  %v11244_v39 = vld [vmem:[%s15408_s0 + $0x1050] ss:$20 sps:$4 sm:$0xff]  }
 0x44b   :  { %v14041_v8 = vpack.c.bf16 %v7713_v25, %v7712_v16 }
 0x44c   :  { %v14043_v57 = vpack.c.bf16 %v7711_v9, %v7710_v23  ;;  %v5970_v2 = vpop.f32.mrb[216].mxu0  ;;  %v9644_v17 = vpop.f32.mrb[96].mxu1 }
 0x44d   :  { %v6988_v12 = vadd.f32 %v9644_v17, %v13899_v27  ;;  %v5972_v50 = vpop.f32.mrb[217].mxu0  ;;  %v6979_v20 = vpop.f32.mrb[97].mxu1  ;;  %v14056_v40 = vadd.f32 %v5970_v2, %v4914_v19  ;;  %v11243_v27 = vld [vmem:[%s15408_s0 + $0xcdc] ss:$20 sps:$4 sm:$0xff]  }
 0x44e   :  { %v6980_v51 = vadd.f32 %v9950_v36, %v6979_v20  ;;  %v5973_v7 = vpop.f32.mrb[218].mxu0  ;;  %v9645_v63 = vpop.f32.mrb[98].mxu1  ;;  %v15617_v36 = vld [vmem:[#allocation14_spill] sm:$0xff] }
 0x44f   :  { %v6991_v16 = vadd.f32 %v9645_v63, %v13909_v1  ;;  %v5975_v25 = vpop.f32.mrb[219].mxu0  ;;  %v6982_v23 = vpop.f32.mrb[99].mxu1  ;;  %v14067_v9 = vadd.f32 %v5973_v7, %v4917_v44  ;;  %v7716_v19 = vmax.f32 %v6988_v12, 0.0  ;;  %v4922_v24 = vadd.f32 %v13813_v53, %v15617_v36  ;;  %v15620_v44 = vld [vmem:[#allocation15_spill] sm:$0xff] }
 0x450   :  { %v6983_v48 = vadd.f32 %v9951_v45, %v6982_v23  ;;  %v7714_v30 = vmax.f32 %v6980_v51, 0.0  ;;  %v4925_v7 = vadd.f32 %v13813_v53, %v15620_v44  ;;  %v11241_v51 = vld [vmem:[%s15408_s0 + $0xcd8] ss:$20 sps:$4 sm:$0xff]  }
 0x451   :  { %v7717_v2 = vmax.f32 %v6991_v16, 0.0  ;;  %6185 = vmatmul.mubr.bf16.gmra.mrb[68].mxu0 %v11236_v26  ;;  %9751 = vmatmul.mubr.bf16.gmra.mrb[156].mxu1 %v11240_v0  ;;  %v11245_v45 = vld [vmem:[%s15408_s0 + $0x1078] ss:$20 sps:$4 sm:$0xff]  }
 0x452   :  { %v7715_v17 = vmax.f32 %v6983_v48, 0.0  ;;  %6192 = vmatprep.mubr.bf16.mxu0 %v11243_v27  ;;  %9754 = vmatprep.mubr.bf16.mxu1 %v11244_v39  ;;  %v11248_v23 = vld [vmem:[%s15408_s0 + $0xd04] ss:$20 sps:$4 sm:$0xff]  }
 0x453   :  { %v14071_v50 = vpack.c.bf16 %v7717_v2, %v7716_v19 }
 0x454   :  { %v14073_v20 = vpack.c.bf16 %v7715_v17, %v7714_v30  ;;  %v5978_v1 = vpop.f32.mrb[220].mxu0  ;;  %v9648_v63 = vpop.f32.mrb[100].mxu1 }
 0x455   :  { %15618 = vst [vmem:[#allocation153_spill] sm:$0xff] %v14071_v50  ;;  %v7004_v12 = vadd.f32 %v9648_v63, %v13963_v43  ;;  %v5980_v26 = vpop.f32.mrb[221].mxu0  ;;  %v6995_v0 = vpop.f32.mrb[101].mxu1  ;;  %v5979_v27 = vadd.f32 %v5978_v1, %v4922_v24  ;;  %v11249_v43 = vld [vmem:[%s15408_s0 + $0x10a0] ss:$20 sps:$4 sm:$0xff]  }
 0x456   :  { %15619 = vst [vmem:[#allocation149_spill] sm:$0xff] %v14073_v20  ;;  %v6996_v39 = vadd.f32 %v6995_v0, %v13931_v49  ;;  %v5981_v16 = vpop.f32.mrb[222].mxu0  ;;  %v9649_v25 = vpop.f32.mrb[102].mxu1  ;;  %v15621_v63 = vld [vmem:[#allocation16_spill] sm:$0xff] }
 0x457   :  { %v7007_v48 = vadd.f32 %v9649_v25, %v13973_v37  ;;  %v5983_v19 = vpop.f32.mrb[223].mxu0  ;;  %v6998_v2 = vpop.f32.mrb[103].mxu1  ;;  %v5982_v30 = vadd.f32 %v5981_v16, %v4925_v7  ;;  %v7720_v36 = vmax.f32 %v7004_v12, 0.0  ;;  %v4930_v44 = vadd.f32 %v13813_v53, %v15621_v63  ;;  %v15624_v7 = vld [vmem:[#allocation17_spill] sm:$0xff] }
 0x458   :  { %v6999_v17 = vadd.f32 %v6998_v2, %v13941_v46  ;;  %v7718_v49 = vmax.f32 %v6996_v39, 0.0  ;;  %v4933_v46 = vadd.f32 %v13813_v53, %v15624_v7  ;;  %v11246_v39 = vld [vmem:[%s15408_s0 + $0xd00] ss:$20 sps:$4 sm:$0xff]   ;;  %v11250_v16 = vld [vmem:[%s15408_s0 + $0x10c8] ss:$20 sps:$4 sm:$0xff]  }
 0x459   :  { %v7721_v24 = vmax.f32 %v7007_v48, 0.0  ;;  %6193 = vmatmul.mubr.bf16.gmra.mrb[72].mxu0 %v11241_v51  ;;  %9755 = vmatmul.mubr.bf16.gmra.mrb[160].mxu1 %v11245_v45  ;;  %v11253_v2 = vld [vmem:[%s15408_s0 + $0xd2c] ss:$20 sps:$4 sm:$0xff]  }
 0x45a   :  { %v7719_v1 = vmax.f32 %v6999_v17, 0.0  ;;  %6200 = vmatprep.mubr.bf16.mxu0 %v11248_v23  ;;  %9758 = vmatprep.mubr.bf16.mxu1 %v11249_v43 }
 0x45b   :  { %v14095_v26 = vpack.c.bf16 %v7721_v24, %v7720_v36 }
 0x45c   :  { %v14097_v0 = vpack.c.bf16 %v7719_v1, %v7718_v49  ;;  %v5986_v37 = vpop.f32.mrb[224].mxu0  ;;  %v9652_v25 = vpop.f32.mrb[104].mxu1 }
 0x45d   :  { %15622 = vst [vmem:[#allocation155_spill] sm:$0xff] %v14095_v26  ;;  %v7020_v12 = vadd.f32 %v9652_v25, %v14027_v42  ;;  %v5988_v51 = vpop.f32.mrb[225].mxu0  ;;  %v7011_v45 = vpop.f32.mrb[105].mxu1  ;;  %v5987_v23 = vadd.f32 %v5986_v37, %v4930_v44  ;;  %v11254_v42 = vld [vmem:[%s15408_s0 + $0x10f0] ss:$20 sps:$4 sm:$0xff]   ;;  %v15648_v26 = vld [vmem:[#allocation31_spill] sm:$0xff] }
 0x45e   :  { %15623 = vst [vmem:[#allocation151_spill] sm:$0xff] %v14097_v0  ;;  %v7012_v43 = vadd.f32 %v7011_v45, %v13995_v52  ;;  %v5989_v48 = vpop.f32.mrb[226].mxu0  ;;  %v9653_v19 = vpop.f32.mrb[106].mxu1  ;;  %v15625_v25 = vld [vmem:[#allocation18_spill] sm:$0xff] }
 0x45f   :  { %v7023_v17 = vadd.f32 %v9653_v19, %v14037_v61  ;;  %v5991_v36 = vpop.f32.mrb[227].mxu0  ;;  %v7014_v24 = vpop.f32.mrb[107].mxu1  ;;  %v5990_v49 = vadd.f32 %v5989_v48, %v4933_v46  ;;  %v7724_v63 = vmax.f32 %v7020_v12, 0.0  ;;  %v4938_v7 = vadd.f32 %v13813_v53, %v15625_v25  ;;  %v15628_v46 = vld [vmem:[#allocation19_spill] sm:$0xff] }
 0x460   :  { %v7015_v1 = vadd.f32 %v7014_v24, %v14005_v60  ;;  %v7722_v52 = vmax.f32 %v7012_v43, 0.0  ;;  %v4941_v60 = vadd.f32 %v13813_v53, %v15628_v46  ;;  %v11255_v43 = vld [vmem:[%s15408_s0 + $0x1118] ss:$20 sps:$4 sm:$0xff]   ;;  %v11258_v24 = vld [vmem:[%s15408_s0 + $0xd54] ss:$20 sps:$4 sm:$0xff]  }
 0x461   :  { %v7725_v44 = vmax.f32 %v7023_v17, 0.0  ;;  %6201 = vmatmul.mubr.bf16.gmra.mrb[76].mxu0 %v11246_v39  ;;  %9759 = vmatmul.mubr.bf16.gmra.mrb[164].mxu1 %v11250_v16  ;;  %v11251_v16 = vld [vmem:[%s15408_s0 + $0xd28] ss:$20 sps:$4 sm:$0xff]  }
 0x462   :  { %v7723_v37 = vmax.f32 %v7015_v1, 0.0  ;;  %6208 = vmatprep.mubr.bf16.mxu0 %v11253_v2  ;;  %9762 = vmatprep.mubr.bf16.mxu1 %v11254_v42 }
 0x463   :  { %v14119_v51 = vpack.c.bf16 %v7725_v44, %v7724_v63 }
 0x464   :  { %v14121_v45 = vpack.c.bf16 %v7723_v37, %v7722_v52  ;;  %v5994_v61 = vpop.f32.mrb[228].mxu0  ;;  %v9656_v19 = vpop.f32.mrb[108].mxu1 }
 0x465   :  { %15626 = vst [vmem:[#allocation161_spill] sm:$0xff] %v14119_v51  ;;  %v7036_v12 = vadd.f32 %v9656_v19, %v5979_v27  ;;  %v5996_v48 = vpop.f32.mrb[229].mxu0  ;;  %v7027_v39 = vpop.f32.mrb[109].mxu1  ;;  %v5995_v2 = vadd.f32 %v5994_v61, %v4938_v7  ;;  %v11259_v27 = vld [vmem:[%s15408_s0 + $0x1140] ss:$20 sps:$4 sm:$0xff]  }
 0x466   :  { %15627 = vst [vmem:[#allocation157_spill] sm:$0xff] %v14121_v45  ;;  %v7028_v42 = vadd.f32 %v7027_v39, %v14056_v40  ;;  %v5997_v17 = vpop.f32.mrb[230].mxu0  ;;  %v9657_v36 = vpop.f32.mrb[110].mxu1  ;;  %v15629_v19 = vld [vmem:[#allocation20_spill] sm:$0xff]  ;;  %v15645_v45 = vld [vmem:[#allocation29_spill] sm:$0xff] }
 0x467   :  { %v7039_v1 = vadd.f32 %v9657_v36, %v5982_v30  ;;  %v5999_v63 = vpop.f32.mrb[231].mxu0  ;;  %v7030_v44 = vpop.f32.mrb[111].mxu1  ;;  %v5998_v52 = vadd.f32 %v5997_v17, %v4941_v60  ;;  %v7728_v25 = vmax.f32 %v7036_v12, 0.0  ;;  %v4946_v46 = vadd.f32 %v13813_v53, %v15629_v19  ;;  %v15632_v60 = vld [vmem:[#allocation21_spill] sm:$0xff] }
 0x468   :  { %v7031_v37 = vadd.f32 %v7030_v44, %v14067_v9  ;;  %v7726_v40 = vmax.f32 %v7028_v42, 0.0  ;;  %v4949_v9 = vadd.f32 %v13813_v53, %v15632_v60  ;;  %v11260_v42 = vld [vmem:[%s15408_s0 + $0x1168] ss:$20 sps:$4 sm:$0xff]  }
 0x469   :  { %v7729_v7 = vmax.f32 %v7039_v1, 0.0  ;;  %6209 = vmatmul.mubr.bf16.gmra.mrb[80].mxu0 %v11251_v16  ;;  %9763 = vmatmul.mubr.bf16.gmra.mrb[168].mxu1 %v11255_v43  ;;  %v11256_v43 = vld [vmem:[%s15408_s0 + $0xd50] ss:$20 sps:$4 sm:$0xff]  }
 0x46a   :  { %v7727_v61 = vmax.f32 %v7031_v37, 0.0  ;;  %6216 = vmatprep.mubr.bf16.mxu0 %v11258_v24  ;;  %9766 = vmatprep.mubr.bf16.mxu1 %v11259_v27  ;;  %v11263_v44 = vld [vmem:[%s15408_s0 + $0xd7c] ss:$20 sps:$4 sm:$0xff]  }
 0x46b   :  { %v14141_v48 = vpack.c.bf16 %v7729_v7, %v7728_v25 }
 0x46c   :  { %v14143_v39 = vpack.c.bf16 %v7727_v61, %v7726_v40  ;;  %v6002_v30 = vpop.f32.mrb[232].mxu0  ;;  %v9660_v36 = vpop.f32.mrb[112].mxu1 }
 0x46d   :  { %15630 = vst [vmem:[#allocation163_spill] sm:$0xff] %v14141_v48  ;;  %v7052_v12 = vadd.f32 %v9660_v36, %v5995_v2  ;;  %v6004_v17 = vpop.f32.mrb[233].mxu0  ;;  %v7043_v16 = vpop.f32.mrb[113].mxu1  ;;  %v6003_v24 = vadd.f32 %v6002_v30, %v4946_v46  ;;  %v11264_v2 = vld [vmem:[%s15408_s0 + $0x1190] ss:$20 sps:$4 sm:$0xff]  }
 0x46e   :  { %15631 = vst [vmem:[#allocation159_spill] sm:$0xff] %v14143_v39  ;;  %v7044_v27 = vadd.f32 %v7043_v16, %v5987_v23  ;;  %v6005_v1 = vpop.f32.mrb[234].mxu0  ;;  %v9661_v63 = vpop.f32.mrb[114].mxu1  ;;  %v15633_v30 = vld [vmem:[#allocation22_spill] sm:$0xff] }
 0x46f   :  { %v7055_v37 = vadd.f32 %v9661_v63, %v5998_v52  ;;  %v6007_v25 = vpop.f32.mrb[235].mxu0  ;;  %v7046_v7 = vpop.f32.mrb[115].mxu1  ;;  %v6006_v40 = vadd.f32 %v6005_v1, %v4949_v9  ;;  %v7732_v19 = vmax.f32 %v7052_v12, 0.0  ;;  %v4954_v60 = vadd.f32 %v13813_v53, %v15633_v30 }
 0x470   :  { %v7047_v61 = vadd.f32 %v7046_v7, %v5990_v49  ;;  %v7730_v23 = vmax.f32 %v7044_v27, 0.0  ;;  %v15636_v25 = vld [vmem:[#allocation23_spill] sm:$0xff]  ;;  %v11269_v7 = vld [vmem:[%s15408_s0 + $0x11e0] ss:$20 sps:$4 sm:$0xff]  }
 0x471   :  { %v7733_v36 = vmax.f32 %v7055_v37, 0.0  ;;  %6217 = vmatmul.mubr.bf16.gmra.mrb[84].mxu0 %v11256_v43  ;;  %9767 = vmatmul.mubr.bf16.gmra.mrb[172].mxu1 %v11260_v42  ;;  %v4957_v49 = vadd.f32 %v13813_v53, %v15636_v25  ;;  %v11261_v42 = vld [vmem:[%s15408_s0 + $0xd78] ss:$20 sps:$4 sm:$0xff]  }
 0x472   :  { %v7731_v46 = vmax.f32 %v7047_v61, 0.0  ;;  %6224 = vmatprep.mubr.bf16.mxu0 %v11263_v44  ;;  %9770 = vmatprep.mubr.bf16.mxu1 %v11264_v2  ;;  %v11265_v27 = vld [vmem:[%s15408_s0 + $0x11b8] ss:$20 sps:$4 sm:$0xff]  }
 0x473   :  { %v14161_v17 = vpack.c.bf16 %v7733_v36, %v7732_v19  ;;  %v11268_v37 = vld [vmem:[%s15408_s0 + $0xda4] ss:$20 sps:$4 sm:$0xff]  }
 0x474   :  { %v14163_v16 = vpack.c.bf16 %v7731_v46, %v7730_v23  ;;  %v6010_v52 = vpop.f32.mrb[236].mxu0  ;;  %v9664_v63 = vpop.f32.mrb[116].mxu1 }
 0x475   :  { %15634 = vst [vmem:[#allocation169_spill] sm:$0xff] %v14161_v17  ;;  %v6011_v9 = vadd.f32 %v6010_v52, %v4954_v60  ;;  %v6012_v12 = vpop.f32.mrb[237].mxu0  ;;  %v7059_v43 = vpop.f32.mrb[117].mxu1  ;;  %v15637_v52 = vld [vmem:[#allocation24_spill] sm:$0xff]  ;;  %v15659_v17 = vld [vmem:[#allocation38_spill] sm:$0xff] }
 0x476   :  { %15635 = vst [vmem:[#allocation165_spill] sm:$0xff] %v14163_v16  ;;  %v7060_v1 = vadd.f32 %v7059_v43, %v6003_v24  ;;  %v6013_v44 = vpop.f32.mrb[238].mxu0  ;;  %v9665_v2 = vpop.f32.mrb[118].mxu1  ;;  %v4962_v25 = vadd.f32 %v13813_v53, %v15637_v52 }
 0x477   :  { %v7068_v61 = vadd.f32 %v9664_v63, %v6011_v9  ;;  %v6014_v19 = vadd.f32 %v6013_v44, %v4957_v49  ;;  %v6015_v36 = vpop.f32.mrb[239].mxu0  ;;  %v7062_v23 = vpop.f32.mrb[119].mxu1  ;;  %v15639_v49 = vld [vmem:[#allocation25_spill] sm:$0xff]  ;;  %v11266_v44 = vld [vmem:[%s15408_s0 + $0xda0] ss:$20 sps:$4 sm:$0xff]  }
 0x478   :  { %v7063_v46 = vadd.f32 %v7062_v23, %v6006_v40  ;;  %v7734_v60 = vmax.f32 %v7060_v1, 0.0  ;;  %v4965_v9 = vadd.f32 %v13813_v53, %v15639_v49  ;;  %v15642_v49 = vld [vmem:[#allocation27_spill] sm:$0xff] }
 0x479   :  { %v7071_v30 = vadd.f32 %v9665_v2, %v6014_v19  ;;  %6225 = vmatmul.mubr.bf16.gmra.mrb[88].mxu0 %v11261_v42  ;;  %9771 = vmatmul.mubr.bf16.gmra.mrb[176].mxu1 %v11265_v27  ;;  %v7736_v12 = vmax.f32 %v7068_v61, 0.0  ;;  %v11270_v2 = vld [vmem:[%s15408_s0 + $0x1208] ss:$20 sps:$4 sm:$0xff]   ;;  %v11273_v61 = vld [vmem:[%s15408_s0 + $0xdcc] ss:$20 sps:$4 sm:$0xff]  }
 0x47a   :  { %v7735_v24 = vmax.f32 %v7063_v46, 0.0  ;;  %6232 = vmatprep.mubr.bf16.mxu0 %v11268_v37  ;;  %9774 = vmatprep.mubr.bf16.mxu1 %v11269_v7  ;;  %v11274_v19 = vld [vmem:[%s15408_s0 + $0x1230] ss:$20 sps:$4 sm:$0xff]  }
 0x47b   :  { %v7737_v43 = vmax.f32 %v7071_v30, 0.0 }
 0x47c   :  { %v14181_v48 = vpack.c.bf16 %v7735_v24, %v7734_v60  ;;  %v6018_v39 = vpop.f32.mrb[240].mxu0  ;;  %v9668_v63 = vpop.f32.mrb[120].mxu1  ;;  %v15641_v60 = vld [vmem:[#allocation26_spill] sm:$0xff] }
 0x47d   :  { %v14185_v40 = vpack.c.bf16 %v7737_v43, %v7736_v12  ;;  %v6020_v42 = vpop.f32.mrb[241].mxu0  ;;  %v6019_v27 = vadd.f32 %v6018_v39, %v4962_v25  ;;  %v7075_v1 = vpop.f32.mrb[121].mxu1  ;;  %v4970_v24 = vadd.f32 %v13813_v53, %v15641_v60 }
 0x47e   :  { %15638 = vst [vmem:[#allocation171_spill] sm:$0xff] %v14181_v48  ;;  %v6021_v37 = vpop.f32.mrb[242].mxu0  ;;  %v9669_v7 = vpop.f32.mrb[122].mxu1  ;;  %v4973_v42 = vadd.f32 %v13813_v53, %v15642_v49 }
 0x47f   :  { %15640 = vst [vmem:[#allocation167_spill] sm:$0xff] %v14185_v40  ;;  %v7076_v39 = vadd.f32 %v7075_v1, %v6019_v27  ;;  %v6023_v36 = vpop.f32.mrb[243].mxu0  ;;  %v6022_v23 = vadd.f32 %v6021_v37, %v4965_v9  ;;  %v7078_v46 = vpop.f32.mrb[123].mxu1  ;;  %v11271_v1 = vld [vmem:[%s15408_s0 + $0xdc8] ss:$20 sps:$4 sm:$0xff]   ;;  %v4989_v40 = vadd.f32 %v13813_v53, %v15648_v26 }
 0x481   :  { %v7079_v30 = vadd.f32 %v7078_v46, %v6022_v23  ;;  %6233 = vmatmul.mubr.bf16.gmra.mrb[92].mxu0 %v11266_v44  ;;  %9775 = vmatmul.mubr.bf16.gmra.mrb[180].mxu1 %v11270_v2  ;;  %v7738_v52 = vmax.f32 %v7076_v39, 0.0  ;;  %v11275_v44 = vld [vmem:[%s15408_s0 + $0x1258] ss:$20 sps:$4 sm:$0xff]   ;;  %v11279_v39 = vld [vmem:[%s15408_s0 + $0x1280] ss:$20 sps:$4 sm:$0xff]  }
 0x482   :  { %6240 = vmatprep.mubr.bf16.mxu0 %v11273_v61  ;;  %9778 = vmatprep.mubr.bf16.mxu1 %v11274_v19  ;;  %v11278_v19 = vld [vmem:[%s15408_s0 + $0xdf4] ss:$20 sps:$4 sm:$0xff]  }
 0x483   :  { %v7739_v25 = vmax.f32 %v7079_v30, 0.0 }
 0x484   :  { %v6026_v12 = vpop.f32.mrb[244].mxu0  ;;  %v9672_v43 = vpop.f32.mrb[124].mxu1 }
 0x485   :  { %v14203_v51 = vpack.c.bf16 %v7739_v25, %v7738_v52  ;;  %v6027_v27 = vadd.f32 %v6026_v12, %v4970_v24  ;;  %v6028_v9 = vpop.f32.mrb[245].mxu0  ;;  %v7091_v2 = vpop.f32.mrb[125].mxu1  ;;  %v15644_v24 = vld [vmem:[#allocation28_spill] sm:$0xff] }
 0x486   :  { %v6029_v37 = vpop.f32.mrb[246].mxu0  ;;  %v9673_v61 = vpop.f32.mrb[126].mxu1  ;;  %v4978_v52 = vadd.f32 %v13813_v53, %v15644_v24 }
 0x487   :  { %15643 = vst [vmem:[#allocation173_spill] sm:$0xff] %v14203_v51  ;;  %v7084_v36 = vadd.f32 %v9668_v63, %v6027_v27  ;;  %v6030_v23 = vadd.f32 %v6029_v37, %v4973_v42  ;;  %v6031_v46 = vpop.f32.mrb[247].mxu0  ;;  %v7094_v30 = vpop.f32.mrb[127].mxu1  ;;  %v4981_v51 = vadd.f32 %v13813_v53, %v15645_v45  ;;  %v11280_v27 = vld [vmem:[%s15408_s0 + $0x12a8] ss:$20 sps:$4 sm:$0xff]  }
 0x488   :  { %v11284_v45 = vld [vmem:[%s15408_s0 + $0x12d0] ss:$20 sps:$4 sm:$0xff]  }
 0x489   :  { %v7087_v60 = vadd.f32 %v9669_v7, %v6030_v23  ;;  %6241 = vmatmul.mubr.bf16.gmra.mrb[96].mxu0 %v11271_v1  ;;  %9779 = vmatmul.mubr.bf16.gmra.mrb[184].mxu1 %v11275_v44  ;;  %v7740_v25 = vmax.f32 %v7084_v36, 0.0  ;;  %v11276_v7 = vld [vmem:[%s15408_s0 + $0xdf0] ss:$20 sps:$4 sm:$0xff]  }
 0x48a   :  { %6248 = vmatprep.mubr.bf16.mxu0 %v11278_v19  ;;  %9782 = vmatprep.mubr.bf16.mxu1 %v11279_v39  ;;  %v11283_v19 = vld [vmem:[%s15408_s0 + $0xe1c] ss:$20 sps:$4 sm:$0xff]  }
 0x48b   :  { %v7741_v12 = vmax.f32 %v7087_v60, 0.0 }
 0x48c   :  { %v6034_v49 = vpop.f32.mrb[248].mxu0  ;;  %v14219_v9 = vpop.f32.mrb[128].mxu1 }
 0x48d   :  { %v6036_v63 = vpop.f32.mrb[249].mxu0  ;;  %v6035_v42 = vadd.f32 %v6034_v49, %v4978_v52  ;;  %v7107_v1 = vpop.f32.mrb[129].mxu1  ;;  %v14229_v44 = vpack.c.bf16 %v7741_v12, %v7740_v25  ;;  %v15647_v52 = vld [vmem:[#allocation30_spill] sm:$0xff] }
 0x48e   :  { %v6037_v37 = vpop.f32.mrb[250].mxu0  ;;  %v14237_v39 = vpop.f32.mrb[130].mxu1  ;;  %v4986_v25 = vadd.f32 %v13813_v53, %v15647_v52  ;;  %v11289_v53 = vld [vmem:[%s15408_s0 + $0x1320] ss:$20 sps:$4 sm:$0xff]  }
 0x48f   :  { %15646 = vst [vmem:[#allocation174_spill] sm:$0xff] %v14229_v44  ;;  %v7092_v36 = vadd.f32 %v7091_v2, %v6035_v42  ;;  %v6039_v23 = vpop.f32.mrb[251].mxu0  ;;  %v6038_v46 = vadd.f32 %v6037_v37, %v4981_v51  ;;  %v7110_v60 = vpop.f32.mrb[131].mxu1  ;;  %v14268_v52 = vld [vmem:[%s15409_s2] ss:$0 sm:$0xff] }
 0x490   :  { %v5018_v20 = vadd.f32 %v14268_v52, %v15659_v17 }
 0x491   :  { %v7095_v24 = vadd.f32 %v7094_v30, %v6038_v46  ;;  %6249 = vmatmul.mubr.bf16.gmra.mrb[100].mxu0 %v11276_v7  ;;  %9783 = vmatmul.mubr.bf16.gmra.mrb[188].mxu1 %v11280_v27  ;;  %v7742_v12 = vmax.f32 %v7092_v36, 0.0  ;;  %v11281_v30 = vld [vmem:[%s15408_s0 + $0xe18] ss:$20 sps:$4 sm:$0xff]  }
 0x492   :  { %6256 = vmatprep.mubr.bf16.mxu0 %v11283_v19  ;;  %9786 = vmatprep.mubr.bf16.mxu1 %v11284_v45  ;;  %v11285_v7 = vld [vmem:[%s15408_s0 + $0x12f8] ss:$20 sps:$4 sm:$0xff]  }
 0x493   :  { %v7743_v49 = vmax.f32 %v7095_v24, 0.0  ;;  %v11288_v19 = vld [vmem:[%s15408_s0 + $0xe44] ss:$20 sps:$4 sm:$0xff]  }
 0x494   :  { %v6042_v63 = vpop.f32.mrb[252].mxu0  ;;  %v14241_v44 = vpop.f32.mrb[132].mxu1 }
 0x495   :  { %v14245_v2 = vpack.c.bf16 %v7743_v49, %v7742_v12  ;;  %v6043_v51 = vadd.f32 %v6042_v63, %v4986_v25  ;;  %v6044_v42 = vpop.f32.mrb[253].mxu0  ;;  %v14253_v27 = vpop.f32.mrb[133].mxu1  ;;  %v15650_v25 = vld [vmem:[#allocation32_spill] sm:$0xff] }
 0x496   :  { %v6045_v37 = vpop.f32.mrb[254].mxu0  ;;  %v14261_v26 = vpop.f32.mrb[134].mxu1  ;;  %v4994_v12 = vadd.f32 %v14268_v52, %v15650_v25 }
 0x497   :  { %15649 = vst [vmem:[#allocation175_spill] sm:$0xff] %v14245_v2  ;;  %v7100_v45 = vadd.f32 %v9672_v43, %v6043_v51  ;;  %v6046_v36 = vadd.f32 %v6045_v37, %v4989_v40  ;;  %v6047_v23 = vpop.f32.mrb[255].mxu0  ;;  %v14263_v46 = vpop.f32.mrb[135].mxu1  ;;  %v11290_v37 = vld [vmem:[%s15408_s0 + $0x1348] ss:$20 sps:$4 sm:$0xff]  }
 0x498   :  { %v11294_v23 = vld [vmem:[%s15408_s0 + $0x1370] ss:$20 sps:$4 sm:$0xff]  }
 0x499   :  { %v7103_v24 = vadd.f32 %v9673_v61, %v6046_v36  ;;  %6257 = vmatmul.mubr.bf16.gmra.mrb[104].mxu0 %v11281_v30  ;;  %9787 = vmatmul.mubr.bf16.gmra.mrb[192].mxu1 %v11285_v7  ;;  %v7744_v49 = vmax.f32 %v7100_v45, 0.0  ;;  %v15651_v61 = vld [vmem:[#allocation33_spill] sm:$0xff]  ;;  %v11286_v7 = vld [vmem:[%s15408_s0 + $0xe40] ss:$20 sps:$4 sm:$0xff]  }
 0x49a   :  { %6264 = vmatprep.mubr.bf16.mxu0 %v11288_v19  ;;  %9790 = vmatprep.mubr.bf16.mxu1 %v11289_v53  ;;  %v4997_v30 = vadd.f32 %v14268_v52, %v15651_v61  ;;  %v11293_v36 = vld [vmem:[%s15408_s0 + $0xe6c] ss:$20 sps:$4 sm:$0xff]  }
 0x49b   :  { %v7745_v63 = vmax.f32 %v7103_v24, 0.0 }
 0x49c   :  { %v6050_v43 = vpop.f32.mrb[0].mxu0  ;;  %v14272_v40 = vpop.f32.mrb[136].mxu1 }
 0x49d   :  { %v6051_v51 = vadd.f32 %v6050_v43, %v4994_v12  ;;  %v6052_v42 = vpop.f32.mrb[1].mxu0  ;;  %v14282_v19 = vpop.f32.mrb[137].mxu1  ;;  %v14284_v53 = vpack.c.bf16 %v7745_v63, %v7744_v49 }
 0x49e   :  { %v6053_v45 = vpop.f32.mrb[2].mxu0  ;;  %v14292_v24 = vpop.f32.mrb[138].mxu1 }
 0x49f   :  { %15652 = vst [vmem:[#allocation2_spill] sm:$0xff] %v14284_v53  ;;  %v6054_v25 = vadd.f32 %v6053_v45, %v4997_v30  ;;  %v7108_v12 = vadd.f32 %v7107_v1, %v6051_v51  ;;  %v6055_v43 = vpop.f32.mrb[3].mxu0  ;;  %v14294_v42 = vpop.f32.mrb[139].mxu1  ;;  %v15653_v53 = vld [vmem:[#allocation34_spill] sm:$0xff]  ;;  %v15655_v51 = vld [vmem:[#allocation35_spill] sm:$0xff] }
 0x4a0   :  { %v5002_v2 = vadd.f32 %v14268_v52, %v15653_v53  ;;  %v5005_v45 = vadd.f32 %v14268_v52, %v15655_v51 }
 0x4a1   :  { %v7111_v61 = vadd.f32 %v7110_v60, %v6054_v25  ;;  %6265 = vmatmul.mubr.bf16.gmra.mrb[108].mxu0 %v11286_v7  ;;  %9791 = vmatmul.mubr.bf16.gmra.mrb[196].mxu1 %v11290_v37  ;;  %v7746_v49 = vmax.f32 %v7108_v12, 0.0  ;;  %v11291_v60 = vld [vmem:[%s15408_s0 + $0xe68] ss:$20 sps:$4 sm:$0xff]   ;;  %v11295_v7 = vld [vmem:[%s15408_s0 + $0x1398] ss:$20 sps:$4 sm:$0xff]  }
 0x4a2   :  { %6272 = vmatprep.mubr.bf16.mxu0 %v11293_v36  ;;  %9794 = vmatprep.mubr.bf16.mxu1 %v11294_v23  ;;  %v11298_v36 = vld [vmem:[%s15408_s0 + $0xe94] ss:$20 sps:$4 sm:$0xff]  }
 0x4a3   :  { %v7747_v63 = vmax.f32 %v7111_v61, 0.0 }
 0x4a4   :  { %v6058_v0 = vpop.f32.mrb[4].mxu0  ;;  %v14298_v48 = vpop.f32.mrb[140].mxu1 }
 0x4a5   :  { %v14300_v50 = vpack.c.bf16 %v7747_v63, %v7746_v49  ;;  %v6059_v30 = vadd.f32 %v6058_v0, %v5002_v2  ;;  %v6060_v1 = vpop.f32.mrb[5].mxu0  ;;  %v14310_v37 = vpop.f32.mrb[141].mxu1  ;;  %v11299_v0 = vld [vmem:[%s15408_s0 + $0x13c0] ss:$20 sps:$4 sm:$0xff]  }
 0x4a6   :  { %v6061_v53 = vpop.f32.mrb[6].mxu0  ;;  %v14318_v2 = vpop.f32.mrb[142].mxu1  ;;  %v15656_v1 = vld [vmem:[#allocation36_spill] sm:$0xff] }
 0x4a7   :  { %15654 = vst [vmem:[#allocation3_spill] sm:$0xff] %v14300_v50  ;;  %v7116_v23 = vadd.f32 %v14219_v9, %v6059_v30  ;;  %v6062_v25 = vadd.f32 %v6061_v53, %v5005_v45  ;;  %v6063_v12 = vpop.f32.mrb[7].mxu0  ;;  %v14321_v43 = vpop.f32.mrb[143].mxu1  ;;  %v5010_v51 = vadd.f32 %v14268_v52, %v15656_v1  ;;  %v7874_v50 = vld [vmem:[%s15410_s3] sm:$0xff] }
 0x4a8   :  { %v11303_v12 = vld [vmem:[%s15408_s0 + $0xebc] ss:$20 sps:$4 sm:$0xff]   ;;  %v9184_v17 = vcombine.low %v7874_v50, %v7874_v50 }
 0x4a9   :  { %v7119_v61 = vadd.f32 %v14237_v39, %v6062_v25  ;;  %6273 = vmatmul.mubr.bf16.gmra.mrb[112].mxu0 %v11291_v60  ;;  %9795 = vmatmul.mubr.bf16.gmra.mrb[200].mxu1 %v11295_v7  ;;  %v7748_v49 = vmax.f32 %v7116_v23, 0.0  ;;  %v15658_v60 = vld [vmem:[#allocation37_spill] sm:$0xff] }
 0x4aa   :  { %6280 = vmatprep.mubr.bf16.mxu0 %v11298_v36  ;;  %9798 = vmatprep.mubr.bf16.mxu1 %v11299_v0  ;;  %v5013_v7 = vadd.f32 %v14268_v52, %v15658_v60  ;;  %v11296_v36 = vld [vmem:[%s15408_s0 + $0xe90] ss:$20 sps:$4 sm:$0xff]   ;;  %v11300_v0 = vld [vmem:[%s15408_s0 + $0x13e8] ss:$20 sps:$4 sm:$0xff]  }
 0x4ab   :  { %v7749_v63 = vmax.f32 %v7119_v61, 0.0  ;;  %v9185_v61 = vcombine.high %v7874_v50, %v7874_v50 }
 0x4ac   :  { %v6066_v9 = vpop.f32.mrb[8].mxu0  ;;  %v14329_v30 = vpop.f32.mrb[144].mxu1 }
 0x4ad   :  { %v14331_v45 = vpack.c.bf16 %v7749_v63, %v7748_v49  ;;  %v6067_v53 = vadd.f32 %v6066_v9, %v5010_v51  ;;  %v6068_v39 = vpop.f32.mrb[9].mxu0  ;;  %v14341_v23 = vpop.f32.mrb[145].mxu1 }
 0x4ae   :  { %v6069_v25 = vpop.f32.mrb[10].mxu0  ;;  %v14346_v49 = vpop.f32.mrb[146].mxu1 }
 0x4af   :  { %15657 = vst [vmem:[#allocation4_spill] sm:$0xff] %v14331_v45  ;;  %v6070_v63 = vadd.f32 %v6069_v25, %v5013_v7  ;;  %v7124_v1 = vadd.f32 %v14253_v27, %v6067_v53  ;;  %v6071_v51 = vpop.f32.mrb[11].mxu0  ;;  %v14349_v9 = vpop.f32.mrb[147].mxu1  ;;  %v14357_v7 = vld [vmem:[%s15410_s3 + $0x8] sm:$0xff] }
 0x4b1   :  { %v7127_v39 = vadd.f32 %v14263_v46, %v6070_v63  ;;  %6281 = vmatmul.mubr.bf16.gmra.mrb[116].mxu0 %v11296_v36  ;;  %9799 = vmatmul.mubr.bf16.gmra.mrb[204].mxu1 %v11300_v0  ;;  %v7750_v60 = vmax.f32 %v7124_v1, 0.0  ;;  %v15661_v0 = vld [vmem:[#allocation39_spill] sm:$0xff]  ;;  %v11308_v1 = vld [vmem:[%s15408_s0 + $0xee4] ss:$20 sps:$4 sm:$0xff]  }
 0x4b2   :  { %6288 = vmatprep.mubr.bf16.mxu0 %v11303_v12  ;;  %8098 = vmatprep.mubr.bf16.mxu1 %v9185_v61  ;;  %v5021_v25 = vadd.f32 %v14268_v52, %v15661_v0  ;;  %v11301_v12 = vld [vmem:[%s15408_s0 + $0xeb8] ss:$20 sps:$4 sm:$0xff]  }
 0x4b3   :  { %v7751_v45 = vmax.f32 %v7127_v39, 0.0  ;;  %v9187_v39 = vcombine.high %v14357_v7, %v14357_v7 }
 0x4b4   :  { %v6074_v16 = vpop.f32.mrb[12].mxu0  ;;  %v14359_v27 = vpop.f32.mrb[208].mxu1 }
 0x4b5   :  { %v14361_v53 = vpack.c.bf16 %v7751_v45, %v7750_v60  ;;  %v6075_v46 = vadd.f32 %v6074_v16, %v5018_v20  ;;  %v6076_v36 = vpop.f32.mrb[13].mxu0  ;;  %v14368_v61 = vpop.f32.mrb[209].mxu1 }
 0x4b6   :  { %v6077_v63 = vpop.f32.mrb[14].mxu0  ;;  %v14373_v51 = vpop.f32.mrb[210].mxu1 }
 0x4b7   :  { %15660 = vst [vmem:[#allocation5_spill] sm:$0xff] %v14361_v53  ;;  %v7132_v20 = vadd.f32 %v14241_v44, %v6075_v46  ;;  %v6078_v16 = vadd.f32 %v6077_v63, %v5021_v25  ;;  %v6079_v45 = vpop.f32.mrb[15].mxu0  ;;  %v14378_v60 = vpop.f32.mrb[211].mxu1  ;;  %v15662_v53 = vld [vmem:[#allocation40_spill] sm:$0xff] }
 0x4b8   :  { %v5026_v44 = vadd.f32 %v14268_v52, %v15662_v53  ;;  %v11311_v53 = vld [vmem:[%s15408_s0 + $0xf0c] ss:$20 sps:$4 sm:$0xff]  }
 0x4b9   :  { %v7135_v50 = vadd.f32 %v14261_v26, %v6078_v16  ;;  %6289 = vmatmul.mubr.bf16.gmra.mrb[120].mxu0 %v11301_v12  ;;  %8099 = vmatmul.mubr.bf16.vlgmr.msra.gmra.mrb[0].mxu1 %v9184_v17  ;;  %v7752_v36 = vmax.f32 %v7132_v20, 0.0  ;;  %v15663_v12 = vld [vmem:[#allocation41_spill] sm:$0xff] }
 0x4ba   :  { %9368 = vmatpush3.bf16.msra.mxu1 %v13600_v11  ;;  %6296 = vmatprep.mubr.bf16.mxu0 %v11308_v1  ;;  %v5029_v17 = vadd.f32 %v14268_v52, %v15663_v12  ;;  %v11306_v11 = vld [vmem:[%s15408_s0 + $0xee0] ss:$20 sps:$4 sm:$0xff]  }
 0x4bb   :  { %v7753_v0 = vmax.f32 %v7135_v50, 0.0  ;;  %9369 = vmatprep.subr.bf16.mxu1 %v13708_v13  ;;  %8138 = vmatprep.mubr.bf16.mxu1 %v9187_v39 }
 0x4bc   :  { %v6082_v46 = vpop.f32.mrb[16].mxu0  ;;  %v14385_v25 = vpop.f32.mrb[212].mxu1 }
 0x4bd   :  { %v14387_v63 = vpack.c.bf16 %v7753_v0, %v7752_v36  ;;  %v6083_v45 = vadd.f32 %v6082_v46, %v5026_v44  ;;  %v6084_v26 = vpop.f32.mrb[17].mxu0  ;;  %v14394_v1 = vpop.f32.mrb[213].mxu1  ;;  %v15664_v46 = vld [vmem:[#allocation42_spill] sm:$0xff] }
 0x4be   :  { %9370 = vmatpush3.bf16.msra.mxu1 %v13595_v56  ;;  %v6085_v13 = vpop.f32.mrb[18].mxu0  ;;  %v14400_v20 = vpop.f32.mrb[214].mxu1  ;;  %v5034_v26 = vadd.f32 %v14268_v52, %v15664_v46 }
 0x4bf   :  { %v6086_v16 = vadd.f32 %v6085_v13, %v5029_v17  ;;  %v7140_v39 = vadd.f32 %v14282_v19, %v6083_v45  ;;  %9371 = vmatprep.subr.bf16.mxu1 %v13738_v15  ;;  %v6087_v50 = vpop.f32.mrb[19].mxu0  ;;  %v14404_v36 = vpop.f32.mrb[215].mxu1  ;;  %v15665_v13 = vld [vmem:[#allocation43_spill] sm:$0xff] }
 0x4c1   :  { %v7143_v0 = vadd.f32 %v14294_v42, %v6086_v16  ;;  %6297 = vmatmul.mubr.bf16.gmra.mrb[124].mxu0 %v11306_v11  ;;  %v7754_v56 = vmax.f32 %v7140_v39, 0.0  ;;  %v5037_v42 = vadd.f32 %v14268_v52, %v15665_v13 }
 0x4c2   :  { %9372 = vmatpush3.bf16.msra.mxu1 %v13628_v31  ;;  %6304 = vmatprep.mubr.bf16.mxu0 %v11311_v53  ;;  %v11309_v31 = vld [vmem:[%s15408_s0 + $0xf08] ss:$20 sps:$4 sm:$0xff]  }
 0x4c3   :  { %v7755_v44 = vmax.f32 %v7143_v0, 0.0  ;;  %9373 = vmatprep.subr.bf16.mxu1 %v13734_v4  ;;  %v11314_v53 = vld [vmem:[%s15408_s0 + $0xf34] ss:$20 sps:$4 sm:$0xff]  }
 0x4c4   :  { %v6090_v12 = vpop.f32.mrb[20].mxu0  ;;  %v14411_v19 = vpop.f32.mrb[216].mxu1 }
 0x4c5   :  { %v14413_v15 = vpack.c.bf16 %v7755_v44, %v7754_v56  ;;  %v6091_v45 = vadd.f32 %v6090_v12, %v5034_v26  ;;  %v6092_v17 = vpop.f32.mrb[21].mxu0  ;;  %v14420_v11 = vpop.f32.mrb[217].mxu1  ;;  %v15666_v26 = vld [vmem:[#allocation44_spill] sm:$0xff] }
 0x4c6   :  { %9374 = vmatpush3.bf16.msra.mxu1 %v13624_v54  ;;  %v6093_v4 = vpop.f32.mrb[22].mxu0  ;;  %v14426_v16 = vpop.f32.mrb[218].mxu1  ;;  %v5042_v12 = vadd.f32 %v14268_v52, %v15666_v26  ;;  %v15668_v26 = vld [vmem:[#allocation46_spill] sm:$0xff] }
 0x4c7   :  { %v7148_v39 = vadd.f32 %v14272_v40, %v6091_v45  ;;  %v6094_v50 = vadd.f32 %v6093_v4, %v5037_v42  ;;  %9375 = vmatprep.subr.bf16.mxu1 %v13766_v58  ;;  %v6095_v0 = vpop.f32.mrb[23].mxu0  ;;  %v14430_v56 = vpop.f32.mrb[219].mxu1  ;;  %v15667_v42 = vld [vmem:[#allocation45_spill] sm:$0xff] }
 0x4c8   :  { %v11317_v4 = vld [vmem:[%s15408_s0 + $0xf5c] ss:$20 sps:$4 sm:$0xff]  }
 0x4c9   :  { %v7151_v44 = vadd.f32 %v14292_v24, %v6094_v50  ;;  %6305 = vmatmul.mubr.bf16.gmra.mrb[128].mxu0 %v11309_v31  ;;  %v7756_v54 = vmax.f32 %v7148_v39, 0.0  ;;  %v5045_v24 = vadd.f32 %v14268_v52, %v15667_v42 }
 0x4ca   :  { %9376 = vmatpush3.bf16.msra.mxu1 %v13656_v41  ;;  %6312 = vmatprep.mubr.bf16.mxu0 %v11314_v53  ;;  %v11312_v41 = vld [vmem:[%s15408_s0 + $0xf30] ss:$20 sps:$4 sm:$0xff]  }
 0x4cb   :  { %v7757_v46 = vmax.f32 %v7151_v44, 0.0  ;;  %9377 = vmatprep.subr.bf16.mxu1 %v13762_v38 }
 0x4cc   :  { %v6098_v40 = vpop.f32.mrb[24].mxu0  ;;  %v14437_v45 = vpop.f32.mrb[220].mxu1 }
 0x4cd   :  { %v14439_v58 = vpack.c.bf16 %v7757_v46, %v7756_v54  ;;  %v6099_v17 = vadd.f32 %v6098_v40, %v5042_v12  ;;  %v6100_v13 = vpop.f32.mrb[25].mxu0  ;;  %v14446_v31 = vpop.f32.mrb[221].mxu1  ;;  %v5050_v12 = vadd.f32 %v14268_v52, %v15668_v26 }
 0x4ce   :  { %9378 = vmatpush3.bf16.msra.mxu1 %v13652_v33  ;;  %v6101_v38 = vpop.f32.mrb[26].mxu0  ;;  %v14452_v53 = vpop.f32.mrb[222].mxu1  ;;  %v15669_v13 = vld [vmem:[#allocation47_spill] sm:$0xff] }
 0x4cf   :  { %v6102_v39 = vadd.f32 %v6101_v38, %v5045_v24  ;;  %v7156_v50 = vadd.f32 %v14310_v37, %v6099_v17  ;;  %9379 = vmatprep.subr.bf16.mxu1 %v13794_v21  ;;  %v6103_v0 = vpop.f32.mrb[27].mxu0  ;;  %v14456_v44 = vpop.f32.mrb[223].mxu1  ;;  %v14466_v21 = vld [vmem:[%s15410_s3 + $0x10] sm:$0xff]  ;;  %v5053_v42 = vadd.f32 %v14268_v52, %v15669_v13  ;;  %v9186_v24 = vcombine.low %v14357_v7, %v14357_v7  ;;  %v15671_v13 = vld [vmem:[#allocation49_spill] sm:$0xff] }
 0x4d0   :  { %v9189_v7 = vcombine.high %v14466_v21, %v14466_v21 }
 0x4d1   :  { %v7159_v54 = vadd.f32 %v14321_v43, %v6102_v39  ;;  %6313 = vmatmul.mubr.bf16.gmra.mrb[132].mxu0 %v11312_v41  ;;  %v7758_v33 = vmax.f32 %v7156_v50, 0.0 }
 0x4d2   :  { %9380 = vmatpush3.bf16.msra.mxu1 %v13684_v29  ;;  %6320 = vmatprep.mubr.bf16.mxu0 %v11317_v4  ;;  %v11322_v4 = vld [vmem:[%s15408_s0 + $0xf84] ss:$20 sps:$4 sm:$0xff]  }
 0x4d3   :  { %v7759_v46 = vmax.f32 %v7159_v54, 0.0  ;;  %9381 = vmatprep.subr.bf16.mxu1 %v13790_v55  ;;  %v11315_v55 = vld [vmem:[%s15408_s0 + $0xf58] ss:$20 sps:$4 sm:$0xff]  }
 0x4d4   :  { %v6106_v40 = vpop.f32.mrb[28].mxu0  ;;  %v14468_v37 = vpop.f32.mrb[224].mxu1 }
 0x4d5   :  { %v14470_v43 = vpack.c.bf16 %v7759_v46, %v7758_v33  ;;  %v6107_v17 = vadd.f32 %v6106_v40, %v5050_v12  ;;  %v6108_v29 = vpop.f32.mrb[29].mxu0  ;;  %v14479_v41 = vpop.f32.mrb[225].mxu1 }
 0x4d6   :  { %9382 = vmatpush3.bf16.msra.mxu1 %v13680_v10  ;;  %v6109_v38 = vpop.f32.mrb[30].mxu0  ;;  %v14485_v39 = vpop.f32.mrb[226].mxu1 }
 0x4d7   :  { %v7164_v50 = vadd.f32 %v14298_v48, %v6107_v17  ;;  %v6110_v0 = vadd.f32 %v6109_v38, %v5053_v42  ;;  %9389 = vmatprep.subr.bf16.mxu1 %v13949_v22  ;;  %v6111_v54 = vpop.f32.mrb[31].mxu0  ;;  %v14491_v33 = vpop.f32.mrb[227].mxu1  ;;  %v15670_v48 = vld [vmem:[#allocation48_spill] sm:$0xff]  ;;  %v5061_v42 = vadd.f32 %v14268_v52, %v15671_v13 }
 0x4d8   :  { %v5058_v22 = vadd.f32 %v14268_v52, %v15670_v48  ;;  %v11328_v13 = vld [vmem:[%s15408_s0 + $0xfd4] ss:$20 sps:$4 sm:$0xff]  }
 0x4d9   :  { %v7167_v10 = vadd.f32 %v14318_v2, %v6110_v0  ;;  %6321 = vmatmul.mubr.bf16.gmra.mrb[136].mxu0 %v11315_v55  ;;  %8139 = vmatmul.mubr.bf16.vlgmr.msra.gmra.mrb[4].mxu1 %v9186_v24  ;;  %v7760_v46 = vmax.f32 %v7164_v50, 0.0  ;;  %v11325_v24 = vld [vmem:[%s15408_s0 + $0xfac] ss:$20 sps:$4 sm:$0xff]  }
 0x4da   :  { %9390 = vmatpush3.bf16.msra.mxu1 %v13827_v35  ;;  %6328 = vmatprep.mubr.bf16.mxu0 %v11322_v4  ;;  %v11320_v35 = vld [vmem:[%s15408_s0 + $0xf80] ss:$20 sps:$4 sm:$0xff]  }
 0x4db   :  { %v7761_v26 = vmax.f32 %v7167_v10, 0.0  ;;  %9391 = vmatprep.subr.bf16.mxu1 %v13945_v14  ;;  %8178 = vmatprep.mubr.bf16.mxu1 %v9189_v7 }
 0x4dc   :  { %v6114_v12 = vpop.f32.mrb[32].mxu0  ;;  %v14498_v40 = vpop.f32.mrb[228].mxu1 }
 0x4dd   :  { %v14500_v17 = vpack.c.bf16 %v7761_v26, %v7760_v46  ;;  %v6115_v29 = vadd.f32 %v6114_v12, %v5058_v22  ;;  %v6116_v2 = vpop.f32.mrb[33].mxu0  ;;  %v14507_v55 = vpop.f32.mrb[229].mxu1  ;;  %v15672_v46 = vld [vmem:[#allocation50_spill] sm:$0xff] }
 0x4de   :  { %9392 = vmatpush3.bf16.msra.mxu1 %v13823_v18  ;;  %v6117_v14 = vpop.f32.mrb[34].mxu0  ;;  %v14513_v38 = vpop.f32.mrb[230].mxu1  ;;  %v5066_v26 = vadd.f32 %v14268_v52, %v15672_v46 }
 0x4df   :  { %v6118_v4 = vadd.f32 %v6117_v14, %v5061_v42  ;;  %v7172_v50 = vadd.f32 %v14341_v23, %v6115_v29  ;;  %9393 = vmatprep.subr.bf16.mxu1 %v13981_v32  ;;  %v6119_v0 = vpop.f32.mrb[35].mxu0  ;;  %v14517_v54 = vpop.f32.mrb[231].mxu1  ;;  %v15673_v29 = vld [vmem:[#allocation51_spill] sm:$0xff] }
 0x4e1   :  { %v7175_v7 = vadd.f32 %v14349_v9, %v6118_v4  ;;  %6329 = vmatmul.mubr.bf16.gmra.mrb[140].mxu0 %v11320_v35  ;;  %v7762_v18 = vmax.f32 %v7172_v50, 0.0  ;;  %v5069_v9 = vadd.f32 %v14268_v52, %v15673_v29 }
 0x4e2   :  { %9394 = vmatpush3.bf16.msra.mxu1 %v13855_v47  ;;  %6336 = vmatprep.mubr.bf16.mxu0 %v11325_v24  ;;  %v11323_v47 = vld [vmem:[%s15408_s0 + $0xfa8] ss:$20 sps:$4 sm:$0xff]  }
 0x4e3   :  { %v7763_v10 = vmax.f32 %v7175_v7, 0.0  ;;  %9395 = vmatprep.subr.bf16.mxu1 %v13977_v6  ;;  %v15674_v7 = vld [vmem:[#allocation52_spill] sm:$0xff] }
 0x4e4   :  { %v6122_v48 = vpop.f32.mrb[36].mxu0  ;;  %v14524_v23 = vpop.f32.mrb[232].mxu1 }
 0x4e5   :  { %v14526_v32 = vpack.c.bf16 %v7763_v10, %v7762_v18  ;;  %v6123_v22 = vadd.f32 %v6122_v48, %v5066_v26  ;;  %v6124_v12 = vpop.f32.mrb[37].mxu0  ;;  %v14533_v2 = vpop.f32.mrb[233].mxu1  ;;  %v5074_v18 = vadd.f32 %v14268_v52, %v15674_v7  ;;  %v15675_v26 = vld [vmem:[#allocation53_spill] sm:$0xff]  ;;  %v15677_v7 = vld [vmem:[#allocation55_spill] sm:$0xff] }
 0x4e6   :  { %9396 = vmatpush3.bf16.msra.mxu1 %v13851_v3  ;;  %v6125_v6 = vpop.f32.mrb[38].mxu0  ;;  %v14539_v42 = vpop.f32.mrb[234].mxu1  ;;  %v5077_v48 = vadd.f32 %v14268_v52, %v15675_v26  ;;  %v11331_v12 = vld [vmem:[%s15408_s0 + $0xffc] ss:$20 sps:$4 sm:$0xff]  }
 0x4e7   :  { %v7180_v35 = vadd.f32 %v14329_v30, %v6123_v22  ;;  %v6126_v14 = vadd.f32 %v6125_v6, %v5069_v9  ;;  %9397 = vmatprep.subr.bf16.mxu1 %v14013_v62  ;;  %v6127_v24 = vpop.f32.mrb[39].mxu0  ;;  %v14543_v4 = vpop.f32.mrb[235].mxu1 }
 0x4e8   :  { %v15676_v24 = vld [vmem:[#allocation54_spill] sm:$0xff] }
 0x4e9   :  { %v7183_v50 = vadd.f32 %v14346_v49, %v6126_v14  ;;  %6337 = vmatmul.mubr.bf16.gmra.mrb[144].mxu0 %v11323_v47  ;;  %v7764_v3 = vmax.f32 %v7180_v35, 0.0 }
 0x4ea   :  { %9398 = vmatpush3.bf16.msra.mxu1 %v13885_v34  ;;  %6344 = vmatprep.mubr.bf16.mxu0 %v11328_v13  ;;  %v11326_v34 = vld [vmem:[%s15408_s0 + $0xfd0] ss:$20 sps:$4 sm:$0xff]  }
 0x4eb   :  { %v7765_v0 = vmax.f32 %v7183_v50, 0.0  ;;  %9399 = vmatprep.subr.bf16.mxu1 %v14009_v59  ;;  %v5082_v50 = vadd.f32 %v14268_v52, %v15676_v24 }
 0x4ec   :  { %v6130_v30 = vpop.f32.mrb[40].mxu0  ;;  %v14550_v10 = vpop.f32.mrb[236].mxu1 }
 0x4ed   :  { %v6131_v62 = vadd.f32 %v6130_v30, %v5074_v18  ;;  %v6132_v46 = vpop.f32.mrb[41].mxu0  ;;  %v14557_v49 = vpack.c.bf16 %v7765_v0, %v7764_v3  ;;  %v14559_v22 = vpop.f32.mrb[237].mxu1  ;;  %v5085_v18 = vadd.f32 %v14268_v52, %v15677_v7  ;;  %v9188_v30 = vcombine.low %v14466_v21, %v14466_v21 }
 0x4ee   :  { %9400 = vmatpush3.bf16.msra.mxu1 %v13881_v28  ;;  %v6133_v59 = vpop.f32.mrb[42].mxu0  ;;  %v14565_v29 = vpop.f32.mrb[238].mxu1  ;;  %v15678_v46 = vld [vmem:[#allocation145_spill] sm:$0xff] }
 0x4ef   :  { %v6134_v9 = vadd.f32 %v6133_v59, %v5077_v48  ;;  %v7188_v47 = vadd.f32 %v14368_v61, %v6131_v62  ;;  %9401 = vmatprep.subr.bf16.mxu1 %v14043_v57  ;;  %v6135_v6 = vpop.f32.mrb[43].mxu0  ;;  %v14569_v13 = vpop.f32.mrb[239].mxu1  ;;  %v14579_v57 = vld [vmem:[%s15410_s3 + $0x18] sm:$0xff] }
 0x4f0   :  { %v11336_v48 = vld [vmem:[%s15408_s0 + $0x1024] ss:$20 sps:$4 sm:$0xff]   ;;  %v9191_v21 = vcombine.high %v14579_v57, %v14579_v57 }
 0x4f1   :  { %v7191_v35 = vadd.f32 %v14378_v60, %v6134_v9  ;;  %6345 = vmatmul.mubr.bf16.gmra.mrb[148].mxu0 %v11326_v34  ;;  %v7766_v28 = vmax.f32 %v7188_v47, 0.0  ;;  %v15679_v9 = vld [vmem:[#allocation165_spill] sm:$0xff] }
 0x4f2   :  { %9402 = vmatpush3.bf16.msra.mxu1 %v13917_v5  ;;  %6352 = vmatprep.mubr.bf16.mxu0 %v11331_v12 }
 0x4f3   :  { %v7767_v14 = vmax.f32 %v7191_v35, 0.0  ;;  %9403 = vmatprep.subr.bf16.mxu1 %v14041_v8  ;;  %v11329_v8 = vld [vmem:[%s15408_s0 + $0xff8] ss:$20 sps:$4 sm:$0xff]  }
 0x4f4   :  { %v6138_v3 = vpop.f32.mrb[44].mxu0  ;;  %v14581_v61 = vpop.f32.mrb[240].mxu1 }
 0x4f5   :  { %v14583_v60 = vpack.c.bf16 %v7767_v14, %v7766_v28  ;;  %v6139_v0 = vadd.f32 %v6138_v3, %v5082_v50  ;;  %v6140_v5 = vpop.f32.mrb[45].mxu0  ;;  %v14592_v62 = vpop.f32.mrb[241].mxu1  ;;  %v15680_v28 = vld [vmem:[#allocation149_spill] sm:$0xff] }
 0x4f6   :  { %9404 = vmatpush3.bf16.msra.mxu1 %v15678_v46  ;;  %v6141_v26 = vpop.f32.mrb[46].mxu0  ;;  %v14598_v34 = vpop.f32.mrb[242].mxu1  ;;  %v15681_v50 = vld [vmem:[#allocation169_spill] sm:$0xff] }
 0x4f7   :  { %v7196_v59 = vadd.f32 %v14359_v27, %v6139_v0  ;;  %v6142_v12 = vadd.f32 %v6141_v26, %v5085_v18  ;;  %9411 = vmatprep.subr.bf16.mxu1 %v15679_v9  ;;  %v6143_v47 = vpop.f32.mrb[47].mxu0  ;;  %v14604_v6 = vpop.f32.mrb[243].mxu1  ;;  %v15682_v27 = vld [vmem:[#allocation56_spill] sm:$0xff]  ;;  %v15683_v18 = vld [vmem:[#allocation57_spill] sm:$0xff] }
 0x4f8   :  { %v5090_v3 = vadd.f32 %v14268_v52, %v15682_v27  ;;  %v5093_v46 = vadd.f32 %v14268_v52, %v15683_v18  ;;  %v15684_v26 = vld [vmem:[#allocation153_spill] sm:$0xff]  ;;  %v15685_v47 = vld [vmem:[#allocation171_spill] sm:$0xff] }
 0x4f9   :  { %v7199_v35 = vadd.f32 %v14373_v51, %v6142_v12  ;;  %6353 = vmatmul.mubr.bf16.gmra.mrb[152].mxu0 %v11329_v8  ;;  %8179 = vmatmul.mubr.bf16.vlgmr.msra.gmra.mrb[8].mxu1 %v9188_v30  ;;  %v7768_v14 = vmax.f32 %v7196_v59, 0.0  ;;  %v11334_v51 = vld [vmem:[%s15408_s0 + $0x1020] ss:$20 sps:$4 sm:$0xff]  }
 0x4fa   :  { %9412 = vmatpush3.bf16.msra.mxu1 %v15680_v28  ;;  %6360 = vmatprep.mubr.bf16.mxu0 %v11336_v48  ;;  %v11339_v59 = vld [vmem:[%s15408_s0 + $0x104c] ss:$20 sps:$4 sm:$0xff]  }
 0x4fb   :  { %v7769_v24 = vmax.f32 %v7199_v35, 0.0  ;;  %9413 = vmatprep.subr.bf16.mxu1 %v15681_v50  ;;  %8218 = vmatprep.mubr.bf16.mxu1 %v9191_v21  ;;  %v15686_v50 = vld [vmem:[#allocation151_spill] sm:$0xff] }
 0x4fc   :  { %v6146_v0 = vpop.f32.mrb[48].mxu0  ;;  %v14618_v30 = vpop.f32.mrb[244].mxu1 }
 0x4fd   :  { %v6147_v5 = vadd.f32 %v6146_v0, %v5090_v3  ;;  %v6148_v7 = vpop.f32.mrb[49].mxu0  ;;  %v14616_v8 = vpack.c.bf16 %v7769_v24, %v7768_v14  ;;  %v14626_v35 = vpop.f32.mrb[245].mxu1  ;;  %v15687_v0 = vld [vmem:[#allocation167_spill] sm:$0xff] }
 0x4fe   :  { %9414 = vmatpush3.bf16.msra.mxu1 %v15684_v26  ;;  %v6149_v48 = vpop.f32.mrb[50].mxu0  ;;  %v14628_v28 = vpop.f32.mrb[246].mxu1 }
 0x4ff   :  { %v6150_v12 = vadd.f32 %v6149_v48, %v5093_v46  ;;  %v7204_v9 = vadd.f32 %v14394_v1, %v6147_v5  ;;  %9415 = vmatprep.subr.bf16.mxu1 %v15685_v47  ;;  %v6151_v21 = vpop.f32.mrb[51].mxu0  ;;  %v14631_v24 = vpop.f32.mrb[247].mxu1  ;;  %v15688_v1 = vld [vmem:[#allocation58_spill] sm:$0xff]  ;;  %v15689_v48 = vld [vmem:[#allocation59_spill] sm:$0xff] }
 0x500   :  { %v5098_v5 = vadd.f32 %v14268_v52, %v15688_v1 }
 0x501   :  { %v7207_v14 = vadd.f32 %v14404_v36, %v6150_v12  ;;  %6361 = vmatmul.mubr.bf16.gmra.mrb[156].mxu0 %v11334_v51  ;;  %v7770_v27 = vmax.f32 %v7204_v9, 0.0  ;;  %v5101_v36 = vadd.f32 %v14268_v52, %v15689_v48  ;;  %v11337_v51 = vld [vmem:[%s15408_s0 + $0x1048] ss:$20 sps:$4 sm:$0xff]  }
 0x502   :  { %9416 = vmatpush3.bf16.msra.mxu1 %v15686_v50  ;;  %6368 = vmatprep.mubr.bf16.mxu0 %v11339_v59  ;;  %v15690_v59 = vld [vmem:[#allocation155_spill] sm:$0xff] }
 0x503   :  { %v7771_v3 = vmax.f32 %v7207_v14, 0.0  ;;  %9417 = vmatprep.subr.bf16.mxu1 %v15687_v0  ;;  %v11342_v9 = vld [vmem:[%s15408_s0 + $0x1074] ss:$20 sps:$4 sm:$0xff]   ;;  %v15691_v14 = vld [vmem:[#allocation173_spill] sm:$0xff] }
 0x504   :  { %v6154_v7 = vpop.f32.mrb[52].mxu0 }
 0x505   :  { %v14637_v18 = vpack.c.bf16 %v7771_v3, %v7770_v27  ;;  %v6155_v46 = vadd.f32 %v6154_v7, %v5098_v5  ;;  %v6156_v26 = vpop.f32.mrb[53].mxu0  ;;  %v15692_v3 = vld [vmem:[#allocation157_spill] sm:$0xff]  ;;  %v15693_v5 = vld [vmem:[#allocation174_spill] sm:$0xff]  ;;  %v15694_v7 = vld [vmem:[#allocation60_spill] sm:$0xff] }
 0x506   :  { %9418 = vmatpush3.bf16.msra.mxu1 %v15690_v59  ;;  %v6157_v12 = vpop.f32.mrb[54].mxu0  ;;  %v5106_v26 = vadd.f32 %v14268_v52, %v15694_v7 }
 0x507   :  { %v7212_v47 = vadd.f32 %v14385_v25, %v6155_v46  ;;  %v6158_v21 = vadd.f32 %v6157_v12, %v5101_v36  ;;  %9419 = vmatprep.subr.bf16.mxu1 %v15691_v14  ;;  %v6159_v50 = vpop.f32.mrb[55].mxu0  ;;  %v15695_v46 = vld [vmem:[#allocation61_spill] sm:$0xff]  ;;  %v14662_v12 = vpop.f32.mrb[248].mxu1 }
 0x508   :  { %v5109_v36 = vadd.f32 %v14268_v52, %v15695_v46  ;;  %v15699_v46 = vld [vmem:[#allocation2_spill] sm:$0xff] }
 0x509   :  { %v7215_v27 = vadd.f32 %v14400_v20, %v6158_v21  ;;  %6369 = vmatmul.mubr.bf16.gmra.mrb[160].mxu0 %v11337_v51  ;;  %v7772_v0 = vmax.f32 %v7212_v47, 0.0  ;;  %v11340_v20 = vld [vmem:[%s15408_s0 + $0x1070] ss:$20 sps:$4 sm:$0xff]  }
 0x50a   :  { %9420 = vmatpush3.bf16.msra.mxu1 %v15692_v3  ;;  %6376 = vmatprep.mubr.bf16.mxu0 %v11342_v9  ;;  %v15696_v9 = vld [vmem:[#allocation161_spill] sm:$0xff] }
 0x50b   :  { %v7773_v1 = vmax.f32 %v7215_v27, 0.0  ;;  %9421 = vmatprep.subr.bf16.mxu1 %v15693_v5  ;;  %v11345_v21 = vld [vmem:[%s15408_s0 + $0x109c] ss:$20 sps:$4 sm:$0xff]   ;;  %v15697_v27 = vld [vmem:[#allocation175_spill] sm:$0xff]  ;;  %v14670_v5 = vpop.f32.mrb[249].mxu1 }
 0x50c   :  { %v6162_v48 = vpop.f32.mrb[56].mxu0  ;;  %v14672_v7 = vpop.f32.mrb[250].mxu1 }
 0x50d   :  { %v6163_v59 = vadd.f32 %v6162_v48, %v5106_v26  ;;  %v6164_v25 = vpop.f32.mrb[57].mxu0  ;;  %v14660_v51 = vpack.c.bf16 %v7773_v1, %v7772_v0  ;;  %v14675_v1 = vpop.f32.mrb[251].mxu1  ;;  %v15698_v26 = vld [vmem:[#allocation159_spill] sm:$0xff] }
 0x50e   :  { %9422 = vmatpush3.bf16.msra.mxu1 %v15696_v9  ;;  %v6165_v47 = vpop.f32.mrb[58].mxu0  ;;  %v14684_v9 = vld [vmem:[%s15410_s3 + $0x20] sm:$0xff] }
 0x50f   :  { %v6166_v14 = vadd.f32 %v6165_v47, %v5109_v36  ;;  %v7220_v50 = vadd.f32 %v14420_v11, %v6163_v59  ;;  %9423 = vmatprep.subr.bf16.mxu1 %v15697_v27  ;;  %v6167_v3 = vpop.f32.mrb[59].mxu0  ;;  %v15700_v11 = vld [vmem:[#allocation62_spill] sm:$0xff]  ;;  %v9190_v27 = vcombine.low %v14579_v57, %v14579_v57  ;;  %v15703_v57 = vld [vmem:[#allocation3_spill] sm:$0xff] }
 0x510   :  { %v5114_v59 = vadd.f32 %v14268_v52, %v15700_v11  ;;  %v15702_v3 = vld [vmem:[#allocation163_spill] sm:$0xff]  ;;  %v9193_v11 = vcombine.high %v14684_v9, %v14684_v9 }
 0x511   :  { %v7223_v0 = vadd.f32 %v14430_v56, %v6166_v14  ;;  %6377 = vmatmul.mubr.bf16.gmra.mrb[164].mxu0 %v11340_v20  ;;  %v7774_v48 = vmax.f32 %v7220_v50, 0.0  ;;  %v15701_v14 = vld [vmem:[#allocation63_spill] sm:$0xff] }
 0x512   :  { %9424 = vmatpush3.bf16.msra.mxu1 %v15698_v26  ;;  %6384 = vmatprep.mubr.bf16.mxu0 %v11345_v21  ;;  %v5117_v21 = vadd.f32 %v14268_v52, %v15701_v14  ;;  %v11343_v50 = vld [vmem:[%s15408_s0 + $0x1098] ss:$20 sps:$4 sm:$0xff]   ;;  %v15704_v14 = vld [vmem:[#allocation64_spill] sm:$0xff] }
 0x513   :  { %v7775_v25 = vmax.f32 %v7223_v0, 0.0  ;;  %9425 = vmatprep.subr.bf16.mxu1 %v15699_v46  ;;  %v11350_v26 = vld [vmem:[%s15408_s0 + $0x10c4] ss:$20 sps:$4 sm:$0xff]  }
 0x514   :  { %v6170_v36 = vpop.f32.mrb[60].mxu0 }
 0x515   :  { %v14686_v56 = vpack.c.bf16 %v7775_v25, %v7774_v48  ;;  %v6171_v20 = vadd.f32 %v6170_v36, %v5114_v59  ;;  %v6172_v47 = vpop.f32.mrb[61].mxu0 }
 0x516   :  { %9426 = vmatpush3.bf16.msra.mxu1 %v15702_v3  ;;  %v6173_v0 = vpop.f32.mrb[62].mxu0  ;;  %v15705_v3 = vld [vmem:[#allocation65_spill] sm:$0xff] }
 0x517   :  { %v7228_v48 = vadd.f32 %v14411_v19, %v6171_v20  ;;  %v6174_v25 = vadd.f32 %v6173_v0, %v5117_v21  ;;  %9433 = vmatprep.subr.bf16.mxu1 %v14526_v32  ;;  %v6175_v46 = vpop.f32.mrb[63].mxu0  ;;  %v5122_v19 = vadd.f32 %v14268_v52, %v15704_v14  ;;  %v5125_v0 = vadd.f32 %v14268_v52, %v15705_v3  ;;  %v15707_v14 = vld [vmem:[#allocation5_spill] sm:$0xff] }
 0x519   :  { %v7231_v59 = vadd.f32 %v14426_v16, %v6174_v25  ;;  %6385 = vmatmul.mubr.bf16.gmra.mrb[168].mxu0 %v11343_v50  ;;  %8219 = vmatmul.mubr.bf16.vlgmr.msra.gmra.mrb[12].mxu1 %v9190_v27  ;;  %v7776_v36 = vmax.f32 %v7228_v48, 0.0  ;;  %v11348_v16 = vld [vmem:[%s15408_s0 + $0x10c0] ss:$20 sps:$4 sm:$0xff]   ;;  %v14715_v27 = vpop.f32.mrb[252].mxu1 }
 0x51a   :  { %9434 = vmatpush3.bf16.msra.mxu1 %v15703_v57  ;;  %6392 = vmatprep.mubr.bf16.mxu0 %v11350_v26  ;;  %v15706_v26 = vld [vmem:[#allocation4_spill] sm:$0xff]  ;;  %v11353_v48 = vld [vmem:[%s15408_s0 + $0x10ec] ss:$20 sps:$4 sm:$0xff]  }
 0x51b   :  { %v7777_v47 = vmax.f32 %v7231_v59, 0.0  ;;  %9435 = vmatprep.subr.bf16.mxu1 %v14557_v49  ;;  %8258 = vmatprep.mubr.bf16.mxu1 %v9193_v11  ;;  %v14723_v59 = vpop.f32.mrb[253].mxu1 }
 0x51c   :  { %v6178_v32 = vpop.f32.mrb[64].mxu0  ;;  %v14725_v57 = vpop.f32.mrb[254].mxu1 }
 0x51d   :  { %v6179_v20 = vadd.f32 %v6178_v32, %v5122_v19  ;;  %v6180_v21 = vpop.f32.mrb[65].mxu0  ;;  %v14713_v50 = vpack.c.bf16 %v7777_v47, %v7776_v36  ;;  %v14728_v47 = vpop.f32.mrb[255].mxu1 }
 0x51e   :  { %9436 = vmatpush3.bf16.msra.mxu1 %v15706_v26  ;;  %v6181_v49 = vpop.f32.mrb[66].mxu0  ;;  %v15709_v26 = vld [vmem:[#allocation67_spill] sm:$0xff] }
 0x51f   :  { %v6182_v25 = vadd.f32 %v6181_v49, %v5125_v0  ;;  %v7236_v46 = vadd.f32 %v14446_v31, %v6179_v20  ;;  %9437 = vmatprep.subr.bf16.mxu1 %v14583_v60  ;;  %v6183_v11 = vpop.f32.mrb[67].mxu0  ;;  %v15708_v31 = vld [vmem:[#allocation66_spill] sm:$0xff] }
 0x520   :  { %v5130_v60 = vadd.f32 %v14268_v52, %v15708_v31 }
 0x521   :  { %v7239_v36 = vadd.f32 %v14456_v44, %v6182_v25  ;;  %6393 = vmatmul.mubr.bf16.gmra.mrb[172].mxu0 %v11348_v16  ;;  %v7778_v19 = vmax.f32 %v7236_v46, 0.0  ;;  %v5133_v44 = vadd.f32 %v14268_v52, %v15709_v26  ;;  %v11351_v16 = vld [vmem:[%s15408_s0 + $0x10e8] ss:$20 sps:$4 sm:$0xff]  }
 0x522   :  { %9438 = vmatpush3.bf16.msra.mxu1 %v15707_v14  ;;  %6400 = vmatprep.mubr.bf16.mxu0 %v11353_v48 }
 0x523   :  { %v7779_v32 = vmax.f32 %v7239_v36, 0.0  ;;  %9439 = vmatprep.subr.bf16.mxu1 %v14616_v8  ;;  %v11356_v8 = vld [vmem:[%s15408_s0 + $0x1114] ss:$20 sps:$4 sm:$0xff]  }
 0x524   :  { %v6186_v20 = vpop.f32.mrb[68].mxu0 }
 0x525   :  { %v14734_v21 = vpack.c.bf16 %v7779_v32, %v7778_v19  ;;  %v6187_v3 = vadd.f32 %v6186_v20, %v5130_v60  ;;  %v6188_v0 = vpop.f32.mrb[69].mxu0 }
 0x526   :  { %9440 = vmatpush3.bf16.msra.mxu1 %v14387_v63  ;;  %v6189_v49 = vpop.f32.mrb[70].mxu0  ;;  %v15710_v63 = vld [vmem:[#allocation68_spill] sm:$0xff] }
 0x527   :  { %v7244_v48 = vadd.f32 %v14437_v45, %v6187_v3  ;;  %v6190_v25 = vadd.f32 %v6189_v49, %v5133_v44  ;;  %9441 = vmatprep.subr.bf16.mxu1 %v14637_v18  ;;  %v6191_v46 = vpop.f32.mrb[71].mxu0  ;;  %v5138_v19 = vadd.f32 %v14268_v52, %v15710_v63  ;;  %v15711_v18 = vld [vmem:[#allocation69_spill] sm:$0xff]  ;;  %v15713_v63 = vld [vmem:[#allocation71_spill] sm:$0xff] }
 0x528   :  { %v5141_v20 = vadd.f32 %v14268_v52, %v15711_v18  ;;  %v11359_v3 = vld [vmem:[%s15408_s0 + $0x113c] ss:$20 sps:$4 sm:$0xff]  }
 0x529   :  { %v7247_v11 = vadd.f32 %v14452_v53, %v6190_v25  ;;  %6401 = vmatmul.mubr.bf16.gmra.mrb[176].mxu0 %v11351_v16  ;;  %v7780_v36 = vmax.f32 %v7244_v48, 0.0  ;;  %v14759_v53 = vpop.f32.mrb[148].mxu1 }
 0x52a   :  { %9442 = vmatpush3.bf16.msra.mxu1 %v14413_v15  ;;  %6408 = vmatprep.mubr.bf16.mxu0 %v11356_v8  ;;  %v11354_v15 = vld [vmem:[%s15408_s0 + $0x1110] ss:$20 sps:$4 sm:$0xff]   ;;  %v14767_v16 = vpop.f32.mrb[149].mxu1 }
 0x52b   :  { %v7781_v14 = vmax.f32 %v7247_v11, 0.0  ;;  %9443 = vmatprep.subr.bf16.mxu1 %v14660_v51  ;;  %v14769_v49 = vpop.f32.mrb[150].mxu1 }
 0x52c   :  { %v6194_v32 = vpop.f32.mrb[72].mxu0  ;;  %v14772_v48 = vpop.f32.mrb[151].mxu1 }
 0x52d   :  { %v14752_v31 = vpack.c.bf16 %v7781_v14, %v7780_v36  ;;  %v6195_v45 = vadd.f32 %v6194_v32, %v5138_v19  ;;  %v6196_v60 = vpop.f32.mrb[73].mxu0  ;;  %v9192_v19 = vcombine.low %v14684_v9, %v14684_v9  ;;  %v11362_v32 = vld [vmem:[%s15408_s0 + $0x1164] ss:$20 sps:$4 sm:$0xff]  }
 0x52e   :  { %9444 = vmatpush3.bf16.msra.mxu1 %v14439_v58  ;;  %v6197_v51 = vpop.f32.mrb[74].mxu0 }
 0x52f   :  { %v6198_v0 = vadd.f32 %v6197_v51, %v5141_v20  ;;  %v7252_v26 = vadd.f32 %v14479_v41, %v6195_v45  ;;  %9445 = vmatprep.subr.bf16.mxu1 %v14686_v56  ;;  %v6199_v44 = vpop.f32.mrb[75].mxu0  ;;  %v15712_v41 = vld [vmem:[#allocation70_spill] sm:$0xff] }
 0x530   :  { %v5146_v56 = vadd.f32 %v14268_v52, %v15712_v41  ;;  %v11365_v41 = vld [vmem:[%s15408_s0 + $0x118c] ss:$20 sps:$4 sm:$0xff]  }
 0x531   :  { %v7255_v8 = vadd.f32 %v14491_v33, %v6198_v0  ;;  %6409 = vmatmul.mubr.bf16.gmra.mrb[180].mxu0 %v11354_v15  ;;  %v7782_v58 = vmax.f32 %v7252_v26, 0.0  ;;  %v5149_v33 = vadd.f32 %v14268_v52, %v15713_v63 }
 0x532   :  { %9446 = vmatpush3.bf16.msra.mxu1 %v14470_v43  ;;  %6416 = vmatprep.mubr.bf16.mxu0 %v11359_v3  ;;  %v11357_v43 = vld [vmem:[%s15408_s0 + $0x1138] ss:$20 sps:$4 sm:$0xff]   ;;  %v15714_v3 = vld [vmem:[#allocation72_spill] sm:$0xff] }
 0x533   :  { %v7783_v25 = vmax.f32 %v7255_v8, 0.0  ;;  %9447 = vmatprep.subr.bf16.mxu1 %v14713_v50  ;;  %v5154_v9 = vadd.f32 %v14268_v52, %v15714_v3  ;;  %v15715_v8 = vld [vmem:[#allocation73_spill] sm:$0xff] }
 0x534   :  { %v6202_v46 = vpop.f32.mrb[76].mxu0 }
 0x535   :  { %v14778_v11 = vpack.c.bf16 %v7783_v25, %v7782_v58  ;;  %v6203_v36 = vadd.f32 %v6202_v46, %v5146_v56  ;;  %v6204_v14 = vpop.f32.mrb[77].mxu0  ;;  %v14802_v58 = vpop.f32.mrb[152].mxu1 }
 0x536   :  { %9448 = vmatpush3.bf16.msra.mxu1 %v14500_v17  ;;  %v6205_v50 = vpop.f32.mrb[78].mxu0  ;;  %v14808_v14 = vpop.f32.mrb[153].mxu1 }
 0x537   :  { %v7260_v45 = vadd.f32 %v14468_v37, %v6203_v36  ;;  %v6206_v60 = vadd.f32 %v6205_v50, %v5149_v33  ;;  %v6207_v18 = vpop.f32.mrb[79].mxu0  ;;  %v5157_v37 = vadd.f32 %v14268_v52, %v15715_v8  ;;  %v14810_v63 = vpop.f32.mrb[154].mxu1  ;;  %v14818_v50 = vld [vmem:[%s15409_s2] ss:$0 sm:$0xff]  ;;  %v14836_v8 = vld [vmem:[%s15410_s3 + $0x28] sm:$0xff] }
 0x538   :  { %v14813_v33 = vpop.f32.mrb[155].mxu1 }
 0x539   :  { %v7263_v20 = vadd.f32 %v14485_v39, %v6206_v60  ;;  %6417 = vmatmul.mubr.bf16.gmra.mrb[184].mxu0 %v11357_v43  ;;  %8259 = vmatmul.mubr.bf16.vlgmr.msra.gmra.mrb[16].mxu1 %v9192_v19  ;;  %v7784_v15 = vmax.f32 %v7260_v45, 0.0  ;;  %v11360_v39 = vld [vmem:[%s15408_s0 + $0x1160] ss:$20 sps:$4 sm:$0xff]  }
 0x53a   :  { %6424 = vmatprep.mubr.bf16.mxu0 %v11362_v32  ;;  %v15716_v32 = vld [vmem:[#allocation74_spill] sm:$0xff] }
 0x53b   :  { %v7785_v51 = vmax.f32 %v7263_v20, 0.0 }
 0x53c   :  { %v6210_v17 = vpop.f32.mrb[80].mxu0 }
 0x53d   :  { %v14795_v0 = vpack.c.bf16 %v7785_v51, %v7784_v15  ;;  %v6211_v26 = vadd.f32 %v6210_v17, %v5154_v9  ;;  %v6212_v44 = vpop.f32.mrb[81].mxu0  ;;  %v11363_v51 = vld [vmem:[%s15408_s0 + $0x1188] ss:$20 sps:$4 sm:$0xff]  }
 0x53e   :  { %v6213_v25 = vpop.f32.mrb[82].mxu0  ;;  %v11368_v9 = vld [vmem:[%s15408_s0 + $0x11b4] ss:$20 sps:$4 sm:$0xff]  }
 0x53f   :  { %v6214_v56 = vadd.f32 %v6213_v25, %v5157_v37  ;;  %v7268_v46 = vadd.f32 %v14507_v55, %v6211_v26  ;;  %v6215_v36 = vpop.f32.mrb[83].mxu0  ;;  %v5162_v55 = vadd.f32 %v14818_v50, %v15716_v32 }
 0x541   :  { %v7271_v52 = vadd.f32 %v14517_v54, %v6214_v56  ;;  %6425 = vmatmul.mubr.bf16.gmra.mrb[188].mxu0 %v11360_v39  ;;  %v7786_v43 = vmax.f32 %v7268_v46, 0.0  ;;  %v15717_v54 = vld [vmem:[#allocation75_spill] sm:$0xff]  ;;  %v9195_v39 = vcombine.high %v14836_v8, %v14836_v8  ;;  %v15718_v56 = vld [vmem:[#allocation76_spill] sm:$0xff] }
 0x542   :  { %6432 = vmatprep.mubr.bf16.mxu0 %v11365_v41  ;;  %v5165_v15 = vadd.f32 %v14818_v50, %v15717_v54  ;;  %v5170_v46 = vadd.f32 %v14818_v50, %v15718_v56 }
 0x543   :  { %v7787_v19 = vmax.f32 %v7271_v52, 0.0  ;;  %8298 = vmatprep.mubr.bf16.mxu1 %v9195_v39 }
 0x544   :  { %v6218_v45 = vpop.f32.mrb[84].mxu0 }
 0x545   :  { %v14822_v60 = vpack.c.bf16 %v7787_v19, %v7786_v43  ;;  %v6219_v18 = vadd.f32 %v6218_v45, %v5162_v55  ;;  %v6220_v20 = vpop.f32.mrb[85].mxu0  ;;  %v15719_v19 = vld [vmem:[#allocation77_spill] sm:$0xff]  ;;  %v14850_v55 = vpop.f32.mrb[156].mxu1 }
 0x546   :  { %v6221_v3 = vpop.f32.mrb[86].mxu0  ;;  %v5173_v32 = vadd.f32 %v14818_v50, %v15719_v19 }
 0x547   :  { %v7276_v17 = vadd.f32 %v14498_v40, %v6219_v18  ;;  %v6222_v26 = vadd.f32 %v6221_v3, %v5165_v15  ;;  %v6223_v44 = vpop.f32.mrb[87].mxu0  ;;  %v11371_v18 = vld [vmem:[%s15408_s0 + $0x11dc] ss:$20 sps:$4 sm:$0xff]  }
 0x549   :  { %v7279_v37 = vadd.f32 %v14513_v38, %v6222_v26  ;;  %6433 = vmatmul.mubr.bf16.gmra.mrb[192].mxu0 %v11363_v51  ;;  %v7788_v25 = vmax.f32 %v7276_v17, 0.0  ;;  %v11366_v38 = vld [vmem:[%s15408_s0 + $0x11b0] ss:$20 sps:$4 sm:$0xff]   ;;  %v14856_v51 = vpop.f32.mrb[157].mxu1 }
 0x54a   :  { %6440 = vmatprep.mubr.bf16.mxu0 %v11368_v9  ;;  %v14858_v3 = vpop.f32.mrb[158].mxu1 }
 0x54b   :  { %v7789_v41 = vmax.f32 %v7279_v37, 0.0  ;;  %v14861_v17 = vpop.f32.mrb[159].mxu1  ;;  %v15720_v37 = vld [vmem:[#allocation78_spill] sm:$0xff] }
 0x54c   :  { %v6226_v40 = vpop.f32.mrb[88].mxu0  ;;  %v5178_v39 = vadd.f32 %v14818_v50, %v15720_v37 }
 0x54d   :  { %v14843_v36 = vpack.c.bf16 %v7789_v41, %v7788_v25  ;;  %v6227_v52 = vadd.f32 %v6226_v40, %v5170_v46  ;;  %v6228_v43 = vpop.f32.mrb[89].mxu0  ;;  %v15721_v46 = vld [vmem:[#allocation79_spill] sm:$0xff] }
 0x54e   :  { %v6229_v45 = vpop.f32.mrb[90].mxu0  ;;  %v5181_v40 = vadd.f32 %v14818_v50, %v15721_v46  ;;  %v11374_v43 = vld [vmem:[%s15408_s0 + $0x1204] ss:$20 sps:$4 sm:$0xff]  }
 0x54f   :  { %v6230_v20 = vadd.f32 %v6229_v45, %v5173_v32  ;;  %v7284_v54 = vadd.f32 %v14533_v2, %v6227_v52  ;;  %v6231_v15 = vpop.f32.mrb[91].mxu0 }
 0x551   :  { %v7287_v9 = vadd.f32 %v14543_v4, %v6230_v20  ;;  %6441 = vmatmul.mubr.bf16.gmra.mrb[196].mxu0 %v11366_v38  ;;  %v7790_v26 = vmax.f32 %v7284_v54, 0.0  ;;  %v11369_v4 = vld [vmem:[%s15408_s0 + $0x11d8] ss:$20 sps:$4 sm:$0xff]   ;;  %v15722_v54 = vld [vmem:[#allocation80_spill] sm:$0xff] }
 0x552   :  { %6448 = vmatprep.mubr.bf16.mxu0 %v11371_v18  ;;  %v5186_v15 = vadd.f32 %v14818_v50, %v15722_v54 }
 0x553   :  { %v7791_v44 = vmax.f32 %v7287_v9, 0.0 }
 0x554   :  { %v6234_v25 = vpop.f32.mrb[92].mxu0 }
 0x555   :  { %v14865_v41 = vpack.c.bf16 %v7791_v44, %v7790_v26  ;;  %v6235_v2 = vadd.f32 %v6234_v25, %v5178_v39  ;;  %v6236_v56 = vpop.f32.mrb[93].mxu0  ;;  %v15723_v39 = vld [vmem:[#allocation81_spill] sm:$0xff] }
 0x556   :  { %v6237_v52 = vpop.f32.mrb[94].mxu0  ;;  %v5189_v25 = vadd.f32 %v14818_v50, %v15723_v39  ;;  %v11379_v56 = vld [vmem:[%s15408_s0 + $0x122c] ss:$20 sps:$4 sm:$0xff]  }
 0x557   :  { %v7292_v19 = vadd.f32 %v14524_v23, %v6235_v2  ;;  %v6238_v32 = vadd.f32 %v6237_v52, %v5181_v40  ;;  %v6239_v38 = vpop.f32.mrb[95].mxu0  ;;  %v11372_v23 = vld [vmem:[%s15408_s0 + $0x1200] ss:$20 sps:$4 sm:$0xff]  }
 0x559   :  { %v7295_v45 = vadd.f32 %v14539_v42, %v6238_v32  ;;  %6449 = vmatmul.mubr.bf16.gmra.mrb[200].mxu0 %v11369_v4  ;;  %v7792_v18 = vmax.f32 %v7292_v19, 0.0  ;;  %v14886_v42 = vpop.f32.mrb[160].mxu1 }
 0x55a   :  { %6456 = vmatprep.mubr.bf16.mxu0 %v11374_v43  ;;  %v14892_v52 = vpop.f32.mrb[161].mxu1 }
 0x55b   :  { %v7793_v20 = vmax.f32 %v7295_v45, 0.0  ;;  %v14894_v43 = vpop.f32.mrb[162].mxu1 }
 0x55c   :  { %v6242_v9 = vpop.f32.mrb[96].mxu0  ;;  %v14897_v32 = vpop.f32.mrb[163].mxu1 }
 0x55d   :  { %v14879_v26 = vpack.c.bf16 %v7793_v20, %v7792_v18  ;;  %v6243_v44 = vadd.f32 %v6242_v9, %v5186_v15  ;;  %v6244_v37 = vpop.f32.mrb[97].mxu0  ;;  %v15724_v18 = vld [vmem:[#allocation82_spill] sm:$0xff] }
 0x55e   :  { %v6245_v2 = vpop.f32.mrb[98].mxu0  ;;  %v5194_v20 = vadd.f32 %v14818_v50, %v15724_v18 }
 0x55f   :  { %v6246_v46 = vadd.f32 %v6245_v2, %v5189_v25  ;;  %v7300_v40 = vadd.f32 %v14559_v22, %v6243_v44  ;;  %v6247_v4 = vpop.f32.mrb[99].mxu0  ;;  %v15725_v44 = vld [vmem:[#allocation83_spill] sm:$0xff] }
 0x560   :  { %v5197_v37 = vadd.f32 %v14818_v50, %v15725_v44  ;;  %v11382_v25 = vld [vmem:[%s15408_s0 + $0x1254] ss:$20 sps:$4 sm:$0xff]  }
 0x561   :  { %v7303_v19 = vadd.f32 %v14569_v13, %v6246_v46  ;;  %6457 = vmatmul.mubr.bf16.gmra.mrb[204].mxu0 %v11372_v23  ;;  %v7794_v38 = vmax.f32 %v7300_v40, 0.0  ;;  %v11377_v13 = vld [vmem:[%s15408_s0 + $0x1228] ss:$20 sps:$4 sm:$0xff]  }
 0x562   :  { %6464 = vmatprep.mubr.bf16.mxu0 %v11379_v56 }
 0x563   :  { %v7795_v45 = vmax.f32 %v7303_v19, 0.0  ;;  %v15726_v19 = vld [vmem:[#allocation84_spill] sm:$0xff] }
 0x564   :  { %v6250_v54 = vpop.f32.mrb[100].mxu0 }
 0x565   :  { %v7970_v15 = vpack.c.bf16 %v7795_v45, %v7794_v38  ;;  %v6251_v9 = vadd.f32 %v6250_v54, %v5194_v20  ;;  %v6252_v22 = vpop.f32.mrb[101].mxu0  ;;  %v5202_v38 = vadd.f32 %v14818_v50, %v15726_v19  ;;  %v15727_v54 = vld [vmem:[#allocation85_spill] sm:$0xff] }
 0x566   :  { %v6253_v39 = vpop.f32.mrb[102].mxu0  ;;  %v11385_v22 = vld [vmem:[%s15408_s0 + $0x127c] ss:$20 sps:$4 sm:$0xff]  }
 0x567   :  { %v7308_v23 = vadd.f32 %v14550_v10, %v6251_v9  ;;  %v6254_v2 = vadd.f32 %v6253_v39, %v5197_v37  ;;  %v6255_v56 = vpop.f32.mrb[103].mxu0  ;;  %9455 = vmatprep.subr.bf16.mxu1 %v7970_v15  ;;  %v5205_v10 = vadd.f32 %v14818_v50, %v15727_v54  ;;  %v14919_v15 = vpop.f32.mrb[164].mxu1  ;;  %v11388_v54 = vld [vmem:[%s15408_s0 + $0x12a4] ss:$20 sps:$4 sm:$0xff]  }
 0x568   :  { %9456 = vmatpush3.bf16.msra.mxu1 %v14734_v21  ;;  %v11380_v21 = vld [vmem:[%s15408_s0 + $0x1250] ss:$20 sps:$4 sm:$0xff]   ;;  %v14925_v39 = vpop.f32.mrb[165].mxu1 }
 0x569   :  { %v7311_v46 = vadd.f32 %v14565_v29, %v6254_v2  ;;  %6465 = vmatmul.mubr.bf16.gmra.mrb[208].mxu0 %v11377_v13  ;;  %v7796_v40 = vmax.f32 %v7308_v23, 0.0 }
 0x56a   :  { %6472 = vmatprep.mubr.bf16.mxu0 %v11382_v25  ;;  %v14928_v25 = vpop.f32.mrb[166].mxu1 }
 0x56b   :  { %v7797_v4 = vmax.f32 %v7311_v46, 0.0  ;;  %v14931_v2 = vpop.f32.mrb[167].mxu1 }
 0x56c   :  { %v6258_v45 = vpop.f32.mrb[104].mxu0 }
 0x56d   :  { %v6259_v18 = vadd.f32 %v6258_v45, %v5202_v38  ;;  %v6260_v20 = vpop.f32.mrb[105].mxu0  ;;  %v7971_v9 = vpack.c.bf16 %v7797_v4, %v7796_v40  ;;  %v15728_v40 = vld [vmem:[#allocation86_spill] sm:$0xff] }
 0x56e   :  { %v6261_v29 = vpop.f32.mrb[106].mxu0  ;;  %v5210_v4 = vadd.f32 %v14818_v50, %v15728_v40  ;;  %v15731_v40 = vld [vmem:[#allocation89_spill] sm:$0xff] }
 0x56f   :  { %v6262_v44 = vadd.f32 %v6261_v29, %v5205_v10  ;;  %v7316_v37 = vadd.f32 %v14592_v62, %v6259_v18  ;;  %v6263_v13 = vpop.f32.mrb[107].mxu0  ;;  %9457 = vmatprep.subr.bf16.mxu1 %v7971_v9  ;;  %v15729_v18 = vld [vmem:[#allocation87_spill] sm:$0xff] }
 0x570   :  { %9458 = vmatpush3.bf16.msra.mxu1 %v14752_v31  ;;  %v5213_v31 = vadd.f32 %v14818_v50, %v15729_v18 }
 0x571   :  { %v7319_v23 = vadd.f32 %v14604_v6, %v6262_v44  ;;  %6473 = vmatmul.mubr.bf16.gmra.mrb[212].mxu0 %v11380_v21  ;;  %v7798_v56 = vmax.f32 %v7316_v37, 0.0  ;;  %v11383_v6 = vld [vmem:[%s15408_s0 + $0x1278] ss:$20 sps:$4 sm:$0xff]   ;;  %v15730_v37 = vld [vmem:[#allocation88_spill] sm:$0xff] }
 0x572   :  { %6480 = vmatprep.mubr.bf16.mxu0 %v11385_v22  ;;  %v5218_v13 = vadd.f32 %v14818_v50, %v15730_v37 }
 0x573   :  { %v7799_v46 = vmax.f32 %v7319_v23, 0.0 }
 0x574   :  { %v6266_v62 = vpop.f32.mrb[108].mxu0 }
 0x575   :  { %v7972_v19 = vpack.c.bf16 %v7799_v46, %v7798_v56  ;;  %v6267_v38 = vadd.f32 %v6266_v62, %v5210_v4  ;;  %v6268_v45 = vpop.f32.mrb[109].mxu0  ;;  %v14953_v62 = vpop.f32.mrb[168].mxu1 }
 0x576   :  { %v6269_v20 = vpop.f32.mrb[110].mxu0 }
 0x577   :  { %v7324_v10 = vadd.f32 %v14581_v61, %v6267_v38  ;;  %v6270_v9 = vadd.f32 %v6269_v20, %v5213_v31  ;;  %v6271_v21 = vpop.f32.mrb[111].mxu0  ;;  %9459 = vmatprep.subr.bf16.mxu1 %v7972_v19  ;;  %v5221_v61 = vadd.f32 %v14818_v50, %v15731_v40  ;;  %v11391_v19 = vld [vmem:[%s15408_s0 + $0x12cc] ss:$20 sps:$4 sm:$0xff]   ;;  %v14959_v31 = vpop.f32.mrb[169].mxu1 }
 0x578   :  { %9460 = vmatpush3.bf16.msra.mxu1 %v14778_v11  ;;  %v11386_v11 = vld [vmem:[%s15408_s0 + $0x12a0] ss:$20 sps:$4 sm:$0xff]  }
 0x579   :  { %v7327_v29 = vadd.f32 %v14598_v34, %v6270_v9  ;;  %6481 = vmatmul.mubr.bf16.gmra.mrb[216].mxu0 %v11383_v6  ;;  %v7800_v22 = vmax.f32 %v7324_v10, 0.0  ;;  %v14962_v6 = vpop.f32.mrb[170].mxu1  ;;  %v15732_v21 = vld [vmem:[#allocation90_spill] sm:$0xff] }
 0x57a   :  { %6488 = vmatprep.mubr.bf16.mxu0 %v11388_v54  ;;  %v14965_v54 = vpop.f32.mrb[171].mxu1 }
 0x57b   :  { %v7801_v44 = vmax.f32 %v7327_v29, 0.0  ;;  %v5226_v29 = vadd.f32 %v14818_v50, %v15732_v21  ;;  %v14987_v21 = vpop.f32.mrb[172].mxu1 }
 0x57c   :  { %v6274_v23 = vpop.f32.mrb[112].mxu0 }
 0x57d   :  { %v6275_v56 = vadd.f32 %v6274_v23, %v5218_v13  ;;  %v6276_v46 = vpop.f32.mrb[113].mxu0  ;;  %v7973_v4 = vpack.c.bf16 %v7801_v44, %v7800_v22  ;;  %v15733_v13 = vld [vmem:[#allocation91_spill] sm:$0xff] }
 0x57e   :  { %v6277_v34 = vpop.f32.mrb[114].mxu0 }
 0x57f   :  { %v6278_v38 = vadd.f32 %v6277_v34, %v5221_v61  ;;  %v7332_v45 = vadd.f32 %v14626_v35, %v6275_v56  ;;  %v6279_v18 = vpop.f32.mrb[115].mxu0  ;;  %9461 = vmatprep.subr.bf16.mxu1 %v7973_v4  ;;  %v11394_v56 = vld [vmem:[%s15408_s0 + $0x12f4] ss:$20 sps:$4 sm:$0xff]  }
 0x580   :  { %9462 = vmatpush3.bf16.msra.mxu1 %v14795_v0  ;;  %v5229_v0 = vadd.f32 %v14818_v50, %v15733_v13 }
 0x581   :  { %v7335_v20 = vadd.f32 %v14631_v24, %v6278_v38  ;;  %6489 = vmatmul.mubr.bf16.gmra.mrb[220].mxu0 %v11386_v11  ;;  %v7802_v10 = vmax.f32 %v7332_v45, 0.0  ;;  %v11389_v24 = vld [vmem:[%s15408_s0 + $0x12c8] ss:$20 sps:$4 sm:$0xff]  }
 0x582   :  { %6496 = vmatprep.mubr.bf16.mxu0 %v11391_v19  ;;  %v15734_v19 = vld [vmem:[#allocation92_spill] sm:$0xff] }
 0x583   :  { %v7803_v9 = vmax.f32 %v7335_v20, 0.0  ;;  %v5234_v38 = vadd.f32 %v14818_v50, %v15734_v19 }
 0x584   :  { %v6282_v35 = vpop.f32.mrb[116].mxu0 }
 0x585   :  { %v7974_v22 = vpack.c.bf16 %v7803_v9, %v7802_v10  ;;  %v6283_v44 = vadd.f32 %v6282_v35, %v5226_v29  ;;  %v6284_v37 = vpop.f32.mrb[117].mxu0  ;;  %v15735_v10 = vld [vmem:[#allocation93_spill] sm:$0xff] }
 0x586   :  { %v6285_v23 = vpop.f32.mrb[118].mxu0  ;;  %v11397_v29 = vld [vmem:[%s15408_s0 + $0x131c] ss:$20 sps:$4 sm:$0xff]   ;;  %v14993_v37 = vpop.f32.mrb[173].mxu1 }
 0x587   :  { %v7340_v46 = vadd.f32 %v14618_v30, %v6283_v44  ;;  %v6286_v40 = vadd.f32 %v6285_v23, %v5229_v0  ;;  %v6287_v61 = vpop.f32.mrb[119].mxu0  ;;  %9463 = vmatprep.subr.bf16.mxu1 %v7974_v22  ;;  %v5237_v30 = vadd.f32 %v14818_v50, %v15735_v10  ;;  %v14996_v13 = vpop.f32.mrb[174].mxu1 }
 0x588   :  { %9464 = vmatpush3.bf16.msra.mxu1 %v14822_v60  ;;  %v11392_v60 = vld [vmem:[%s15408_s0 + $0x12f0] ss:$20 sps:$4 sm:$0xff]  }
 0x589   :  { %v7343_v4 = vadd.f32 %v14628_v28, %v6286_v40  ;;  %6497 = vmatmul.mubr.bf16.gmra.mrb[224].mxu0 %v11389_v24  ;;  %v7804_v11 = vmax.f32 %v7340_v46, 0.0  ;;  %v14999_v24 = vpop.f32.mrb[175].mxu1  ;;  %v15736_v46 = vld [vmem:[#allocation94_spill] sm:$0xff] }
 0x58a   :  { %6504 = vmatprep.mubr.bf16.mxu0 %v11394_v56  ;;  %v5242_v40 = vadd.f32 %v14818_v50, %v15736_v46 }
 0x58b   :  { %v7805_v34 = vmax.f32 %v7343_v4, 0.0 }
 0x58c   :  { %v6290_v45 = vpop.f32.mrb[120].mxu0 }
 0x58d   :  { %v6291_v18 = vadd.f32 %v6290_v45, %v5234_v38  ;;  %v6292_v20 = vpop.f32.mrb[121].mxu0  ;;  %v7975_v9 = vpack.c.bf16 %v7805_v34, %v7804_v11  ;;  %v15737_v34 = vld [vmem:[#allocation95_spill] sm:$0xff]  ;;  %v11400_v38 = vld [vmem:[%s15408_s0 + $0x1344] ss:$20 sps:$4 sm:$0xff]  }
 0x58e   :  { %v6293_v28 = vpop.f32.mrb[122].mxu0 }
 0x58f   :  { %v6294_v35 = vadd.f32 %v6293_v28, %v5237_v30  ;;  %v7348_v22 = vadd.f32 %v14670_v5, %v6291_v18  ;;  %v6295_v44 = vpop.f32.mrb[123].mxu0  ;;  %9465 = vmatprep.subr.bf16.mxu1 %v7975_v9 }
 0x590   :  { %9466 = vmatpush3.bf16.msra.mxu1 %v14843_v36  ;;  %v5245_v36 = vadd.f32 %v14818_v50, %v15737_v34  ;;  %v15739_v44 = vld [vmem:[#allocation97_spill] sm:$0xff]  ;;  %v15037_v34 = vld [vmem:[%s15410_s3 + $0x30] sm:$0xff] }
 0x591   :  { %v7351_v0 = vadd.f32 %v14675_v1, %v6294_v35  ;;  %6505 = vmatmul.mubr.bf16.gmra.mrb[228].mxu0 %v11392_v60  ;;  %v7806_v23 = vmax.f32 %v7348_v22, 0.0  ;;  %v11395_v1 = vld [vmem:[%s15408_s0 + $0x1318] ss:$20 sps:$4 sm:$0xff]   ;;  %v15738_v60 = vld [vmem:[#allocation96_spill] sm:$0xff] }
 0x592   :  { %6512 = vmatprep.mubr.bf16.mxu0 %v11397_v29  ;;  %v5250_v28 = vadd.f32 %v14818_v50, %v15738_v60 }
 0x593   :  { %v7807_v56 = vmax.f32 %v7351_v0, 0.0 }
 0x594   :  { %v6298_v5 = vpop.f32.mrb[124].mxu0 }
 0x595   :  { %v7976_v61 = vpack.c.bf16 %v7807_v56, %v7806_v23  ;;  %v6299_v4 = vadd.f32 %v6298_v5, %v5242_v40  ;;  %v6300_v11 = vpop.f32.mrb[125].mxu0  ;;  %v15021_v23 = vpop.f32.mrb[176].mxu1  ;;  %v11403_v56 = vld [vmem:[%s15408_s0 + $0x136c] ss:$20 sps:$4 sm:$0xff]  }
 0x596   :  { %v6301_v19 = vpop.f32.mrb[126].mxu0 }
 0x597   :  { %v7356_v45 = vadd.f32 %v14662_v12, %v6299_v4  ;;  %v6302_v18 = vadd.f32 %v6301_v19, %v5245_v36  ;;  %v6303_v20 = vpop.f32.mrb[127].mxu0  ;;  %9467 = vmatprep.subr.bf16.mxu1 %v7976_v61  ;;  %v5253_v12 = vadd.f32 %v14818_v50, %v15739_v44  ;;  %v9194_v61 = vcombine.low %v14836_v8, %v14836_v8  ;;  %v15029_v4 = vpop.f32.mrb[177].mxu1 }
 0x598   :  { %9468 = vmatpush3.bf16.msra.mxu1 %v14865_v41  ;;  %v11398_v41 = vld [vmem:[%s15408_s0 + $0x1340] ss:$20 sps:$4 sm:$0xff]   ;;  %v15032_v11 = vpop.f32.mrb[178].mxu1 }
 0x599   :  { %v7359_v10 = vadd.f32 %v14672_v7, %v6302_v18  ;;  %6513 = vmatmul.mubr.bf16.gmra.mrb[232].mxu0 %v11395_v1  ;;  %v7808_v30 = vmax.f32 %v7356_v45, 0.0  ;;  %v9197_v1 = vcombine.high %v15037_v34, %v15037_v34 }
 0x59a   :  { %6520 = vmatprep.mubr.bf16.mxu0 %v11400_v38  ;;  %v15740_v38 = vld [vmem:[#allocation98_spill] sm:$0xff] }
 0x59b   :  { %v7809_v9 = vmax.f32 %v7359_v10, 0.0 }
 0x59c   :  { %v6306_v29 = vpop.f32.mrb[128].mxu0 }
 0x59d   :  { %v6307_v35 = vadd.f32 %v6306_v29, %v5250_v28  ;;  %v6308_v22 = vpop.f32.mrb[129].mxu0  ;;  %v7977_v0 = vpack.c.bf16 %v7809_v9, %v7808_v30  ;;  %v11401_v9 = vld [vmem:[%s15408_s0 + $0x1368] ss:$20 sps:$4 sm:$0xff]  }
 0x59e   :  { %v6309_v7 = vpop.f32.mrb[130].mxu0  ;;  %v11406_v28 = vld [vmem:[%s15408_s0 + $0x1394] ss:$20 sps:$4 sm:$0xff]  }
 0x59f   :  { %v6310_v46 = vadd.f32 %v6309_v7, %v5253_v12  ;;  %v7364_v40 = vadd.f32 %v14723_v59, %v6307_v35  ;;  %v6311_v5 = vpop.f32.mrb[131].mxu0  ;;  %9469 = vmatprep.subr.bf16.mxu1 %v7977_v0  ;;  %v15040_v59 = vpop.f32.mrb[179].mxu1 }
 0x5a0   :  { %9470 = vmatpush3.bf16.msra.mxu1 %v14879_v26  ;;  %v5258_v26 = vadd.f32 %v14818_v50, %v15740_v38 }
 0x5a1   :  { %v7367_v36 = vadd.f32 %v14728_v47, %v6310_v46  ;;  %6521 = vmatmul.mubr.bf16.gmra.mrb[236].mxu0 %v11398_v41  ;;  %v7810_v8 = vmax.f32 %v7364_v40, 0.0  ;;  %v15741_v47 = vld [vmem:[#allocation99_spill] sm:$0xff]  ;;  %v15742_v41 = vld [vmem:[#allocation100_spill] sm:$0xff] }
 0x5a2   :  { %6528 = vmatprep.mubr.bf16.mxu0 %v11403_v56  ;;  %v5261_v30 = vadd.f32 %v14818_v50, %v15741_v47  ;;  %v5266_v7 = vadd.f32 %v14818_v50, %v15742_v41  ;;  %v11412_v41 = vld [vmem:[%s15408_s0 + $0x13e4] ss:$20 sps:$4 sm:$0xff]  }
 0x5a3   :  { %v7811_v19 = vmax.f32 %v7367_v36, 0.0  ;;  %8299 = vmatmul.mubr.bf16.vlgmr.msra.gmra.mrb[20].mxu1 %v9194_v61  ;;  %v15743_v61 = vld [vmem:[#allocation101_spill] sm:$0xff] }
 0x5a4   :  { %v6314_v45 = vpop.f32.mrb[132].mxu0  ;;  %8338 = vmatprep.mubr.bf16.mxu1 %v9197_v1  ;;  %v5269_v36 = vadd.f32 %v14818_v50, %v15743_v61 }
 0x5a5   :  { %v15046_v18 = vpack.c.bf16 %v7811_v19, %v7810_v8  ;;  %v6315_v20 = vadd.f32 %v6314_v45, %v5258_v26  ;;  %v6316_v10 = vpop.f32.mrb[133].mxu0  ;;  %v11409_v8 = vld [vmem:[%s15408_s0 + $0x13bc] ss:$20 sps:$4 sm:$0xff]  }
 0x5a6   :  { %v6317_v60 = vpop.f32.mrb[134].mxu0 }
 0x5a7   :  { %v7372_v29 = vadd.f32 %v14715_v27, %v6315_v20  ;;  %v6318_v35 = vadd.f32 %v6317_v60, %v5261_v30  ;;  %v6319_v22 = vpop.f32.mrb[135].mxu0  ;;  %v11404_v27 = vld [vmem:[%s15408_s0 + $0x1390] ss:$20 sps:$4 sm:$0xff]  }
 0x5a8   :  { %v15744_v60 = vld [vmem:[#allocation102_spill] sm:$0xff] }
 0x5a9   :  { %v7375_v44 = vadd.f32 %v14725_v57, %v6318_v35  ;;  %6529 = vmatmul.mubr.bf16.gmra.mrb[240].mxu0 %v11401_v9  ;;  %v7812_v12 = vmax.f32 %v7372_v29, 0.0  ;;  %v15067_v57 = vpop.f32.mrb[180].mxu1 }
 0x5aa   :  { %6536 = vmatprep.mubr.bf16.mxu0 %v11406_v28  ;;  %v15073_v45 = vpop.f32.mrb[181].mxu1  ;;  %v5274_v28 = vadd.f32 %v14818_v50, %v15744_v60 }
 0x5ab   :  { %v7813_v0 = vmax.f32 %v7375_v44, 0.0  ;;  %v15075_v20 = vpop.f32.mrb[182].mxu1  ;;  %v15745_v44 = vld [vmem:[#allocation103_spill] sm:$0xff] }
 0x5ac   :  { %v6322_v56 = vpop.f32.mrb[136].mxu0  ;;  %v15078_v47 = vpop.f32.mrb[183].mxu1 }
 0x5ad   :  { %v15060_v46 = vpack.c.bf16 %v7813_v0, %v7812_v12  ;;  %v6323_v40 = vadd.f32 %v6322_v56, %v5266_v7  ;;  %v6324_v5 = vpop.f32.mrb[137].mxu0  ;;  %v5277_v12 = vadd.f32 %v14818_v50, %v15745_v44 }
 0x5ae   :  { %v6325_v1 = vpop.f32.mrb[138].mxu0 }
 0x5af   :  { %v6326_v19 = vadd.f32 %v6325_v1, %v5269_v36  ;;  %v7380_v38 = vadd.f32 %v14767_v16, %v6323_v40  ;;  %v6327_v26 = vpop.f32.mrb[139].mxu0 }
 0x5b1   :  { %v7383_v10 = vadd.f32 %v14772_v48, %v6326_v19  ;;  %6537 = vmatmul.mubr.bf16.gmra.mrb[244].mxu0 %v11404_v27  ;;  %v7814_v30 = vmax.f32 %v7380_v38, 0.0  ;;  %v11407_v48 = vld [vmem:[%s15408_s0 + $0x13b8] ss:$20 sps:$4 sm:$0xff]   ;;  %v15746_v27 = vld [vmem:[#allocation104_spill] sm:$0xff] }
 0x5b2   :  { %6544 = vmatprep.mubr.bf16.mxu0 %v11409_v8  ;;  %v5282_v1 = vadd.f32 %v14818_v50, %v15746_v27 }
 0x5b3   :  { %v7815_v9 = vmax.f32 %v7383_v10, 0.0  ;;  %v15747_v10 = vld [vmem:[#allocation105_spill] sm:$0xff] }
 0x5b4   :  { %v6330_v29 = vpop.f32.mrb[140].mxu0 }
 0x5b5   :  { %v15082_v35 = vpack.c.bf16 %v7815_v9, %v7814_v30  ;;  %v6331_v16 = vadd.f32 %v6330_v29, %v5274_v28  ;;  %v6332_v22 = vpop.f32.mrb[141].mxu0  ;;  %v5285_v30 = vadd.f32 %v14818_v50, %v15747_v10 }
 0x5b6   :  { %v6333_v0 = vpop.f32.mrb[142].mxu0 }
 0x5b7   :  { %v7388_v7 = vadd.f32 %v14759_v53, %v6331_v16  ;;  %v6334_v56 = vadd.f32 %v6333_v0, %v5277_v12  ;;  %v6335_v40 = vpop.f32.mrb[143].mxu0  ;;  %v11410_v53 = vld [vmem:[%s15408_s0 + $0x13e0] ss:$20 sps:$4 sm:$0xff]  }
 0x5b9   :  { %v7391_v5 = vadd.f32 %v14769_v49, %v6334_v56  ;;  %6545 = vmatmul.mubr.bf16.gmra.mrb[248].mxu0 %v11407_v48  ;;  %v7816_v61 = vmax.f32 %v7388_v7, 0.0  ;;  %v15103_v49 = vpop.f32.mrb[184].mxu1 }
 0x5ba   :  { %6552 = vmatprep.mubr.bf16.mxu0 %v11412_v41  ;;  %v15106_v16 = vpop.f32.mrb[185].mxu1  ;;  %v15748_v41 = vld [vmem:[#allocation106_spill] sm:$0xff] }
 0x5bb   :  { %v7817_v36 = vmax.f32 %v7391_v5, 0.0  ;;  %v15108_v22 = vpop.f32.mrb[186].mxu1  ;;  %v5290_v7 = vadd.f32 %v14818_v50, %v15748_v41 }
 0x5bc   :  { %v6338_v8 = vpop.f32.mrb[144].mxu0  ;;  %v15111_v12 = vpop.f32.mrb[187].mxu1 }
 0x5bd   :  { %v15096_v19 = vpack.c.bf16 %v7817_v36, %v7816_v61  ;;  %v6339_v38 = vadd.f32 %v6338_v8, %v5282_v1  ;;  %v6340_v26 = vpop.f32.mrb[145].mxu0  ;;  %v15749_v61 = vld [vmem:[#allocation107_spill] sm:$0xff] }
 0x5be   :  { %v6341_v9 = vpop.f32.mrb[146].mxu0  ;;  %v5293_v36 = vadd.f32 %v14818_v50, %v15749_v61 }
 0x5bf   :  { %v6342_v60 = vadd.f32 %v6341_v9, %v5285_v30  ;;  %v7396_v28 = vadd.f32 %v14808_v14, %v6339_v38  ;;  %v6343_v29 = vpop.f32.mrb[147].mxu0  ;;  %v15750_v30 = vld [vmem:[#allocation108_spill] sm:$0xff] }
 0x5c1   :  { %v7399_v44 = vadd.f32 %v14813_v33, %v6342_v60  ;;  %6553 = vmatmul.mubr.bf16.gmra.mrb[252].mxu0 %v11410_v53  ;;  %v7818_v48 = vmax.f32 %v7396_v28, 0.0  ;;  %v5298_v53 = vadd.f32 %v14818_v50, %v15750_v30 }
 0x5c3   :  { %v7819_v0 = vmax.f32 %v7399_v44, 0.0  ;;  %v15751_v44 = vld [vmem:[#allocation109_spill] sm:$0xff] }
 0x5c4   :  { %v6346_v56 = vpop.f32.mrb[148].mxu0 }
 0x5c5   :  { %v15115_v40 = vpack.c.bf16 %v7819_v0, %v7818_v48  ;;  %v6347_v5 = vadd.f32 %v6346_v56, %v5290_v7  ;;  %v6348_v14 = vpop.f32.mrb[149].mxu0  ;;  %v5301_v48 = vadd.f32 %v14818_v50, %v15751_v44  ;;  %v15127_v0 = vpop.f32.mrb[188].mxu1 }
 0x5c6   :  { %v6349_v27 = vpop.f32.mrb[150].mxu0  ;;  %v15130_v56 = vpop.f32.mrb[189].mxu1 }
 0x5c7   :  { %v7404_v1 = vadd.f32 %v14802_v58, %v6347_v5  ;;  %v6350_v33 = vadd.f32 %v6349_v27, %v5293_v36  ;;  %v6351_v8 = vpop.f32.mrb[151].mxu0  ;;  %v15132_v5 = vpop.f32.mrb[190].mxu1 }
 0x5c8   :  { %v15135_v61 = vpop.f32.mrb[191].mxu1 }
 0x5c9   :  { %v7407_v38 = vadd.f32 %v14810_v63, %v6350_v33  ;;  %v7820_v26 = vmax.f32 %v7404_v1, 0.0  ;;  %v15752_v1 = vld [vmem:[#allocation110_spill] sm:$0xff] }
 0x5ca   :  { %v5306_v33 = vadd.f32 %v14818_v50, %v15752_v1 }
 0x5cb   :  { %v7821_v10 = vmax.f32 %v7407_v38, 0.0 }
 0x5cc   :  { %v6354_v9 = vpop.f32.mrb[152].mxu0 }
 0x5cd   :  { %v15123_v60 = vpack.c.bf16 %v7821_v10, %v7820_v26  ;;  %v6355_v28 = vadd.f32 %v6354_v9, %v5298_v53  ;;  %v6356_v29 = vpop.f32.mrb[153].mxu0 }
 0x5ce   :  { %v6357_v58 = vpop.f32.mrb[154].mxu0 }
 0x5cf   :  { %v6358_v41 = vadd.f32 %v6357_v58, %v5301_v48  ;;  %v7412_v7 = vadd.f32 %v14856_v51, %v6355_v28  ;;  %v6359_v63 = vpop.f32.mrb[155].mxu0  ;;  %v15753_v51 = vld [vmem:[#allocation111_spill] sm:$0xff]  ;;  %v15754_v58 = vld [vmem:[#allocation112_spill] sm:$0xff] }
 0x5d0   :  { %v5309_v30 = vadd.f32 %v14818_v50, %v15753_v51 }
 0x5d1   :  { %v7415_v14 = vadd.f32 %v14861_v17, %v6358_v41  ;;  %v7822_v36 = vmax.f32 %v7412_v7, 0.0  ;;  %v5314_v41 = vadd.f32 %v14818_v50, %v15754_v58 }
 0x5d3   :  { %v7823_v27 = vmax.f32 %v7415_v14, 0.0 }
 0x5d4   :  { %v6362_v8 = vpop.f32.mrb[156].mxu0 }
 0x5d5   :  { %v15139_v38 = vpack.c.bf16 %v7823_v27, %v7822_v36  ;;  %v6363_v26 = vadd.f32 %v6362_v8, %v5306_v33  ;;  %v6364_v10 = vpop.f32.mrb[157].mxu0  ;;  %v15755_v27 = vld [vmem:[#allocation113_spill] sm:$0xff]  ;;  %v15151_v33 = vpop.f32.mrb[192].mxu1 }
 0x5d6   :  { %v6365_v53 = vpop.f32.mrb[158].mxu0  ;;  %v5317_v1 = vadd.f32 %v14818_v50, %v15755_v27  ;;  %v15154_v10 = vpop.f32.mrb[193].mxu1 }
 0x5d7   :  { %v7420_v9 = vadd.f32 %v14850_v55, %v6363_v26  ;;  %v6366_v28 = vadd.f32 %v6365_v53, %v5309_v30  ;;  %v6367_v17 = vpop.f32.mrb[159].mxu0  ;;  %v15156_v51 = vpop.f32.mrb[194].mxu1 }
 0x5d8   :  { %v15159_v53 = vpop.f32.mrb[195].mxu1  ;;  %v15756_v17 = vld [vmem:[#allocation114_spill] sm:$0xff] }
 0x5d9   :  { %v7423_v29 = vadd.f32 %v14858_v3, %v6366_v28  ;;  %v7824_v44 = vmax.f32 %v7420_v9, 0.0 }
 0x5db   :  { %v7825_v48 = vmax.f32 %v7423_v29, 0.0  ;;  %v5322_v29 = vadd.f32 %v14818_v50, %v15756_v17  ;;  %v15759_v17 = vld [vmem:[#allocation117_spill] sm:$0xff] }
 0x5dc   :  { %v6370_v7 = vpop.f32.mrb[160].mxu0 }
 0x5dd   :  { %v15147_v63 = vpack.c.bf16 %v7825_v48, %v7824_v44  ;;  %v6371_v14 = vadd.f32 %v6370_v7, %v5314_v41  ;;  %v6372_v36 = vpop.f32.mrb[161].mxu0  ;;  %v15757_v7 = vld [vmem:[#allocation115_spill] sm:$0xff] }
 0x5de   :  { %v6373_v55 = vpop.f32.mrb[162].mxu0 }
 0x5df   :  { %v6374_v8 = vadd.f32 %v6373_v55, %v5317_v1  ;;  %v7428_v26 = vadd.f32 %v14892_v52, %v6371_v14  ;;  %v6375_v3 = vpop.f32.mrb[163].mxu0  ;;  %v5325_v52 = vadd.f32 %v14818_v50, %v15757_v7 }
 0x5e1   :  { %v7431_v30 = vadd.f32 %v14897_v32, %v6374_v8  ;;  %v7826_v9 = vmax.f32 %v7428_v26, 0.0  ;;  %v15758_v26 = vld [vmem:[#allocation116_spill] sm:$0xff] }
 0x5e2   :  { %v5330_v3 = vadd.f32 %v14818_v50, %v15758_v26 }
 0x5e3   :  { %v7827_v28 = vmax.f32 %v7431_v30, 0.0 }
 0x5e4   :  { %v6378_v44 = vpop.f32.mrb[164].mxu0 }
 0x5e5   :  { %v7986_v48 = vpack.c.bf16 %v7827_v28, %v7826_v9  ;;  %v6379_v58 = vadd.f32 %v6378_v44, %v5322_v29  ;;  %v6380_v41 = vpop.f32.mrb[165].mxu0  ;;  %v5333_v29 = vadd.f32 %v14818_v50, %v15759_v17 }
 0x5e6   :  { %v6381_v14 = vpop.f32.mrb[166].mxu0 }
 0x5e7   :  { %v7436_v36 = vadd.f32 %v14886_v42, %v6379_v58  ;;  %v6382_v27 = vadd.f32 %v6381_v14, %v5325_v52  ;;  %v6383_v1 = vpop.f32.mrb[167].mxu0  ;;  %9477 = vmatprep.subr.bf16.mxu1 %v7986_v48  ;;  %v15172_v42 = vpop.f32.mrb[196].mxu1 }
 0x5e8   :  { %9478 = vmatpush3.bf16.msra.mxu1 %v15046_v18  ;;  %v15760_v1 = vld [vmem:[#allocation118_spill] sm:$0xff] }
 0x5e9   :  { %v7439_v32 = vadd.f32 %v14894_v43, %v6382_v27  ;;  %v7828_v55 = vmax.f32 %v7436_v36, 0.0  ;;  %v15175_v43 = vpop.f32.mrb[197].mxu1 }
 0x5ea   :  { %v15178_v7 = vpop.f32.mrb[198].mxu1 }
 0x5eb   :  { %v7829_v8 = vmax.f32 %v7439_v32, 0.0  ;;  %v15181_v14 = vpop.f32.mrb[199].mxu1  ;;  %v5338_v32 = vadd.f32 %v14818_v50, %v15760_v1 }
 0x5ec   :  { %v6386_v30 = vpop.f32.mrb[168].mxu0 }
 0x5ed   :  { %v6387_v9 = vadd.f32 %v6386_v30, %v5330_v3  ;;  %v6388_v28 = vpop.f32.mrb[169].mxu0  ;;  %v7987_v44 = vpack.c.bf16 %v7829_v8, %v7828_v55  ;;  %v15761_v3 = vld [vmem:[#allocation119_spill] sm:$0xff] }
 0x5ee   :  { %v6389_v58 = vpop.f32.mrb[170].mxu0  ;;  %v5341_v30 = vadd.f32 %v14818_v50, %v15761_v3 }
 0x5ef   :  { %v6390_v48 = vadd.f32 %v6389_v58, %v5333_v29  ;;  %v7444_v18 = vadd.f32 %v14925_v39, %v6387_v9  ;;  %v6391_v41 = vpop.f32.mrb[171].mxu0  ;;  %9479 = vmatprep.subr.bf16.mxu1 %v7987_v44  ;;  %v15762_v58 = vld [vmem:[#allocation120_spill] sm:$0xff] }
 0x5f0   :  { %9480 = vmatpush3.bf16.msra.mxu1 %v15060_v46 }
 0x5f1   :  { %v7447_v52 = vadd.f32 %v14931_v2, %v6390_v48  ;;  %v7830_v36 = vmax.f32 %v7444_v18, 0.0  ;;  %v5346_v48 = vadd.f32 %v14818_v50, %v15762_v58 }
 0x5f3   :  { %v7831_v27 = vmax.f32 %v7447_v52, 0.0 }
 0x5f4   :  { %v6394_v55 = vpop.f32.mrb[172].mxu0 }
 0x5f5   :  { %v7988_v8 = vpack.c.bf16 %v7831_v27, %v7830_v36  ;;  %v6395_v39 = vadd.f32 %v6394_v55, %v5338_v32  ;;  %v6396_v26 = vpop.f32.mrb[173].mxu0  ;;  %v15763_v36 = vld [vmem:[#allocation121_spill] sm:$0xff] }
 0x5f6   :  { %v6397_v9 = vpop.f32.mrb[174].mxu0  ;;  %v5349_v27 = vadd.f32 %v14818_v50, %v15763_v36 }
 0x5f7   :  { %v7452_v46 = vadd.f32 %v14919_v15, %v6395_v39  ;;  %v6398_v28 = vadd.f32 %v6397_v9, %v5341_v30  ;;  %v6399_v17 = vpop.f32.mrb[175].mxu0  ;;  %9481 = vmatprep.subr.bf16.mxu1 %v7988_v8  ;;  %v15194_v15 = vpop.f32.mrb[200].mxu1 }
 0x5f8   :  { %9482 = vmatpush3.bf16.msra.mxu1 %v15082_v35 }
 0x5f9   :  { %v7455_v2 = vadd.f32 %v14928_v25, %v6398_v28  ;;  %v7832_v29 = vmax.f32 %v7452_v46, 0.0  ;;  %v15197_v25 = vpop.f32.mrb[201].mxu1  ;;  %v15764_v46 = vld [vmem:[#allocation122_spill] sm:$0xff] }
 0x5fa   :  { %v15200_v39 = vpop.f32.mrb[202].mxu1  ;;  %v5354_v28 = vadd.f32 %v14818_v50, %v15764_v46 }
 0x5fb   :  { %v7833_v44 = vmax.f32 %v7455_v2, 0.0  ;;  %v15203_v3 = vpop.f32.mrb[203].mxu1 }
 0x5fc   :  { %v6402_v18 = vpop.f32.mrb[176].mxu0 }
 0x5fd   :  { %v6403_v41 = vadd.f32 %v6402_v18, %v5346_v48  ;;  %v6404_v52 = vpop.f32.mrb[177].mxu0  ;;  %v7989_v1 = vpack.c.bf16 %v7833_v44, %v7832_v29  ;;  %v15765_v44 = vld [vmem:[#allocation123_spill] sm:$0xff] }
 0x5fe   :  { %v6405_v32 = vpop.f32.mrb[178].mxu0  ;;  %v5357_v58 = vadd.f32 %v14818_v50, %v15765_v44 }
 0x5ff   :  { %v6406_v55 = vadd.f32 %v6405_v32, %v5349_v27  ;;  %v7460_v35 = vadd.f32 %v14959_v31, %v6403_v41  ;;  %v6407_v8 = vpop.f32.mrb[179].mxu0  ;;  %9483 = vmatprep.subr.bf16.mxu1 %v7989_v1 }
 0x600   :  { %9484 = vmatpush3.bf16.msra.mxu1 %v15096_v19 }
 0x601   :  { %v7463_v26 = vadd.f32 %v14965_v54, %v6406_v55  ;;  %v7834_v30 = vmax.f32 %v7460_v35, 0.0  ;;  %v15210_v54 = vpop.f32.mrb[204].mxu1  ;;  %v15766_v35 = vld [vmem:[#allocation124_spill] sm:$0xff] }
 0x602   :  { %v15213_v52 = vpop.f32.mrb[205].mxu1 }
 0x603   :  { %v7835_v9 = vmax.f32 %v7463_v26, 0.0  ;;  %v15216_v27 = vpop.f32.mrb[206].mxu1 }
 0x604   :  { %v6410_v17 = vpop.f32.mrb[180].mxu0  ;;  %v15218_v1 = vpop.f32.mrb[207].mxu1 }
 0x605   :  { %v7990_v2 = vpack.c.bf16 %v7835_v9, %v7834_v30  ;;  %v6411_v31 = vadd.f32 %v6410_v17, %v5354_v28  ;;  %v6412_v29 = vpop.f32.mrb[181].mxu0  ;;  %v9361_v8 = vpop.f32.mrb[0].mxu1  ;;  %v15767_v28 = vld [vmem:[#allocation125_spill] sm:$0xff] }
 0x606   :  { %v6413_v48 = vpop.f32.mrb[182].mxu0  ;;  %v9362_v30 = vpop.f32.mrb[1].mxu1 }
 0x607   :  { %v7468_v19 = vadd.f32 %v14953_v62, %v6411_v31  ;;  %v6414_v18 = vadd.f32 %v6413_v48, %v5357_v58  ;;  %v6415_v41 = vpop.f32.mrb[183].mxu0  ;;  %9485 = vmatprep.subr.bf16.mxu1 %v7990_v2  ;;  %v5362_v62 = vadd.f32 %v14818_v50, %v15766_v35  ;;  %v9364_v2 = vpop.f32.mrb[2].mxu1 }
 0x608   :  { %9486 = vmatpush3.bf16.msra.mxu1 %v15115_v40  ;;  %v5365_v40 = vadd.f32 %v14818_v50, %v15767_v28  ;;  %v9365_v31 = vpop.f32.mrb[3].mxu1  ;;  %v9363_v41 = vadd.f32 %v9362_v30, %v9361_v8 }
 0x609   :  { %v7471_v36 = vadd.f32 %v14962_v6, %v6414_v18  ;;  %v7836_v32 = vmax.f32 %v7468_v19, 0.0  ;;  %v9383_v48 = vpop.f32.mrb[4].mxu1 }
 0x60a   :  { %v9384_v19 = vpop.f32.mrb[5].mxu1 }
 0x60b   :  { %v7837_v55 = vmax.f32 %v7471_v36, 0.0  ;;  %v9386_v36 = vpop.f32.mrb[6].mxu1 }
 0x60c   :  { %v6418_v26 = vpop.f32.mrb[184].mxu0  ;;  %v9387_v35 = vpop.f32.mrb[7].mxu1 }
 0x60d   :  { %v6419_v9 = vadd.f32 %v6418_v26, %v5362_v62  ;;  %v6420_v46 = vpop.f32.mrb[185].mxu0  ;;  %v7991_v17 = vpack.c.bf16 %v7837_v55, %v7836_v32  ;;  %v15768_v32 = vld [vmem:[#allocation126_spill] sm:$0xff]  ;;  %v9405_v28 = vpop.f32.mrb[8].mxu1 }
 0x60e   :  { %v6421_v6 = vpop.f32.mrb[186].mxu0  ;;  %v5370_v55 = vadd.f32 %v14818_v50, %v15768_v32  ;;  %v9385_v46 = vadd.f32 %v9384_v19, %v9383_v48 }
 0x60f   :  { %v6422_v29 = vadd.f32 %v6421_v6, %v5365_v40  ;;  %v7476_v44 = vadd.f32 %v14993_v37, %v6419_v9  ;;  %v6423_v58 = vpop.f32.mrb[187].mxu0  ;;  %9487 = vmatprep.subr.bf16.mxu1 %v7991_v17  ;;  %v9406_v37 = vpop.f32.mrb[9].mxu1  ;;  %v15769_v6 = vld [vmem:[#allocation127_spill] sm:$0xff] }
 0x610   :  { %9488 = vmatpush3.bf16.msra.mxu1 %v15123_v60  ;;  %v5373_v60 = vadd.f32 %v14818_v50, %v15769_v6  ;;  %v8141_v31 = vadd.f32 %v9385_v46, %v9363_v41  ;;  %v9407_v36 = vadd.f32 %v9406_v37, %v9405_v28  ;;  %v15237_v50 = vld [vmem:[%s15409_s2] ss:$0 sm:$0xff]  ;;  %v15770_v41 = vld [vmem:[#allocation128_spill] sm:$0xff] }
 0x611   :  { %v7479_v18 = vadd.f32 %v14999_v24, %v6422_v29  ;;  %v7838_v62 = vmax.f32 %v7476_v44, 0.0  ;;  %v9408_v24 = vpop.f32.mrb[10].mxu1 }
 0x612   :  { %v9409_v30 = vpop.f32.mrb[11].mxu1 }
 0x613   :  { %v7839_v26 = vmax.f32 %v7479_v18, 0.0  ;;  %v9427_v18 = vpop.f32.mrb[12].mxu1 }
 0x614   :  { %v6426_v40 = vpop.f32.mrb[188].mxu0  ;;  %v9428_v48 = vpop.f32.mrb[13].mxu1 }
 0x615   :  { %v7992_v9 = vpack.c.bf16 %v7839_v26, %v7838_v62  ;;  %v6427_v17 = vadd.f32 %v6426_v40, %v5370_v55  ;;  %v6428_v2 = vpop.f32.mrb[189].mxu0  ;;  %v9430_v35 = vpop.f32.mrb[14].mxu1  ;;  %v5378_v62 = vadd.f32 %v15237_v50, %v15770_v41  ;;  %v8181_v55 = vadd.f32 %v9407_v36, %v8141_v31  ;;  %v15772_v41 = vld [vmem:[#allocation130_spill] sm:$0xff] }
 0x616   :  { %v6429_v8 = vpop.f32.mrb[190].mxu0  ;;  %v9429_v46 = vadd.f32 %v9428_v48, %v9427_v18  ;;  %v9196_v31 = vcombine.low %v15037_v34, %v15037_v34  ;;  %v15252_v48 = vld [vmem:[%s15410_s3 + $0x38] sm:$0xff]  ;;  %v5386_v34 = vadd.f32 %v15237_v50, %v15772_v41 }
 0x617   :  { %v7484_v29 = vadd.f32 %v14987_v21, %v6427_v17  ;;  %v6430_v44 = vadd.f32 %v6429_v8, %v5373_v60  ;;  %v6431_v58 = vpop.f32.mrb[191].mxu0  ;;  %9489 = vmatprep.subr.bf16.mxu1 %v7992_v9  ;;  %v9431_v21 = vpop.f32.mrb[15].mxu1  ;;  %v15771_v9 = vld [vmem:[#allocation129_spill] sm:$0xff]  ;;  %v9199_v36 = vcombine.high %v15252_v48, %v15252_v48 }
 0x618   :  { %9490 = vmatpush3.bf16.msra.mxu1 %v15139_v38  ;;  %v9449_v40 = vpop.f32.mrb[16].mxu1  ;;  %v8221_v6 = vadd.f32 %v9429_v46, %v8181_v55 }
 0x619   :  { %v7487_v19 = vadd.f32 %v14996_v13, %v6430_v44  ;;  %v7840_v26 = vmax.f32 %v7484_v29, 0.0  ;;  %v5381_v13 = vadd.f32 %v15237_v50, %v15771_v9  ;;  %v9450_v28 = vpop.f32.mrb[17].mxu1 }
 0x61a   :  { %v9451_v60 = vadd.f32 %v9450_v28, %v9449_v40  ;;  %v9452_v24 = vpop.f32.mrb[18].mxu1 }
 0x61b   :  { %v7841_v32 = vmax.f32 %v7487_v19, 0.0  ;;  %v9453_v30 = vpop.f32.mrb[19].mxu1 }
 0x61c   :  { %v6434_v38 = vpop.f32.mrb[192].mxu0  ;;  %v15246_v18 = vadd.f32 %v9451_v60, %v8221_v6 }
 0x61d   :  { %v6435_v37 = vadd.f32 %v6434_v38, %v5378_v62  ;;  %v6436_v17 = vpop.f32.mrb[193].mxu0  ;;  %v7993_v2 = vpack.c.bf16 %v7841_v32, %v7840_v26  ;;  %v15773_v32 = vld [vmem:[#allocation131_spill] sm:$0xff] }
 0x61e   :  { %v6437_v8 = vpop.f32.mrb[194].mxu0  ;;  %v5389_v55 = vadd.f32 %v15237_v50, %v15773_v32 }
 0x61f   :  { %v6438_v44 = vadd.f32 %v6437_v8, %v5381_v13  ;;  %v7492_v29 = vadd.f32 %v15029_v4, %v6435_v37  ;;  %v6439_v58 = vpop.f32.mrb[195].mxu0  ;;  %9491 = vmatprep.subr.bf16.mxu1 %v7993_v2  ;;  %v15774_v37 = vld [vmem:[#allocation132_spill] sm:$0xff]  ;;  %v15775_v8 = vld [vmem:[#allocation133_spill] sm:$0xff] }
 0x620   :  { %9492 = vmatpush3.bf16.msra.mxu1 %v15147_v63  ;;  %v5394_v17 = vadd.f32 %v15237_v50, %v15774_v37  ;;  %v5397_v30 = vadd.f32 %v15237_v50, %v15775_v8 }
 0x621   :  { %v7495_v19 = vadd.f32 %v15040_v59, %v6438_v44  ;;  %v7842_v4 = vmax.f32 %v7492_v29, 0.0 }
 0x623   :  { %v7843_v35 = vmax.f32 %v7495_v19, 0.0  ;;  %8339 = vmatmul.mubr.bf16.vlgmr.msra.gmra.mrb[24].mxu1 %v9196_v31 }
 0x624   :  { %v6442_v62 = vpop.f32.mrb[196].mxu0  ;;  %8378 = vmatprep.mubr.bf16.mxu1 %v9199_v36  ;;  %v15776_v36 = vld [vmem:[#allocation134_spill] sm:$0xff] }
 0x625   :  { %v15259_v21 = vpack.c.bf16 %v7843_v35, %v7842_v4  ;;  %v6443_v63 = vadd.f32 %v6442_v62, %v5386_v34  ;;  %v6444_v26 = vpop.f32.mrb[197].mxu0  ;;  %v5402_v4 = vadd.f32 %v15237_v50, %v15776_v36 }
 0x626   :  { %v6445_v46 = vpop.f32.mrb[198].mxu0 }
 0x627   :  { %v7500_v59 = vadd.f32 %v15021_v23, %v6443_v63  ;;  %v6446_v40 = vadd.f32 %v6445_v46, %v5389_v55  ;;  %v6447_v38 = vpop.f32.mrb[199].mxu0  ;;  %v15777_v63 = vld [vmem:[#allocation135_spill] sm:$0xff] }
 0x628   :  { %v5405_v26 = vadd.f32 %v15237_v50, %v15777_v63  ;;  %v15778_v38 = vld [vmem:[#allocation136_spill] sm:$0xff] }
 0x629   :  { %v7503_v9 = vadd.f32 %v15032_v11, %v6446_v40  ;;  %v7844_v13 = vmax.f32 %v7500_v59, 0.0 }
 0x62b   :  { %v7845_v28 = vmax.f32 %v7503_v9, 0.0  ;;  %v5410_v9 = vadd.f32 %v15237_v50, %v15778_v38  ;;  %v15783_v38 = vld [vmem:[#allocation141_spill] sm:$0xff] }
 0x62c   :  { %v6450_v2 = vpop.f32.mrb[200].mxu0 }
 0x62d   :  { %v15267_v6 = vpack.c.bf16 %v7845_v28, %v7844_v13  ;;  %v6451_v60 = vadd.f32 %v6450_v2, %v5394_v17  ;;  %v6452_v24 = vpop.f32.mrb[201].mxu0  ;;  %v15779_v2 = vld [vmem:[#allocation137_spill] sm:$0xff] }
 0x62e   :  { %v6453_v44 = vpop.f32.mrb[202].mxu0 }
 0x62f   :  { %v6454_v29 = vadd.f32 %v6453_v44, %v5397_v30  ;;  %v7508_v23 = vadd.f32 %v15073_v45, %v6451_v60  ;;  %v6455_v58 = vpop.f32.mrb[203].mxu0  ;;  %v5413_v60 = vadd.f32 %v15237_v50, %v15779_v2 }
 0x631   :  { %v7511_v11 = vadd.f32 %v15078_v47, %v6454_v29  ;;  %v7846_v31 = vmax.f32 %v7508_v23, 0.0  ;;  %v15780_v23 = vld [vmem:[#allocation138_spill] sm:$0xff] }
 0x632   :  { %v5418_v58 = vadd.f32 %v15237_v50, %v15780_v23 }
 0x633   :  { %v7847_v19 = vmax.f32 %v7511_v11, 0.0 }
 0x634   :  { %v6458_v35 = vpop.f32.mrb[204].mxu0 }
 0x635   :  { %v15275_v41 = vpack.c.bf16 %v7847_v19, %v7846_v31  ;;  %v6459_v34 = vadd.f32 %v6458_v35, %v5402_v4  ;;  %v6460_v62 = vpop.f32.mrb[205].mxu0  ;;  %v15781_v4 = vld [vmem:[#allocation139_spill] sm:$0xff] }
 0x636   :  { %v6461_v32 = vpop.f32.mrb[206].mxu0  ;;  %v5421_v35 = vadd.f32 %v15237_v50, %v15781_v4 }
 0x637   :  { %v7516_v55 = vadd.f32 %v15067_v57, %v6459_v34  ;;  %v6462_v45 = vadd.f32 %v6461_v32, %v5405_v26  ;;  %v6463_v46 = vpop.f32.mrb[207].mxu0 }
 0x639   :  { %v7519_v47 = vadd.f32 %v15075_v20, %v6462_v45  ;;  %v7848_v59 = vmax.f32 %v7516_v55, 0.0  ;;  %v15782_v55 = vld [vmem:[#allocation140_spill] sm:$0xff] }
 0x63a   :  { %v5426_v45 = vadd.f32 %v15237_v50, %v15782_v55 }
 0x63b   :  { %v7849_v40 = vmax.f32 %v7519_v47, 0.0 }
 0x63c   :  { %v6466_v13 = vpop.f32.mrb[208].mxu0 }
 0x63d   :  { %v15283_v28 = vpack.c.bf16 %v7849_v40, %v7848_v59  ;;  %v6467_v37 = vadd.f32 %v6466_v13, %v5410_v9  ;;  %v6468_v17 = vpop.f32.mrb[209].mxu0  ;;  %v5429_v9 = vadd.f32 %v15237_v50, %v15783_v38  ;;  %v15788_v38 = vld [vmem:[#allocation147_spill] sm:$0xff] }
 0x63e   :  { %v6469_v24 = vpop.f32.mrb[210].mxu0 }
 0x63f   :  { %v6470_v8 = vadd.f32 %v6469_v24, %v5413_v60  ;;  %v7524_v57 = vadd.f32 %v15106_v16, %v6467_v37  ;;  %v6471_v30 = vpop.f32.mrb[211].mxu0  ;;  %v15784_v24 = vld [vmem:[#allocation142_spill] sm:$0xff] }
 0x641   :  { %v7527_v20 = vadd.f32 %v15111_v12, %v6470_v8  ;;  %v7850_v44 = vmax.f32 %v7524_v57, 0.0  ;;  %v5434_v8 = vadd.f32 %v15237_v50, %v15784_v24 }
 0x643   :  { %v7851_v29 = vmax.f32 %v7527_v20, 0.0 }
 0x644   :  { %v6474_v11 = vpop.f32.mrb[212].mxu0 }
 0x645   :  { %v15291_v31 = vpack.c.bf16 %v7851_v29, %v7850_v44  ;;  %v6475_v19 = vadd.f32 %v6474_v11, %v5418_v58  ;;  %v6476_v36 = vpop.f32.mrb[213].mxu0  ;;  %v15785_v29 = vld [vmem:[#allocation143_spill] sm:$0xff] }
 0x646   :  { %v6477_v34 = vpop.f32.mrb[214].mxu0  ;;  %v5437_v23 = vadd.f32 %v15237_v50, %v15785_v29 }
 0x647   :  { %v7532_v62 = vadd.f32 %v15103_v49, %v6475_v19  ;;  %v6478_v16 = vadd.f32 %v6477_v34, %v5421_v35  ;;  %v6479_v63 = vpop.f32.mrb[215].mxu0  ;;  %v15786_v35 = vld [vmem:[#allocation144_spill] sm:$0xff] }
 0x648   :  { %v5442_v34 = vadd.f32 %v15237_v50, %v15786_v35 }
 0x649   :  { %v7535_v12 = vadd.f32 %v15108_v22, %v6478_v16  ;;  %v7852_v26 = vmax.f32 %v7532_v62, 0.0 }
 0x64b   :  { %v7853_v32 = vmax.f32 %v7535_v12, 0.0 }
 0x64c   :  { %v6482_v46 = vpop.f32.mrb[216].mxu0 }
 0x64d   :  { %v15299_v47 = vpack.c.bf16 %v7853_v32, %v7852_v26  ;;  %v6483_v59 = vadd.f32 %v6482_v46, %v5426_v45  ;;  %v6484_v40 = vpop.f32.mrb[217].mxu0  ;;  %v15787_v26 = vld [vmem:[#allocation146_spill] sm:$0xff] }
 0x64e   :  { %v6485_v13 = vpop.f32.mrb[218].mxu0  ;;  %v5445_v32 = vadd.f32 %v15237_v50, %v15787_v26 }
 0x64f   :  { %v6486_v37 = vadd.f32 %v6485_v13, %v5429_v9  ;;  %v7540_v49 = vadd.f32 %v15130_v56, %v6483_v59  ;;  %v6487_v17 = vpop.f32.mrb[219].mxu0  ;;  %v5450_v9 = vadd.f32 %v15237_v50, %v15788_v38 }
 0x651   :  { %v7543_v22 = vadd.f32 %v15135_v61, %v6486_v37  ;;  %v7854_v2 = vmax.f32 %v7540_v49, 0.0 }
 0x653   :  { %v7855_v60 = vmax.f32 %v7543_v22, 0.0  ;;  %v15789_v22 = vld [vmem:[#allocation148_spill] sm:$0xff] }
 0x654   :  { %v6490_v57 = vpop.f32.mrb[220].mxu0 }
 0x655   :  { %v15307_v30 = vpack.c.bf16 %v7855_v60, %v7854_v2  ;;  %v6491_v20 = vadd.f32 %v6490_v57, %v5434_v8  ;;  %v6492_v44 = vpop.f32.mrb[221].mxu0  ;;  %v5453_v2 = vadd.f32 %v15237_v50, %v15789_v22  ;;  %v15794_v22 = vld [vmem:[#allocation158_spill] sm:$0xff] }
 0x656   :  { %v6493_v58 = vpop.f32.mrb[222].mxu0  ;;  %v15790_v44 = vld [vmem:[#allocation150_spill] sm:$0xff] }
 0x657   :  { %v7548_v11 = vadd.f32 %v15127_v0, %v6491_v20  ;;  %v6494_v56 = vadd.f32 %v6493_v58, %v5437_v23  ;;  %v6495_v19 = vpop.f32.mrb[223].mxu0  ;;  %v5458_v29 = vadd.f32 %v15237_v50, %v15790_v44 }
 0x659   :  { %v7551_v61 = vadd.f32 %v15132_v5, %v6494_v56  ;;  %v7856_v36 = vmax.f32 %v7548_v11, 0.0  ;;  %v15791_v56 = vld [vmem:[#allocation152_spill] sm:$0xff] }
 0x65a   :  { %v5461_v19 = vadd.f32 %v15237_v50, %v15791_v56 }
 0x65b   :  { %v7857_v4 = vmax.f32 %v7551_v61, 0.0 }
 0x65c   :  { %v6498_v62 = vpop.f32.mrb[224].mxu0 }
 0x65d   :  { %v15315_v16 = vpack.c.bf16 %v7857_v4, %v7856_v36  ;;  %v6499_v63 = vadd.f32 %v6498_v62, %v5442_v34  ;;  %v6500_v12 = vpop.f32.mrb[225].mxu0  ;;  %v15792_v62 = vld [vmem:[#allocation154_spill] sm:$0xff] }
 0x65e   :  { %v6501_v55 = vpop.f32.mrb[226].mxu0 }
 0x65f   :  { %v6502_v45 = vadd.f32 %v6501_v55, %v5445_v32  ;;  %v7556_v0 = vadd.f32 %v15154_v10, %v6499_v63  ;;  %v6503_v46 = vpop.f32.mrb[227].mxu0  ;;  %v5466_v63 = vadd.f32 %v15237_v50, %v15792_v62 }
 0x661   :  { %v7559_v5 = vadd.f32 %v15159_v53, %v6502_v45  ;;  %v7858_v59 = vmax.f32 %v7556_v0, 0.0  ;;  %v15793_v45 = vld [vmem:[#allocation156_spill] sm:$0xff] }
 0x662   :  { %v5469_v0 = vadd.f32 %v15237_v50, %v15793_v45 }
 0x663   :  { %v7859_v40 = vmax.f32 %v7559_v5, 0.0 }
 0x664   :  { %v6506_v13 = vpop.f32.mrb[228].mxu0 }
 0x665   :  { %v8002_v37 = vpack.c.bf16 %v7859_v40, %v7858_v59  ;;  %v6507_v49 = vadd.f32 %v6506_v13, %v5450_v9  ;;  %v6508_v17 = vpop.f32.mrb[229].mxu0 }
 0x666   :  { %v6509_v60 = vpop.f32.mrb[230].mxu0 }
 0x667   :  { %v7564_v24 = vadd.f32 %v15151_v33, %v6507_v49  ;;  %v6510_v8 = vadd.f32 %v6509_v60, %v5453_v2  ;;  %v6511_v10 = vpop.f32.mrb[231].mxu0  ;;  %9499 = vmatprep.subr.bf16.mxu1 %v8002_v37  ;;  %v5474_v2 = vadd.f32 %v15237_v50, %v15794_v22 }
 0x668   :  { %9500 = vmatpush3.bf16.msra.mxu1 %v15259_v21 }
 0x669   :  { %v7567_v53 = vadd.f32 %v15156_v51, %v6510_v8  ;;  %v7860_v57 = vmax.f32 %v7564_v24, 0.0  ;;  %v15795_v8 = vld [vmem:[#allocation160_spill] sm:$0xff] }
 0x66a   :  { %v5477_v10 = vadd.f32 %v15237_v50, %v15795_v8  ;;  %v11424_v8 = vld [vmem:[%s15411_s4 + $0x28] sm:$0xff]  }
 0x66b   :  { %v7861_v20 = vmax.f32 %v7567_v53, 0.0 }
 0x66c   :  { %v6514_v23 = vpop.f32.mrb[232].mxu0 }
 0x66d   :  { %v6515_v58 = vadd.f32 %v6514_v23, %v5458_v29  ;;  %v6516_v11 = vpop.f32.mrb[233].mxu0  ;;  %v8003_v61 = vpack.c.bf16 %v7861_v20, %v7860_v57  ;;  %v15796_v23 = vld [vmem:[#allocation162_spill] sm:$0xff] }
 0x66e   :  { %v6517_v33 = vpop.f32.mrb[234].mxu0 }
 0x66f   :  { %v6518_v36 = vadd.f32 %v6517_v33, %v5461_v19  ;;  %v7572_v4 = vadd.f32 %v15175_v43, %v6515_v58  ;;  %v6519_v35 = vpop.f32.mrb[235].mxu0  ;;  %9501 = vmatprep.subr.bf16.mxu1 %v8003_v61  ;;  %v5482_v58 = vadd.f32 %v15237_v50, %v15796_v23  ;;  %v15797_v33 = vld [vmem:[#allocation164_spill] sm:$0xff] }
 0x670   :  { %9502 = vmatpush3.bf16.msra.mxu1 %v15267_v6 }
 0x671   :  { %v7575_v51 = vadd.f32 %v15181_v14, %v6518_v36  ;;  %v7862_v21 = vmax.f32 %v7572_v4, 0.0  ;;  %v5485_v36 = vadd.f32 %v15237_v50, %v15797_v33  ;;  %v9200_v33 = vld [vmem:[%s15412_s5] ss:$0 sm:$0xff] }
 0x673   :  { %v7863_v34 = vmax.f32 %v7575_v51, 0.0 }
 0x674   :  { %v6522_v12 = vpop.f32.mrb[236].mxu0 }
 0x675   :  { %v8004_v26 = vpack.c.bf16 %v7863_v34, %v7862_v21  ;;  %v6523_v32 = vadd.f32 %v6522_v12, %v5466_v63  ;;  %v6524_v55 = vpop.f32.mrb[237].mxu0  ;;  %v15798_v34 = vld [vmem:[#allocation166_spill] sm:$0xff] }
 0x676   :  { %v6525_v46 = vpop.f32.mrb[238].mxu0  ;;  %v9471_v43 = vpop.f32.mrb[20].mxu1  ;;  %v5490_v62 = vadd.f32 %v15237_v50, %v15798_v34 }
 0x677   :  { %v7580_v5 = vadd.f32 %v15172_v42, %v6523_v32  ;;  %v6526_v59 = vadd.f32 %v6525_v46, %v5469_v0  ;;  %v6527_v6 = vpop.f32.mrb[239].mxu0  ;;  %9503 = vmatprep.subr.bf16.mxu1 %v8004_v26  ;;  %v9472_v14 = vpop.f32.mrb[21].mxu1  ;;  %v15799_v32 = vld [vmem:[#allocation168_spill] sm:$0xff] }
 0x678   :  { %9504 = vmatpush3.bf16.msra.mxu1 %v15275_v41  ;;  %v9473_v40 = vadd.f32 %v9472_v14, %v9471_v43  ;;  %v9474_v38 = vpop.f32.mrb[22].mxu1  ;;  %v5493_v55 = vadd.f32 %v15237_v50, %v15799_v32 }
 0x679   :  { %v7583_v9 = vadd.f32 %v15178_v7, %v6526_v59  ;;  %v9475_v13 = vpop.f32.mrb[23].mxu1  ;;  %v7864_v49 = vmax.f32 %v7580_v5, 0.0  ;;  %v15800_v59 = vld [vmem:[#allocation170_spill] sm:$0xff] }
 0x67a   :  { %v15343_v37 = vadd.f32 %v9473_v40, %v15246_v18  ;;  %v5498_v6 = vadd.f32 %v15237_v50, %v15800_v59 }
 0x67b   :  { %v7865_v17 = vmax.f32 %v7583_v9, 0.0  ;;  %v15801_v9 = vld [vmem:[#allocation172_spill] sm:$0xff] }
 0x67c   :  { %v6530_v42 = vpop.f32.mrb[240].mxu0  ;;  %v5501_v13 = vadd.f32 %v15237_v50, %v15801_v9  ;;  %v11432_v50 = vmov 0.0  }
 0x67d   :  { %v6531_v60 = vadd.f32 %v6530_v42, %v5474_v2  ;;  %v6532_v24 = vpop.f32.mrb[241].mxu0  ;;  %v8005_v41 = vpack.c.bf16 %v7865_v17, %v7864_v49 }
 0x67e   :  { %v6533_v53 = vpop.f32.mrb[242].mxu0  ;;  %v9198_v24 = vcombine.low %v15252_v48, %v15252_v48  ;;  %v11421_v48 = vld [vmem:[%s15411_s4 + $0x10] sm:$0xff]  }
 0x67f   :  { %v6534_v57 = vadd.f32 %v6533_v53, %v5477_v10  ;;  %v7588_v7 = vadd.f32 %v15197_v25, %v6531_v60  ;;  %v6535_v20 = vpop.f32.mrb[243].mxu0  ;;  %9505 = vmatprep.subr.bf16.mxu1 %v8005_v41  ;;  %v11425_v41 = vld [vmem:[%s15411_s4 + $0x30] sm:$0xff]  }
 0x680   :  { %9506 = vmatpush3.bf16.msra.mxu1 %v15283_v28 }
 0x681   :  { %v7591_v18 = vadd.f32 %v15203_v3, %v6534_v57  ;;  %v7866_v44 = vmax.f32 %v7588_v7, 0.0 }
 0x683   :  { %v7867_v29 = vmax.f32 %v7591_v18, 0.0 }
 0x684   :  { %v6538_v11 = vpop.f32.mrb[244].mxu0 }
 0x685   :  { %v8006_v56 = vpack.c.bf16 %v7867_v29, %v7866_v44  ;;  %v6539_v19 = vadd.f32 %v6538_v11, %v5482_v58  ;;  %v6540_v61 = vpop.f32.mrb[245].mxu0  ;;  %v11426_v44 = vld [vmem:[%s15411_s4 + $0x38] sm:$0xff]  }
 0x686   :  { %v6541_v4 = vpop.f32.mrb[246].mxu0 }
 0x687   :  { %v7596_v25 = vadd.f32 %v15194_v15, %v6539_v19  ;;  %v6542_v35 = vadd.f32 %v6541_v4, %v5485_v36  ;;  %v6543_v51 = vpop.f32.mrb[247].mxu0  ;;  %9507 = vmatprep.subr.bf16.mxu1 %v8006_v56 }
 0x688   :  { %9508 = vmatpush3.bf16.msra.mxu1 %v15291_v31 }
 0x689   :  { %v7599_v3 = vadd.f32 %v15200_v39, %v6542_v35  ;;  %v7868_v28 = vmax.f32 %v7596_v25, 0.0 }
 0x68b   :  { %v7869_v21 = vmax.f32 %v7599_v3, 0.0 }
 0x68c   :  { %v6546_v63 = vpop.f32.mrb[248].mxu0 }
 0x68d   :  { %v6547_v12 = vadd.f32 %v6546_v63, %v5490_v62  ;;  %v6548_v26 = vpop.f32.mrb[249].mxu0  ;;  %v8007_v45 = vpack.c.bf16 %v7869_v21, %v7868_v28 }
 0x68e   :  { %v6549_v15 = vpop.f32.mrb[250].mxu0 }
 0x68f   :  { %v7604_v0 = vadd.f32 %v15213_v52, %v6547_v12  ;;  %v6550_v46 = vadd.f32 %v6549_v15, %v5493_v55  ;;  %v6551_v43 = vpop.f32.mrb[251].mxu0  ;;  %9509 = vmatprep.subr.bf16.mxu1 %v8007_v45 }
 0x690   :  { %9510 = vmatpush3.bf16.msra.mxu1 %v15299_v47 }
 0x691   :  { %v7607_v39 = vadd.f32 %v15218_v1, %v6550_v46  ;;  %v7870_v31 = vmax.f32 %v7604_v0, 0.0 }
 0x693   :  { %v7871_v5 = vmax.f32 %v7607_v39, 0.0 }
 0x694   :  { %v6554_v14 = vpop.f32.mrb[252].mxu0 }
 0x695   :  { %v6555_v40 = vadd.f32 %v6554_v14, %v5498_v6  ;;  %v6556_v38 = vpop.f32.mrb[253].mxu0  ;;  %v8008_v49 = vpack.c.bf16 %v7871_v5, %v7870_v31 }
 0x696   :  { %v6557_v52 = vpop.f32.mrb[254].mxu0 }
 0x697   :  { %v7612_v17 = vadd.f32 %v15210_v54, %v6555_v40  ;;  %v6558_v22 = vadd.f32 %v6557_v52, %v5501_v13  ;;  %v6559_v2 = vpop.f32.mrb[255].mxu0  ;;  %9511 = vmatprep.subr.bf16.mxu1 %v8008_v49  ;;  %v11419_v54 = vld [vmem:[%s15411_s4] sm:$0xff]  }
 0x698   :  { %9512 = vmatpush3.bf16.msra.mxu1 %v15307_v30  ;;  %v11422_v30 = vld [vmem:[%s15411_s4 + $0x18] sm:$0xff]  }
 0x699   :  { %v7615_v1 = vadd.f32 %v15216_v27, %v6558_v22  ;;  %v7872_v47 = vmax.f32 %v7612_v17, 0.0  ;;  %v11420_v27 = vld [vmem:[%s15411_s4 + $0x8] sm:$0xff]  }
 0x69b   :  { %v7873_v42 = vmax.f32 %v7615_v1, 0.0 }
 0x69d   :  { %v8009_v60 = vpack.c.bf16 %v7873_v42, %v7872_v47 }
 0x69f   :  { %9513 = vmatprep.subr.bf16.mxu1 %v8009_v60 }
 0x6a0   :  { %9514 = vmatpush3.bf16.msra.mxu1 %v15315_v16  ;;  %v11423_v16 = vld [vmem:[%s15411_s4 + $0x20] sm:$0xff]  }
 0x6a1   :  { %9802 = vmatprep.subr.bf16.mxu1 %v11432_v50 }
 0x6a3   :  { %8379 = vmatmul.mubr.bf16.vlgmr.msra.gmra.mrb[28].mxu1 %v9198_v24 }
 0x6a4   :  { %9803 = vmatpush3.bf16.msra.mxu1 %v11419_v54  ;;  %9818 = vmatprep.mubr.msk.bf16.mxu1 %vm11433_vm0, %v11432_v50 }
 0x6a5   :  { %9804 = vmatprep.subr.bf16.mxu1 %v11432_v50 }
 0x6a8   :  { %9805 = vmatpush3.bf16.msra.mxu1 %v11420_v27 }
 0x6a9   :  { %9806 = vmatprep.subr.bf16.mxu1 %v11432_v50 }
 0x6ac   :  { %9807 = vmatpush3.bf16.msra.mxu1 %v11421_v48 }
 0x6ad   :  { %9808 = vmatprep.subr.bf16.mxu1 %v11432_v50 }
 0x6b0   :  { %9809 = vmatpush3.bf16.msra.mxu1 %v11422_v30 }
 0x6b1   :  { %9810 = vmatprep.subr.bf16.mxu1 %v11432_v50 }
 0x6b4   :  { %9811 = vmatpush3.bf16.msra.mxu1 %v11423_v16 }
 0x6b5   :  { %9812 = vmatprep.subr.bf16.mxu1 %v11432_v50 }
 0x6b8   :  { %9813 = vmatpush3.bf16.msra.mxu1 %v11424_v8 }
 0x6b9   :  { %9814 = vmatprep.subr.bf16.mxu1 %v11432_v50 }
 0x6bc   :  { %9815 = vmatpush3.bf16.msra.mxu1 %v11425_v41 }
 0x6bd   :  { %9816 = vmatprep.subr.bf16.mxu1 %v11432_v50 }
 0x6c0   :  { %9817 = vmatpush3.bf16.msra.mxu1 %v11426_v44 }
 0x6f6   :  { %v9493_v10 = vpop.f32.mrb[24].mxu1 }
 0x6f7   :  { %v9494_v53 = vpop.f32.mrb[25].mxu1 }
 0x6f8   :  { %v9495_v57 = vadd.f32 %v9494_v53, %v9493_v10  ;;  %v9496_v7 = vpop.f32.mrb[26].mxu1 }
 0x6f9   :  { %v9497_v20 = vpop.f32.mrb[27].mxu1 }
 0x6fa   :  { %v8341_v18 = vadd.f32 %v9495_v57, %v15343_v37 }
 0x776   :  { %v9515_v29 = vpop.f32.mrb[28].mxu1 }
 0x777   :  { %v9516_v23 = vpop.f32.mrb[29].mxu1 }
 0x778   :  { %v9517_v58 = vadd.f32 %v9516_v23, %v9515_v29  ;;  %v9518_v11 = vpop.f32.mrb[30].mxu1 }
 0x779   :  { %v9519_v56 = vpop.f32.mrb[31].mxu1 }
 0x77a   :  { %v8381_v19 = vadd.f32 %v9517_v58, %v8341_v18 }
 0x77c   :  { %v8386_v61 = vpack.c.bf16 %v8381_v19, %v8381_v19 }
 0x77e   :  { %9819 = vmatmul.mubr.bf16.vlgmr.msra.gmra.mrb[32].mxu1 %v8386_v61 }
 0x851   :  { %v8492_v37 = vpop.f32.mrb[32].mxu1 }
 0x852   :  { %v8493_v36 = vadd.f32 %v9200_v33, %v8492_v37  ;;  %v9820_v4 = vpop.f32.mrb[33].mxu1 }
 0x853   :  { %v8495_v25 = vpop.f32.mrb[34].mxu1 }
 0x854   :  { %8498 = vst [vmem:[%s15413_s6] sm:$0xff] %v8493_v36  ;;  %v9821_v35 = vpop.f32.mrb[35].mxu1 }

</bundles_post_ra>
